<compile_context>
chip_gen: v7x
topology: tpu7x:2x2x1
jax: 0.10.0
libtpu: 0.0.40
codegen_flags: <defaults>
</compile_context>

<pallas_src>
import functools
import math

import jax
import jax.numpy as jnp
from jax import lax
from jax.experimental import pallas as pl
from jax.experimental.pallas import tpu as pltpu


def _gelu_tanh(x):
    # GELU(approximate='tanh'), matches torch.nn.GELU(approximate='tanh')
    c = math.sqrt(2.0 / math.pi)
    return 0.5 * x * (1.0 + jnp.tanh(c * (x + 0.044715 * x * x * x)))


# --------------------------------------------------------------------------------
# Pass 1: AdaLN-modulated LayerNorm, Q/K/V (+ per-head RMSNorm), and the MLP branch
# pre-contracted with proj_out's MLP rows.  Grid = (B, n_q_tiles, n_mlp_chunks).
# --------------------------------------------------------------------------------
def _pass1_kernel(
    x_ref, shift_ref, scale_ref,
    qw_ref, qb_ref, kw_ref, kb_ref, vw_ref, vb_ref,
    rmsq_ref, rmsk_ref, mdh_ref, mhd_ref,
    mlpw_ref, mlpb_ref, owm_ref,
    q_ref, k_ref, v_ref, mlpc_ref,
    nh_s, acc_s,
    *, head_dim, eps_ln, eps_rms,
):
    j = pl.program_id(2)
    nj = pl.num_programs(2)

    @pl.when(j == 0)
    def _():
        # ----- LayerNorm (no affine) + AdaLN modulation, f32 statistics -----
        x = x_ref[0].astype(jnp.float32)                       # (TQ, D)
        mean = jnp.mean(x, axis=-1, keepdims=True)
        var = jnp.mean((x - mean) ** 2, axis=-1, keepdims=True)
        xn = (x - mean) * lax.rsqrt(var + eps_ln)
        nh = xn * (1.0 + scale_ref[0]) + shift_ref[0]          # (TQ, D) f32
        nh_bf = nh.astype(jnp.bfloat16)
        nh_s[...] = nh_bf

        mdh = mdh_ref[...]          # (D, HPAD) head-membership mask (f32)
        mhd = mhd_ref[...]          # (HPAD, D)
        inv_dh = 1.0 / float(head_dim)

        def proj(w_ref, b_ref):
            return jnp.dot(nh_bf, w_ref[...],
                           preferred_element_type=jnp.float32) + b_ref[...]

        def head_rms(t, w_full):
            # Per-head mean-square via two MXU-friendly mask matmuls (no narrow
            # lane slices, no reshapes).  Padded mask columns see ms=0 and are
            # zeroed again by the second matmul.
            ms = jnp.dot(t * t, mdh, preferred_element_type=jnp.float32) * inv_dh
            inv = lax.rsqrt(ms + eps_rms)                      # (TQ, HPAD)
            inv_full = jnp.dot(inv, mhd, preferred_element_type=jnp.float32)
            return t * inv_full * w_full

        q_ref[0] = head_rms(proj(qw_ref, qb_ref), rmsq_ref[...]).astype(q_ref.dtype)
        k_ref[0] = head_rms(proj(kw_ref, kb_ref), rmsk_ref[...]).astype(k_ref.dtype)
        v_ref[0] = proj(vw_ref, vb_ref).astype(v_ref.dtype)
        acc_s[...] = jnp.zeros_like(acc_s)

    # ----- MLP chunk j: gelu(norm_h @ W1[:, chunk]) @ W2[chunk, :] -> accumulate -----
    h = jnp.dot(nh_s[...], mlpw_ref[...],
                preferred_element_type=jnp.float32) + mlpb_ref[...]     # (TQ, TN) f32
    h = _gelu_tanh(h)
    acc_s[...] += jnp.dot(h.astype(jnp.bfloat16), owm_ref[...],
                          preferred_element_type=jnp.float32)           # (TQ, D)

    @pl.when(j == nj - 1)
    def _():
        mlpc_ref[0] = acc_s[...].astype(mlpc_ref.dtype)


# --------------------------------------------------------------------------------
# Pass 2: flash attention per head + proj_out(attn rows) + gate + residual.
# Grid = (B, n_q_tiles, heads, n_kv_tiles).  Heads and KV tiles are reduction axes.
# --------------------------------------------------------------------------------
def _pass2_kernel(
    q_ref, k_ref, v_ref, x_ref, mlpc_ref, gate_ref, owa_ref, ob_ref,
    o_ref,
    m_s, l_s, acc_s, oacc_s,
):
    h = pl.program_id(2)
    kk = pl.program_id(3)
    nh = pl.num_programs(2)
    nk = pl.num_programs(3)

    @pl.when(jnp.logical_and(h == 0, kk == 0))
    def _():
        oacc_s[...] = jnp.zeros_like(oacc_s)

    @pl.when(kk == 0)
    def _():
        m_s[...] = jnp.full_like(m_s, -jnp.inf)
        l_s[...] = jnp.zeros_like(l_s)
        acc_s[...] = jnp.zeros_like(acc_s)

    qh = q_ref[0]     # (TQ, Dh) bf16, RMS-normed, already scaled by 1/sqrt(Dh)
    kh = k_ref[0]     # (TK, Dh) bf16, RMS-normed
    vh = v_ref[0]     # (TK, Dh) bf16

    s = lax.dot_general(qh, kh, (((1,), (1,)), ((), ())),
                        preferred_element_type=jnp.float32)     # (TQ, TK) f32
    m_prev = m_s[...]
    m_new = jnp.maximum(m_prev, jnp.max(s, axis=-1, keepdims=True))
    alpha = jnp.exp(m_prev - m_new)
    p = jnp.exp(s - m_new)
    l_s[...] = alpha * l_s[...] + jnp.sum(p, axis=-1, keepdims=True)
    acc_s[...] = alpha * acc_s[...] + jnp.dot(p.astype(jnp.bfloat16), vh,
                                              preferred_element_type=jnp.float32)
    m_s[...] = m_new

    @pl.when(kk == nk - 1)
    def _():
        # Finalize this head and fold it straight into proj_out's attention rows.
        attn_h = acc_s[...] * pl.reciprocal(l_s[...], approx=True)      # (TQ, Dh)
        oacc_s[...] += jnp.dot(attn_h.astype(jnp.bfloat16), owa_ref[0],
                               preferred_element_type=jnp.float32)      # (TQ, D)

    @pl.when(jnp.logical_and(h == nh - 1, kk == nk - 1))
    def _():
        proj = oacc_s[...] + mlpc_ref[0] + ob_ref[...]
        o_ref[0] = (x_ref[0] + gate_ref[0] * proj).astype(o_ref.dtype)


# --------------------------------------------------------------------------------
# Wrapper
# --------------------------------------------------------------------------------
def flux_single_transformer_block(hidden_states, temb, params, *, heads, head_dim,
                                  q_tile=128, kv_tile=128, mlp_tile=512):
    B, S, D = hidden_states.shape
    mlp_hidden = params["mlp_w"].shape[1]
    assert D == heads * head_dim
    assert S % q_tile == 0 and S % kv_tile == 0 and mlp_hidden % mlp_tile == 0
    # Per-head Q/K/V blocks are lane-dim slices of (B, S, D); real Flux uses 128.
    assert head_dim % 128 == 0, "head_dim must be a multiple of 128"

    f32, bf16 = jnp.float32, jnp.bfloat16

    # ---- AdaLayerNormZeroSingle linear hoisted to XLA (M=1 matmul; keeps the
    #      (D, 3D) weight out of VMEM entirely) ----
    silu = temb * jax.nn.sigmoid(temb)
    emb = jnp.dot(silu, params["ada_w"]) + params["ada_b"]               # (B, 3D)
    shift, scale, gate = jnp.split(emb, 3, axis=-1)
    shift = shift[:, None, :].astype(f32)                                # (B, 1, D)
    scale = scale[:, None, :].astype(f32)
    gate = gate[:, None, :].astype(f32)

    # ---- weights in bf16 (f32 accumulation in-kernel); biases stay f32 ----
    qw, kw, vw = (params[n].astype(bf16) for n in ("q_w", "k_w", "v_w"))
    qb, kb, vb = (params[n].astype(f32) for n in ("q_b", "k_b", "v_b"))
    mlp_w = params["mlp_w"].astype(bf16)
    mlp_b = params["mlp_b"].astype(f32)
    out_w = params["out_w"]
    owa = out_w[:D, :].reshape(heads, head_dim, D).astype(bf16)   # attn rows, head-major
    owm = out_w[D:, :].astype(bf16)                               # mlp rows (streamed)
    out_b = params["out_b"].astype(f32)

    # RMSNorm weights tiled head-major to (1, D); fold 1/sqrt(head_dim) into q's.
    rmsq_full = (jnp.tile(params["rmsq_w"], (1, heads)) *
                 (1.0 / math.sqrt(head_dim))).astype(f32)
    rmsk_full = jnp.tile(params["rmsk_w"], (1, heads)).astype(f32)

    # Head-membership masks (lane-padded to >=128) for per-head RMS statistics.
    hpad = max(128, ((heads + 127) // 128) * 128)
    head_ids = jnp.arange(D, dtype=jnp.int32) // head_dim
    mask_dh = (head_ids[:, None] ==
               jnp.arange(hpad, dtype=jnp.int32)[None, :]).astype(f32)   # (D, HPAD)
    mask_hd = mask_dh.T                                                  # (HPAD, D)

    ni = S // q_tile
    nj = mlp_hidden // mlp_tile
    nk = S // kv_tile

    # ---------------------------- Pass 1 ----------------------------
    p1 = pl.pallas_call(
        functools.partial(_pass1_kernel, head_dim=head_dim, eps_ln=1e-6, eps_rms=1e-6),
        out_shape=(
            jax.ShapeDtypeStruct((B, S, D), bf16),    # q (rms-normed, pre-scaled)
            jax.ShapeDtypeStruct((B, S, D), bf16),    # k (rms-normed)
            jax.ShapeDtypeStruct((B, S, D), bf16),    # v
            jax.ShapeDtypeStruct((B, S, D), f32),     # gelu(mlp) @ out_w[D:, :]
        ),
        grid_spec=pltpu.PrefetchScalarGridSpec(
            num_scalar_prefetch=0,
            grid=(B, ni, nj),
            in_specs=[
                pl.BlockSpec((1, q_tile, D), lambda b, i, j: (b, i, 0)),   # hidden_states
                pl.BlockSpec((1, 1, D), lambda b, i, j: (b, 0, 0)),        # shift
                pl.BlockSpec((1, 1, D), lambda b, i, j: (b, 0, 0)),        # scale
                pl.BlockSpec((D, D), lambda b, i, j: (0, 0)),              # q_w
                pl.BlockSpec((1, D), lambda b, i, j: (0, 0)),              # q_b
                pl.BlockSpec((D, D), lambda b, i, j: (0, 0)),              # k_w
                pl.BlockSpec((1, D), lambda b, i, j: (0, 0)),              # k_b
                pl.BlockSpec((D, D), lambda b, i, j: (0, 0)),              # v_w
                pl.BlockSpec((1, D), lambda b, i, j: (0, 0)),              # v_b
                pl.BlockSpec((1, D), lambda b, i, j: (0, 0)),              # rmsq tiled
                pl.BlockSpec((1, D), lambda b, i, j: (0, 0)),              # rmsk tiled
                pl.BlockSpec((D, hpad), lambda b, i, j: (0, 0)),           # mask D->H
                pl.BlockSpec((hpad, D), lambda b, i, j: (0, 0)),           # mask H->D
                pl.BlockSpec((D, mlp_tile), lambda b, i, j: (0, j)),       # mlp_w chunk
                pl.BlockSpec((1, mlp_tile), lambda b, i, j: (0, j)),       # mlp_b chunk
                pl.BlockSpec((mlp_tile, D), lambda b, i, j: (j, 0)),       # out_w mlp rows chunk
            ],
            out_specs=[
                pl.BlockSpec((1, q_tile, D), lambda b, i, j: (b, i, 0)),
                pl.BlockSpec((1, q_tile, D), lambda b, i, j: (b, i, 0)),
                pl.BlockSpec((1, q_tile, D), lambda b, i, j: (b, i, 0)),
                pl.BlockSpec((1, q_tile, D), lambda b, i, j: (b, i, 0)),
            ],
            scratch_shapes=[
                pltpu.VMEM((q_tile, D), bf16),     # norm_h (reused across mlp chunks)
                pltpu.VMEM((q_tile, D), f32),      # mlp-contribution accumulator
            ],
        ),
        compiler_params=pltpu.CompilerParams(
            dimension_semantics=("parallel", "parallel", "arbitrary"),
            vmem_limit_bytes=64 * 1024 * 1024,
        ),
    )
    q_bsd, k_bsd, v_bsd, mlpc = p1(
        hidden_states, shift, scale, qw, qb, kw, kb, vw, vb,
        rmsq_full, rmsk_full, mask_dh, mask_hd, mlp_w, mlp_b, owm)

    # ---------------------------- Pass 2 ----------------------------
    p2 = pl.pallas_call(
        _pass2_kernel,
        out_shape=jax.ShapeDtypeStruct((B, S, D), hidden_states.dtype),
        grid_spec=pltpu.PrefetchScalarGridSpec(
            num_scalar_prefetch=0,
            grid=(B, ni, heads, nk),
            in_specs=[
                pl.BlockSpec((1, q_tile, head_dim), lambda b, i, h, k: (b, i, h)),   # q
                pl.BlockSpec((1, kv_tile, head_dim), lambda b, i, h, k: (b, k, h)),  # k
                pl.BlockSpec((1, kv_tile, head_dim), lambda b, i, h, k: (b, k, h)),  # v
                pl.BlockSpec((1, q_tile, D), lambda b, i, h, k: (b, i, 0)),          # residual
                pl.BlockSpec((1, q_tile, D), lambda b, i, h, k: (b, i, 0)),          # mlp contrib
                pl.BlockSpec((1, 1, D), lambda b, i, h, k: (b, 0, 0)),               # gate
                pl.BlockSpec((1, head_dim, D), lambda b, i, h, k: (h, 0, 0)),        # out_w head slice
                pl.BlockSpec((1, D), lambda b, i, h, k: (0, 0)),                     # out_b
            ],
            out_specs=pl.BlockSpec((1, q_tile, D), lambda b, i, h, k: (b, i, 0)),
            scratch_shapes=[
                pltpu.VMEM((q_tile, 1), f32),           # running max
                pltpu.VMEM((q_tile, 1), f32),           # running sum
                pltpu.VMEM((q_tile, head_dim), f32),    # per-head flash accumulator
                pltpu.VMEM((q_tile, D), f32),           # proj_out accumulator over heads
            ],
        ),
        compiler_params=pltpu.CompilerParams(
            dimension_semantics=("parallel", "parallel", "arbitrary", "arbitrary"),
            vmem_limit_bytes=64 * 1024 * 1024,
        ),
    )
    return p2(q_bsd, k_bsd, v_bsd, hidden_states, mlpc, gate, owa, out_b)


# --------------------------------------------------------------------------------
# Plain-JAX reference (PyTorch forward with image_rotary_emb=None).  Mirrors the
# kernel's mixed-precision policy (bf16 matmul inputs, f32 accumulation, f32
# norm/softmax statistics) so the comparison isolates kernel correctness.
# --------------------------------------------------------------------------------
def reference_forward(hidden, temb, params, *, heads, head_dim):
    f32, bf16 = jnp.float32, jnp.bfloat16
    B, S, D = hidden.shape

    def mm(a, w):
        return jnp.einsum("...d,dn->...n", a.astype(bf16), w.astype(bf16),
                          preferred_element_type=f32)

    silu = temb * jax.nn.sigmoid(temb)
    emb = silu @ params["ada_w"] + params["ada_b"]
    shift, scale, gate = jnp.split(emb, 3, axis=-1)

    mean = hidden.mean(-1, keepdims=True)
    var = ((hidden - mean) ** 2).mean(-1, keepdims=True)
    xn = (hidden - mean) / jnp.sqrt(var + 1e-6)
    norm_h = xn * (1.0 + scale[:, None]) + shift[:, None]

    q = mm(norm_h, params["q_w"]) + params["q_b"]
    k = mm(norm_h, params["k_w"]) + params["k_b"]
    v = mm(norm_h, params["v_w"]) + params["v_b"]

    def split_heads(t):
        return t.reshape(B, S, heads, head_dim).transpose(0, 2, 1, 3)

    q, k, v = map(split_heads, (q, k, v))
    q = q * lax.rsqrt(jnp.mean(q * q, -1, keepdims=True) + 1e-6) * params["rmsq_w"][0]
    k = k * lax.rsqrt(jnp.mean(k * k, -1, keepdims=True) + 1e-6) * params["rmsk_w"][0]
    # bf16 round-trip mirrors the q/k/v handoff between the two kernels
    q, k, v = (t.astype(bf16).astype(f32) for t in (q, k, v))

    scores = jnp.einsum("bhqd,bhkd->bhqk", q.astype(bf16), k.astype(bf16),
                        preferred_element_type=f32) / math.sqrt(head_dim)
    p = jax.nn.softmax(scores, axis=-1)
    attn = jnp.einsum("bhqk,bhkd->bhqd", p.astype(bf16), v.astype(bf16),
                      preferred_element_type=f32)
    attn = attn.transpose(0, 2, 1, 3).reshape(B, S, D)

    mlp = _gelu_tanh(mm(norm_h, params["mlp_w"]) + params["mlp_b"])
    proj = mm(attn, params["out_w"][:D]) + mm(mlp, params["out_w"][D:]) + params["out_b"]
    return hidden + gate[:, None] * proj


if __name__ == "__main__":
    # Small shapes consistent with the module (dim = heads * head_dim), but large
    # enough to exercise the tiling: 2 q-tiles, 2 kv-tiles, 4 mlp chunks, 4 heads.
    B, S = 2, 256
    heads, head_dim = 4, 128
    dim = heads * head_dim            # 512
    mlp_hidden = 4 * dim              # 2048

    key = jax.random.PRNGKey(0)
    ks = jax.random.split(key, 16)

    def init(k, shape, s=0.05):
        return s * jax.random.normal(k, shape, dtype=jnp.float32)

    # Weights stored pre-transposed: (in_features, out_features); biases as (1, out).
    params = {
        "ada_w": init(ks[0], (dim, 3 * dim)),
        "ada_b": init(ks[1], (1, 3 * dim)),
        "mlp_w": init(ks[2], (dim, mlp_hidden)),
        "mlp_b": init(ks[3], (1, mlp_hidden)),
        "q_w": init(ks[4], (dim, dim)),
        "q_b": init(ks[5], (1, dim)),
        "k_w": init(ks[6], (dim, dim)),
        "k_b": init(ks[7], (1, dim)),
        "v_w": init(ks[8], (dim, dim)),
        "v_b": init(ks[9], (1, dim)),
        "rmsq_w": jnp.ones((1, head_dim), jnp.float32),   # RMSNorm weight init = ones
        "rmsk_w": jnp.ones((1, head_dim), jnp.float32),
        "out_w": init(ks[10], (dim + mlp_hidden, dim)),
        "out_b": init(ks[11], (1, dim)),
    }

    hidden_states = jax.random.normal(ks[12], (B, S, dim), dtype=jnp.float32)
    temb = jax.random.normal(ks[13], (B, dim), dtype=jnp.float32)

    out = flux_single_transformer_block(hidden_states, temb, params,
                                        heads=heads, head_dim=head_dim)
    out = jax.block_until_ready(out)

    ref = jax.block_until_ready(
        reference_forward(hidden_states, temb, params, heads=heads, head_dim=head_dim))

    assert out.shape == (B, S, dim)
    assert bool(jnp.all(jnp.isfinite(out)))
    # Tolerance covers MXU accumulation order and the approximate reciprocal in
    # the softmax finalize; observed error is a few 1e-3.
    assert bool(jnp.allclose(out, ref, atol=3e-2, rtol=3e-2)), \
        float(jnp.max(jnp.abs(out - ref)))
    print("KERNEL_OK")
</pallas_src>

<mosaic_0001>
module attributes {stable_mosaic.version = 11 : i64} {
  func.func @_pass1_kernel(%arg0: i32, %arg1: i32, %arg2: i32, %arg3: memref<1x128x512xf32, #tpu.memory_space<vmem>>, %arg4: memref<1x1x512xf32, #tpu.memory_space<vmem>>, %arg5: memref<1x1x512xf32, #tpu.memory_space<vmem>>, %arg6: memref<512x512xbf16, #tpu.memory_space<vmem>>, %arg7: memref<1x512xf32, #tpu.memory_space<vmem>>, %arg8: memref<512x512xbf16, #tpu.memory_space<vmem>>, %arg9: memref<1x512xf32, #tpu.memory_space<vmem>>, %arg10: memref<512x512xbf16, #tpu.memory_space<vmem>>, %arg11: memref<1x512xf32, #tpu.memory_space<vmem>>, %arg12: memref<1x512xf32, #tpu.memory_space<vmem>>, %arg13: memref<1x512xf32, #tpu.memory_space<vmem>>, %arg14: memref<512x128xf32, #tpu.memory_space<vmem>>, %arg15: memref<128x512xf32, #tpu.memory_space<vmem>>, %arg16: memref<512x512xbf16, #tpu.memory_space<vmem>>, %arg17: memref<1x512xf32, #tpu.memory_space<vmem>>, %arg18: memref<512x512xbf16, #tpu.memory_space<vmem>>, %arg19: memref<1x128x512xbf16, #tpu.memory_space<vmem>>, %arg20: memref<1x128x512xbf16, #tpu.memory_space<vmem>>, %arg21: memref<1x128x512xbf16, #tpu.memory_space<vmem>>, %arg22: memref<1x128x512xf32, #tpu.memory_space<vmem>>, %arg23: memref<128x512xbf16, #tpu.memory_space<vmem>>, %arg24: memref<128x512xf32, #tpu.memory_space<vmem>>) attributes {dimension_semantics = [#tpu.dimension_semantics<parallel>, #tpu.dimension_semantics<parallel>, #tpu.dimension_semantics<arbitrary>], iteration_bounds = array<i64: 2, 2, 4>, scalar_prefetch = 0 : i64, scratch_operands = 2 : i64, tpu.core_type = #tpu.core_type<tc>, window_params = [{transform_indices = @transform_0, window_bounds = array<i64: 1, 128, 512>}, {transform_indices = @transform_1, window_bounds = array<i64: 1, 1, 512>}, {transform_indices = @transform_2, window_bounds = array<i64: 1, 1, 512>}, {pipeline_mode = #tpu.pipeline_mode<synchronous>, transform_indices = @transform_3, window_bounds = array<i64: 512, 512>}, {pipeline_mode = #tpu.pipeline_mode<synchronous>, transform_indices = @transform_4, window_bounds = array<i64: 1, 512>}, {pipeline_mode = #tpu.pipeline_mode<synchronous>, transform_indices = @transform_5, window_bounds = array<i64: 512, 512>}, {pipeline_mode = #tpu.pipeline_mode<synchronous>, transform_indices = @transform_6, window_bounds = array<i64: 1, 512>}, {pipeline_mode = #tpu.pipeline_mode<synchronous>, transform_indices = @transform_7, window_bounds = array<i64: 512, 512>}, {pipeline_mode = #tpu.pipeline_mode<synchronous>, transform_indices = @transform_8, window_bounds = array<i64: 1, 512>}, {pipeline_mode = #tpu.pipeline_mode<synchronous>, transform_indices = @transform_9, window_bounds = array<i64: 1, 512>}, {pipeline_mode = #tpu.pipeline_mode<synchronous>, transform_indices = @transform_10, window_bounds = array<i64: 1, 512>}, {pipeline_mode = #tpu.pipeline_mode<synchronous>, transform_indices = @transform_11, window_bounds = array<i64: 512, 128>}, {pipeline_mode = #tpu.pipeline_mode<synchronous>, transform_indices = @transform_12, window_bounds = array<i64: 128, 512>}, {transform_indices = @transform_13, window_bounds = array<i64: 512, 512>}, {transform_indices = @transform_14, window_bounds = array<i64: 1, 512>}, {transform_indices = @transform_15, window_bounds = array<i64: 512, 512>}, {transform_indices = @transform_16, window_bounds = array<i64: 1, 128, 512>}, {transform_indices = @transform_17, window_bounds = array<i64: 1, 128, 512>}, {transform_indices = @transform_18, window_bounds = array<i64: 1, 128, 512>}, {transform_indices = @transform_19, window_bounds = array<i64: 1, 128, 512>}]} {
    %c0_i32 = arith.constant 0 : i32
    %0 = arith.cmpi eq, %arg2, %c0_i32 : i32
    %1 = arith.extui %0 : i1 to i32
    %c0_i32_0 = arith.constant 0 : i32
    %2 = arith.cmpi ne, %1, %c0_i32_0 : i32
    scf.if %2 {
      %c0_18 = arith.constant 0 : index
      %c0_19 = arith.constant 0 : index
      %c0_20 = arith.constant 0 : index
      %31 = vector.load %arg3[%c0_18, %c0_19, %c0_20] : memref<1x128x512xf32, #tpu.memory_space<vmem>>, vector<1x128x512xf32>
      %32 = vector.shape_cast %31 : vector<1x128x512xf32> to vector<128x512xf32>
      %cst_21 = arith.constant dense<0.000000e+00> : vector<128xf32>
      %33 = vector.multi_reduction <add>, %32, %cst_21 [1] : vector<128x512xf32> to vector<128xf32>
      %34 = vector.shape_cast %33 : vector<128xf32> to vector<128x1xf32>
      %cst_22 = arith.constant 5.120000e+02 : f32
      %35 = vector.broadcast %cst_22 : f32 to vector<128x1xf32>
      %36 = arith.divf %34, %35 : vector<128x1xf32>
      %37 = vector.broadcast %36 : vector<128x1xf32> to vector<128x512xf32>
      %38 = arith.subf %32, %37 : vector<128x512xf32>
      %39 = arith.mulf %38, %38 : vector<128x512xf32>
      %cst_23 = arith.constant dense<0.000000e+00> : vector<128xf32>
      %40 = vector.multi_reduction <add>, %39, %cst_23 [1] : vector<128x512xf32> to vector<128xf32>
      %41 = vector.shape_cast %40 : vector<128xf32> to vector<128x1xf32>
      %cst_24 = arith.constant 5.120000e+02 : f32
      %42 = vector.broadcast %cst_24 : f32 to vector<128x1xf32>
      %43 = arith.divf %41, %42 : vector<128x1xf32>
      %44 = vector.broadcast %36 : vector<128x1xf32> to vector<128x512xf32>
      %45 = arith.subf %32, %44 : vector<128x512xf32>
      %cst_25 = arith.constant 9.99999997E-7 : f32
      %46 = vector.broadcast %cst_25 : f32 to vector<128x1xf32>
      %47 = arith.addf %43, %46 : vector<128x1xf32>
      %48 = math.rsqrt %47 : vector<128x1xf32>
      %49 = vector.broadcast %48 : vector<128x1xf32> to vector<128x512xf32>
      %50 = arith.mulf %45, %49 : vector<128x512xf32>
      %c0_26 = arith.constant 0 : index
      %c0_27 = arith.constant 0 : index
      %c0_28 = arith.constant 0 : index
      %51 = vector.load %arg5[%c0_26, %c0_27, %c0_28] : memref<1x1x512xf32, #tpu.memory_space<vmem>>, vector<1x1x512xf32>
      %52 = vector.shape_cast %51 : vector<1x1x512xf32> to vector<1x512xf32>
      %cst_29 = arith.constant 1.000000e+00 : f32
      %53 = vector.broadcast %cst_29 : f32 to vector<1x512xf32>
      %54 = arith.addf %53, %52 : vector<1x512xf32>
      %55 = vector.broadcast %54 : vector<1x512xf32> to vector<128x512xf32>
      %56 = arith.mulf %50, %55 : vector<128x512xf32>
      %c0_30 = arith.constant 0 : index
      %c0_31 = arith.constant 0 : index
      %c0_32 = arith.constant 0 : index
      %57 = vector.load %arg4[%c0_30, %c0_31, %c0_32] : memref<1x1x512xf32, #tpu.memory_space<vmem>>, vector<1x1x512xf32>
      %58 = vector.shape_cast %57 : vector<1x1x512xf32> to vector<1x512xf32>
      %59 = vector.broadcast %58 : vector<1x512xf32> to vector<128x512xf32>
      %60 = arith.addf %56, %59 : vector<128x512xf32>
      %61 = arith.truncf %60 : vector<128x512xf32> to vector<128x512xbf16>
      %c0_33 = arith.constant 0 : index
      %c0_34 = arith.constant 0 : index
      %62 = vector.load %arg23[%c0_33, %c0_34] : memref<128x512xbf16, #tpu.memory_space<vmem>>, vector<128x512xbf16>
      tpu.vector_store %arg23[%c0_33, %c0_34], %61 {strides = array<i32>} : memref<128x512xbf16, #tpu.memory_space<vmem>>, vector<128x512xbf16>,
      %c0_35 = arith.constant 0 : index
      %c0_36 = arith.constant 0 : index
      %63 = vector.load %arg14[%c0_35, %c0_36] : memref<512x128xf32, #tpu.memory_space<vmem>>, vector<512x128xf32>
      %c0_37 = arith.constant 0 : index
      %c0_38 = arith.constant 0 : index
      %64 = vector.load %arg15[%c0_37, %c0_38] : memref<128x512xf32, #tpu.memory_space<vmem>>, vector<128x512xf32>
      %c0_39 = arith.constant 0 : index
      %c0_40 = arith.constant 0 : index
      %65 = vector.load %arg6[%c0_39, %c0_40] : memref<512x512xbf16, #tpu.memory_space<vmem>>, vector<512x512xbf16>
      %cst_41 = arith.constant dense<0.000000e+00> : vector<128x512xf32>
      %66 = tpu.matmul %61, %65, %cst_41 {dimension_numbers = #tpu.dot_dimension_numbers<[1], [0], [0], [1], [0, 0, 1, 1], [], []>} : vector<128x512xbf16>, vector<512x512xbf16>, vector<128x512xf32> -> vector<128x512xf32>
      %c0_42 = arith.constant 0 : index
      %c0_43 = arith.constant 0 : index
      %67 = vector.load %arg7[%c0_42, %c0_43] : memref<1x512xf32, #tpu.memory_space<vmem>>, vector<1x512xf32>
      %68 = vector.broadcast %67 : vector<1x512xf32> to vector<128x512xf32>
      %69 = arith.addf %66, %68 : vector<128x512xf32>
      %c0_44 = arith.constant 0 : index
      %c0_45 = arith.constant 0 : index
      %70 = vector.load %arg12[%c0_44, %c0_45] : memref<1x512xf32, #tpu.memory_space<vmem>>, vector<1x512xf32>
      %71 = arith.mulf %69, %69 : vector<128x512xf32>
      %cst_46 = arith.constant dense<0.000000e+00> : vector<128x128xf32>
      %72 = tpu.matmul %71, %63, %cst_46 {dimension_numbers = #tpu.dot_dimension_numbers<[1], [0], [0], [1], [0, 0, 1, 1], [], []>} : vector<128x512xf32>, vector<512x128xf32>, vector<128x128xf32> -> vector<128x128xf32>
      %cst_47 = arith.constant 7.812500e-03 : f32
      %73 = vector.broadcast %cst_47 : f32 to vector<128x128xf32>
      %74 = arith.mulf %72, %73 : vector<128x128xf32>
      %cst_48 = arith.constant 9.99999997E-7 : f32
      %75 = vector.broadcast %cst_48 : f32 to vector<128x128xf32>
      %76 = arith.addf %74, %75 : vector<128x128xf32>
      %77 = math.rsqrt %76 : vector<128x128xf32>
      %cst_49 = arith.constant dense<0.000000e+00> : vector<128x512xf32>
      %78 = tpu.matmul %77, %64, %cst_49 {dimension_numbers = #tpu.dot_dimension_numbers<[1], [0], [0], [1], [0, 0, 1, 1], [], []>} : vector<128x128xf32>, vector<128x512xf32>, vector<128x512xf32> -> vector<128x512xf32>
      %79 = arith.mulf %69, %78 : vector<128x512xf32>
      %80 = vector.broadcast %70 : vector<1x512xf32> to vector<128x512xf32>
      %81 = arith.mulf %79, %80 : vector<128x512xf32>
      %82 = arith.truncf %81 : vector<128x512xf32> to vector<128x512xbf16>
      %c0_50 = arith.constant 0 : index
      %c0_51 = arith.constant 0 : index
      %c0_52 = arith.constant 0 : index
      %83 = vector.load %arg19[%c0_50, %c0_51, %c0_52] : memref<1x128x512xbf16, #tpu.memory_space<vmem>>, vector<1x128x512xbf16>
      %84 = vector.shape_cast %83 : vector<1x128x512xbf16> to vector<128x512xbf16>
      %85 = vector.shape_cast %82 : vector<128x512xbf16> to vector<1x128x512xbf16>
      tpu.vector_store %arg19[%c0_50, %c0_51, %c0_52], %85 {strides = array<i32>} : memref<1x128x512xbf16, #tpu.memory_space<vmem>>, vector<1x128x512xbf16>,
      %c0_53 = arith.constant 0 : index
      %c0_54 = arith.constant 0 : index
      %86 = vector.load %arg8[%c0_53, %c0_54] : memref<512x512xbf16, #tpu.memory_space<vmem>>, vector<512x512xbf16>
      %cst_55 = arith.constant dense<0.000000e+00> : vector<128x512xf32>
      %87 = tpu.matmul %61, %86, %cst_55 {dimension_numbers = #tpu.dot_dimension_numbers<[1], [0], [0], [1], [0, 0, 1, 1], [], []>} : vector<128x512xbf16>, vector<512x512xbf16>, vector<128x512xf32> -> vector<128x512xf32>
      %c0_56 = arith.constant 0 : index
      %c0_57 = arith.constant 0 : index
      %88 = vector.load %arg9[%c0_56, %c0_57] : memref<1x512xf32, #tpu.memory_space<vmem>>, vector<1x512xf32>
      %89 = vector.broadcast %88 : vector<1x512xf32> to vector<128x512xf32>
      %90 = arith.addf %87, %89 : vector<128x512xf32>
      %c0_58 = arith.constant 0 : index
      %c0_59 = arith.constant 0 : index
      %91 = vector.load %arg13[%c0_58, %c0_59] : memref<1x512xf32, #tpu.memory_space<vmem>>, vector<1x512xf32>
      %92 = arith.mulf %90, %90 : vector<128x512xf32>
      %cst_60 = arith.constant dense<0.000000e+00> : vector<128x128xf32>
      %93 = tpu.matmul %92, %63, %cst_60 {dimension_numbers = #tpu.dot_dimension_numbers<[1], [0], [0], [1], [0, 0, 1, 1], [], []>} : vector<128x512xf32>, vector<512x128xf32>, vector<128x128xf32> -> vector<128x128xf32>
      %cst_61 = arith.constant 7.812500e-03 : f32
      %94 = vector.broadcast %cst_61 : f32 to vector<128x128xf32>
      %95 = arith.mulf %93, %94 : vector<128x128xf32>
      %cst_62 = arith.constant 9.99999997E-7 : f32
      %96 = vector.broadcast %cst_62 : f32 to vector<128x128xf32>
      %97 = arith.addf %95, %96 : vector<128x128xf32>
      %98 = math.rsqrt %97 : vector<128x128xf32>
      %cst_63 = arith.constant dense<0.000000e+00> : vector<128x512xf32>
      %99 = tpu.matmul %98, %64, %cst_63 {dimension_numbers = #tpu.dot_dimension_numbers<[1], [0], [0], [1], [0, 0, 1, 1], [], []>} : vector<128x128xf32>, vector<128x512xf32>, vector<128x512xf32> -> vector<128x512xf32>
      %100 = arith.mulf %90, %99 : vector<128x512xf32>
      %101 = vector.broadcast %91 : vector<1x512xf32> to vector<128x512xf32>
      %102 = arith.mulf %100, %101 : vector<128x512xf32>
      %103 = arith.truncf %102 : vector<128x512xf32> to vector<128x512xbf16>
      %c0_64 = arith.constant 0 : index
      %c0_65 = arith.constant 0 : index
      %c0_66 = arith.constant 0 : index
      %104 = vector.load %arg20[%c0_64, %c0_65, %c0_66] : memref<1x128x512xbf16, #tpu.memory_space<vmem>>, vector<1x128x512xbf16>
      %105 = vector.shape_cast %104 : vector<1x128x512xbf16> to vector<128x512xbf16>
      %106 = vector.shape_cast %103 : vector<128x512xbf16> to vector<1x128x512xbf16>
      tpu.vector_store %arg20[%c0_64, %c0_65, %c0_66], %106 {strides = array<i32>} : memref<1x128x512xbf16, #tpu.memory_space<vmem>>, vector<1x128x512xbf16>,
      %c0_67 = arith.constant 0 : index
      %c0_68 = arith.constant 0 : index
      %107 = vector.load %arg10[%c0_67, %c0_68] : memref<512x512xbf16, #tpu.memory_space<vmem>>, vector<512x512xbf16>
      %cst_69 = arith.constant dense<0.000000e+00> : vector<128x512xf32>
      %108 = tpu.matmul %61, %107, %cst_69 {dimension_numbers = #tpu.dot_dimension_numbers<[1], [0], [0], [1], [0, 0, 1, 1], [], []>} : vector<128x512xbf16>, vector<512x512xbf16>, vector<128x512xf32> -> vector<128x512xf32>
      %c0_70 = arith.constant 0 : index
      %c0_71 = arith.constant 0 : index
      %109 = vector.load %arg11[%c0_70, %c0_71] : memref<1x512xf32, #tpu.memory_space<vmem>>, vector<1x512xf32>
      %110 = vector.broadcast %109 : vector<1x512xf32> to vector<128x512xf32>
      %111 = arith.addf %108, %110 : vector<128x512xf32>
      %112 = arith.truncf %111 : vector<128x512xf32> to vector<128x512xbf16>
      %c0_72 = arith.constant 0 : index
      %c0_73 = arith.constant 0 : index
      %c0_74 = arith.constant 0 : index
      %113 = vector.load %arg21[%c0_72, %c0_73, %c0_74] : memref<1x128x512xbf16, #tpu.memory_space<vmem>>, vector<1x128x512xbf16>
      %114 = vector.shape_cast %113 : vector<1x128x512xbf16> to vector<128x512xbf16>
      %115 = vector.shape_cast %112 : vector<128x512xbf16> to vector<1x128x512xbf16>
      tpu.vector_store %arg21[%c0_72, %c0_73, %c0_74], %115 {strides = array<i32>} : memref<1x128x512xbf16, #tpu.memory_space<vmem>>, vector<1x128x512xbf16>,
      %cst_75 = arith.constant 0.000000e+00 : f32
      %116 = vector.broadcast %cst_75 : f32 to vector<128x512xf32>
      %c0_76 = arith.constant 0 : index
      %c0_77 = arith.constant 0 : index
      %117 = vector.load %arg24[%c0_76, %c0_77] : memref<128x512xf32, #tpu.memory_space<vmem>>, vector<128x512xf32>
      tpu.vector_store %arg24[%c0_76, %c0_77], %116 {strides = array<i32>} : memref<128x512xf32, #tpu.memory_space<vmem>>, vector<128x512xf32>,
    } else {
    }
    %c0 = arith.constant 0 : index
    %c0_1 = arith.constant 0 : index
    %3 = vector.load %arg23[%c0, %c0_1] : memref<128x512xbf16, #tpu.memory_space<vmem>>, vector<128x512xbf16>
    %c0_2 = arith.constant 0 : index
    %c0_3 = arith.constant 0 : index
    %4 = vector.load %arg16[%c0_2, %c0_3] : memref<512x512xbf16, #tpu.memory_space<vmem>>, vector<512x512xbf16>
    %cst = arith.constant dense<0.000000e+00> : vector<128x512xf32>
    %5 = tpu.matmul %3, %4, %cst {dimension_numbers = #tpu.dot_dimension_numbers<[1], [0], [0], [1], [0, 0, 1, 1], [], []>} : vector<128x512xbf16>, vector<512x512xbf16>, vector<128x512xf32> -> vector<128x512xf32>
    %c0_4 = arith.constant 0 : index
    %c0_5 = arith.constant 0 : index
    %6 = vector.load %arg17[%c0_4, %c0_5] : memref<1x512xf32, #tpu.memory_space<vmem>>, vector<1x512xf32>
    %7 = vector.broadcast %6 : vector<1x512xf32> to vector<128x512xf32>
    %8 = arith.addf %5, %7 : vector<128x512xf32>
    %cst_6 = arith.constant 5.000000e-01 : f32
    %9 = vector.broadcast %cst_6 : f32 to vector<128x512xf32>
    %10 = arith.mulf %9, %8 : vector<128x512xf32>
    %cst_7 = arith.constant 4.471500e-02 : f32
    %11 = vector.broadcast %cst_7 : f32 to vector<128x512xf32>
    %12 = arith.mulf %11, %8 : vector<128x512xf32>
    %13 = arith.mulf %12, %8 : vector<128x512xf32>
    %14 = arith.mulf %13, %8 : vector<128x512xf32>
    %15 = arith.addf %8, %14 : vector<128x512xf32>
    %cst_8 = arith.constant 0.797884583 : f32
    %16 = vector.broadcast %cst_8 : f32 to vector<128x512xf32>
    %17 = arith.mulf %16, %15 : vector<128x512xf32>
    %18 = math.tanh %17 : vector<128x512xf32>
    %cst_9 = arith.constant 1.000000e+00 : f32
    %19 = vector.broadcast %cst_9 : f32 to vector<128x512xf32>
    %20 = arith.addf %19, %18 : vector<128x512xf32>
    %21 = arith.mulf %10, %20 : vector<128x512xf32>
    %c0_10 = arith.constant 0 : index
    %c0_11 = arith.constant 0 : index
    %22 = vector.load %arg24[%c0_10, %c0_11] : memref<128x512xf32, #tpu.memory_space<vmem>>, vector<128x512xf32>
    %23 = arith.truncf %21 : vector<128x512xf32> to vector<128x512xbf16>
    %c0_12 = arith.constant 0 : index
    %c0_13 = arith.constant 0 : index
    %24 = vector.load %arg18[%c0_12, %c0_13] : memref<512x512xbf16, #tpu.memory_space<vmem>>, vector<512x512xbf16>
    %cst_14 = arith.constant dense<0.000000e+00> : vector<128x512xf32>
    %25 = tpu.matmul %23, %24, %cst_14 {dimension_numbers = #tpu.dot_dimension_numbers<[1], [0], [0], [1], [0, 0, 1, 1], [], []>} : vector<128x512xbf16>, vector<512x512xbf16>, vector<128x512xf32> -> vector<128x512xf32>
    %26 = arith.addf %22, %25 : vector<128x512xf32>
    %c0_15 = arith.constant 0 : index
    %c0_16 = arith.constant 0 : index
    %27 = vector.load %arg24[%c0_15, %c0_16] : memref<128x512xf32, #tpu.memory_space<vmem>>, vector<128x512xf32>
    tpu.vector_store %arg24[%c0_15, %c0_16], %26 {strides = array<i32>} : memref<128x512xf32, #tpu.memory_space<vmem>>, vector<128x512xf32>,
    %c3_i32 = arith.constant 3 : i32
    %28 = arith.cmpi eq, %arg2, %c3_i32 : i32
    %29 = arith.extui %28 : i1 to i32
    %c0_i32_17 = arith.constant 0 : i32
    %30 = arith.cmpi ne, %29, %c0_i32_17 : i32
    scf.if %30 {
      %c0_18 = arith.constant 0 : index
      %c0_19 = arith.constant 0 : index
      %31 = vector.load %arg24[%c0_18, %c0_19] : memref<128x512xf32, #tpu.memory_space<vmem>>, vector<128x512xf32>
      %c0_20 = arith.constant 0 : index
      %c0_21 = arith.constant 0 : index
      %c0_22 = arith.constant 0 : index
      %32 = vector.load %arg22[%c0_20, %c0_21, %c0_22] : memref<1x128x512xf32, #tpu.memory_space<vmem>>, vector<1x128x512xf32>
      %33 = vector.shape_cast %32 : vector<1x128x512xf32> to vector<128x512xf32>
      %34 = vector.shape_cast %31 : vector<128x512xf32> to vector<1x128x512xf32>
      tpu.vector_store %arg22[%c0_20, %c0_21, %c0_22], %34 {strides = array<i32>} : memref<1x128x512xf32, #tpu.memory_space<vmem>>, vector<1x128x512xf32>,
    } else {
    }
    return
  }
  func.func @transform_0(%arg0: i32, %arg1: i32, %arg2: i32) -> (i32, i32, i32) {
    %c0_i32 = arith.constant 0 : i32
    %c0_i32_0 = arith.constant 0 : i32
    return %arg0, %arg1, %c0_i32 : i32, i32, i32
  }
  func.func @transform_1(%arg0: i32, %arg1: i32, %arg2: i32) -> (i32, i32, i32) {
    %c0_i32 = arith.constant 0 : i32
    %c0_i32_0 = arith.constant 0 : i32
    %c0_i32_1 = arith.constant 0 : i32
    return %arg0, %c0_i32, %c0_i32_0 : i32, i32, i32
  }
  func.func @transform_2(%arg0: i32, %arg1: i32, %arg2: i32) -> (i32, i32, i32) {
    %c0_i32 = arith.constant 0 : i32
    %c0_i32_0 = arith.constant 0 : i32
    %c0_i32_1 = arith.constant 0 : i32
    return %arg0, %c0_i32, %c0_i32_0 : i32, i32, i32
  }
  func.func @transform_3(%arg0: i32, %arg1: i32, %arg2: i32) -> (i32, i32) {
    %c0_i32 = arith.constant 0 : i32
    %c0_i32_0 = arith.constant 0 : i32
    %c0_i32_1 = arith.constant 0 : i32
    return %c0_i32, %c0_i32_0 : i32, i32
  }
  func.func @transform_4(%arg0: i32, %arg1: i32, %arg2: i32) -> (i32, i32) {
    %c0_i32 = arith.constant 0 : i32
    %c0_i32_0 = arith.constant 0 : i32
    %c0_i32_1 = arith.constant 0 : i32
    return %c0_i32, %c0_i32_0 : i32, i32
  }
  func.func @transform_5(%arg0: i32, %arg1: i32, %arg2: i32) -> (i32, i32) {
    %c0_i32 = arith.constant 0 : i32
    %c0_i32_0 = arith.constant 0 : i32
    %c0_i32_1 = arith.constant 0 : i32
    return %c0_i32, %c0_i32_0 : i32, i32
  }
  func.func @transform_6(%arg0: i32, %arg1: i32, %arg2: i32) -> (i32, i32) {
    %c0_i32 = arith.constant 0 : i32
    %c0_i32_0 = arith.constant 0 : i32
    %c0_i32_1 = arith.constant 0 : i32
    return %c0_i32, %c0_i32_0 : i32, i32
  }
  func.func @transform_7(%arg0: i32, %arg1: i32, %arg2: i32) -> (i32, i32) {
    %c0_i32 = arith.constant 0 : i32
    %c0_i32_0 = arith.constant 0 : i32
    %c0_i32_1 = arith.constant 0 : i32
    return %c0_i32, %c0_i32_0 : i32, i32
  }
  func.func @transform_8(%arg0: i32, %arg1: i32, %arg2: i32) -> (i32, i32) {
    %c0_i32 = arith.constant 0 : i32
    %c0_i32_0 = arith.constant 0 : i32
    %c0_i32_1 = arith.constant 0 : i32
    return %c0_i32, %c0_i32_0 : i32, i32
  }
  func.func @transform_9(%arg0: i32, %arg1: i32, %arg2: i32) -> (i32, i32) {
    %c0_i32 = arith.constant 0 : i32
    %c0_i32_0 = arith.constant 0 : i32
    %c0_i32_1 = arith.constant 0 : i32
    return %c0_i32, %c0_i32_0 : i32, i32
  }
  func.func @transform_10(%arg0: i32, %arg1: i32, %arg2: i32) -> (i32, i32) {
    %c0_i32 = arith.constant 0 : i32
    %c0_i32_0 = arith.constant 0 : i32
    %c0_i32_1 = arith.constant 0 : i32
    return %c0_i32, %c0_i32_0 : i32, i32
  }
  func.func @transform_11(%arg0: i32, %arg1: i32, %arg2: i32) -> (i32, i32) {
    %c0_i32 = arith.constant 0 : i32
    %c0_i32_0 = arith.constant 0 : i32
    %c0_i32_1 = arith.constant 0 : i32
    return %c0_i32, %c0_i32_0 : i32, i32
  }
  func.func @transform_12(%arg0: i32, %arg1: i32, %arg2: i32) -> (i32, i32) {
    %c0_i32 = arith.constant 0 : i32
    %c0_i32_0 = arith.constant 0 : i32
    %c0_i32_1 = arith.constant 0 : i32
    return %c0_i32, %c0_i32_0 : i32, i32
  }
  func.func @transform_13(%arg0: i32, %arg1: i32, %arg2: i32) -> (i32, i32) {
    %c0_i32 = arith.constant 0 : i32
    %c0_i32_0 = arith.constant 0 : i32
    return %c0_i32, %arg2 : i32, i32
  }
  func.func @transform_14(%arg0: i32, %arg1: i32, %arg2: i32) -> (i32, i32) {
    %c0_i32 = arith.constant 0 : i32
    %c0_i32_0 = arith.constant 0 : i32
    return %c0_i32, %arg2 : i32, i32
  }
  func.func @transform_15(%arg0: i32, %arg1: i32, %arg2: i32) -> (i32, i32) {
    %c0_i32 = arith.constant 0 : i32
    %c0_i32_0 = arith.constant 0 : i32
    return %arg2, %c0_i32 : i32, i32
  }
  func.func @transform_16(%arg0: i32, %arg1: i32, %arg2: i32) -> (i32, i32, i32) {
    %c0_i32 = arith.constant 0 : i32
    %c0_i32_0 = arith.constant 0 : i32
    return %arg0, %arg1, %c0_i32 : i32, i32, i32
  }
  func.func @transform_17(%arg0: i32, %arg1: i32, %arg2: i32) -> (i32, i32, i32) {
    %c0_i32 = arith.constant 0 : i32
    %c0_i32_0 = arith.constant 0 : i32
    return %arg0, %arg1, %c0_i32 : i32, i32, i32
  }
  func.func @transform_18(%arg0: i32, %arg1: i32, %arg2: i32) -> (i32, i32, i32) {
    %c0_i32 = arith.constant 0 : i32
    %c0_i32_0 = arith.constant 0 : i32
    return %arg0, %arg1, %c0_i32 : i32, i32, i32
  }
  func.func @transform_19(%arg0: i32, %arg1: i32, %arg2: i32) -> (i32, i32, i32) {
    %c0_i32 = arith.constant 0 : i32
    %c0_i32_0 = arith.constant 0 : i32
    return %arg0, %arg1, %c0_i32 : i32, i32, i32
  }
}

</mosaic_0001>

<bundles_post_ra>
// kernel: tpu_custom_call.1
= control target key start
LH: loop header
LB: loop body
LE: loop exit
PB: predicated region body
PF: predicated region fallthrough
CT: control target
= control target key end

     0   :  { %s21053_s0 = inlined_call_operand.hbm [shape: f32[2,256,512], index: 0, kind: input, shape index: {}]   ;;  %s21054_s1 = inlined_call_operand.hbm [shape: f32[2,1,512], index: 1, kind: input, shape index: {}]   ;;  %s21055_s2 = inlined_call_operand.hbm [shape: f32[2,1,512], index: 2, kind: input, shape index: {}]   ;;  %s21056_s3 = inlined_call_operand.hbm [shape: bf16[512,512], index: 3, kind: input, shape index: {}]   ;;  %s21057_s4 = inlined_call_operand.hbm [shape: f32[1,512], index: 4, kind: input, shape index: {}]   ;;  %s21058_s5 = inlined_call_operand.hbm [shape: bf16[512,512], index: 5, kind: input, shape index: {}]   ;;  %s21059_s6 = inlined_call_operand.hbm [shape: f32[1,512], index: 6, kind: input, shape index: {}]   ;;  %s21060_s7 = inlined_call_operand.hbm [shape: bf16[512,512], index: 7, kind: input, shape index: {}]   ;;  %s21061_s8 = inlined_call_operand.hbm [shape: f32[1,512], index: 8, kind: input, shape index: {}]   ;;  %s21062_s9 = inlined_call_operand.hbm [shape: f32[1,512], index: 9, kind: input, shape index: {}]   ;;  %s21063_s10 = inlined_call_operand.hbm [shape: f32[1,512], index: 10, kind: input, shape index: {}]   ;;  %s21064_s11 = inlined_call_operand.hbm [shape: f32[512,128], index: 11, kind: input, shape index: {}]   ;;  %s21065_s12 = inlined_call_operand.hbm [shape: f32[128,512], index: 12, kind: input, shape index: {}]   ;;  %s21066_s13 = inlined_call_operand.hbm [shape: bf16[512,2048], index: 13, kind: input, shape index: {}]   ;;  %s21067_s14 = inlined_call_operand.hbm [shape: f32[1,2048], index: 14, kind: input, shape index: {}]   ;;  %s21068_s15 = inlined_call_operand.hbm [shape: bf16[2048,512], index: 15, kind: input, shape index: {}]   ;;  %s21069_s16 = inlined_call_operand.hbm [shape: bf16[2,256,512], index: 16, kind: output, shape index: {0}]   ;;  %s21070_s17 = inlined_call_operand.hbm [shape: bf16[2,256,512], index: 17, kind: output, shape index: {1}]   ;;  %s21071_s18 = inlined_call_operand.hbm [shape: bf16[2,256,512], index: 18, kind: output, shape index: {2}]   ;;  %s21072_s19 = inlined_call_operand.hbm [shape: f32[2,256,512], index: 19, kind: output, shape index: {3}]  }
   0x1   :  { %21362 = sst [smem:[#allocation223_spill]] %s21053_s0 }
   0x2   :  { %21363 = sst [smem:[#allocation224_spill]] %s21054_s1 }
   0x3   :  { %21364 = sst [smem:[#allocation225_spill]] %s21055_s2 }
   0x4   :  { %21365 = sst [smem:[#allocation226_spill]] %s21056_s3 }
   0x5   :  { %21366 = sst [smem:[#allocation227_spill]] %s21057_s4 }
   0x6   :  { %21367 = sst [smem:[#allocation228_spill]] %s21058_s5 }
   0x7   :  { %21368 = sst [smem:[#allocation229_spill]] %s21059_s6 }
   0x8   :  { %21369 = sst [smem:[#allocation230_spill]] %s21060_s7 }
   0x9   :  { %21370 = sst [smem:[#allocation231_spill]] %s21061_s8 }
   0xa   :  { %21371 = sst [smem:[#allocation232_spill]] %s21062_s9 }
   0xb   :  { %21372 = sst [smem:[#allocation233_spill]] %s21063_s10 }
   0xc   :  { %21373 = sst [smem:[#allocation234_spill]] %s21064_s11 }
   0xd   :  { %21374 = sst [smem:[#allocation235_spill]] %s21065_s12 }
   0xe   :  { %21375 = sst [smem:[#allocation236_spill]] %s21066_s13 }
   0xf   :  { %21376 = sst [smem:[#allocation237_spill]] %s21067_s14 }
  0x10   :  { %21377 = sst [smem:[#allocation238_spill]] %s21068_s15 }
  0x11   :  { %21378 = sst [smem:[#allocation239_spill]] %s21069_s16 }
  0x12   :  { %21379 = sst [smem:[#allocation240_spill]] %s21070_s17 }
  0x13   :  { %21380 = sst [smem:[#allocation241_spill]] %s21071_s18 }
  0x14   :  { %21381 = sst [smem:[#allocation242_spill]] %s21072_s19 }
  0x15   :  { %25 = vsyncpa [#allocation5], 0 }
  0x16   :  { %27 = vsyncpa [#allocation5 + $0x1], 0 }
  0x17   :  { %28 = vsyncpa [#allocation8], 0 }
  0x18   :  { %30 = vsyncpa [#allocation8 + $0x1], 0 }
  0x19   :  { %31 = vsyncpa [#allocation11], 0 }
  0x1a   :  { %32 = vsyncpa [#allocation14], 0 }
  0x1b   :  { %33 = vsyncpa [#allocation17], 0 }
  0x1c   :  { %34 = vsyncpa [#allocation20], 0 }
  0x1d   :  { %35 = vsyncpa [#allocation23], 0 }
  0x1e   :  { %36 = vsyncpa [#allocation26], 0 }
  0x1f   :  { %38 = vsyncpa [#allocation26 + $0x1], 0 }
  0x20   :  { %39 = vsyncpa [#allocation29], 0 }
  0x21   :  { %41 = vsyncpa [#allocation29 + $0x1], 0 }
  0x22   :  { %42 = vsyncpa [#allocation6], 0 }
  0x23   :  { %44 = vsyncpa [#allocation6 + $0x1], 0 }
  0x24   :  { %45 = vsyncpa [#allocation32], 0 }
  0x25   :  { %47 = vsyncpa [#allocation32 + $0x1], 0 }
  0x26   :  { %48 = vsyncpa [#allocation35], 0 }
  0x27   :  { %50 = vsyncpa [#allocation35 + $0x1], 0  ;;  %s16553_s0 = smov 0   ;;  %s16555_s30 = smov 0  }
  0x28   :  { %s16557_s20 = smov 0   ;;  %s16559_s21 = smov 0  }
  0x29   :  { %s16561_s1 = smov 0   ;;  %s16563_s22 = smov 0  }
  0x2a   :  { %s16565_s2 = smov 0   ;;  %s16567_s23 = smov 0  }
  0x2b   :  { %s16569_s24 = smov 0   ;;  %s16571_s25 = smov 0  }
  0x2c   :  { %s16573_s3 = smov 0   ;;  %s16575_s26 = smov 0  }
  0x2d   :  { %s16577_s27 = smov 0   ;;  %s16579_s28 = smov 0  }
  0x2e   :  { %s16581_s29 = smov 0   ;;  %s16583_s19 = smov 0  }
  0x2f LB: > { %21382 = sst [smem:[#allocation48_spill]] %s16359_s0  ;;  %s16634_s18 = sadd.s32 4294967295, %s16419_s19   ;;  %s16419_s19 = sphi %s16583_s19, %s56_s19   ;;  %s16415_s29 = sphi %s16581_s29, %s21954_s29   ;;  %s16411_s28 = sphi %s16579_s28, %s21953_s28   ;;  %s16407_s27 = sphi %s16577_s27, %s21943_s27   ;;  %s16403_s26 = sphi %s16575_s26, %s21952_s26   ;;  %s16399_s3 = sphi %s16573_s3, %s21951_s3   ;;  %s16395_s25 = sphi %s16571_s25, %s21950_s25   ;;  %s16391_s24 = sphi %s16569_s24, %s21949_s24   ;;  %s16387_s23 = sphi %s16567_s23, %s21941_s23   ;;  %s16383_s2 = sphi %s16565_s2, %s21940_s2   ;;  %s16379_s22 = sphi %s16563_s22, %s21948_s22   ;;  %s16375_s1 = sphi %s16561_s1, %s21938_s1   ;;  %s16371_s21 = sphi %s16559_s21, %s21947_s21   ;;  %s16367_s20 = sphi %s16557_s20, %s21936_s20   ;;  %s16363_s30 = sphi %s16555_s30, %s21935_s30   ;;  %s16359_s0 = sphi %s16553_s0, %s21934_s0  }
  0x30   : > { %21383 = sst [smem:[#allocation49_spill]] %s16363_s30  ;;  %p11992_p0 = scmp.ge.s32.totalorder %s16419_s19, 1 }
  0x31   : > { %21384 = sst [smem:[#allocation50_spill]] %s16367_s20  ;;  %p21092_p1 = scmp.eq.s32.totalorder %s16634_s18, 0 }
  0x32   : > { %21385 = sst [smem:[#allocation51_spill]] %s16375_s1  ;;  %p560_p2 = scmp.lt.s32.totalorder %s16419_s19, 17 }
  0x33   : > { %21386 = sst [smem:[#allocation52_spill]] %s16379_s22  ;;  %s16421_s17 = smov [#allocation10]  }
  0x34   : > { %21387 = sst [smem:[#allocation53_spill]] %s16383_s2  ;;  %p16639_p3 = pnand %p11992_p0, %p560_p2 }
  0x35   : > { %21388 = sst [smem:[#allocation54_spill]] %s16387_s23  ;;  %s16423_s14 = smov [#allocation16]  }
  0x36   : > { %21389 = sst [smem:[#allocation55_spill]] %s16391_s24  ;;  %p14125_p4 = pneg %p16639_p3 }
  0x37   : > { %21390 = sst [smem:[#allocation56_spill]] %s16395_s25  ;;  %s16422_s25 = smov [#allocation13]  }
  0x38   : > { %21391 = sst [smem:[#allocation57_spill]] %s16399_s3  ;;  %p16649_p5 = pnand %p14125_p4, %p21092_p1 }
  0x39   : > { %21392 = sst [smem:[#allocation58_spill]] %s16403_s26  ;;  %s572_s26 = sshll.u32 %s16421_s17, 4  ;;  %s16643_s26 = int_to_ptr.vmem [resolvable:$true] %s572_s26 }
  0x3a   : > { %21393 = sst [smem:[#allocation59_spill]] %s16407_s27  ;;  %s596_s15 = sshll.u32 %s16422_s25, 4  ;;  %s16653_s15 = int_to_ptr.vmem [resolvable:$true] %s596_s15 }
  0x3b   : > { %s21394_s16 = scalar_select %p16639_p3, 1, 0 }
  0x3c   : > { %s21396_s3 = scalar_select %p16649_p5, 1, 0 }
  0x3d   : > { %21395 = sst [smem:[#allocation60_spill]] %s21394_s16  ;;  %s16655_s2 = sshll.u32 %s16423_s14, 4  ;;  %s621_s2 = int_to_ptr.vmem [resolvable:$true] %s16655_s2 }
  0x3e   : > { %s21397_s17 = sld [smem:[#allocation226_spill]]  ;;  %p16665_p7 = pneg %p16649_p5 }
  0x40   : > { %s21398_s8 = scalar_select %p16665_p7, 1, 0 }
  0x44   : > { %s15673_s12 = scalar_lea.hbm %s21397_s17, 16384 }
  0x45   : > { %p15674_p6 = scmp.ne.s32.totalorder %s21397_s17, %s15673_s12  ;;  %p15680_p10 = scmp.lt.u32.totalorder %s15673_s12, %s21397_s17 }
  0x47   : > { %p15676_p8 = pnand %p16665_p7, %p15674_p6 }
  0x49   : > { %p15677_p9 = pneg %p15676_p8 }
  0x4b   : > { %p15682_p11 = pnand %p15680_p10, %p15677_p9 }
  0x4d   : > { %15685 = shalt.err (!%p15682_p11)
}
  0x4e   : > { %s15686_s10 = scalar_lea.vmem %s16643_s26, 16384  ;;  %p15694_p2 = scmp.lt.s32.totalorder %s16643_s26, %s16643_s26 }
  0x4f   : > { %p15687_p12 = scmp.ne.s32.totalorder %s16643_s26, %s15686_s10  ;;  %p15695_p4 = scmp.lt.s32.totalorder %s15686_s10, %s15686_s10 }
  0x51   : > { %p15689_p13 = pnand %p15687_p12, %p16665_p7  ;;  %p15696_p6 = por %p15695_p4, %p15694_p2 }
  0x53   : > { %p15690_p0 = pneg %p15689_p13 }
  0x55   : > { %p15697_p8 = pnand %p15696_p6, %p15690_p0 }
  0x57   : > { %15700 = shalt.err (!%p15697_p8)
}
  0x58   : > { %s21094_s16 = smov 256   ;;  %s21096_s12 = smov 16  }
  0x59   : > { %14128 = dma.hbm_to_vmem [thread:$0]  (!%p16649_p5), %s21397_s17, 16384, %s16643_s26, [#allocation11], %s21094_s16, %s21094_s16, %s21096_s12  }
  0x5a   : > { %s21399_s5 = sld [smem:[#allocation228_spill]] }
  0x60   : > { %s15701_s10 = scalar_lea.hbm %s21399_s5, 16384 }
  0x61   : > { %p15702_p9 = scmp.ne.s32.totalorder %s21399_s5, %s15701_s10  ;;  %p15708_p12 = scmp.lt.u32.totalorder %s15701_s10, %s21399_s5 }
  0x63   : > { %p15704_p10 = pnand %p15702_p9, %p16665_p7 }
  0x65   : > { %p15705_p11 = pneg %p15704_p10 }
  0x67   : > { %p15710_p13 = pnand %p15708_p12, %p15705_p11 }
  0x69   : > { %15713 = shalt.err (!%p15710_p13)
}
  0x6a   : > { %s15714_s26 = scalar_lea.vmem %s16653_s15, 16384  ;;  %p15722_p6 = scmp.lt.s32.totalorder %s16653_s15, %s16653_s15 }
  0x6b   : > { %p15715_p0 = scmp.ne.s32.totalorder %s16653_s15, %s15714_s26  ;;  %p15723_p8 = scmp.lt.s32.totalorder %s15714_s26, %s15714_s26 }
  0x6d   : > { %p15717_p2 = pnand %p15715_p0, %p16665_p7  ;;  %p15724_p9 = por %p15723_p8, %p15722_p6 }
  0x6f   : > { %p15718_p4 = pneg %p15717_p2 }
  0x71   : > { %p15725_p10 = pnand %p15724_p9, %p15718_p4 }
  0x73   : > { %15728 = shalt.err (!%p15725_p10)
}
  0x74   : > { %14134 = dma.hbm_to_vmem [thread:$0]  (!%p16649_p5), %s21399_s5, 16384, %s16653_s15, [#allocation14], %s21094_s16, %s21094_s16, %s21096_s12  }
  0x75   : > { %s21400_s7 = sld [smem:[#allocation230_spill]] }
  0x7b   : > { %s15729_s23 = scalar_lea.hbm %s21400_s7, 16384 }
  0x7c   : > { %p15730_p11 = scmp.ne.s32.totalorder %s21400_s7, %s15729_s23  ;;  %p15736_p0 = scmp.lt.u32.totalorder %s15729_s23, %s21400_s7 }
  0x7e   : > { %p15732_p12 = pnand %p15730_p11, %p16665_p7 }
  0x80   : > { %p15733_p13 = pneg %p15732_p12 }
  0x82   : > { %p15738_p2 = pnand %p15736_p0, %p15733_p13 }
  0x84   : > { %15741 = shalt.err (!%p15738_p2)
}
  0x85   : > { %s15742_s26 = scalar_lea.vmem %s621_s2, 16384  ;;  %p15750_p9 = scmp.lt.s32.totalorder %s621_s2, %s621_s2 }
  0x86   : > { %p15743_p4 = scmp.ne.s32.totalorder %s621_s2, %s15742_s26  ;;  %p15751_p10 = scmp.lt.s32.totalorder %s15742_s26, %s15742_s26 }
  0x88   : > { %p15745_p6 = pnand %p15743_p4, %p16665_p7  ;;  %p15752_p1 = por %p15751_p10, %p15750_p9 }
  0x8a   : > { %p15746_p8 = pneg %p15745_p6 }
  0x8c   : > { %p15753_p3 = pnand %p15752_p1, %p15746_p8 }
  0x8e   : > { %15756 = shalt.err (!%p15753_p3)
}
  0x8f   : > { %14140 = dma.hbm_to_vmem [thread:$0]  (!%p16649_p5), %s21400_s7, 16384, %s621_s2, [#allocation17], %s21094_s16, %s21094_s16, %s21096_s12  }
  0x90   : > { %s16426_s6 = smov [#allocation19]   ;;  %s16427_s0 = smov [#allocation22]  }
  0x91   : > { %s645_s13 = sshll.u32 %s16426_s6, 4  ;;  %s666_s23 = sshll.u32 %s16427_s0, 4  ;;  %s646_s13 = int_to_ptr.vmem [resolvable:$true] %s645_s13  ;;  %s667_s23 = int_to_ptr.vmem [resolvable:$true] %s666_s23 }
  0x92   : > { %s21401_s9 = sld [smem:[#allocation232_spill]] }
  0x98   : > { %s15757_s14 = scalar_lea.hbm %s21401_s9, 64 }
  0x99   : > { %p15758_p1 = scmp.ne.s32.totalorder %s21401_s9, %s15757_s14  ;;  %p15764_p12 = scmp.lt.u32.totalorder %s15757_s14, %s21401_s9 }
  0x9b   : > { %p15760_p3 = pnand %p15758_p1, %p16665_p7 }
  0x9d   : > { %p15761_p11 = pneg %p15760_p3 }
  0x9f   : > { %p15766_p13 = pnand %p15764_p12, %p15761_p11 }
  0xa1   : > { %15769 = shalt.err (!%p15766_p13)
}
  0xa2   : > { %s15770_s2 = scalar_lea.vmem %s646_s13, 64  ;;  %p15778_p6 = scmp.lt.s32.totalorder %s646_s13, %s646_s13 }
  0xa3   : > { %p15771_p0 = scmp.ne.s32.totalorder %s646_s13, %s15770_s2  ;;  %p15779_p8 = scmp.lt.s32.totalorder %s15770_s2, %s15770_s2 }
  0xa5   : > { %p15773_p2 = pnand %p15771_p0, %p16665_p7  ;;  %p15780_p9 = por %p15779_p8, %p15778_p6 }
  0xa7   : > { %p15774_p4 = pneg %p15773_p2 }
  0xa9   : > { %p15781_p10 = pnand %p15780_p9, %p15774_p4 }
  0xab   : > { %15784 = shalt.err (!%p15781_p10)
}
  0xac   : > { %14146 = dma.hbm_to_vmem [thread:$0]  (!%p16649_p5), %s21401_s9, 64, %s646_s13, [#allocation20]  }
  0xad   : > { %s21402_s11 = sld [smem:[#allocation234_spill]] }
  0xb3   : > { %s15785_s24 = scalar_lea.hbm %s21402_s11, 8192 }
  0xb4   : > { %p15786_p1 = scmp.ne.s32.totalorder %s21402_s11, %s15785_s24  ;;  %p15792_p12 = scmp.lt.u32.totalorder %s15785_s24, %s21402_s11 }
  0xb6   : > { %p15788_p3 = pnand %p15786_p1, %p16665_p7 }
  0xb8   : > { %p15789_p11 = pneg %p15788_p3 }
  0xba   : > { %p15794_p13 = pnand %p15792_p12, %p15789_p11 }
  0xbc   : > { %15797 = shalt.err (!%p15794_p13)
}
  0xbd   : > { %s15798_s15 = scalar_lea.vmem %s667_s23, 8192  ;;  %p15806_p6 = scmp.lt.s32.totalorder %s667_s23, %s667_s23 }
  0xbe   : > { %p15799_p0 = scmp.ne.s32.totalorder %s667_s23, %s15798_s15  ;;  %p15807_p8 = scmp.lt.s32.totalorder %s15798_s15, %s15798_s15 }
  0xc0   : > { %p15801_p2 = pnand %p15799_p0, %p16665_p7  ;;  %p15808_p9 = por %p15807_p8, %p15806_p6 }
  0xc2   : > { %p15802_p4 = pneg %p15801_p2 }
  0xc4   : > { %p15809_p10 = pnand %p15808_p9, %p15802_p4 }
  0xc6   : > { %15812 = shalt.err (!%p15809_p10)
}
  0xc7   : > { %s16428_s13 = smov 128   ;;  %s16429_s2 = smov 8  }
  0xc8   : > { %14152 = dma.hbm_to_vmem [thread:$0]  (!%p16649_p5), %s21402_s11, 8192, %s667_s23, [#allocation23], %s16428_s13, %s16428_s13, %s16429_s2  }
  0xc9   : > { %s68_s5 = sadd.s32 1, %s16407_s27  ;;  %s71_s0 = sadd.s32 1, %s16411_s28 }
  0xca   : > { %p69_p1 = scmp.ge.s32.totalorder %s68_s5, 4  ;;  %s75_s24 = sadd.s32 1, %s16415_s29 }
  0xcb   : > { %p21103_p3 = scmp.eq.s32.totalorder %s16419_s19, 0  ;;  %s110_s25 = sadd.s32 1, %s16379_s22 }
  0xcc   : > { %s21956_s5 = smov (%p69_p1, %s68_s5), 0  ;;  %s21958_s0 = smov (!%p69_p1, %s71_s0), %s16411_s28 }
  0xcd   : > { %21403 = sst [smem:[#allocation61_spill]] %s21956_s5  ;;  %p117_p11 = scmp.ne.s32.totalorder %s16379_s22, %s16375_s1 }
  0xce   : > { %p73_p12 = scmp.ge.s32.totalorder %s21958_s0, 2  ;;  %p123_p13 = scmp.ne.s32.totalorder %s16375_s1, %s16371_s21 }
  0xcf   : > { %p16787_p0 = por %p117_p11, %p21103_p3  ;;  %s369_s14 = ssub.s32 %s16407_s27, %s21956_s5 }
  0xd0   : > { %s21405_s10 = sld [smem:[#allocation48_spill]]  ;;  %s21960_s0 = smov (%p73_p12, %s21958_s0), 0 }
  0xd1   : > { %21406 = sst [smem:[#allocation62_spill]] %s21960_s0  ;;  %s21962_s24 = smov (!%p73_p12, %s75_s24), %s16415_s29 }
  0xd2   : > { %s80_s26 = ssub.s32 %s16411_s28, %s21960_s0  ;;  %p21407_p2 = scmp.eq.s32.totalorder %s16634_s18, 0 }
  0xd3   : > { %p77_p6 = scmp.ge.s32.totalorder %s21962_s24, 2  ;;  %p370_p8 = scmp.eq.s32.totalorder %s369_s14, 0 }
  0xd4   : > { %p16800_p4 = por %p123_p13, %p21407_p2  ;;  %s372_s21 = sadd.s32 1, %s16367_s20 }
  0xd5   : > { %p379_p9 = scmp.ne.s32.totalorder %s16367_s20, %s16363_s30  ;;  %s21964_s24 = smov (%p77_p6, %s21962_s24), 0 }
  0xd6   : > { %s21408_s15 = scalar_select %p16800_p4, 1, 0 }
  0xd7   : > { %21410 = sst [smem:[#allocation63_spill]] %s21964_s24  ;;  %s79_s2 = ssub.s32 %s16415_s29, %s21964_s24 }
  0xd8   : > { %21409 = sst [smem:[#allocation48_spill]] %s21408_s15  ;;  %p16816_p10 = por %p379_p9, %p21103_p3 }
  0xd9   : > { %s16810_s13 = scalar_select %p370_p8, %s16367_s20, %s372_s21  }
  0xda   : > { %s16820_s6 = sor.u32 %s80_s26, %s79_s2  ;;  %p108_p1 = scmp.eq.s32.totalorder %s79_s2, 0 }
  0xdb   : > { %21411 = sst [smem:[#allocation64_spill]] %s16810_s13  ;;  %p385_p12 = scmp.ne.s32.totalorder %s16363_s30, %s21405_s10 }
  0xdc   : > { %s16826_s14 = scalar_select %p108_p1, %s16379_s22, %s110_s25  }
  0xdd   : > { %p21414_p13 = pmov %p21407_p2  ;;  %p21104_p6 = scmp.lt.s32.totalorder %s16419_s19, 16 }
  0xde   : > { %21413 = sst [smem:[#allocation65_spill]] %s16826_s14  ;;  %s719_s12 = sand.u32 1, %s16379_s22  }
  0xdf   : > { %p16830_p2 = por %p385_p12, %p21414_p13  ;;  %s16837_s7 = sshll.u32 %s719_s12, 2 }
  0xe0   : > { %s12807_s26 = sshll.u32 %s16415_s29, 6  ;;  %s21417_s2 = sld [smem:[#allocation224_spill]] }
  0xe1   : > { %s21415_s21 = scalar_select %p16830_p2, 1, 0 }
  0xe2   : > { %s721_s25 = scalar_lea.vmem [#allocation7], %s16837_s7  ;;  %p16852_p8 = pnand %p21104_p6, %p16787_p0 }
  0xe3   : > { %21416 = sst [smem:[#allocation66_spill]] %s21415_s21  ;;  %s729_s10 = sshll.u32 %s721_s25, 4  ;;  %s16846_s10 = int_to_ptr.vmem [resolvable:$true] %s729_s10 }
  0xe4   : > { %s21419_s12 = scalar_select %p16852_p8, 1, 0 }
  0xe5   : > { %s21420_s5 = sld [smem:[#allocation225_spill]]  ;;  %s21421_s11 = sand.u32 1, %s16419_s19  }
  0xe6   : > { %s21418_s17 = smov %s21417_s2  ;;  %s16843_s24 = scalar_lea.hbm %s21417_s2, %s12807_s26 }
  0xe7   : > { %s16863_s2 = scalar_lea.sflag [#allocation8], %s21421_s11  ;;  %s15813_s14 = scalar_lea.hbm %s16843_s24, 64 }
  0xe8   : > { %p15814_p9 = scmp.ne.s32.totalorder %s16843_s24, %s15813_s14  ;;  %p21115_p1 = pneg %p16852_p8 }
  0xe9   : > { %s15818_s22 = scalar_lea.hbm %s21418_s17, 128  ;;  %p15819_p13 = scmp.lt.u32.totalorder %s16843_s24, %s21418_s17 }
  0xea   : > { %p15816_p0 = pnand %p21115_p1, %p15814_p9  ;;  %p15820_p3 = scmp.lt.u32.totalorder %s15818_s22, %s15813_s14 }
  0xeb   : > { %s16859_s9 = scalar_lea.hbm %s21420_s5, %s12807_s26  ;;  %p15822_p6 = scmp.lt.u32.totalorder %s15813_s14, %s16843_s24 }
  0xec   : > { %p15817_p12 = pneg %p15816_p0  ;;  %p15821_p11 = por %p15820_p3, %p15819_p13 }
  0xee   : > { %p15823_p2 = por %p15822_p6, %p15821_p11 }
  0xf0   : > { %p15824_p4 = pnand %p15823_p2, %p15817_p12 }
  0xf2   : > { %15827 = shalt.err (!%p15824_p4)
}
  0xf3   : > { %s15828_s26 = scalar_lea.vmem %s16846_s10, 64  ;;  %s16430_s11 = smov [#allocation7]  }
  0xf4   : > { %p15829_p9 = scmp.ne.s32.totalorder %s16846_s10, %s15828_s26  ;;  %s15833_s23 = sshll.u32 %s16430_s11, 4  ;;  %s15834_s23 = int_to_ptr.vmem [resolvable:$false] %s15833_s23 }
  0xf5   : > { %s15835_s25 = scalar_lea.vmem %s15834_s23, 128  ;;  %p15836_p7 = scmp.lt.s32.totalorder %s16846_s10, %s15834_s23 }
  0xf6   : > { %p15831_p0 = pnand %p15829_p9, %p21115_p1  ;;  %p15837_p3 = scmp.lt.s32.totalorder %s15835_s25, %s15828_s26 }
  0xf8   : > { %p15832_p5 = pneg %p15831_p0  ;;  %p15838_p13 = por %p15837_p3, %p15836_p7 }
  0xfa   : > { %p15839_p11 = pnand %p15838_p13, %p15832_p5 }
  0xfc   : > { %15842 = shalt.err (!%p15839_p11)
}
  0xfd   : > { %14162 = dma.hbm_to_vmem [thread:$0]  (!%p16852_p8), %s16843_s24, 64, %s16846_s10, %s16863_s2  }
  0xfe   : > { %p21422_p4 = scmp.lt.s32.totalorder %s16419_s19, 16  ;;  %s16900_s14 = sand.u32 1, %s16367_s20  }
  0xff   : > { %s21118_s16 = sshll.u32 %s16900_s14, 10  ;;  %s12809_s0 = sshll.u32 %s16407_s27, 8 }
 0x100   : > { %p16895_p2 = pnand %p21422_p4, %p16816_p10  ;;  %s21425_s23 = sld [smem:[#allocation236_spill]] }
 0x101   : > { %s759_s24 = scalar_lea.vmem [#allocation25], %s21118_s16  ;;  %s21427_s10 = sand.u32 1, %s16419_s19  }
 0x102   : > { %s21423_s22 = scalar_select %p16895_p2, 1, 0 }
 0x103   : > { %s766_s4 = sshll.u32 %s759_s24, 4  ;;  %s16915_s13 = scalar_lea.sflag [#allocation26], %s21427_s10  ;;  %s16911_s4 = int_to_ptr.vmem [resolvable:$true] %s766_s4 }
 0x104   : > { %21424 = sst [smem:[#allocation67_spill]] %s21423_s22  ;;  %p16921_p7 = pneg %p16895_p2 }
 0x106   : > { %s21426_s17 = smov %s21425_s23  ;;  %s16907_s25 = scalar_lea.hbm %s21425_s23, %s12809_s0 }
 0x107   : > { %s15843_s20 = scalar_lea.hbm %s16907_s25, 16384  ;;  %s15848_s11 = scalar_lea.hbm %s21426_s17, 65536 }
 0x108   : > { %p15844_p5 = scmp.ne.s32.totalorder %s16907_s25, %s15843_s20  ;;  %p15849_p12 = scmp.lt.u32.totalorder %s16907_s25, %s21426_s17 }
 0x109   : > { %s21428_s21 = scalar_select %p16921_p7, 1, 0 }
 0x10a   : > { %p15846_p10 = pnand %p16921_p7, %p15844_p5  ;;  %p15850_p9 = scmp.lt.u32.totalorder %s15848_s11, %s15843_s20 }
 0x10b   : > { %21429 = sst [smem:[#allocation68_spill]] %s21428_s21  ;;  %p15852_p3 = scmp.lt.u32.totalorder %s15843_s20, %s16907_s25 }
 0x10c   : > { %p15847_p6 = pneg %p15846_p10  ;;  %p15851_p0 = por %p15850_p9, %p15849_p12 }
 0x10e   : > { %p15853_p13 = por %p15852_p3, %p15851_p0 }
 0x110   : > { %p15854_p11 = pnand %p15853_p13, %p15847_p6 }
 0x112   : > { %15857 = shalt.err (!%p15854_p11)
}
 0x113   : > { %s15858_s10 = scalar_lea.vmem %s16911_s4, 16384  ;;  %s16431_s0 = smov [#allocation25]  }
 0x114   : > { %p15859_p4 = scmp.ne.s32.totalorder %s16911_s4, %s15858_s10  ;;  %s15863_s26 = sshll.u32 %s16431_s0, 4  ;;  %s15864_s26 = int_to_ptr.vmem [resolvable:$false] %s15863_s26 }
 0x115   : > { %s15865_s23 = scalar_lea.vmem %s15864_s26, 32768  ;;  %p15866_p1 = scmp.lt.s32.totalorder %s16911_s4, %s15864_s26 }
 0x116   : > { %p15861_p5 = pnand %p15859_p4, %p16921_p7  ;;  %p15867_p8 = scmp.lt.s32.totalorder %s15865_s23, %s15858_s10 }
 0x118   : > { %p15862_p10 = pneg %p15861_p5  ;;  %p15868_p12 = por %p15867_p8, %p15866_p1 }
 0x11a   : > { %p15869_p9 = pnand %p15868_p12, %p15862_p10 }
 0x11c   : > { %15872 = shalt.err (!%p15869_p9)
}
 0x11d   : > { %s16432_s20 = smov 1024   ;;  %s21430_s11 = smov 16  }
 0x11e   : > { %s21431_s24 = smov 256   ;;  %s16433_s16 = smov [#allocation12]  }
 0x11f   : > { %14168 = dma.hbm_to_vmem [thread:$0]  (!%p16895_p2), %s16907_s25, 16384, %s16911_s4, %s16915_s13, %s16432_s20, %s21431_s24, %s21430_s11  }
 0x120   : > { %s586_s17 = sshll.u32 %s16433_s16, 4  ;;  %s16434_s0 = smov [#allocation15]   ;;  %s587_s17 = int_to_ptr.vmem [resolvable:$true] %s586_s17 }
 0x121   : > { %s610_s30 = sshll.u32 %s16434_s0, 4  ;;  %s21432_s23 = sld [smem:[#allocation227_spill]]  ;;  %s16947_s30 = int_to_ptr.vmem [resolvable:$true] %s610_s30 }
 0x122   : > { %p21434_p1 = scmp.ne.s32.totalorder %s21398_s8, 0 }
 0x127   : > { %s21433_s15 = smov %s21432_s23  ;;  %s15873_s1 = scalar_lea.hbm %s21432_s23, 64 }
 0x128   : > { %p15874_p8 = scmp.ne.s32.totalorder %s21433_s15, %s15873_s1  ;;  %p15880_p3 = scmp.lt.u32.totalorder %s15873_s1, %s21433_s15 }
 0x12a   : > { %p15876_p6 = pnand %p15874_p8, %p21434_p1 }
 0x12c   : > { %p15877_p0 = pneg %p15876_p6 }
 0x12e   : > { %p15882_p13 = pnand %p15880_p3, %p15877_p0 }
 0x130   : > { %15885 = shalt.err (!%p15882_p13)
}
 0x131   : > { %s15886_s16 = scalar_lea.vmem %s587_s17, 64  ;;  %p15894_p10 = scmp.lt.s32.totalorder %s587_s17, %s587_s17 }
 0x132   : > { %p15887_p11 = scmp.ne.s32.totalorder %s587_s17, %s15886_s16  ;;  %p15895_p12 = scmp.lt.s32.totalorder %s15886_s16, %s15886_s16 }
 0x134   : > { %p15889_p4 = pnand %p15887_p11, %p21434_p1  ;;  %p15896_p9 = por %p15895_p12, %p15894_p10 }
 0x136   : > { %p15890_p5 = pneg %p15889_p4 }
 0x138   : > { %p15897_p2 = pnand %p15896_p9, %p15890_p5 }
 0x13a   : > { %15900 = shalt.err (!%p15897_p2)
}
 0x13b   : > { %p21435_p8 = scmp.ne.s32.totalorder %s21396_s3, 0  ;;  %s21436_s4 = sld [smem:[#allocation229_spill]] }
 0x13d   : > { %14131 = dma.hbm_to_vmem [thread:$0]  (!%p21435_p8), %s21433_s15, 64, %s587_s17, [#allocation11]  }
 0x141   : > { %s15901_s20 = scalar_lea.hbm %s21436_s4, 64 }
 0x142   : > { %p15902_p6 = scmp.ne.s32.totalorder %s21436_s4, %s15901_s20  ;;  %p15908_p2 = scmp.lt.u32.totalorder %s15901_s20, %s21436_s4 }
 0x144   : > { %p15904_p0 = pnand %p15902_p6, %p21434_p1 }
 0x146   : > { %p15905_p3 = pneg %p15904_p0 }
 0x148   : > { %p15910_p13 = pnand %p15908_p2, %p15905_p3 }
 0x14a   : > { %15913 = shalt.err (!%p15910_p13)
}
 0x14b   : > { %s15914_s17 = scalar_lea.vmem %s16947_s30, 64  ;;  %p15922_p10 = scmp.lt.s32.totalorder %s16947_s30, %s16947_s30 }
 0x14c   : > { %p15915_p11 = scmp.ne.s32.totalorder %s16947_s30, %s15914_s17  ;;  %p15923_p12 = scmp.lt.s32.totalorder %s15914_s17, %s15914_s17 }
 0x14e   : > { %p15917_p4 = pnand %p15915_p11, %p21434_p1  ;;  %p15924_p9 = por %p15923_p12, %p15922_p10 }
 0x150   : > { %p15918_p5 = pneg %p15917_p4 }
 0x152   : > { %p15925_p6 = pnand %p15924_p9, %p15918_p5 }
 0x154   : > { %15928 = shalt.err (!%p15925_p6)
}
 0x155   : > { %14137 = dma.hbm_to_vmem [thread:$0]  (!%p21435_p8), %s21436_s4, 64, %s16947_s30, [#allocation14]  }
 0x156   : > { %s16435_s21 = smov [#allocation18]   ;;  %s16436_s1 = smov [#allocation21]  }
 0x157   : > { %s634_s22 = sshll.u32 %s16435_s21, 4  ;;  %s656_s27 = sshll.u32 %s16436_s1, 4  ;;  %s635_s22 = int_to_ptr.vmem [resolvable:$true] %s634_s22  ;;  %s16990_s27 = int_to_ptr.vmem [resolvable:$true] %s656_s27 }
 0x158   : > { %s21437_s10 = sld [smem:[#allocation231_spill]] }
 0x15e   : > { %s15929_s26 = scalar_lea.hbm %s21437_s10, 64 }
 0x15f   : > { %p15930_p0 = scmp.ne.s32.totalorder %s21437_s10, %s15929_s26  ;;  %p15936_p13 = scmp.lt.u32.totalorder %s15929_s26, %s21437_s10 }
 0x161   : > { %p15932_p3 = pnand %p15930_p0, %p21434_p1 }
 0x163   : > { %p15933_p2 = pneg %p15932_p3 }
 0x165   : > { %p15938_p11 = pnand %p15936_p13, %p15933_p2 }
 0x167   : > { %15941 = shalt.err (!%p15938_p11)
}
 0x168   : > { %s15942_s16 = scalar_lea.vmem %s635_s22, 64  ;;  %p15950_p12 = scmp.lt.s32.totalorder %s635_s22, %s635_s22 }
 0x169   : > { %p15943_p4 = scmp.ne.s32.totalorder %s635_s22, %s15942_s16  ;;  %p15951_p9 = scmp.lt.s32.totalorder %s15942_s16, %s15942_s16 }
 0x16b   : > { %p15945_p5 = pnand %p15943_p4, %p21434_p1  ;;  %p15952_p6 = por %p15951_p9, %p15950_p12 }
 0x16d   : > { %p15946_p10 = pneg %p15945_p5 }
 0x16f   : > { %p15953_p7 = pnand %p15952_p6, %p15946_p10 }
 0x171   : > { %15956 = shalt.err (!%p15953_p7)
}
 0x172   : > { %14143 = dma.hbm_to_vmem [thread:$0]  (!%p21435_p8), %s21437_s10, 64, %s635_s22, [#allocation17]  }
 0x173   : > { %s21438_s26 = sld [smem:[#allocation233_spill]] }
 0x179   : > { %s21439_s17 = smov %s21438_s26  ;;  %s15957_s23 = scalar_lea.hbm %s21438_s26, 64 }
 0x17a   : > { %p15958_p0 = scmp.ne.s32.totalorder %s21439_s17, %s15957_s23  ;;  %p15964_p7 = scmp.lt.u32.totalorder %s15957_s23, %s21439_s17 }
 0x17c   : > { %p15960_p3 = pnand %p15958_p0, %p21434_p1 }
 0x17e   : > { %p15961_p2 = pneg %p15960_p3 }
 0x180   : > { %p15966_p13 = pnand %p15964_p7, %p15961_p2 }
 0x182   : > { %15969 = shalt.err (!%p15966_p13)
}
 0x183   : > { %s15970_s22 = scalar_lea.vmem %s16990_s27, 64  ;;  %p15978_p10 = scmp.lt.s32.totalorder %s16990_s27, %s16990_s27 }
 0x184   : > { %p15971_p11 = scmp.ne.s32.totalorder %s16990_s27, %s15970_s22  ;;  %p15979_p12 = scmp.lt.s32.totalorder %s15970_s22, %s15970_s22 }
 0x186   : > { %p15973_p4 = pnand %p15971_p11, %p21434_p1  ;;  %p15980_p9 = por %p15979_p12, %p15978_p10 }
 0x188   : > { %p15974_p5 = pneg %p15973_p4 }
 0x18a   : > { %p15981_p6 = pnand %p15980_p9, %p15974_p5 }
 0x18c   : > { %15984 = shalt.err (!%p15981_p6)
}
 0x18d   : > { %14149 = dma.hbm_to_vmem [thread:$0]  (!%p21435_p8), %s21439_s17, 64, %s16990_s27, [#allocation20]  }
 0x18e   : > { %s16437_s1 = smov [#allocation24]   ;;  %s21440_s23 = sld [smem:[#allocation235_spill]] }
 0x18f   : > { %s679_s20 = sshll.u32 %s16437_s1, 4  ;;  %s680_s20 = int_to_ptr.vmem [resolvable:$true] %s679_s20 }
 0x194   : > { %s21441_s16 = smov %s21440_s23  ;;  %s15985_s25 = scalar_lea.hbm %s21440_s23, 8192 }
 0x195   : > { %p15986_p0 = scmp.ne.s32.totalorder %s21441_s16, %s15985_s25  ;;  %p15992_p7 = scmp.lt.u32.totalorder %s15985_s25, %s21441_s16 }
 0x197   : > { %p15988_p3 = pnand %p15986_p0, %p21434_p1 }
 0x199   : > { %p15989_p2 = pneg %p15988_p3 }
 0x19b   : > { %p15994_p13 = pnand %p15992_p7, %p15989_p2 }
 0x19d   : > { %15997 = shalt.err (!%p15994_p13)
}
 0x19e   : > { %s15998_s27 = scalar_lea.vmem %s680_s20, 8192  ;;  %p16006_p10 = scmp.lt.s32.totalorder %s680_s20, %s680_s20 }
 0x19f   : > { %p15999_p11 = scmp.ne.s32.totalorder %s680_s20, %s15998_s27  ;;  %p16007_p12 = scmp.lt.s32.totalorder %s15998_s27, %s15998_s27 }
 0x1a1   : > { %p16001_p4 = pnand %p15999_p11, %p21434_p1  ;;  %p16008_p9 = por %p16007_p12, %p16006_p10 }
 0x1a3   : > { %p16002_p5 = pneg %p16001_p4 }
 0x1a5   : > { %p16009_p6 = pnand %p16008_p9, %p16002_p5 }
 0x1a7   : > { %16012 = shalt.err (!%p16009_p6)
}
 0x1a8   : > { %s21138_s4 = smov 512   ;;  %s21442_s21 = sld [smem:[#allocation55_spill]] }
 0x1a9   : > { %s21443_s1 = sld [smem:[#allocation54_spill]]  ;;  %s21444_s15 = sld [smem:[#allocation53_spill]] }
 0x1aa   : > { %s21139_s8 = smov 32   ;;  %s21137_s26 = sadd.s32 4294967294, %s16419_s19  }
 0x1ab   : > { %14155 = dma.hbm_to_vmem [thread:$0]  (!%p21435_p8), %s21441_s16, 8192, %s680_s20, [#allocation23], %s21138_s4, %s21138_s4, %s21139_s8  }
 0x1ac   : > { %p21445_p0 = scmp.eq.s32.totalorder %s16820_s6, 0  ;;  %p21446_p3 = scmp.eq.s32.totalorder %s16419_s19, 0 }
 0x1ad   : > { %p463_p13 = scmp.eq.s32.totalorder %s16634_s18, 15  ;;  %p469_p11 = scmp.eq.s32.totalorder %s21137_s26, 15 }
 0x1ae   : > { %s84_s23 = sadd.s32 1, %s21442_s21  ;;  %p21448_p4 = scmp.eq.s32.totalorder %s16634_s18, 0 }
 0x1af   : > { %p91_p1 = scmp.ne.s32.totalorder %s21442_s21, %s21443_s1  ;;  %p97_p7 = scmp.ne.s32.totalorder %s21443_s1, %s21444_s15 }
 0x1b0   : > { %s17061_s25 = scalar_select %p21445_p0, %s21442_s21, %s84_s23  }
 0x1b1   : > { %p17065_p2 = por %p21446_p3, %p91_p1  ;;  %p17076_p8 = por %p21448_p4, %p97_p7 }
 0x1b2   : > { %s693_s6 = sand.u32 1, %s21442_s21   ;;  %p17081_p5 = por %p463_p13, %p91_p1 }
 0x1b3   : > { %s21449_s3 = scalar_select %p17076_p8, 1, 0 }
 0x1b4   : > { %s21450_s20 = scalar_select %p17081_p5, 1, 0 }
 0x1b5   : > { %p17085_p10 = por %p469_p11, %p97_p7  ;;  %s12004_s27 = sshll.u32 %s693_s6, 9 }
 0x1b6   : > { %s12806_s1 = sshll.u32 %s16411_s28, 6  ;;  %s12007_s15 = sshll.u32 %s16415_s29, 7 }
 0x1b7   : > { %s21451_s22 = scalar_select %p17085_p10, 1, 0 }
 0x1b8   : > { %s697_s10 = scalar_lea.vmem [#allocation4], %s12004_s27  ;;  %s704_s23 = sadd.s32 %s12806_s1, %s12007_s15 }
 0x1b9   : > { %s707_s0 = sshll.u32 %s697_s10, 4  ;;  %s12008_s26 = sshll.u32 %s704_s23, 7  ;;  %s17091_s0 = int_to_ptr.vmem [resolvable:$true] %s707_s0 }
 0x1ba   : > { %p21452_p12 = scmp.lt.s32.totalorder %s16419_s19, 16  ;;  %s21454_s16 = sld [smem:[#allocation223_spill]] }
 0x1bb   : > { %s740_s27 = scalar_lea.vmem [#allocation9], %s16837_s7  ;;  %s17109_s30 = scalar_lea.sflag [#allocation5], %s693_s6 }
 0x1bc   : > { %p17097_p9 = pnand %p21452_p12, %p17065_p2  ;;  %s748_s1 = sshll.u32 %s740_s27, 4  ;;  %s17107_s1 = int_to_ptr.vmem [resolvable:$true] %s748_s1 }
 0x1be   : > { %p16015_p1 = pneg %p17097_p9 }
 0x1c0   : > { %s17104_s17 = scalar_lea.hbm %s21454_s16, %s12008_s26  ;;  %s16018_s26 = scalar_lea.hbm %s21454_s16, 32768 }
 0x1c1   : > { %s16013_s15 = scalar_lea.hbm %s17104_s17, 8192  ;;  %p16019_p2 = scmp.lt.u32.totalorder %s17104_s17, %s21454_s16 }
 0x1c2   : > { %p16014_p6 = scmp.ne.s32.totalorder %s17104_s17, %s16013_s15  ;;  %p16020_p7 = scmp.lt.u32.totalorder %s16018_s26, %s16013_s15 }
 0x1c3   : > { %p16022_p11 = scmp.lt.u32.totalorder %s16013_s15, %s17104_s17 }
 0x1c4   : > { %p16016_p0 = pnand %p16015_p1, %p16014_p6  ;;  %p16021_p13 = por %p16020_p7, %p16019_p2 }
 0x1c6   : > { %p16017_p3 = pneg %p16016_p0  ;;  %p16023_p4 = por %p16022_p11, %p16021_p13 }
 0x1c8   : > { %p16024_p12 = pnand %p16023_p4, %p16017_p3 }
 0x1ca   : > { %16027 = shalt.err (!%p16024_p12)
}
 0x1cb   : > { %s16028_s7 = scalar_lea.vmem %s17091_s0, 8192  ;;  %s16440_s6 = smov [#allocation4]  }
 0x1cc   : > { %p16029_p6 = scmp.ne.s32.totalorder %s17091_s0, %s16028_s7  ;;  %s16033_s27 = sshll.u32 %s16440_s6, 4  ;;  %s16034_s27 = int_to_ptr.vmem [resolvable:$false] %s16033_s27 }
 0x1cd   : > { %s16035_s4 = scalar_lea.vmem %s16034_s27, 16384  ;;  %p16036_p5 = scmp.lt.s32.totalorder %s17091_s0, %s16034_s27 }
 0x1ce   : > { %p16031_p0 = pnand %p16029_p6, %p16015_p1  ;;  %p16037_p2 = scmp.lt.s32.totalorder %s16035_s4, %s16028_s7 }
 0x1d0   : > { %p16032_p10 = pneg %p16031_p0  ;;  %p16038_p7 = por %p16037_p2, %p16036_p5 }
 0x1d2   : > { %p16039_p13 = pnand %p16038_p7, %p16032_p10 }
 0x1d4   : > { %16042 = shalt.err (!%p16039_p13)
}
 0x1d5   : > { %s21455_s15 = smov 32   ;;  %s21456_s8 = smov 512  }
 0x1d6   : > { %14159 = dma.hbm_to_vmem [thread:$0]  (!%p17097_p9), %s17104_s17, 8192, %s17091_s0, %s17109_s30, %s21456_s8, %s21456_s8, %s21455_s15  }
 0x1d7   : > { %s16043_s26 = scalar_lea.hbm %s16859_s9, 64  ;;  %p21457_p3 = scmp.ne.s32.totalorder %s21419_s12, 0 }
 0x1d8   : > { %p16044_p1 = scmp.ne.s32.totalorder %s16859_s9, %s16043_s26  ;;  %s16048_s23 = scalar_lea.hbm %s21420_s5, 128 }
 0x1d9   : > { %p21458_p5 = pneg %p21457_p3  ;;  %p16049_p4 = scmp.lt.u32.totalorder %s16859_s9, %s21420_s5 }
 0x1da   : > { %p16050_p12 = scmp.lt.u32.totalorder %s16048_s23, %s16043_s26  ;;  %p16052_p0 = scmp.lt.u32.totalorder %s16043_s26, %s16859_s9 }
 0x1db   : > { %p16046_p10 = pnand %p16044_p1, %p21458_p5 }
 0x1dc   : > { %p16051_p6 = por %p16050_p12, %p16049_p4 }
 0x1dd   : > { %p16047_p11 = pneg %p16046_p10 }
 0x1de   : > { %p16053_p2 = por %p16052_p0, %p16051_p6 }
 0x1e0   : > { %p16054_p7 = pnand %p16053_p2, %p16047_p11 }
 0x1e2   : > { %16057 = shalt.err (!%p16054_p7)
}
 0x1e3   : > { %s16058_s17 = scalar_lea.vmem %s17107_s1, 64  ;;  %p21459_p13 = pmov %p21458_p5 }
 0x1e4   : > { %p16059_p9 = scmp.ne.s32.totalorder %s17107_s1, %s16058_s17  ;;  %s16441_s0 = smov [#allocation9]  }
 0x1e5   : > { %s16063_s30 = sshll.u32 %s16441_s0, 4  ;;  %s16064_s30 = int_to_ptr.vmem [resolvable:$false] %s16063_s30 }
 0x1e6   : > { %p16061_p1 = pnand %p16059_p9, %p21459_p13  ;;  %s16065_s27 = scalar_lea.vmem %s16064_s30, 128 }
 0x1e7   : > { %p16066_p10 = scmp.lt.s32.totalorder %s17107_s1, %s16064_s30  ;;  %p16067_p4 = scmp.lt.s32.totalorder %s16065_s27, %s16058_s17 }
 0x1e8   : > { %p16062_p5 = pneg %p16061_p1 }
 0x1e9   : > { %p16068_p12 = por %p16067_p4, %p16066_p10 }
 0x1eb   : > { %p16069_p6 = pnand %p16068_p12, %p16062_p5 }
 0x1ed   : > { %16072 = shalt.err (!%p16069_p6)
}
 0x1ee   : > { %s21460_s4 = sld [smem:[#allocation59_spill]]  ;;  %s21461_s15 = sld [smem:[#allocation68_spill]] }
 0x1ef   : > { %14165 = dma.hbm_to_vmem [thread:$0]  (!%p21457_p3), %s16859_s9, 64, %s17107_s1, %s16863_s2  }
 0x1f0   : > { %s12018_s8 = sshll.u32 %s16900_s14, 2  ;;  %s21462_s23 = sld [smem:[#allocation237_spill]] }
 0x1f1   : > { %s780_s17 = scalar_lea.vmem [#allocation27], %s12018_s8 }
 0x1f2   : > { %s788_s12 = sshll.u32 %s780_s17, 4  ;;  %s789_s12 = int_to_ptr.vmem [resolvable:$true] %s788_s12 }
 0x1f4   : > { %s12810_s26 = sshll.u32 %s21460_s4, 6  ;;  %p21464_p0 = scmp.ne.s32.totalorder %s21461_s15, 0 }
 0x1f6   : > { %s21463_s7 = smov %s21462_s23  ;;  %s17169_s6 = scalar_lea.hbm %s21462_s23, %s12810_s26 }
 0x1f7   : > { %s16073_s0 = scalar_lea.hbm %s17169_s6, 64  ;;  %s16078_s1 = scalar_lea.hbm %s21463_s7, 256 }
 0x1f8   : > { %p16074_p11 = scmp.ne.s32.totalorder %s17169_s6, %s16073_s0  ;;  %p16079_p3 = scmp.lt.u32.totalorder %s17169_s6, %s21463_s7 }
 0x1f9   : > { %p16080_p9 = scmp.lt.u32.totalorder %s16078_s1, %s16073_s0  ;;  %p16082_p1 = scmp.lt.u32.totalorder %s16073_s0, %s17169_s6 }
 0x1fa   : > { %p16076_p2 = pnand %p16074_p11, %p21464_p0 }
 0x1fb   : > { %p16081_p13 = por %p16080_p9, %p16079_p3 }
 0x1fc   : > { %p16077_p7 = pneg %p16076_p2 }
 0x1fd   : > { %p16083_p5 = por %p16082_p1, %p16081_p13 }
 0x1ff   : > { %p16084_p10 = pnand %p16083_p5, %p16077_p7 }
 0x201   : > { %16087 = shalt.err (!%p16084_p10)
}
 0x202   : > { %s16088_s8 = scalar_lea.vmem %s789_s12, 64  ;;  %s16442_s26 = smov [#allocation27]  }
 0x203   : > { %p16089_p4 = scmp.ne.s32.totalorder %s789_s12, %s16088_s8  ;;  %s16093_s10 = sshll.u32 %s16442_s26, 4  ;;  %s16094_s10 = int_to_ptr.vmem [resolvable:$false] %s16093_s10 }
 0x204   : > { %s16095_s21 = scalar_lea.vmem %s16094_s10, 128  ;;  %p16096_p11 = scmp.lt.s32.totalorder %s789_s12, %s16094_s10 }
 0x205   : > { %p16091_p12 = pnand %p16089_p4, %p21464_p0  ;;  %p16097_p2 = scmp.lt.s32.totalorder %s16095_s21, %s16088_s8 }
 0x207   : > { %p16092_p6 = pneg %p16091_p12  ;;  %p16098_p8 = por %p16097_p2, %p16096_p11 }
 0x209   : > { %p16099_p3 = pnand %p16098_p8, %p16092_p6 }
 0x20b   : > { %16102 = shalt.err (!%p16099_p3)
}
 0x20c   : > { %s21465_s23 = sld [smem:[#allocation67_spill]]  ;;  %s12812_s17 = sshll.u32 %s21460_s4, 14 }
 0x20d   : > { %s21467_s0 = sshll.u32 %s16900_s14, 10  ;;  %s21468_s27 = sld [smem:[#allocation238_spill]] }
 0x20e   : > { %s799_s9 = scalar_lea.vmem [#allocation28], %s21467_s0  ;;  %s796_s26 = scalar_lea.sflag [#allocation29], %s16900_s14 }
 0x20f   : > { %s807_s2 = sshll.u32 %s799_s9, 4  ;;  %s17197_s2 = int_to_ptr.vmem [resolvable:$true] %s807_s2 }
 0x212   : > { %p21466_p9 = scmp.ne.s32.totalorder %s21465_s23, 0 }
 0x213   : > { %s21469_s10 = smov %s21468_s27  ;;  %s17195_s8 = scalar_lea.hbm %s21468_s27, %s12812_s17 }
 0x214   : > { %14171 = dma.hbm_to_vmem [thread:$0]  (!%p21466_p9), %s17169_s6, 64, %s789_s12, %s16915_s13  }
 0x215   : > { %s16103_s21 = scalar_lea.hbm %s17195_s8, 16384  ;;  %s16108_s6 = scalar_lea.hbm %s21469_s10, 65536 }
 0x216   : > { %p16104_p8 = scmp.ne.s32.totalorder %s17195_s8, %s16103_s21  ;;  %p16109_p1 = scmp.lt.u32.totalorder %s17195_s8, %s21469_s10 }
 0x217   : > { %p16110_p5 = scmp.lt.u32.totalorder %s16108_s6, %s16103_s21  ;;  %p16112_p4 = scmp.lt.u32.totalorder %s16103_s21, %s17195_s8 }
 0x218   : > { %p16106_p7 = pnand %p16104_p8, %p21464_p0 }
 0x219   : > { %p16111_p10 = por %p16110_p5, %p16109_p1 }
 0x21a   : > { %p16107_p13 = pneg %p16106_p7 }
 0x21b   : > { %p16113_p12 = por %p16112_p4, %p16111_p10 }
 0x21d   : > { %p16114_p6 = pnand %p16113_p12, %p16107_p13 }
 0x21f   : > { %16117 = shalt.err (!%p16114_p6)
}
 0x220   : > { %s16118_s17 = scalar_lea.vmem %s17197_s2, 16384  ;;  %s16443_s9 = smov [#allocation28]  }
 0x221   : > { %p16119_p11 = scmp.ne.s32.totalorder %s17197_s2, %s16118_s17  ;;  %s16123_s1 = sshll.u32 %s16443_s9, 4  ;;  %s16124_s1 = int_to_ptr.vmem [resolvable:$false] %s16123_s1 }
 0x222   : > { %s16125_s30 = scalar_lea.vmem %s16124_s1, 32768  ;;  %p16126_p8 = scmp.lt.s32.totalorder %s17197_s2, %s16124_s1 }
 0x223   : > { %p16121_p2 = pnand %p16119_p11, %p21464_p0  ;;  %p16127_p7 = scmp.lt.s32.totalorder %s16125_s30, %s16118_s17 }
 0x225   : > { %p16122_p3 = pneg %p16121_p2  ;;  %p16128_p1 = por %p16127_p7, %p16126_p8 }
 0x227   : > { %p16129_p5 = pnand %p16128_p1, %p16122_p3 }
 0x229   : > { %16132 = shalt.err (!%p16129_p5)
}
 0x22a   : > { %14174 = dma.hbm_to_vmem [thread:$0]  (!%p21466_p9), %s17195_s8, 16384, %s17197_s2, %s796_s26, %s21431_s24, %s21431_s24, %s21430_s11  }
 0x22b   : > { %s21470_s15 = sld [smem:[#allocation60_spill]] }
 0x231   : > { %p21471_p0 = scmp.ne.s32.totalorder %s21470_s15, 0 }
 0x233   : > { %819 = sbr.rel (%p21471_p0) target bundleno = 3362 (0xd22), region = 84 }
 0x23a   : > { %s21472_s27 = sld [smem:[#allocation54_spill]]  ;;  %p21473_p13 = scmp.ne.s32.totalorder %s21449_s3, 0 }
 0x240   : > { %s17229_s21 = sand.u32 1, %s21472_s27  }
 0x241   : > { %s12026_s13 = sshll.u32 %s17229_s21, 9  ;;  %s822_s23 = scalar_lea.sflag [#allocation5], %s17229_s21 }
 0x242   : > { %s17235_s4 = scalar_lea.vmem [#allocation4], %s12026_s13 }
 0x243   : > { %16310 = dma.done.wait (%p21473_p13), %s822_s23, 8192  }
 0x244   : > { %16312 = vsyncadd (%p21473_p13), %s822_s23, 4294959104  ;;  %s21474_s14 = sld [smem:[#allocation51_spill]]  ;;  %s21475_s11 = sld [smem:[#allocation48_spill]] }
 0x245   : > { %s17242_s24 = sand.u32 1, %s16634_s18  }
 0x246   : > { %s831_s26 = scalar_lea.sflag [#allocation8], %s17242_s24 }
 0x24a   : > { %s832_s2 = sand.u32 1, %s21474_s14   ;;  %p21476_p9 = scmp.ne.s32.totalorder %s21475_s11, 0 }
 0x24b   : > { %s17245_s8 = sshll.u32 %s832_s2, 2 }
 0x24c   : > { %s834_s6 = scalar_lea.vmem [#allocation7], %s17245_s8 }
 0x24d   : > { %16314 = dma.done.wait (%p21476_p9), %s831_s26, 128  }
 0x24e   : > { %16316 = vsyncadd (%p21476_p9), %s831_s26, 4294967168  ;;  %s843_s3 = scalar_lea.vmem [#allocation9], %s17245_s8  ;;  %p21477_p10 = scmp.eq.s32.totalorder %s16634_s18, 0 }
 0x250   : > { %16318 = dma.done.wait (%p21477_p10), [#allocation11], 16448   ;;  %p21478_p4 = pmov %p21477_p10 }
 0x252   : > { %16320 = vsyncadd (%p21478_p4), [#allocation11], 4294950848  ;;  %p21479_p12 = pmov %p21478_p4 }
 0x253   : > { %p21480_p6 = pmov %p21478_p4 }
 0x254   : > { %16322 = dma.done.wait (%p21479_p12), [#allocation14], 16448  }
 0x255   : > { %16324 = vsyncadd (%p21480_p6), [#allocation14], 4294950848  ;;  %p21481_p11 = pmov %p21478_p4 }
 0x256   : > { %p21482_p2 = pmov %p21478_p4 }
 0x257   : > { %16326 = dma.done.wait (%p21481_p11), [#allocation17], 16448  }
 0x258   : > { %16328 = vsyncadd (%p21482_p2), [#allocation17], 4294950848  ;;  %p21483_p3 = pmov %p21482_p2 }
 0x259   : > { %p21484_p8 = pmov %p21482_p2 }
 0x25a   : > { %16330 = dma.done.wait (%p21483_p3), [#allocation20], 128  }
 0x25b   : > { %16332 = vsyncadd (%p21484_p8), [#allocation20], 4294967168  ;;  %p21485_p7 = pmov %p21482_p2 }
 0x25c   : > { %p21486_p1 = pmov %p21482_p2 }
 0x25d   : > { %16334 = dma.done.wait (%p21485_p7), [#allocation23], 16384  }
 0x25e   : > { %16336 = vsyncadd (%p21486_p1), [#allocation23], 4294950912  ;;  %s21487_s12 = sld [smem:[#allocation49_spill]]  ;;  %s21488_s0 = sld [smem:[#allocation66_spill]] }
 0x25f   : > { %s889_s1 = scalar_lea.sflag [#allocation26], %s17242_s24 }
 0x264   : > { %s890_s17 = sand.u32 1, %s21487_s12   ;;  %p21489_p5 = scmp.ne.s32.totalorder %s21488_s0, 0 }
 0x265   : > { %s12039_s9 = sshll.u32 %s890_s17, 10 }
 0x266   : > { %s17276_s30 = scalar_lea.vmem [#allocation25], %s12039_s9 }
 0x267   : > { %16338 = dma.done.wait (%p21489_p5), %s889_s1, 16448  }
 0x268   : > { %16340 = vsyncadd (%p21489_p5), %s889_s1, 4294950848  ;;  %s12040_s15 = sshll.u32 %s890_s17, 2  ;;  %s907_s23 = scalar_lea.sflag [#allocation29], %s890_s17 }
 0x269   : > { %s17282_s27 = scalar_lea.vmem [#allocation27], %s12040_s15  ;;  %s17284_s18 = scalar_lea.vmem [#allocation28], %s12039_s9 }
 0x26a   : > { %16342 = dma.done.wait (%p21489_p5), %s907_s23, 16384  }
 0x26b   : > { %16344 = vsyncadd (%p21489_p5), %s907_s23, 4294950912  ;;  %s12042_s14 = sshll.u32 %s17229_s21, 8  ;;  %s17299_s12 = scalar_lea.vmem [#allocation34], %s12026_s13 }
 0x26c   : > { %s17291_s11 = scalar_lea.vmem [#allocation30], %s12042_s14  ;;  %s17293_s2 = scalar_lea.vmem [#allocation31], %s12042_s14 }
 0x26d   : > { %s17295_s26 = scalar_lea.vmem [#allocation33], %s12042_s14  ;;  %s21490_s17 = sld [smem:[#allocation56_spill]] }
 0x273   : > { %p12046_p0 = scmp.ne.s32.totalorder %s21490_s17, 0 }
 0x275   : > { %1016 = sbr.rel (%p12046_p0) target bundleno = 2472 (0x9a8), region = 152 }
 0x27c   : > { %v1017_v0 = vld [vmem:[%s17235_s4] sm:$0xff]  ;;  %v1018_v1 = vld [vmem:[%s17235_s4 + $0x8] sm:$0xff]  ;;  %v1019_v2 = vld [vmem:[%s17235_s4 + $0x10] sm:$0xff] }
 0x27d   : > { %v1081_v3 = vadd.f32 %v1018_v1, %v1017_v0  ;;  %v1025_v4 = vld [vmem:[%s17235_s4 + $0x40] sm:$0xff]  ;;  %v1026_v5 = vld [vmem:[%s17235_s4 + $0x48] sm:$0xff]  ;;  %v1020_v6 = vld [vmem:[%s17235_s4 + $0x18] sm:$0xff] }
 0x27e   : > { %v1027_v7 = vld [vmem:[%s17235_s4 + $0x50] sm:$0xff]  ;;  %v1091_v8 = vadd.f32 %v1026_v5, %v1025_v4  ;;  %v1021_v9 = vld [vmem:[%s17235_s4 + $0x20] sm:$0xff]  ;;  %v1028_v11 = vld [vmem:[%s17235_s4 + $0x58] sm:$0xff] }
 0x27f   : > { %v1082_v10 = vadd.f32 %v1081_v3, %v1019_v2  ;;  %v1022_v12 = vld [vmem:[%s17235_s4 + $0x28] sm:$0xff]  ;;  %v1023_v13 = vld [vmem:[%s17235_s4 + $0x30] sm:$0xff]  ;;  %v1029_v16 = vld [vmem:[%s17235_s4 + $0x60] sm:$0xff] }
 0x280   : > { %v1092_v14 = vadd.f32 %v1091_v8, %v1027_v7  ;;  %v1086_v15 = vadd.f32 %v1022_v12, %v1021_v9  ;;  %v1030_v17 = vld [vmem:[%s17235_s4 + $0x68] sm:$0xff]  ;;  %v1031_v18 = vld [vmem:[%s17235_s4 + $0x70] sm:$0xff]  ;;  %v1024_v20 = vld [vmem:[%s17235_s4 + $0x38] sm:$0xff] }
 0x281   : > { %v1083_v19 = vadd.f32 %v1082_v10, %v1020_v6  ;;  %v1096_v21 = vadd.f32 %v1030_v17, %v1029_v16  ;;  %v1033_v22 = vld [vmem:[%s17235_s4 + $0x80] sm:$0xff]  ;;  %v1034_v23 = vld [vmem:[%s17235_s4 + $0x88] sm:$0xff]  ;;  %v1032_v26 = vld [vmem:[%s17235_s4 + $0x78] sm:$0xff] }
 0x282   : > { %v1093_v24 = vadd.f32 %v1092_v14, %v1028_v11  ;;  %v1087_v25 = vadd.f32 %v1086_v15, %v1023_v13  ;;  %v1035_v27 = vld [vmem:[%s17235_s4 + $0x90] sm:$0xff]  ;;  %v1101_v28 = vadd.f32 %v1034_v23, %v1033_v22  ;;  %v1037_v29 = vld [vmem:[%s17235_s4 + $0xa0] sm:$0xff]  ;;  %v1036_v31 = vld [vmem:[%s17235_s4 + $0x98] sm:$0xff] }
 0x283   : > { %1084 = vadd.xlane.f32.xlu0 %v1083_v19  ;;  %v1097_v30 = vadd.f32 %v1096_v21, %v1031_v18  ;;  %v1038_v32 = vld [vmem:[%s17235_s4 + $0xa8] sm:$0xff]  ;;  %v1039_v33 = vld [vmem:[%s17235_s4 + $0xb0] sm:$0xff]  ;;  %v1041_v37 = vld [vmem:[%s17235_s4 + $0xc0] sm:$0xff] }
 0x284   : > { %1094 = vadd.xlane.f32.xlu1 %v1093_v24  ;;  %v1088_v34 = vadd.f32 %v1087_v25, %v1024_v20  ;;  %v1102_v35 = vadd.f32 %v1101_v28, %v1035_v27  ;;  %v1106_v36 = vadd.f32 %v1038_v32, %v1037_v29  ;;  %v1042_v38 = vld [vmem:[%s17235_s4 + $0xc8] sm:$0xff]  ;;  %v1043_v39 = vld [vmem:[%s17235_s4 + $0xd0] sm:$0xff]  ;;  %v1040_v41 = vld [vmem:[%s17235_s4 + $0xb8] sm:$0xff] }
 0x285   : > { %v1098_v40 = vadd.f32 %v1097_v30, %v1032_v26  ;;  %v1111_v42 = vadd.f32 %v1042_v38, %v1041_v37  ;;  %v1045_v43 = vld [vmem:[%s17235_s4 + $0xe0] sm:$0xff]  ;;  %v1046_v44 = vld [vmem:[%s17235_s4 + $0xe8] sm:$0xff]  ;;  %v1047_v46 = vld [vmem:[%s17235_s4 + $0xf0] sm:$0xff] }
 0x286   : > { %v1107_v45 = vadd.f32 %v1106_v36, %v1039_v33  ;;  %v1116_v47 = vadd.f32 %v1046_v44, %v1045_v43  ;;  %v1049_v48 = vld [vmem:[%s17235_s4 + $0x100] sm:$0xff]  ;;  %v1103_v49 = vadd.f32 %v1102_v35, %v1036_v31  ;;  %v1044_v50 = vld [vmem:[%s17235_s4 + $0xd8] sm:$0xff]  ;;  %v1050_v53 = vld [vmem:[%s17235_s4 + $0x108] sm:$0xff] }
 0x287   : > { %1089 = vadd.xlane.f32.xlu0 %v1088_v34  ;;  %v1112_v51 = vadd.f32 %v1111_v42, %v1043_v39  ;;  %v1048_v52 = vld [vmem:[%s17235_s4 + $0xf8] sm:$0xff]  ;;  %v1051_v56 = vld [vmem:[%s17235_s4 + $0x110] sm:$0xff]  ;;  %v1121_v57 = vadd.f32 %v1050_v53, %v1049_v48  ;;  %v1053_v58 = vld [vmem:[%s17235_s4 + $0x120] sm:$0xff] }
 0x288   : > { %1099 = vadd.xlane.f32.xlu1 %v1098_v40  ;;  %v1108_v54 = vadd.f32 %v1107_v45, %v1040_v41  ;;  %v1117_v55 = vadd.f32 %v1116_v47, %v1047_v46  ;;  %v1054_v59 = vld [vmem:[%s17235_s4 + $0x128] sm:$0xff]  ;;  %v1055_v60 = vld [vmem:[%s17235_s4 + $0x130] sm:$0xff]  ;;  %v1057_v62 = vld [vmem:[%s17235_s4 + $0x140] sm:$0xff] }
 0x289   : > { %v1126_v61 = vadd.f32 %v1054_v59, %v1053_v58  ;;  %v1058_v63 = vld [vmem:[%s17235_s4 + $0x148] sm:$0xff]  ;;  %v1061_v0 = vld [vmem:[%s17235_s4 + $0x160] sm:$0xff]  ;;  %v1113_v1 = vadd.f32 %v1112_v51, %v1044_v50  ;;  %v1052_v2 = vld [vmem:[%s17235_s4 + $0x118] sm:$0xff]  ;;  %v1122_v3 = vadd.f32 %v1121_v57, %v1051_v56 }
 0x28a   : > { %v1056_v4 = vld [vmem:[%s17235_s4 + $0x138] sm:$0xff]  ;;  %v1131_v5 = vadd.f32 %v1058_v63, %v1057_v62  ;;  %v1062_v6 = vld [vmem:[%s17235_s4 + $0x168] sm:$0xff]  ;;  %v1118_v7 = vadd.f32 %v1117_v55, %v1048_v52  ;;  %v1059_v9 = vld [vmem:[%s17235_s4 + $0x150] sm:$0xff] }
 0x28b   : > { %1104 = vadd.xlane.f32.xlu0 %v1103_v49  ;;  %v1127_v8 = vadd.f32 %v1126_v61, %v1055_v60  ;;  %v1136_v10 = vadd.f32 %v1062_v6, %v1061_v0  ;;  %v1065_v11 = vld [vmem:[%s17235_s4 + $0x180] sm:$0xff]  ;;  %v1066_v12 = vld [vmem:[%s17235_s4 + $0x188] sm:$0xff]  ;;  %v1063_v13 = vld [vmem:[%s17235_s4 + $0x170] sm:$0xff]  ;;  %v1123_v17 = vadd.f32 %v1122_v3, %v1052_v2 }
 0x28c   : > { %1109 = vadd.xlane.f32.xlu1 %v1108_v54  ;;  %v1069_v14 = vld [vmem:[%s17235_s4 + $0x1a0] sm:$0xff]  ;;  %v1070_v15 = vld [vmem:[%s17235_s4 + $0x1a8] sm:$0xff]  ;;  %v1060_v16 = vld [vmem:[%s17235_s4 + $0x158] sm:$0xff]  ;;  %v1132_v18 = vadd.f32 %v1131_v5, %v1059_v9  ;;  %v1141_v21 = vadd.f32 %v1066_v12, %v1065_v11 }
 0x28d   : > { %v1064_v19 = vld [vmem:[%s17235_s4 + $0x178] sm:$0xff]  ;;  %v1067_v20 = vld [vmem:[%s17235_s4 + $0x190] sm:$0xff]  ;;  %v1128_v23 = vadd.f32 %v1127_v8, %v1056_v4  ;;  %v1137_v24 = vadd.f32 %v1136_v10, %v1063_v13  ;;  %v1146_v25 = vadd.f32 %v1070_v15, %v1069_v14  ;;  %v1073_v26 = vld [vmem:[%s17235_s4 + $0x1c0] sm:$0xff] }
 0x28e   : > { %v1071_v22 = vld [vmem:[%s17235_s4 + $0x1b0] sm:$0xff]  ;;  %v1074_v27 = vld [vmem:[%s17235_s4 + $0x1c8] sm:$0xff]  ;;  %v1077_v28 = vld [vmem:[%s17235_s4 + $0x1e0] sm:$0xff]  ;;  %v1133_v32 = vadd.f32 %v1132_v18, %v1060_v16  ;;  %v1142_v33 = vadd.f32 %v1141_v21, %v1067_v20 }
 0x28f   : > { %1114 = vadd.xlane.f32.xlu0 %v1113_v1  ;;  %v1078_v29 = vld [vmem:[%s17235_s4 + $0x1e8] sm:$0xff]  ;;  %v1068_v30 = vld [vmem:[%s17235_s4 + $0x198] sm:$0xff]  ;;  %v1075_v31 = vld [vmem:[%s17235_s4 + $0x1d0] sm:$0xff]  ;;  %v1151_v35 = vadd.f32 %v1074_v27, %v1073_v26  ;;  %v1138_v37 = vadd.f32 %v1137_v24, %v1064_v19  ;;  %v1147_v38 = vadd.f32 %v1146_v25, %v1071_v22 }
 0x290   : > { %1119 = vadd.xlane.f32.xlu1 %v1118_v7  ;;  %v1072_v34 = vld [vmem:[%s17235_s4 + $0x1b8] sm:$0xff]  ;;  %v1079_v36 = vld [vmem:[%s17235_s4 + $0x1f0] sm:$0xff]  ;;  %v1156_v39 = vadd.f32 %v1078_v29, %v1077_v28  ;;  %v1143_v41 = vadd.f32 %v1142_v33, %v1068_v30  ;;  %v15032_v26 = vld [vmem:[%s17235_s4] sm:$0xff] }
 0x291   : > { %v1076_v40 = vld [vmem:[%s17235_s4 + $0x1d8] sm:$0xff]  ;;  %v1152_v42 = vadd.f32 %v1151_v35, %v1075_v31  ;;  %v1148_v44 = vadd.f32 %v1147_v38, %v1072_v34  ;;  %v14360_v48 = vld [vmem:[#allocation10 + $0x4] ss:$16 sps:$4 sm:$0xff]   ;;  %v14364_v50 = vld [vmem:[#allocation10] ss:$16 sps:$4 sm:$0xff]  }
 0x292   : > { %v1080_v43 = vld [vmem:[%s17235_s4 + $0x1f8] sm:$0xff]  ;;  %v1157_v45 = vadd.f32 %v1156_v39, %v1079_v36  ;;  %v14366_v52 = vld [vmem:[#allocation10 + $0x24] ss:$16 sps:$4 sm:$0xff]   ;;  %2653 = vmatprep.subr.bf16.mxu0 %v14360_v48  ;;  %v14370_v54 = vld [vmem:[#allocation10 + $0x20] ss:$16 sps:$4 sm:$0xff]  }
 0x293   : > { %1124 = vadd.xlane.f32.xlu0 %v1123_v17  ;;  %v1153_v46 = vadd.f32 %v1152_v42, %v1076_v40  ;;  %v14362_v49 = vld [vmem:[#allocation10 + $0xc] ss:$16 sps:$4 sm:$0xff]   ;;  %v14365_v51 = vld [vmem:[#allocation10 + $0x8] ss:$16 sps:$4 sm:$0xff]   ;;  %2654 = vmatpush1.bf16.msra.mxu0 %v14364_v50  ;;  %v14372_v56 = vld [vmem:[#allocation10 + $0x44] ss:$16 sps:$4 sm:$0xff]  }
 0x294   : > { %1129 = vadd.xlane.f32.xlu1 %v1128_v23  ;;  %v1158_v47 = vadd.f32 %v1157_v45, %v1080_v43  ;;  %v14368_v53 = vld [vmem:[#allocation10 + $0x2c] ss:$16 sps:$4 sm:$0xff]   ;;  %2879 = vmatprep.subr.bf16.mxu1 %v14362_v49  ;;  %v14371_v55 = vld [vmem:[#allocation10 + $0x28] ss:$16 sps:$4 sm:$0xff]   ;;  %v14376_v58 = vld [vmem:[#allocation10 + $0x40] ss:$16 sps:$4 sm:$0xff]  }
 0x295   : > { %2880 = vmatpush1.bf16.msra.mxu1 %v14365_v51  ;;  %2655 = vmatprep.subr.bf16.mxu0 %v14366_v52  ;;  %v14374_v57 = vld [vmem:[#allocation10 + $0x4c] ss:$16 sps:$4 sm:$0xff]   ;;  %v14377_v59 = vld [vmem:[#allocation10 + $0x48] ss:$16 sps:$4 sm:$0xff]   ;;  %v14378_v60 = vld [vmem:[#allocation10 + $0x64] ss:$16 sps:$4 sm:$0xff]  }
 0x296   : > { %2881 = vmatprep.subr.bf16.mxu1 %v14368_v53  ;;  %v14380_v61 = vld [vmem:[#allocation10 + $0x6c] ss:$16 sps:$4 sm:$0xff]   ;;  %v14382_v62 = vld [vmem:[#allocation10 + $0x60] ss:$16 sps:$4 sm:$0xff]   ;;  %v14383_v63 = vld [vmem:[#allocation10 + $0x68] ss:$16 sps:$4 sm:$0xff]  }
 0x297   : > { %1134 = vadd.xlane.f32.xlu0 %v1133_v32  ;;  %2656 = vmatpush1.bf16.msra.mxu0 %v14370_v54  ;;  %v14384_v0 = vld [vmem:[#allocation10 + $0x84] ss:$16 sps:$4 sm:$0xff]   ;;  %v14386_v1 = vld [vmem:[#allocation10 + $0x8c] ss:$16 sps:$4 sm:$0xff]   ;;  %v14388_v2 = vld [vmem:[#allocation10 + $0x80] ss:$16 sps:$4 sm:$0xff]  }
 0x298   : > { %1139 = vadd.xlane.f32.xlu1 %v1138_v37  ;;  %2657 = vmatprep.subr.bf16.mxu0 %v14372_v56  ;;  %v14389_v3 = vld [vmem:[#allocation10 + $0x88] ss:$16 sps:$4 sm:$0xff]   ;;  %v14390_v4 = vld [vmem:[#allocation10 + $0xa4] ss:$16 sps:$4 sm:$0xff]   ;;  %v14392_v5 = vld [vmem:[#allocation10 + $0xac] ss:$16 sps:$4 sm:$0xff]  }
 0x299   : > { %2882 = vmatpush1.bf16.msra.mxu1 %v14371_v55  ;;  %v14394_v6 = vld [vmem:[#allocation10 + $0xa0] ss:$16 sps:$4 sm:$0xff]   ;;  %v14395_v7 = vld [vmem:[#allocation10 + $0xa8] ss:$16 sps:$4 sm:$0xff]   ;;  %v14396_v8 = vld [vmem:[#allocation10 + $0xc4] ss:$16 sps:$4 sm:$0xff]  }
 0x29a   : > { %2883 = vmatprep.subr.bf16.mxu1 %v14374_v57  ;;  %v14398_v9 = vld [vmem:[#allocation10 + $0xcc] ss:$16 sps:$4 sm:$0xff]   ;;  %v14400_v10 = vld [vmem:[#allocation10 + $0xc0] ss:$16 sps:$4 sm:$0xff]   ;;  %v14401_v11 = vld [vmem:[#allocation10 + $0xc8] ss:$16 sps:$4 sm:$0xff]  }
 0x29b   : > { %1144 = vadd.xlane.f32.xlu0 %v1143_v41  ;;  %2658 = vmatpush1.bf16.msra.mxu0 %v14376_v58  ;;  %v14402_v12 = vld [vmem:[#allocation10 + $0xe4] ss:$16 sps:$4 sm:$0xff]   ;;  %v14404_v13 = vld [vmem:[#allocation10 + $0xec] ss:$16 sps:$4 sm:$0xff]   ;;  %v14406_v14 = vld [vmem:[#allocation10 + $0xe0] ss:$16 sps:$4 sm:$0xff]  }
 0x29c   : > { %1149 = vadd.xlane.f32.xlu1 %v1148_v44  ;;  %2659 = vmatprep.subr.bf16.mxu0 %v14378_v60  ;;  %v14407_v15 = vld [vmem:[#allocation10 + $0xe8] ss:$16 sps:$4 sm:$0xff]   ;;  %v14408_v16 = vld [vmem:[#allocation10 + $0x104] ss:$16 sps:$4 sm:$0xff]   ;;  %v14410_v17 = vld [vmem:[#allocation10 + $0x10c] ss:$16 sps:$4 sm:$0xff]  }
 0x29d   : > { %2884 = vmatpush1.bf16.msra.mxu1 %v14377_v59  ;;  %v14412_v18 = vld [vmem:[#allocation10 + $0x100] ss:$16 sps:$4 sm:$0xff]   ;;  %v14413_v19 = vld [vmem:[#allocation10 + $0x108] ss:$16 sps:$4 sm:$0xff]   ;;  %v14414_v20 = vld [vmem:[#allocation10 + $0x124] ss:$16 sps:$4 sm:$0xff]  }
 0x29e   : > { %2885 = vmatprep.subr.bf16.mxu1 %v14380_v61  ;;  %v14416_v21 = vld [vmem:[#allocation10 + $0x12c] ss:$16 sps:$4 sm:$0xff]   ;;  %v15034_v30 = vld [vmem:[%s17235_s4 + $0x10] sm:$0xff]  ;;  %v15036_v34 = vld [vmem:[%s17235_s4 + $0x40] sm:$0xff] }
 0x29f   : > { %1154 = vadd.xlane.f32.xlu0 %v1153_v46  ;;  %2660 = vmatpush1.bf16.msra.mxu0 %v14382_v62  ;;  %v15033_v28 = vld [vmem:[%s17235_s4 + $0x8] sm:$0xff]  ;;  %v15035_v32 = vld [vmem:[%s17235_s4 + $0x18] sm:$0xff]  ;;  %v15038_v39 = vld [vmem:[%s17235_s4 + $0x50] sm:$0xff] }
 0x2a0   : > { %1159 = vadd.xlane.f32.xlu1 %v1158_v47  ;;  %2661 = vmatprep.subr.bf16.mxu0 %v14384_v0  ;;  %v15037_v36 = vld [vmem:[%s17235_s4 + $0x48] sm:$0xff]  ;;  %v15039_v41 = vld [vmem:[%s17235_s4 + $0x58] sm:$0xff]  ;;  %v15040_v52 = vld [vmem:[%s17235_s4 + $0x20] sm:$0xff] }
 0x2a1   : > { %2886 = vmatpush1.bf16.msra.mxu1 %v14383_v63  ;;  %v15041_v54 = vld [vmem:[%s17235_s4 + $0x28] sm:$0xff]  ;;  %v15042_v58 = vld [vmem:[%s17235_s4 + $0x60] sm:$0xff] }
 0x2a2   : > { %2887 = vmatprep.subr.bf16.mxu1 %v14386_v1  ;;  %v15043_v60 = vld [vmem:[%s17235_s4 + $0x68] sm:$0xff] }
 0x2a3   : > { %2662 = vmatpush1.bf16.msra.mxu0 %v14388_v2 }
 0x2a4   : > { %2663 = vmatprep.subr.bf16.mxu0 %v14390_v4  ;;  %v15044_v4 = vld [vmem:[%s17235_s4 + $0x30] sm:$0xff] }
 0x2a5   : > { %2888 = vmatpush1.bf16.msra.mxu1 %v14389_v3 }
 0x2a6   : > { %2889 = vmatprep.subr.bf16.mxu1 %v14392_v5 }
 0x2a7   : > { %2664 = vmatpush1.bf16.msra.mxu0 %v14394_v6  ;;  %v15045_v6 = vld [vmem:[%s17235_s4 + $0x38] sm:$0xff] }
 0x2a8   : > { %2665 = vmatprep.subr.bf16.mxu0 %v14396_v8 }
 0x2a9   : > { %2890 = vmatpush1.bf16.msra.mxu1 %v14395_v7 }
 0x2aa   : > { %2891 = vmatprep.subr.bf16.mxu1 %v14398_v9 }
 0x2ab   : > { %2666 = vmatpush1.bf16.msra.mxu0 %v14400_v10 }
 0x2ac   : > { %2667 = vmatprep.subr.bf16.mxu0 %v14402_v12  ;;  %v15046_v12 = vld [vmem:[%s17235_s4 + $0x80] sm:$0xff] }
 0x2ad   : > { %2892 = vmatpush1.bf16.msra.mxu1 %v14401_v11 }
 0x2ae   : > { %2893 = vmatprep.subr.bf16.mxu1 %v14404_v13 }
 0x2af   : > { %2668 = vmatpush1.bf16.msra.mxu0 %v14406_v14  ;;  %v15047_v14 = vld [vmem:[%s17235_s4 + $0x88] sm:$0xff] }
 0x2b0   : > { %2669 = vmatprep.subr.bf16.mxu0 %v14408_v16 }
 0x2b1   : > { %2894 = vmatpush1.bf16.msra.mxu1 %v14407_v15 }
 0x2b2   : > { %2895 = vmatprep.subr.bf16.mxu1 %v14410_v17 }
 0x2b3   : > { %2670 = vmatpush1.bf16.msra.mxu0 %v14412_v18  ;;  %v15048_v18 = vld [vmem:[%s17235_s4 + $0xa0] sm:$0xff] }
 0x2b4   : > { %2671 = vmatprep.subr.bf16.mxu0 %v14414_v20  ;;  %v15049_v20 = vld [vmem:[%s17235_s4 + $0xa8] sm:$0xff] }
 0x2b5   : > { %2896 = vmatpush1.bf16.msra.mxu1 %v14413_v19 }
 0x2b6   : > { %2897 = vmatprep.subr.bf16.mxu1 %v14416_v21 }
 0x310   : > { %v1085_v22 = vpop.xlane.xlu0 %1084 }
 0x311   : > { %v1162_v23 = vmul.f32 0.001953125, %v1085_v22  ;;  %v1095_v24 = vpop.xlane.xlu1 %1094 }
 0x312   : > { %v1164_v25 = vmul.f32 0.001953125, %v1095_v24 }
 0x313   : > { %v17367_v27 = vsub.f32 %v15032_v26, %v1162_v23  ;;  %v17370_v29 = vsub.f32 %v15033_v28, %v1162_v23  ;;  %v17373_v31 = vsub.f32 %v15034_v30, %v1162_v23  ;;  %v17376_v33 = vsub.f32 %v15035_v32, %v1162_v23  ;;  %v15050_v30 = vld [vmem:[%s17235_s4 + $0x70] sm:$0xff] }
 0x314   : > { %v17379_v35 = vsub.f32 %v15036_v34, %v1164_v25  ;;  %v17382_v37 = vsub.f32 %v15037_v36, %v1164_v25  ;;  %v1090_v38 = vpop.xlane.xlu0 %1089  ;;  %v17385_v40 = vsub.f32 %v15038_v39, %v1164_v25  ;;  %v17388_v42 = vsub.f32 %v15039_v41, %v1164_v25  ;;  %v15051_v34 = vld [vmem:[%s17235_s4 + $0x78] sm:$0xff] }
 0x315   : > { %v1163_v43 = vmul.f32 0.001953125, %v1090_v38  ;;  %v1100_v44 = vpop.xlane.xlu1 %1099  ;;  %v1242_v45 = vmul.f32 %v17367_v27, %v17367_v27  ;;  %v1243_v46 = vmul.f32 %v17370_v29, %v17370_v29  ;;  %v1244_v47 = vmul.f32 %v17373_v31, %v17373_v31 }
 0x316   : > { %21491 = vst [vmem:[#allocation69_spill] sm:$0xff] %v17385_v40  ;;  %v1165_v48 = vmul.f32 0.001953125, %v1100_v44  ;;  %v1245_v49 = vmul.f32 %v17376_v33, %v17376_v33  ;;  %v1250_v50 = vmul.f32 %v17379_v35, %v17379_v35  ;;  %v1251_v51 = vmul.f32 %v17382_v37, %v17382_v37 }
 0x317   : > { %v17403_v53 = vsub.f32 %v15040_v52, %v1163_v43  ;;  %v17406_v55 = vsub.f32 %v15041_v54, %v1163_v43  ;;  %v1306_v56 = vadd.f32 %v1243_v46, %v1242_v45  ;;  %v1252_v57 = vmul.f32 %v17385_v40, %v17385_v40  ;;  %v15053_v45 = vld [vmem:[%s17235_s4 + $0xc0] sm:$0xff]  ;;  %v15056_v54 = vld [vmem:[%s17235_s4 + $0xe8] sm:$0xff]  ;;  %v15085_v40 = vld [vmem:[%s17235_s4 + $0x158] sm:$0xff] }
 0x318   : > { %v17411_v59 = vsub.f32 %v15042_v58, %v1165_v48  ;;  %v17414_v61 = vsub.f32 %v15043_v60, %v1165_v48  ;;  %v1105_v62 = vpop.xlane.xlu0 %1104  ;;  %v1253_v63 = vmul.f32 %v17388_v42, %v17388_v42  ;;  %v1316_v0 = vadd.f32 %v1251_v51, %v1250_v50  ;;  %v15055_v51 = vld [vmem:[%s17235_s4 + $0xe0] sm:$0xff] }
 0x319   : > { %v1166_v1 = vmul.f32 0.001953125, %v1105_v62  ;;  %v1110_v2 = vpop.xlane.xlu1 %1109  ;;  %v1307_v3 = vadd.f32 %v1306_v56, %v1244_v47  ;;  %v17419_v5 = vsub.f32 %v15044_v4, %v1163_v43  ;;  %v17422_v7 = vsub.f32 %v15045_v6, %v1163_v43  ;;  %v15052_v43 = vld [vmem:[%s17235_s4 + $0x90] sm:$0xff]  ;;  %v15054_v47 = vld [vmem:[%s17235_s4 + $0xc8] sm:$0xff] }
 0x31a   : > { %v17424_v8 = vmul.f32 0.001953125, %v1110_v2  ;;  %v1317_v9 = vadd.f32 %v1316_v0, %v1252_v57  ;;  %v1246_v10 = vmul.f32 %v17403_v53, %v17403_v53  ;;  %v1247_v11 = vmul.f32 %v17406_v55, %v17406_v55  ;;  %v15057_v2 = vld [vmem:[%s17235_s4 + $0x98] sm:$0xff] }
 0x31b   : > { %v17431_v13 = vsub.f32 %v15046_v12, %v1166_v1  ;;  %v17434_v15 = vsub.f32 %v15047_v14, %v1166_v1  ;;  %v1308_v16 = vadd.f32 %v1307_v3, %v1245_v49  ;;  %v1248_v17 = vmul.f32 %v17419_v5, %v17419_v5  ;;  %v15058_v12 = vld [vmem:[%s17235_s4 + $0x100] sm:$0xff] }
 0x31c   : > { %v17440_v19 = vsub.f32 %v15048_v18, %v17424_v8  ;;  %v17444_v21 = vsub.f32 %v15049_v20, %v17424_v8  ;;  %v1115_v22 = vpop.xlane.xlu0 %1114  ;;  %v1318_v23 = vadd.f32 %v1317_v9, %v1253_v63  ;;  %v1249_v24 = vmul.f32 %v17422_v7, %v17422_v7  ;;  %v15060_v18 = vld [vmem:[%s17235_s4 + $0xb0] sm:$0xff] }
 0x31d   : > { %v17448_v25 = vmul.f32 0.001953125, %v1115_v22  ;;  %1309 = vadd.xlane.f32.xlu0 %v1308_v16  ;;  %v1120_v26 = vpop.xlane.xlu1 %1119  ;;  %v1311_v28 = vadd.f32 %v1247_v11, %v1246_v10  ;;  %v17451_v32 = vsub.f32 %v15050_v30, %v1165_v48  ;;  %v17454_v36 = vsub.f32 %v15051_v34, %v1165_v48  ;;  %v15061_v22 = vld [vmem:[%s17235_s4 + $0x120] sm:$0xff] }
 0x31e   : > { %v17456_v38 = vmul.f32 0.001953125, %v1120_v26  ;;  %v1254_v39 = vmul.f32 %v17411_v59, %v17411_v59  ;;  %v1255_v41 = vmul.f32 %v17414_v61, %v17414_v61  ;;  %v17463_v44 = vsub.f32 %v15052_v43, %v1166_v1  ;;  %v15063_v43 = vld [vmem:[%s17235_s4 + $0xb8] sm:$0xff] }
 0x31f   : > { %21492 = vst [vmem:[#allocation70_spill] sm:$0xff] %v17451_v32  ;;  %v17467_v46 = vsub.f32 %v15053_v45, %v17448_v25  ;;  %v17471_v48 = vsub.f32 %v15054_v47, %v17448_v25  ;;  %v1312_v49 = vadd.f32 %v1311_v28, %v1248_v17  ;;  %v1256_v50 = vmul.f32 %v17451_v32, %v17451_v32 }
 0x320   : > { %21493 = vst [vmem:[#allocation71_spill] sm:$0xff] %v17463_v44  ;;  %v17477_v52 = vsub.f32 %v15055_v51, %v17456_v38  ;;  %v17481_v56 = vsub.f32 %v15056_v54, %v17456_v38  ;;  %v1125_v57 = vpop.xlane.xlu0 %1124  ;;  %v1257_v58 = vmul.f32 %v17454_v36, %v17454_v36  ;;  %v1321_v60 = vadd.f32 %v1255_v41, %v1254_v39 }
 0x321   : > { %v17485_v62 = vmul.f32 0.001953125, %v1125_v57  ;;  %1319 = vadd.xlane.f32.xlu0 %v1318_v23  ;;  %v1313_v63 = vadd.f32 %v1312_v49, %v1249_v24  ;;  %v1130_v0 = vpop.xlane.xlu1 %1129  ;;  %v17488_v3 = vsub.f32 %v15057_v2, %v1166_v1  ;;  %v1258_v4 = vmul.f32 %v17431_v13, %v17431_v13  ;;  %v15059_v1 = vld [vmem:[%s17235_s4 + $0x108] sm:$0xff]  ;;  %v15064_v57 = vld [vmem:[%s17235_s4 + $0xd0] sm:$0xff] }
 0x322   : > { %v17492_v6 = vmul.f32 0.001953125, %v1130_v0  ;;  %v1322_v9 = vadd.f32 %v1321_v60, %v1256_v50  ;;  %v1259_v10 = vmul.f32 %v17434_v15, %v17434_v15  ;;  %v1260_v11 = vmul.f32 %v17463_v44, %v17463_v44  ;;  %v15062_v24 = vld [vmem:[%s17235_s4 + $0x128] sm:$0xff] }
 0x323   : > { %21494 = vst [vmem:[#allocation72_spill] sm:$0xff] %v17488_v3  ;;  %v17500_v14 = vsub.f32 %v15058_v12, %v17485_v62  ;;  %v17504_v16 = vsub.f32 %v15059_v1, %v17485_v62  ;;  %1314 = vadd.xlane.f32.xlu1 %v1313_v63  ;;  %v1261_v17 = vmul.f32 %v17488_v3, %v17488_v3  ;;  %v15066_v63 = vld [vmem:[%s17235_s4 + $0x148] sm:$0xff] }
 0x324   : > { %v17510_v20 = vsub.f32 %v15060_v18, %v17424_v8  ;;  %v17514_v23 = vsub.f32 %v15061_v22, %v17492_v6  ;;  %v17518_v26 = vsub.f32 %v15062_v24, %v17492_v6  ;;  %v1135_v28 = vpop.xlane.xlu0 %1134  ;;  %v1323_v30 = vadd.f32 %v1322_v9, %v1257_v58  ;;  %v15068_v12 = vld [vmem:[%s17235_s4 + $0x168] sm:$0xff]  ;;  %v15069_v22 = vld [vmem:[%s17235_s4 + $0xd8] sm:$0xff] }
 0x325   : > { %v1326_v34 = vadd.f32 %v1259_v10, %v1258_v4  ;;  %v17520_v39 = vmul.f32 0.001953125, %v1135_v28  ;;  %v1140_v41 = vpop.xlane.xlu1 %1139  ;;  %v17524_v45 = vsub.f32 %v15063_v43, %v17424_v8  ;;  %v1262_v47 = vmul.f32 %v17440_v19, %v17440_v19  ;;  %v15065_v8 = vld [vmem:[%s17235_s4 + $0x140] sm:$0xff]  ;;  %v14419_v44 = vld [vmem:[#allocation10 + $0x128] ss:$16 sps:$4 sm:$0xff]  }
 0x326   : > { %21495 = vst [vmem:[#allocation73_spill] sm:$0xff] %v17510_v20  ;;  %21496 = vst [vmem:[#allocation74_spill] sm:$0xff] %v17514_v23  ;;  %v1263_v49 = vmul.f32 %v17444_v21, %v17444_v21  ;;  %v17530_v51 = vmul.f32 0.001953125, %v1140_v41  ;;  %v1264_v54 = vmul.f32 %v17510_v20, %v17510_v20  ;;  %v17536_v58 = vsub.f32 %v15064_v57, %v17448_v25  ;;  %v15067_v10 = vld [vmem:[%s17235_s4 + $0x160] sm:$0xff] }
 0x327   : > { %21497 = vst [vmem:[#allocation75_spill] sm:$0xff] %v17524_v45  ;;  %v1327_v50 = vadd.f32 %v1326_v34, %v1260_v11  ;;  %v17540_v60 = vsub.f32 %v15065_v8, %v17520_v39  ;;  %v17544_v0 = vsub.f32 %v15066_v63, %v17520_v39  ;;  %1324 = vadd.xlane.f32.xlu1 %v1323_v30  ;;  %v15072_v8 = vld [vmem:[%s17235_s4 + $0x188] sm:$0xff]  ;;  %v14418_v20 = vld [vmem:[#allocation10 + $0x120] ss:$16 sps:$4 sm:$0xff]  }
 0x328   : > { %21498 = vst [vmem:[#allocation76_spill] sm:$0xff] %v17536_v58  ;;  %v1265_v2 = vmul.f32 %v17524_v45, %v17524_v45  ;;  %v1331_v4 = vadd.f32 %v1263_v49, %v1262_v47  ;;  %v17550_v11 = vsub.f32 %v15067_v10, %v17530_v51  ;;  %v17554_v1 = vsub.f32 %v15068_v12, %v17530_v51  ;;  %v1145_v18 = vpop.xlane.xlu0 %1144  ;;  %v15070_v49 = vld [vmem:[%s17235_s4 + $0xf0] sm:$0xff]  ;;  %v15073_v10 = vld [vmem:[%s17235_s4 + $0x1a0] sm:$0xff] }
 0x329   : > { %v1328_v9 = vadd.f32 %v1327_v50, %v1261_v17  ;;  %v17558_v24 = vsub.f32 %v15069_v22, %v17448_v25  ;;  %v17560_v28 = vmul.f32 0.001953125, %v1145_v18  ;;  %v1266_v17 = vmul.f32 %v17467_v46, %v17467_v46  ;;  %v1150_v41 = vpop.xlane.xlu1 %1149  ;;  %v15074_v18 = vld [vmem:[%s17235_s4 + $0x1a8] sm:$0xff]  ;;  %v15080_v45 = vld [vmem:[%s17235_s4 + $0x130] sm:$0xff]  ;;  %2672 = vmatpush1.bf16.msra.mxu0 %v14418_v20  ;;  %2898 = vmatpush1.bf16.msra.mxu1 %v14419_v44 }
 0x32a   : > { %v1332_v30 = vadd.f32 %v1331_v4, %v1264_v54  ;;  %v1267_v34 = vmul.f32 %v17471_v48, %v17471_v48  ;;  %v1268_v43 = vmul.f32 %v17536_v58, %v17536_v58  ;;  %v17570_v47 = vmul.f32 0.001953125, %v1150_v41  ;;  %v15071_v54 = vld [vmem:[%s17235_s4 + $0x180] sm:$0xff]  ;;  %v15077_v58 = vld [vmem:[%s17235_s4 + $0x118] sm:$0xff] }
 0x32b   : > { %21499 = vst [vmem:[#allocation77_spill] sm:$0xff] %v17558_v24  ;;  %1329 = vadd.xlane.f32.xlu0 %v1328_v9  ;;  %v1269_v25 = vmul.f32 %v17558_v24, %v17558_v24  ;;  %v17574_v50 = vsub.f32 %v15070_v49, %v17456_v38  ;;  %v17578_v57 = vsub.f32 %v15071_v54, %v17560_v28  ;;  %v15075_v49 = vld [vmem:[%s17235_s4 + $0xf8] sm:$0xff]  ;;  %v15079_v24 = vld [vmem:[%s17235_s4 + $0x1c8] sm:$0xff] }
 0x32c   : > { %v17582_v63 = vsub.f32 %v15072_v8, %v17560_v28  ;;  %v1333_v4 = vadd.f32 %v1332_v30, %v1265_v2  ;;  %v1336_v9 = vadd.f32 %v1267_v34, %v1266_v17  ;;  %v17586_v12 = vsub.f32 %v15073_v10, %v17570_v47  ;;  %v1155_v41 = vpop.xlane.xlu0 %1154 }
 0x32d   : > { %21500 = vst [vmem:[#allocation78_spill] sm:$0xff] %v17574_v50  ;;  %v17590_v22 = vsub.f32 %v15074_v18, %v17570_v47  ;;  %v17594_v54 = vsub.f32 %v15075_v49, %v17456_v38  ;;  %v1270_v2 = vmul.f32 %v17477_v52, %v17477_v52  ;;  %v17598_v17 = vmul.f32 0.001953125, %v1155_v41  ;;  %v1160_v10 = vpop.xlane.xlu1 %1159  ;;  %v15076_v38 = vld [vmem:[%s17235_s4 + $0x110] sm:$0xff]  ;;  %v15078_v41 = vld [vmem:[%s17235_s4 + $0x1c0] sm:$0xff] }
 0x32e   : > { %1334 = vadd.xlane.f32.xlu1 %v1333_v4  ;;  %v1337_v30 = vadd.f32 %v1336_v9, %v1268_v43  ;;  %v1271_v34 = vmul.f32 %v17481_v56, %v17481_v56  ;;  %v1272_v8 = vmul.f32 %v17574_v50, %v17574_v50  ;;  %v17608_v49 = vsub.f32 %v15076_v38, %v17485_v62 }
 0x32f   : > { %21501 = vst [vmem:[#allocation79_spill] sm:$0xff] %v17594_v54  ;;  %v1273_v18 = vmul.f32 %v17594_v54, %v17594_v54  ;;  %v17612_v4 = vsub.f32 %v15077_v58, %v17485_v62  ;;  %v1274_v43 = vmul.f32 %v17500_v14, %v17500_v14  ;;  %v17618_v50 = vsub.f32 %v15078_v41, %v17598_v17  ;;  %v14420_v41 = vld [vmem:[#allocation10 + $0x144] ss:$16 sps:$4 sm:$0xff]  }
 0x330   : > { %21502 = vst [vmem:[#allocation80_spill] sm:$0xff] %v17608_v49  ;;  %v1338_v9 = vadd.f32 %v1337_v30, %v1269_v25  ;;  %v17622_v54 = vsub.f32 %v15079_v24, %v17598_v17  ;;  %v1341_v38 = vadd.f32 %v1271_v34, %v1270_v2  ;;  %v1275_v62 = vmul.f32 %v17504_v16, %v17504_v16  ;;  %v15081_v34 = vld [vmem:[%s17235_s4 + $0x138] sm:$0xff] }
 0x331   : > { %21503 = vst [vmem:[#allocation81_spill] sm:$0xff] %v17612_v4  ;;  %v1276_v58 = vmul.f32 %v17608_v49, %v17608_v49  ;;  %v1277_v25 = vmul.f32 %v17612_v4, %v17612_v4  ;;  %v17630_v30 = vmul.f32 0.001953125, %v1160_v10  ;;  %v17634_v2 = vsub.f32 %v15080_v45, %v17492_v6  ;;  %v15082_v4 = vld [vmem:[%s17235_s4 + $0x1e0] sm:$0xff]  ;;  %2673 = vmatprep.subr.bf16.mxu0 %v14420_v41 }
 0x332   : > { %1339 = vadd.xlane.f32.xlu0 %v1338_v9  ;;  %v1342_v24 = vadd.f32 %v1341_v38, %v1272_v8  ;;  %v17638_v3 = vsub.f32 %v15081_v34, %v17492_v6  ;;  %v1278_v49 = vmul.f32 %v17514_v23, %v17514_v23  ;;  %v1346_v32 = vadd.f32 %v1275_v62, %v1274_v43  ;;  %v15083_v9 = vld [vmem:[%s17235_s4 + $0x1e8] sm:$0xff] }
 0x333   : > { %21504 = vst [vmem:[#allocation82_spill] sm:$0xff] %v17634_v2  ;;  %v17644_v10 = vsub.f32 %v15082_v4, %v17630_v30  ;;  %v17648_v8 = vsub.f32 %v15083_v9, %v17630_v30  ;;  %v1279_v45 = vmul.f32 %v17518_v26, %v17518_v26  ;;  %v14422_v38 = vld [vmem:[#allocation10 + $0x14c] ss:$16 sps:$4 sm:$0xff]   ;;  %v1280_v34 = vmul.f32 %v17634_v2, %v17634_v2  ;;  %v15084_v4 = vld [vmem:[%s17235_s4 + $0x150] sm:$0xff] }
 0x334   : > { %21505 = vst [vmem:[#allocation83_spill] sm:$0xff] %v17638_v3  ;;  %v1343_v6 = vadd.f32 %v1342_v24, %v1273_v18  ;;  %v1281_v43 = vmul.f32 %v17638_v3, %v17638_v3  ;;  %v17658_v62 = vsub.f32 %v15084_v4, %v17520_v39  ;;  %v1347_v9 = vadd.f32 %v1346_v32, %v1276_v58  ;;  %v15086_v4 = vld [vmem:[%s17235_s4 + $0x170] sm:$0xff]  ;;  %v15087_v32 = vld [vmem:[%s17235_s4 + $0x178] sm:$0xff] }
 0x335   : > { %v1351_v23 = vadd.f32 %v1279_v45, %v1278_v49  ;;  %v17662_v20 = vsub.f32 %v15085_v40, %v17520_v39  ;;  %v1282_v18 = vmul.f32 %v17540_v60, %v17540_v60  ;;  %v1283_v24 = vmul.f32 %v17544_v0, %v17544_v0  ;;  %v14424_v40 = vld [vmem:[#allocation10 + $0x140] ss:$16 sps:$4 sm:$0xff]   ;;  %v14425_v39 = vld [vmem:[#allocation10 + $0x148] ss:$16 sps:$4 sm:$0xff]   ;;  %2899 = vmatprep.subr.bf16.mxu1 %v14422_v38 }
 0x336   : > { %21506 = vst [vmem:[#allocation84_spill] sm:$0xff] %v17658_v62  ;;  %1344 = vadd.xlane.f32.xlu1 %v1343_v6  ;;  %v1284_v2 = vmul.f32 %v17658_v62, %v17658_v62  ;;  %v17672_v44 = vsub.f32 %v15086_v4, %v17530_v51  ;;  %v17676_v49 = vsub.f32 %v15087_v32, %v17530_v51  ;;  %v15089_v38 = vld [vmem:[%s17235_s4 + $0x198] sm:$0xff] }
 0x337   : > { %21507 = vst [vmem:[#allocation85_spill] sm:$0xff] %v17662_v20  ;;  %v1348_v58 = vadd.f32 %v1347_v9, %v1277_v25  ;;  %v1352_v41 = vadd.f32 %v1351_v23, %v1280_v34  ;;  %v1285_v45 = vmul.f32 %v17662_v20, %v17662_v20  ;;  %v1286_v6 = vmul.f32 %v17550_v11, %v17550_v11  ;;  %v14426_v23 = vld [vmem:[#allocation10 + $0x164] ss:$16 sps:$4 sm:$0xff]  }
 0x338   : > { %21508 = vst [vmem:[#allocation86_spill] sm:$0xff] %v17672_v44  ;;  %v1356_v62 = vadd.f32 %v1283_v24, %v1282_v18  ;;  %v1287_v4 = vmul.f32 %v17554_v1, %v17554_v1  ;;  %v1288_v51 = vmul.f32 %v17672_v44, %v17672_v44  ;;  %v1289_v32 = vmul.f32 %v17676_v49, %v17676_v49  ;;  %v15088_v34 = vld [vmem:[%s17235_s4 + $0x190] sm:$0xff]  ;;  %v14428_v44 = vld [vmem:[#allocation10 + $0x16c] ss:$16 sps:$4 sm:$0xff]  }
 0x339   : > { %2674 = vmatpush1.bf16.msra.mxu0 %v14424_v40  ;;  %1349 = vadd.xlane.f32.xlu0 %v1348_v58  ;;  %v1353_v25 = vadd.f32 %v1352_v41, %v1281_v43  ;;  %v17690_v9 = vsub.f32 %v15088_v34, %v17560_v28  ;;  %v17694_v18 = vsub.f32 %v15089_v38, %v17560_v28  ;;  %v15090_v58 = vld [vmem:[%s17235_s4 + $0x1b0] sm:$0xff]  ;;  %v15091_v34 = vld [vmem:[%s17235_s4 + $0x1b8] sm:$0xff] }
 0x33a   : > { %v1290_v24 = vmul.f32 %v17578_v57, %v17578_v57  ;;  %v1357_v20 = vadd.f32 %v1356_v62, %v1284_v2  ;;  %v1361_v3 = vadd.f32 %v1287_v4, %v1286_v6  ;;  %v1291_v40 = vmul.f32 %v17582_v63, %v17582_v63  ;;  %2900 = vmatpush1.bf16.msra.mxu1 %v14425_v39 }
 0x33b   : > { %21509 = vst [vmem:[#allocation87_spill] sm:$0xff] %v17690_v9  ;;  %21510 = vst [vmem:[#allocation88_spill] sm:$0xff] %v17694_v18  ;;  %v17702_v43 = vsub.f32 %v15090_v58, %v17570_v47  ;;  %1354 = vadd.xlane.f32.xlu1 %v1353_v25  ;;  %v1292_v28 = vmul.f32 %v17690_v9, %v17690_v9  ;;  %v1293_v41 = vmul.f32 %v17694_v18, %v17694_v18  ;;  %v15092_v9 = vld [vmem:[%s17235_s4 + $0x1d0] sm:$0xff] }
 0x33c   : > { %v17710_v2 = vsub.f32 %v15091_v34, %v17570_v47  ;;  %v1294_v62 = vmul.f32 %v17586_v12, %v17586_v12  ;;  %v1358_v6 = vadd.f32 %v1357_v20, %v1285_v45  ;;  %v1362_v4 = vadd.f32 %v1361_v3, %v1288_v51  ;;  %2675 = vmatprep.subr.bf16.mxu0 %v14426_v23  ;;  %v15093_v34 = vld [vmem:[%s17235_s4 + $0x1d8] sm:$0xff]  ;;  %v14430_v3 = vld [vmem:[#allocation10 + $0x160] ss:$16 sps:$4 sm:$0xff]   ;;  %v14432_v51 = vld [vmem:[#allocation10 + $0x184] ss:$16 sps:$4 sm:$0xff]  }
 0x33d   : > { %21511 = vst [vmem:[#allocation89_spill] sm:$0xff] %v17702_v43  ;;  %v1366_v38 = vadd.f32 %v1291_v40, %v1290_v24  ;;  %v1295_v39 = vmul.f32 %v17590_v22, %v17590_v22  ;;  %v1296_v25 = vmul.f32 %v17702_v43, %v17702_v43  ;;  %v17722_v47 = vsub.f32 %v15092_v9, %v17598_v17  ;;  %v14431_v45 = vld [vmem:[#allocation10 + $0x168] ss:$16 sps:$4 sm:$0xff]  }
 0x33e   : > { %21512 = vst [vmem:[#allocation90_spill] sm:$0xff] %v17710_v2  ;;  %v1297_v58 = vmul.f32 %v17710_v2, %v17710_v2  ;;  %v17726_v20 = vsub.f32 %v15093_v34, %v17598_v17  ;;  %2901 = vmatprep.subr.bf16.mxu1 %v14428_v44  ;;  %1359 = vadd.xlane.f32.xlu0 %v1358_v6  ;;  %v14434_v2 = vld [vmem:[#allocation10 + $0x18c] ss:$16 sps:$4 sm:$0xff]   ;;  %v15094_v34 = vld [vmem:[%s17235_s4 + $0x1f0] sm:$0xff] }
 0x33f   : > { %21513 = vst [vmem:[#allocation91_spill] sm:$0xff] %v17722_v47  ;;  %v1363_v23 = vadd.f32 %v1362_v4, %v1289_v32  ;;  %v1367_v24 = vadd.f32 %v1366_v38, %v1292_v28  ;;  %v1371_v40 = vadd.f32 %v1295_v39, %v1294_v62  ;;  %v1298_v43 = vmul.f32 %v17618_v50, %v17618_v50  ;;  %v15095_v62 = vld [vmem:[%s17235_s4 + $0x1f8] sm:$0xff] }
 0x340   : > { %21514 = vst [vmem:[#allocation92_spill] sm:$0xff] %v17726_v20  ;;  %v1299_v9 = vmul.f32 %v17622_v54, %v17622_v54  ;;  %v1300_v17 = vmul.f32 %v17722_v47, %v17722_v47  ;;  %v1301_v44 = vmul.f32 %v17726_v20, %v17726_v20  ;;  %v17738_v18 = vsub.f32 %v15094_v34, %v17630_v30  ;;  %v14440_v34 = vld [vmem:[#allocation10 + $0x1ac] ss:$16 sps:$4 sm:$0xff]  }
 0x341   : > { %2676 = vmatpush1.bf16.msra.mxu0 %v14430_v3  ;;  %1364 = vadd.xlane.f32.xlu1 %v1363_v23  ;;  %v1368_v32 = vadd.f32 %v1367_v24, %v1293_v41  ;;  %v1372_v28 = vadd.f32 %v1371_v40, %v1296_v25  ;;  %v17742_v6 = vsub.f32 %v15095_v62, %v17630_v30  ;;  %v14436_v23 = vld [vmem:[#allocation10 + $0x180] ss:$16 sps:$4 sm:$0xff]   ;;  %v14437_v24 = vld [vmem:[#allocation10 + $0x188] ss:$16 sps:$4 sm:$0xff]  }
 0x342   : > { %21515 = vst [vmem:[#allocation93_spill] sm:$0xff] %v17738_v18  ;;  %v1302_v4 = vmul.f32 %v17644_v10, %v17644_v10  ;;  %v1376_v38 = vadd.f32 %v1299_v9, %v1298_v43  ;;  %v1303_v39 = vmul.f32 %v17648_v8, %v17648_v8  ;;  %v1304_v47 = vmul.f32 %v17738_v18, %v17738_v18  ;;  %v14438_v43 = vld [vmem:[#allocation10 + $0x1a4] ss:$16 sps:$4 sm:$0xff]   ;;  %v14454_v62 = vld [vmem:[#allocation10 + $0x1e0] ss:$16 sps:$4 sm:$0xff]  }
 0x343   : > { %21516 = vst [vmem:[#allocation94_spill] sm:$0xff] %v17742_v6  ;;  %2902 = vmatpush1.bf16.msra.mxu1 %v14431_v45  ;;  %2677 = vmatprep.subr.bf16.mxu0 %v14432_v51  ;;  %v1373_v3 = vadd.f32 %v1372_v28, %v1297_v58  ;;  %v1305_v30 = vmul.f32 %v17742_v6, %v17742_v6  ;;  %v14442_v58 = vld [vmem:[#allocation10 + $0x1a0] ss:$16 sps:$4 sm:$0xff]   ;;  %v14444_v51 = vld [vmem:[#allocation10 + $0x1c4] ss:$16 sps:$4 sm:$0xff]  }
 0x344   : > { %1369 = vadd.xlane.f32.xlu0 %v1368_v32  ;;  %2903 = vmatprep.subr.bf16.mxu1 %v14434_v2  ;;  %v1377_v41 = vadd.f32 %v1376_v38, %v1300_v17  ;;  %v1381_v25 = vadd.f32 %v1303_v39, %v1302_v4  ;;  %v14443_v2 = vld [vmem:[#allocation10 + $0x1a8] ss:$16 sps:$4 sm:$0xff]   ;;  %v14446_v17 = vld [vmem:[#allocation10 + $0x1cc] ss:$16 sps:$4 sm:$0xff]   ;;  %v14448_v32 = vld [vmem:[#allocation10 + $0x1c0] ss:$16 sps:$4 sm:$0xff]  }
 0x345   : > { %1374 = vadd.xlane.f32.xlu1 %v1373_v3  ;;  %2678 = vmatpush1.bf16.msra.mxu0 %v14436_v23  ;;  %v14449_v28 = vld [vmem:[#allocation10 + $0x1c8] ss:$16 sps:$4 sm:$0xff]   ;;  %v14458_v38 = vld [vmem:[#allocation10 + $0x204] ss:$16 sps:$4 sm:$0xff]   ;;  %v14461_v39 = vld [vmem:[#allocation10 + $0x20c] ss:$16 sps:$4 sm:$0xff]  }
 0x346   : > { %v1378_v40 = vadd.f32 %v1377_v41, %v1301_v44  ;;  %v1382_v9 = vadd.f32 %v1381_v25, %v1304_v47  ;;  %2679 = vmatprep.subr.bf16.mxu0 %v14438_v43  ;;  %v14450_v47 = vld [vmem:[#allocation10 + $0x1e4] ss:$16 sps:$4 sm:$0xff]   ;;  %v14452_v44 = vld [vmem:[#allocation10 + $0x1ec] ss:$16 sps:$4 sm:$0xff]   ;;  %v14455_v4 = vld [vmem:[#allocation10 + $0x1e8] ss:$16 sps:$4 sm:$0xff]  }
 0x347   : > { %2904 = vmatpush1.bf16.msra.mxu1 %v14437_v24  ;;  %v14467_v6 = vld [vmem:[#allocation10 + $0x22c] ss:$16 sps:$4 sm:$0xff]  }
 0x348   : > { %1379 = vadd.xlane.f32.xlu0 %v1378_v40  ;;  %v1383_v45 = vadd.f32 %v1382_v9, %v1305_v30  ;;  %2905 = vmatprep.subr.bf16.mxu1 %v14440_v34  ;;  %v1501_v30 = vlaneseq }
 0x349   : > { %2680 = vmatpush1.bf16.msra.mxu0 %v14442_v58 }
 0x34a   : > { %1384 = vadd.xlane.f32.xlu1 %v1383_v45  ;;  %2681 = vmatprep.subr.bf16.mxu0 %v14444_v51  ;;  %v1502_v40 = vshrl.u32 %v1501_v30, 7  ;;  %v1498_v45 = vld [vmem:[%s843_s3] sm:$0xf] }
 0x34b   : > { %2906 = vmatpush1.bf16.msra.mxu1 %v14443_v2  ;;  %v1499_v51 = vadd.f32 1.0, %v1498_v45 }
 0x34c   : > { %2907 = vmatprep.subr.bf16.mxu1 %v14446_v17  ;;  %v17754_v17 = vsub.s32 1, %v1502_v40 }
 0x34d   : > { %2682 = vmatpush1.bf16.msra.mxu0 %v14448_v32  ;;  %v17756_v32 = vsub.s32 0, %v1502_v40 }
 0x34e   : > { %2683 = vmatprep.subr.bf16.mxu0 %v14450_v47  ;;  %21517 = vst [vmem:[#allocation95_spill] sm:$0xff] %v17754_v17 }
 0x34f   : > { %2908 = vmatpush1.bf16.msra.mxu1 %v14449_v28  ;;  %21518 = vst [vmem:[#allocation96_spill] sm:$0xff] %v17756_v32  ;;  %v17758_v28 = vsub.s32 3, %v1502_v40 }
 0x350   : > { %2909 = vmatprep.subr.bf16.mxu1 %v14452_v44  ;;  %v17760_v44 = vsub.s32 2, %v1502_v40 }
 0x351   : > { %2684 = vmatpush1.bf16.msra.mxu0 %v14454_v62  ;;  %21519 = vst [vmem:[#allocation97_spill] sm:$0xff] %v17758_v28  ;;  %v1585_v62 = vld [vmem:[%s834_s6] sm:$0xf]  ;;  %v17771_v30 = vrot.slane %v1499_v51, %v17758_v28 }
 0x352   : > { %2766 = vmatprep.subr.bf16.mxu0 %v14458_v38  ;;  %21520 = vst [vmem:[#allocation98_spill] sm:$0xff] %v17760_v44 }
 0x353   : > { %2910 = vmatpush1.bf16.msra.mxu1 %v14455_v4 }
 0x354   : > { %2992 = vmatprep.subr.bf16.mxu1 %v14461_v39 }
 0x3aa   : > { %v1310_v3 = vpop.xlane.xlu0 %1309 }
 0x3ab   : > { %v1386_v41 = vmul.f32 0.001953125, %v1310_v3  ;;  %v17765_v3 = vrot.slane %v1499_v51, %v17754_v17 }
 0x3ad   : > { %v1402_v25 = vadd.f32 1e-06, %v1386_v41  ;;  %v17768_v41 = vrot.slane %v1499_v51, %v17756_v32 }
 0x3ae   : > { %v1320_v23 = vpop.xlane.xlu0 %1319 }
 0x3af   : > { %14936 = vrsqrt.f32 %v1402_v25  ;;  %v1388_v24 = vmul.f32 0.001953125, %v1320_v23  ;;  %v17774_v23 = vrot.slane %v1585_v62, %v17754_v17 }
 0x3b0   : > { %v1315_v43 = vpop.xlane.xlu1 %1314 }
 0x3b1   : > { %v1387_v9 = vmul.f32 0.001953125, %v1315_v43  ;;  %v1404_v34 = vadd.f32 1e-06, %v1388_v24  ;;  %v17777_v24 = vrot.slane %v1585_v62, %v17756_v32  ;;  %v17780_v43 = vrot.slane %v1499_v51, %v17760_v44 }
 0x3b3   : > { %v1403_v58 = vadd.f32 1e-06, %v1387_v9  ;;  %14938 = vrsqrt.f32 %v1404_v34 }
 0x3b4   : > { %v1325_v2 = vpop.xlane.xlu1 %1324 }
 0x3b5   : > { %14940 = vrsqrt.f32 %v1403_v58  ;;  %v1389_v47 = vmul.f32 0.001953125, %v1325_v2 }
 0x3b7   : > { %v1405_v4 = vadd.f32 1e-06, %v1389_v47  ;;  %v17786_v47 = vrot.slane %v1585_v62, %v17758_v28 }
 0x3b8   : > { %v1330_v38 = vpop.xlane.xlu0 %1329 }
 0x3b9   : > { %v1390_v39 = vmul.f32 0.001953125, %v1330_v38  ;;  %v14937_v25 = vpop.eup %14936  ;;  %14942 = vrsqrt.f32 %v1405_v4  ;;  %v17790_v38 = vrot.slane %v1585_v62, %v17760_v44 }
 0x3ba   : > { %v1435_v34 = vmul.f32 %v14937_v25, %v17370_v29  ;;  %v1434_v45 = vmul.f32 %v14937_v25, %v17367_v27  ;;  %v1437_v58 = vmul.f32 %v14937_v25, %v17376_v33  ;;  %v1436_v4 = vmul.f32 %v14937_v25, %v17373_v31 }
 0x3bb   : > { %v1406_v40 = vadd.f32 1e-06, %v1390_v39  ;;  %v1335_v9 = vpop.xlane.xlu1 %1334 }
 0x3bc   : > { %v1391_v2 = vmul.f32 0.001953125, %v1335_v9  ;;  %v1522_v51 = vmul.f32 %v17765_v3, %v1435_v34  ;;  %v1521_v39 = vmul.f32 %v17768_v41, %v1434_v45  ;;  %v1524_v29 = vmul.f32 %v17771_v30, %v1437_v58 }
 0x3bd   : > { %14944 = vrsqrt.f32 %v1406_v40  ;;  %v17795_v17 = vpop.eup %14938  ;;  %v1523_v33 = vmul.f32 %v17780_v43, %v1436_v4 }
 0x3be   : > { %v1407_v27 = vadd.f32 1e-06, %v1391_v2  ;;  %v1608_v28 = vadd.f32 %v17774_v23, %v1522_v51  ;;  %v1607_v31 = vadd.f32 %v17777_v24, %v1521_v39  ;;  %v1443_v62 = vmul.f32 %v17795_v17, %v17382_v37 }
 0x3bf   : > { %v1340_v9 = vpop.xlane.xlu0 %1339  ;;  %v1442_v25 = vmul.f32 %v17795_v17, %v17379_v35  ;;  %v14941_v40 = vpop.eup %14940  ;;  %v1610_v45 = vadd.f32 %v17786_v47, %v1524_v29  ;;  %v17806_v58 = vadd.f32 %v17790_v38, %v1523_v33 }
 0x3c0   : > { %14946 = vrsqrt.f32 %v1407_v27  ;;  %v1392_v34 = vmul.f32 0.001953125, %v1340_v9  ;;  %v1439_v2 = vmul.f32 %v14941_v40, %v17406_v55  ;;  %v1438_v4 = vmul.f32 %v14941_v40, %v17403_v53 }
 0x3c1   : > { %v1530_v51 = vmul.f32 %v17765_v3, %v1443_v62  ;;  %v1529_v39 = vmul.f32 %v17768_v41, %v1442_v25  ;;  %v1441_v44 = vmul.f32 %v14941_v40, %v17422_v7  ;;  %v1440_v35 = vmul.f32 %v14941_v40, %v17419_v5 }
 0x3c2   : > { %v1408_v37 = vadd.f32 1e-06, %v1392_v34  ;;  %v17816_v27 = vmul.f32 %v17795_v17, %v17388_v42  ;;  %v1526_v33 = vmul.f32 %v17765_v3, %v1439_v2  ;;  %v1525_v55 = vmul.f32 %v17768_v41, %v1438_v4 }
 0x3c3   : > { %v1345_v29 = vpop.xlane.xlu1 %1344  ;;  %v1616_v53 = vadd.f32 %v17774_v23, %v1530_v51  ;;  %v1615_v9 = vadd.f32 %v17777_v24, %v1529_v39  ;;  %v17822_v62 = vpop.eup %14942  ;;  %v1528_v7 = vmul.f32 %v17771_v30, %v1441_v44  ;;  %v1527_v5 = vmul.f32 %v17780_v43, %v1440_v35 }
 0x3c4   : > { %14948 = vrsqrt.f32 %v1408_v37  ;;  %v1393_v25 = vmul.f32 0.001953125, %v1345_v29  ;;  %v1612_v42 = vadd.f32 %v17774_v23, %v1526_v33  ;;  %v1611_v40 = vadd.f32 %v17777_v24, %v1525_v55  ;;  %v14456_v33 = vld [vmem:[#allocation10 + $0x200] ss:$16 sps:$4 sm:$0xff]   ;;  %v14459_v55 = vld [vmem:[#allocation10 + $0x208] ss:$16 sps:$4 sm:$0xff]  }
 0x3c5   : > { %v1447_v34 = vmul.f32 %v17822_v62, %v17414_v61  ;;  %v1446_v2 = vmul.f32 %v17822_v62, %v17411_v59  ;;  %v1614_v39 = vadd.f32 %v17786_v47, %v1528_v7  ;;  %v1613_v37 = vadd.f32 %v17790_v38, %v1527_v5 }
 0x3c6   : > { %v1409_v4 = vadd.f32 1e-06, %v1393_v25  ;;  %v1350_v51 = vpop.xlane.xlu0 %1349  ;;  %v17836_v44 = vmul.f32 %v17822_v62, %v17454_v36  ;;  %v1672_v32 = vpack.c.bf16 %v1612_v42, %v1608_v28  ;;  %v1671_v61 = vpack.c.bf16 %v1611_v40, %v1607_v31  ;;  %v14464_v25 = vld [vmem:[#allocation10 + $0x224] ss:$16 sps:$4 sm:$0xff]  }
 0x3c7   : > { %v17838_v35 = vpop.eup %14944  ;;  %v1394_v29 = vmul.f32 0.001953125, %v1350_v51  ;;  %v1534_v18 = vmul.f32 %v17765_v3, %v1447_v34  ;;  %v1533_v7 = vmul.f32 %v17768_v41, %v1446_v2  ;;  %v17847_v31 = vpack.c.bf16 %v1614_v39, %v1610_v45 }
 0x3c8   : > { %14950 = vrsqrt.f32 %v1409_v4  ;;  %v1355_v59 = vpop.xlane.xlu1 %1354  ;;  %v1451_v5 = vmul.f32 %v17838_v35, %v17434_v15  ;;  %v1450_v36 = vmul.f32 %v17838_v35, %v17431_v13  ;;  %1704 = vst [vmem:[#allocation2 + $0x8] sm:$0xff] %v1672_v32  ;;  %2685 = vmatprep.mubr.bf16.mxu0 %v1672_v32  ;;  %2911 = vmatprep.mubr.bf16.mxu1 %v1672_v32  ;;  %1703 = vst [vmem:[#allocation2] sm:$0xff] %v1671_v61  ;;  %v14462_v4 = vld [vmem:[#allocation10 + $0x220] ss:$16 sps:$4 sm:$0xff]  }
 0x3c9   : > { %v1410_v20 = vadd.f32 1e-06, %v1394_v29  ;;  %v1395_v51 = vmul.f32 0.001953125, %v1355_v59  ;;  %v1620_v28 = vadd.f32 %v17774_v23, %v1534_v18  ;;  %2686 = vmatmul.mubr.bf16.vlgmr.msra.gmra.mrb[0].mxu0 %v1671_v61  ;;  %2912 = vmatmul.mubr.bf16.vlgmr.msra.gmra.mrb[0].mxu1 %v1671_v61  ;;  %v1619_v40 = vadd.f32 %v17777_v24, %v1533_v7  ;;  %v14465_v18 = vld [vmem:[#allocation10 + $0x228] ss:$16 sps:$4 sm:$0xff]   ;;  %1706 = vst [vmem:[#allocation2 + $0x18] sm:$0xff] %v17847_v31 }
 0x3ca   : > { %v17849_v42 = vpop.eup %14946  ;;  %v1538_v15 = vmul.f32 %v17765_v3, %v1451_v5  ;;  %v1537_v13 = vmul.f32 %v17768_v41, %v1450_v36  ;;  %2767 = vmatpush1.bf16.msra.mxu0 %v14456_v33  ;;  %2993 = vmatpush1.bf16.msra.mxu1 %v14459_v55  ;;  %v14470_v29 = vld [vmem:[#allocation10 + $0x244] ss:$16 sps:$4 sm:$0xff]   ;;  %v14473_v61 = vld [vmem:[#allocation10 + $0x24c] ss:$16 sps:$4 sm:$0xff]  }
 0x3cb   : > { %14952 = vrsqrt.f32 %v1410_v20  ;;  %v1411_v34 = vadd.f32 1e-06, %v1395_v51  ;;  %v1360_v2 = vpop.xlane.xlu0 %1359  ;;  %v1676_v32 = vpack.c.bf16 %v1620_v28, %v1616_v53  ;;  %v1455_v45 = vmul.f32 %v17849_v42, %v17444_v21  ;;  %2768 = vmatprep.subr.bf16.mxu0 %v14464_v25  ;;  %2994 = vmatprep.subr.bf16.mxu1 %v14467_v6  ;;  %v14468_v51 = vld [vmem:[#allocation10 + $0x240] ss:$16 sps:$4 sm:$0xff]   ;;  %v14471_v28 = vld [vmem:[#allocation10 + $0x248] ss:$16 sps:$4 sm:$0xff]  }
 0x3cc   : > { %v1396_v39 = vmul.f32 0.001953125, %v1360_v2  ;;  %v1675_v59 = vpack.c.bf16 %v1619_v40, %v1615_v9  ;;  %v1624_v20 = vadd.f32 %v17774_v23, %v1538_v15  ;;  %v1454_v33 = vmul.f32 %v17849_v42, %v17440_v19 }
 0x3cd   : > { %14954 = vrsqrt.f32 %v1411_v34  ;;  %1708 = vst [vmem:[#allocation2 + $0x28] sm:$0xff] %v1676_v32  ;;  %2695 = vmatprep.mubr.bf16.mxu0 %v1676_v32  ;;  %2921 = vmatprep.mubr.bf16.mxu1 %v1676_v32  ;;  %v1542_v21 = vmul.f32 %v17765_v3, %v1455_v45  ;;  %v1623_v55 = vadd.f32 %v17777_v24, %v1537_v13  ;;  %v14476_v32 = vld [vmem:[#allocation10 + $0x264] ss:$16 sps:$4 sm:$0xff]  }
 0x3ce   : > { %v1365_v53 = vpop.xlane.xlu1 %1364  ;;  %v17863_v25 = vpack.c.bf16 %v1613_v37, %v17806_v58  ;;  %v17865_v6 = vpop.eup %14948  ;;  %v1412_v9 = vadd.f32 1e-06, %v1396_v39  ;;  %1707 = vst [vmem:[#allocation2 + $0x20] sm:$0xff] %v1675_v59  ;;  %v1541_v5 = vmul.f32 %v17768_v41, %v1454_v33  ;;  %v1532_v19 = vmul.f32 %v17771_v30, %v17816_v27  ;;  %2769 = vmatpush1.bf16.msra.mxu0 %v14462_v4  ;;  %v14479_v4 = vld [vmem:[#allocation10 + $0x26c] ss:$16 sps:$4 sm:$0xff]  }
 0x3cf   : > { %v1397_v7 = vmul.f32 0.001953125, %v1365_v53  ;;  %2995 = vmatpush1.bf16.msra.mxu1 %v14465_v18  ;;  %v1628_v40 = vadd.f32 %v17774_v23, %v1542_v21  ;;  %v1459_v58 = vmul.f32 %v17865_v6, %v17471_v48  ;;  %v1458_v37 = vmul.f32 %v17865_v6, %v17467_v46  ;;  %2770 = vmatprep.subr.bf16.mxu0 %v14470_v29 }
 0x3d0   : > { %1705 = vst [vmem:[#allocation2 + $0x10] sm:$0xff] %v17863_v25  ;;  %14956 = vrsqrt.f32 %v1412_v9  ;;  %2996 = vmatprep.subr.bf16.mxu1 %v14473_v61  ;;  %v1627_v27 = vadd.f32 %v17777_v24, %v1541_v5  ;;  %v1536_v46 = vmul.f32 %v17771_v30, %v17836_v44  ;;  %v14474_v61 = vld [vmem:[#allocation10 + $0x260] ss:$16 sps:$4 sm:$0xff]  }
 0x3d1   : > { %v1370_v36 = vpop.xlane.xlu0 %1369  ;;  %v1413_v15 = vadd.f32 1e-06, %v1397_v7  ;;  %v1680_v2 = vpack.c.bf16 %v1628_v40, %v1624_v20  ;;  %v1546_v18 = vmul.f32 %v17765_v3, %v1459_v58  ;;  %v1545_v48 = vmul.f32 %v17768_v41, %v1458_v37  ;;  %2696 = vmatmul.mubr.bf16.gmra.mrb[4].mxu0 %v1675_v59  ;;  %2922 = vmatmul.mubr.bf16.gmra.mrb[4].mxu1 %v1675_v59  ;;  %v14477_v20 = vld [vmem:[#allocation10 + $0x268] ss:$16 sps:$4 sm:$0xff]   ;;  %v14482_v59 = vld [vmem:[#allocation10 + $0x284] ss:$16 sps:$4 sm:$0xff]  }
 0x3d2   : > { %v1398_v13 = vmul.f32 0.001953125, %v1370_v36  ;;  %v1375_v34 = vpop.xlane.xlu1 %1374  ;;  %v17881_v45 = vpop.eup %14950  ;;  %v1679_v29 = vpack.c.bf16 %v1627_v27, %v1623_v55  ;;  %2771 = vmatpush1.bf16.msra.mxu0 %v14468_v51  ;;  %v14485_v55 = vld [vmem:[#allocation10 + $0x28c] ss:$16 sps:$4 sm:$0xff]   ;;  %v1618_v36 = vadd.f32 %v17786_v47, %v1532_v19  ;;  %v1622_v40 = vadd.f32 %v17786_v47, %v1536_v46  ;;  %v14480_v37 = vld [vmem:[#allocation10 + $0x280] ss:$16 sps:$4 sm:$0xff]  }
 0x3d3   : > { %14958 = vrsqrt.f32 %v1413_v15  ;;  %v1399_v33 = vmul.f32 0.001953125, %v1375_v34  ;;  %2997 = vmatpush1.bf16.msra.mxu1 %v14471_v28  ;;  %1712 = vst [vmem:[#allocation2 + $0x48] sm:$0xff] %v1680_v2  ;;  %v1463_v53 = vmul.f32 %v17881_v45, %v17481_v56  ;;  %v1632_v21 = vadd.f32 %v17774_v23, %v1546_v18  ;;  %2705 = vmatprep.mubr.bf16.mxu0 %v1680_v2 }
 0x3d4   : > { %v1414_v39 = vadd.f32 1e-06, %v1398_v13  ;;  %v1462_v44 = vmul.f32 %v17881_v45, %v17477_v52  ;;  %2931 = vmatprep.mubr.bf16.mxu1 %v1680_v2  ;;  %1711 = vst [vmem:[#allocation2 + $0x40] sm:$0xff] %v1679_v29  ;;  %v1631_v5 = vadd.f32 %v17777_v24, %v1545_v48  ;;  %2772 = vmatprep.subr.bf16.mxu0 %v14476_v32  ;;  %v21521_v13 = vld [vmem:[#allocation69_spill] sm:$0xff] }
 0x3d5   : > { %v1415_v9 = vadd.f32 1e-06, %v1399_v33  ;;  %v1380_v7 = vpop.xlane.xlu0 %1379  ;;  %v17890_v51 = vpop.eup %14952  ;;  %2998 = vmatprep.subr.bf16.mxu1 %v14479_v4  ;;  %v1550_v28 = vmul.f32 %v17765_v3, %v1463_v53  ;;  %v17901_v27 = vmul.f32 %v17795_v17, %v21521_v13  ;;  %v14483_v4 = vld [vmem:[#allocation10 + $0x288] ss:$16 sps:$4 sm:$0xff]   ;;  %v21522_v17 = vld [vmem:[#allocation74_spill] sm:$0xff] }
 0x3d6   : > { %14960 = vrsqrt.f32 %v1414_v39  ;;  %v1400_v56 = vmul.f32 0.001953125, %v1380_v7  ;;  %v1549_v52 = vmul.f32 %v17768_v41, %v1462_v44  ;;  %v1467_v15 = vmul.f32 %v17890_v51, %v17504_v16  ;;  %2773 = vmatpush1.bf16.msra.mxu0 %v14474_v61  ;;  %v14488_v61 = vld [vmem:[#allocation10 + $0x2a4] ss:$16 sps:$4 sm:$0xff]  }
 0x3d7   : > { %14962 = vrsqrt.f32 %v1415_v9  ;;  %v1385_v58 = vpop.xlane.xlu1 %1384  ;;  %v1466_v19 = vmul.f32 %v17890_v51, %v17500_v14  ;;  %v17903_v34 = vpop.eup %14954  ;;  %2999 = vmatpush1.bf16.msra.mxu1 %v14477_v20  ;;  %v1636_v18 = vadd.f32 %v17774_v23, %v1550_v28  ;;  %2774 = vmatprep.subr.bf16.mxu0 %v14482_v59  ;;  %v14491_v20 = vld [vmem:[#allocation10 + $0x2ac] ss:$16 sps:$4 sm:$0xff]   ;;  %v14486_v59 = vld [vmem:[#allocation10 + $0x2a0] ss:$16 sps:$4 sm:$0xff]   ;;  %v14494_v28 = vld [vmem:[#allocation10 + $0x2c4] ss:$16 sps:$4 sm:$0xff]  }
 0x3d8   : > { %v1416_v2 = vadd.f32 1e-06, %v1400_v56  ;;  %v1401_v32 = vmul.f32 0.001953125, %v1385_v58  ;;  %v1635_v48 = vadd.f32 %v17777_v24, %v1549_v52  ;;  %3000 = vmatprep.subr.bf16.mxu1 %v14485_v55  ;;  %v1471_v14 = vmul.f32 %v17903_v34, %v17518_v26  ;;  %v14489_v55 = vld [vmem:[#allocation10 + $0x2a8] ss:$16 sps:$4 sm:$0xff]  }
 0x3d9   : > { %v1554_v16 = vmul.f32 %v17765_v3, %v1467_v15  ;;  %v1470_v46 = vmul.f32 %v17903_v34, %v21522_v17  ;;  %v1684_v33 = vpack.c.bf16 %v1636_v18, %v1632_v21  ;;  %2706 = vmatmul.mubr.bf16.gmra.mrb[8].mxu0 %v1679_v29  ;;  %2932 = vmatmul.mubr.bf16.gmra.mrb[8].mxu1 %v1679_v29  ;;  %v14497_v52 = vld [vmem:[#allocation10 + $0x2cc] ss:$16 sps:$4 sm:$0xff]   ;;  %v14492_v18 = vld [vmem:[#allocation10 + $0x2c0] ss:$16 sps:$4 sm:$0xff]  }
 0x3da   : > { %14964 = vrsqrt.f32 %v1416_v2  ;;  %v1417_v39 = vadd.f32 1e-06, %v1401_v32  ;;  %v1683_v53 = vpack.c.bf16 %v1635_v48, %v1631_v5  ;;  %v17912_v44 = vpop.eup %14956  ;;  %v1558_v9 = vmul.f32 %v17765_v3, %v1471_v14  ;;  %2775 = vmatpush1.bf16.msra.mxu0 %v14480_v37  ;;  %v14495_v48 = vld [vmem:[#allocation10 + $0x2c8] ss:$16 sps:$4 sm:$0xff]  }
 0x3db   : > { %v1640_v7 = vadd.f32 %v17774_v23, %v1554_v16  ;;  %v1553_v26 = vmul.f32 %v17768_v41, %v1466_v19  ;;  %3001 = vmatpush1.bf16.msra.mxu1 %v14483_v4  ;;  %1716 = vst [vmem:[#allocation2 + $0x68] sm:$0xff] %v1684_v33  ;;  %v1557_v21 = vmul.f32 %v17768_v41, %v1470_v46 }
 0x3dc   : > { %14966 = vrsqrt.f32 %v1417_v39  ;;  %1715 = vst [vmem:[#allocation2 + $0x60] sm:$0xff] %v1683_v53  ;;  %v1475_v5 = vmul.f32 %v17912_v44, %v17544_v0  ;;  %v1474_v29 = vmul.f32 %v17912_v44, %v17540_v60  ;;  %2715 = vmatprep.mubr.bf16.mxu0 %v1684_v33  ;;  %2941 = vmatprep.mubr.bf16.mxu1 %v1684_v33  ;;  %v14500_v39 = vld [vmem:[#allocation10 + $0x2e4] ss:$16 sps:$4 sm:$0xff]   ;;  %v14503_v33 = vld [vmem:[#allocation10 + $0x2ec] ss:$16 sps:$4 sm:$0xff]  }
 0x3dd   : > { %v17922_v56 = vpop.eup %14958  ;;  %v1644_v58 = vadd.f32 %v17774_v23, %v1558_v9  ;;  %v1639_v37 = vadd.f32 %v17777_v24, %v1553_v26  ;;  %v17926_v15 = vpack.c.bf16 %v1622_v40, %v1618_v36  ;;  %2776 = vmatprep.subr.bf16.mxu0 %v14488_v61  ;;  %3002 = vmatprep.subr.bf16.mxu1 %v14491_v20  ;;  %v21523_v36 = vld [vmem:[#allocation70_spill] sm:$0xff] }
 0x3de   : > { %v1643_v19 = vadd.f32 %v17777_v24, %v1557_v21  ;;  %v1479_v0 = vmul.f32 %v17922_v56, %v17554_v1  ;;  %v1562_v60 = vmul.f32 %v17765_v3, %v1475_v5  ;;  %v1478_v32 = vmul.f32 %v17922_v56, %v17550_v11  ;;  %2777 = vmatpush1.bf16.msra.mxu0 %v14486_v59  ;;  %v14501_v21 = vld [vmem:[#allocation10 + $0x2e8] ss:$16 sps:$4 sm:$0xff]  }
 0x3df   : > { %v1688_v2 = vpack.c.bf16 %v1644_v58, %v1640_v7  ;;  %v1561_v4 = vmul.f32 %v17768_v41, %v1474_v29  ;;  %1710 = vst [vmem:[#allocation2 + $0x38] sm:$0xff] %v17926_v15  ;;  %v1448_v40 = vmul.f32 %v17822_v62, %v21523_v36  ;;  %3003 = vmatpush1.bf16.msra.mxu1 %v14489_v55  ;;  %v14509_v29 = vld [vmem:[#allocation10 + $0x30c] ss:$16 sps:$4 sm:$0xff]   ;;  %v14504_v36 = vld [vmem:[#allocation10 + $0x300] ss:$16 sps:$4 sm:$0xff]  }
 0x3e0   : > { %v17932_v13 = vpop.eup %14960  ;;  %v17940_v1 = vpack.c.bf16 %v1643_v19, %v1639_v37  ;;  %v1566_v14 = vmul.f32 %v17765_v3, %v1479_v0  ;;  %v1648_v16 = vadd.f32 %v17774_v23, %v1562_v60  ;;  %2778 = vmatprep.subr.bf16.mxu0 %v14494_v28  ;;  %3004 = vmatprep.subr.bf16.mxu1 %v14497_v52 }
 0x3e1   : > { %v17944_v17 = vpop.eup %14962  ;;  %1720 = vst [vmem:[#allocation2 + $0x88] sm:$0xff] %v1688_v2  ;;  %v1565_v11 = vmul.f32 %v17768_v41, %v1478_v32  ;;  %v1647_v46 = vadd.f32 %v17777_v24, %v1561_v4  ;;  %v1483_v62 = vmul.f32 %v17932_v13, %v17582_v63  ;;  %v1482_v9 = vmul.f32 %v17932_v13, %v17578_v57 }
 0x3e2   : > { %1719 = vst [vmem:[#allocation2 + $0x80] sm:$0xff] %v17940_v1  ;;  %v1652_v61 = vadd.f32 %v17774_v23, %v1566_v14  ;;  %v1487_v20 = vmul.f32 %v17944_v17, %v17590_v22  ;;  %v1486_v7 = vmul.f32 %v17944_v17, %v17586_v12  ;;  %2716 = vmatmul.mubr.bf16.gmra.mrb[12].mxu0 %v1683_v53  ;;  %v14498_v22 = vld [vmem:[#allocation10 + $0x2e0] ss:$16 sps:$4 sm:$0xff]  }
 0x3e3   : > { %2942 = vmatmul.mubr.bf16.gmra.mrb[12].mxu1 %v1683_v53  ;;  %v1651_v26 = vadd.f32 %v17777_v24, %v1565_v11  ;;  %v1570_v63 = vmul.f32 %v17765_v3, %v1483_v62  ;;  %v1531_v59 = vmul.f32 %v17780_v43, %v17901_v27  ;;  %2779 = vmatpush1.bf16.msra.mxu0 %v14492_v18  ;;  %v14506_v53 = vld [vmem:[#allocation10 + $0x304] ss:$16 sps:$4 sm:$0xff]   ;;  %v14507_v18 = vld [vmem:[#allocation10 + $0x308] ss:$16 sps:$4 sm:$0xff]  }
 0x3e4   : > { %v17962_v55 = vpop.eup %14964  ;;  %3005 = vmatpush1.bf16.msra.mxu1 %v14495_v48  ;;  %v1692_v5 = vpack.c.bf16 %v1652_v61, %v1648_v16  ;;  %v1574_v57 = vmul.f32 %v17765_v3, %v1487_v20  ;;  %v1569_v12 = vmul.f32 %v17768_v41, %v1482_v9  ;;  %2725 = vmatprep.mubr.bf16.mxu0 %v1688_v2  ;;  %v14512_v11 = vld [vmem:[#allocation10 + $0x324] ss:$16 sps:$4 sm:$0xff]   ;;  %v21524_v61 = vld [vmem:[#allocation72_spill] sm:$0xff]  ;;  %v14513_v9 = vld [vmem:[#allocation10 + $0x328] ss:$16 sps:$4 sm:$0xff]  }
 0x3e5   : > { %2951 = vmatprep.mubr.bf16.mxu1 %v1688_v2  ;;  %v17966_v28 = vpack.c.bf16 %v1651_v26, %v1647_v46  ;;  %v1656_v52 = vadd.f32 %v17774_v23, %v1570_v63  ;;  %v1573_v27 = vmul.f32 %v17768_v41, %v1486_v7  ;;  %2780 = vmatprep.subr.bf16.mxu0 %v14500_v39  ;;  %v21525_v63 = vld [vmem:[#allocation75_spill] sm:$0xff] }
 0x3e6   : > { %v17970_v58 = vpop.eup %14966  ;;  %3006 = vmatprep.subr.bf16.mxu1 %v14503_v33  ;;  %1724 = vst [vmem:[#allocation2 + $0xa8] sm:$0xff] %v1692_v5  ;;  %v1660_v37 = vadd.f32 %v17774_v23, %v1574_v57  ;;  %v1655_v19 = vadd.f32 %v17777_v24, %v1569_v12  ;;  %v1491_v0 = vmul.f32 %v17962_v55, %v17622_v54  ;;  %v21526_v57 = vld [vmem:[#allocation71_spill] sm:$0xff] }
 0x3e7   : > { %1723 = vst [vmem:[#allocation2 + $0xa0] sm:$0xff] %v17966_v28  ;;  %v1659_v60 = vadd.f32 %v17777_v24, %v1573_v27  ;;  %v1495_v2 = vmul.f32 %v17970_v58, %v17648_v8  ;;  %v1490_v32 = vmul.f32 %v17962_v55, %v17618_v50  ;;  %v1494_v4 = vmul.f32 %v17970_v58, %v17644_v10  ;;  %v14515_v10 = vld [vmem:[#allocation10 + $0x32c] ss:$16 sps:$4 sm:$0xff]  }
 0x3e8   : > { %2781 = vmatpush1.bf16.msra.mxu0 %v14498_v22  ;;  %3007 = vmatpush1.bf16.msra.mxu1 %v14501_v21  ;;  %v17984_v48 = vpack.c.bf16 %v1660_v37, %v1656_v52  ;;  %v1578_v54 = vmul.f32 %v17765_v3, %v1491_v0  ;;  %v1535_v14 = vmul.f32 %v17780_v43, %v1448_v40  ;;  %v21528_v37 = vld [vmem:[#allocation77_spill] sm:$0xff] }
 0x3e9   : > { %2782 = vmatprep.subr.bf16.mxu0 %v14506_v53  ;;  %3008 = vmatprep.subr.bf16.mxu1 %v14509_v29  ;;  %v17988_v16 = vpack.c.bf16 %v1659_v60, %v1655_v19  ;;  %v1582_v8 = vmul.f32 %v17765_v3, %v1495_v2  ;;  %v1577_v50 = vmul.f32 %v17768_v41, %v1490_v32  ;;  %v21527_v29 = vld [vmem:[#allocation73_spill] sm:$0xff]  ;;  %v21529_v19 = vld [vmem:[#allocation79_spill] sm:$0xff]  ;;  %v14516_v60 = vld [vmem:[#allocation10 + $0x340] ss:$16 sps:$4 sm:$0xff]  }
 0x3ea   : > { %1728 = vst [vmem:[#allocation2 + $0xc8] sm:$0xff] %v17984_v48  ;;  %v1664_v46 = vadd.f32 %v17774_v23, %v1578_v54  ;;  %v1581_v62 = vmul.f32 %v17768_v41, %v1494_v4  ;;  %v1617_v39 = vadd.f32 %v17790_v38, %v1531_v59  ;;  %v1621_v40 = vadd.f32 %v17790_v38, %v1535_v14  ;;  %v14510_v41 = vld [vmem:[#allocation10 + $0x320] ss:$16 sps:$4 sm:$0xff]   ;;  %v14518_v59 = vld [vmem:[#allocation10 + $0x344] ss:$16 sps:$4 sm:$0xff]  }
 0x3eb   : > { %2726 = vmatmul.mubr.bf16.gmra.mrb[16].mxu0 %v17940_v1  ;;  %2952 = vmatmul.mubr.bf16.gmra.mrb[16].mxu1 %v17940_v1  ;;  %1727 = vst [vmem:[#allocation2 + $0xc0] sm:$0xff] %v17988_v16  ;;  %v1668_v3 = vadd.f32 %v17774_v23, %v1582_v8  ;;  %v1663_v33 = vadd.f32 %v17777_v24, %v1577_v50  ;;  %v14521_v23 = vld [vmem:[#allocation10 + $0x34c] ss:$16 sps:$4 sm:$0xff]   ;;  %v14519_v2 = vld [vmem:[#allocation10 + $0x348] ss:$16 sps:$4 sm:$0xff]  }
 0x3ec   : > { %v1453_v20 = vmul.f32 %v17838_v35, %v21524_v61  ;;  %2783 = vmatpush1.bf16.msra.mxu0 %v14504_v36  ;;  %3009 = vmatpush1.bf16.msra.mxu1 %v14507_v18  ;;  %v1667_v7 = vadd.f32 %v17777_v24, %v1581_v62  ;;  %v18005_v26 = vpack.c.bf16 %v1621_v40, %v1617_v39  ;;  %v21530_v4 = vld [vmem:[#allocation76_spill] sm:$0xff]  ;;  %v14524_v8 = vld [vmem:[#allocation10 + $0x364] ss:$16 sps:$4 sm:$0xff]  }
 0x3ed   : > { %v1457_v1 = vmul.f32 %v17849_v42, %v21525_v63  ;;  %2735 = vmatprep.mubr.bf16.mxu0 %v1692_v5  ;;  %2961 = vmatprep.mubr.bf16.mxu1 %v1692_v5  ;;  %v18009_v22 = vpack.c.bf16 %v1668_v3, %v1664_v46  ;;  %v1452_v12 = vmul.f32 %v17838_v35, %v21526_v57  ;;  %v14527_v50 = vld [vmem:[#allocation10 + $0x36c] ss:$16 sps:$4 sm:$0xff]   ;;  %v21532_v3 = vld [vmem:[#allocation81_spill] sm:$0xff]  ;;  %v14522_v61 = vld [vmem:[#allocation10 + $0x360] ss:$16 sps:$4 sm:$0xff]  }
 0x3ee   : > { %v1540_v21 = vmul.f32 %v17771_v30, %v1453_v20  ;;  %2784 = vmatprep.subr.bf16.mxu0 %v14512_v11  ;;  %3010 = vmatprep.subr.bf16.mxu1 %v14515_v10  ;;  %v18014_v53 = vpack.c.bf16 %v1667_v7, %v1663_v33  ;;  %1709 = vst [vmem:[#allocation2 + $0x30] sm:$0xff] %v18005_v26  ;;  %v21531_v46 = vld [vmem:[#allocation78_spill] sm:$0xff]  ;;  %v14525_v20 = vld [vmem:[#allocation10 + $0x368] ss:$16 sps:$4 sm:$0xff]   ;;  %v21534_v57 = vld [vmem:[#allocation80_spill] sm:$0xff] }
 0x3ef   : > { %v1544_v24 = vmul.f32 %v17771_v30, %v1457_v1  ;;  %v1456_v5 = vmul.f32 %v17849_v42, %v21527_v29  ;;  %1732 = vst [vmem:[#allocation2 + $0xe8] sm:$0xff] %v18009_v22  ;;  %v1539_v27 = vmul.f32 %v17780_v43, %v1452_v12  ;;  %v1461_v35 = vmul.f32 %v17865_v6, %v21528_v37  ;;  %v14533_v7 = vld [vmem:[#allocation10 + $0x38c] ss:$16 sps:$4 sm:$0xff]   ;;  %v21533_v1 = vld [vmem:[#allocation83_spill] sm:$0xff] }
 0x3f0   : > { %v1626_v52 = vadd.f32 %v17786_v47, %v1540_v21  ;;  %v1465_v0 = vmul.f32 %v17881_v45, %v21529_v19  ;;  %2785 = vmatpush1.bf16.msra.mxu0 %v14510_v41  ;;  %3011 = vmatpush1.bf16.msra.mxu1 %v14513_v9  ;;  %1731 = vst [vmem:[#allocation2 + $0xe0] sm:$0xff] %v18014_v53  ;;  %v14531_v19 = vld [vmem:[#allocation10 + $0x388] ss:$16 sps:$4 sm:$0xff]  }
 0x3f1   : > { %v1630_v42 = vadd.f32 %v17786_v47, %v1544_v24  ;;  %v1543_v32 = vmul.f32 %v17780_v43, %v1456_v5  ;;  %v1460_v36 = vmul.f32 %v17865_v6, %v21530_v4  ;;  %2786 = vmatprep.subr.bf16.mxu0 %v14518_v59  ;;  %3012 = vmatprep.subr.bf16.mxu1 %v14521_v23  ;;  %v21535_v24 = vld [vmem:[#allocation82_spill] sm:$0xff] }
 0x3f2   : > { %v1625_v18 = vadd.f32 %v17790_v38, %v1539_v27  ;;  %v1548_v54 = vmul.f32 %v17771_v30, %v1461_v35  ;;  %v1552_v14 = vmul.f32 %v17771_v30, %v1465_v0  ;;  %v1464_v62 = vmul.f32 %v17881_v45, %v21531_v46  ;;  %v14528_v35 = vld [vmem:[#allocation10 + $0x380] ss:$16 sps:$4 sm:$0xff]  }
 0x3f3   : > { %v18035_v11 = vpack.c.bf16 %v1630_v42, %v1626_v52  ;;  %v1629_v10 = vadd.f32 %v17790_v38, %v1543_v32  ;;  %v1547_v39 = vmul.f32 %v17780_v43, %v1460_v36  ;;  %2736 = vmatmul.mubr.bf16.gmra.mrb[20].mxu0 %v17966_v28  ;;  %2962 = vmatmul.mubr.bf16.gmra.mrb[20].mxu1 %v17966_v28  ;;  %v14530_v28 = vld [vmem:[#allocation10 + $0x384] ss:$16 sps:$4 sm:$0xff]  }
 0x3f4   : > { %v1634_v6 = vadd.f32 %v17786_v47, %v1548_v54  ;;  %v1638_v40 = vadd.f32 %v17786_v47, %v1552_v14  ;;  %v1469_v33 = vmul.f32 %v17890_v51, %v21532_v3  ;;  %2787 = vmatpush1.bf16.msra.mxu0 %v14516_v60  ;;  %3013 = vmatpush1.bf16.msra.mxu1 %v14519_v2  ;;  %v21536_v52 = vld [vmem:[#allocation85_spill] sm:$0xff]  ;;  %v21538_v14 = vld [vmem:[#allocation86_spill] sm:$0xff] }
 0x3f5   : > { %1714 = vst [vmem:[#allocation2 + $0x58] sm:$0xff] %v18035_v11  ;;  %v18048_v45 = vpack.c.bf16 %v1629_v10, %v1625_v18  ;;  %v1551_v41 = vmul.f32 %v17780_v43, %v1464_v62  ;;  %v1633_v9 = vadd.f32 %v17790_v38, %v1547_v39  ;;  %2745 = vmatprep.mubr.bf16.mxu0 %v17984_v48  ;;  %v14536_v32 = vld [vmem:[#allocation10 + $0x3a4] ss:$16 sps:$4 sm:$0xff]   ;;  %v21537_v18 = vld [vmem:[#allocation84_spill] sm:$0xff]  ;;  %v14537_v39 = vld [vmem:[#allocation10 + $0x3a8] ss:$16 sps:$4 sm:$0xff]  }
 0x3f6   : > { %2971 = vmatprep.mubr.bf16.mxu1 %v17984_v48  ;;  %v18054_v63 = vpack.c.bf16 %v1638_v40, %v1634_v6  ;;  %v1473_v59 = vmul.f32 %v17903_v34, %v21533_v1  ;;  %v1556_v23 = vmul.f32 %v17771_v30, %v1469_v33  ;;  %2788 = vmatprep.subr.bf16.mxu0 %v14524_v8  ;;  %v14534_v62 = vld [vmem:[#allocation10 + $0x3a0] ss:$16 sps:$4 sm:$0xff]   ;;  %v14545_v40 = vld [vmem:[#allocation10 + $0x3cc] ss:$16 sps:$4 sm:$0xff]  }
 0x3f7   : > { %3014 = vmatprep.subr.bf16.mxu1 %v14527_v50  ;;  %1713 = vst [vmem:[#allocation2 + $0x50] sm:$0xff] %v18048_v45  ;;  %v1637_v21 = vadd.f32 %v17790_v38, %v1551_v41  ;;  %v1468_v12 = vmul.f32 %v17890_v51, %v21534_v57  ;;  %v1472_v48 = vmul.f32 %v17903_v34, %v21535_v24  ;;  %v21539_v33 = vld [vmem:[#allocation88_spill] sm:$0xff] }
 0x3f8   : > { %1718 = vst [vmem:[#allocation2 + $0x78] sm:$0xff] %v18054_v63  ;;  %v1560_v29 = vmul.f32 %v17771_v30, %v1473_v59  ;;  %v1642_v5 = vadd.f32 %v17786_v47, %v1556_v23  ;;  %v1477_v27 = vmul.f32 %v17912_v44, %v21536_v52  ;;  %v1481_v37 = vmul.f32 %v17922_v56, %v17676_v49  ;;  %v14539_v49 = vld [vmem:[#allocation10 + $0x3ac] ss:$16 sps:$4 sm:$0xff]   ;;  %v21542_v23 = vld [vmem:[#allocation89_spill] sm:$0xff]  ;;  %v14540_v24 = vld [vmem:[#allocation10 + $0x3c0] ss:$16 sps:$4 sm:$0xff]  }
 0x3f9   : > { %2789 = vmatpush1.bf16.msra.mxu0 %v14522_v61  ;;  %3015 = vmatpush1.bf16.msra.mxu1 %v14525_v20  ;;  %v18072_v51 = vpack.c.bf16 %v1637_v21, %v1633_v9  ;;  %v1555_v34 = vmul.f32 %v17780_v43, %v1468_v12  ;;  %v1559_v0 = vmul.f32 %v17780_v43, %v1472_v48  ;;  %v21540_v20 = vld [vmem:[#allocation90_spill] sm:$0xff]  ;;  %v21543_v57 = vld [vmem:[#allocation92_spill] sm:$0xff]  ;;  %v14543_v48 = vld [vmem:[#allocation10 + $0x3c8] ss:$16 sps:$4 sm:$0xff]  }
 0x3fa   : > { %2790 = vmatprep.subr.bf16.mxu0 %v14530_v28  ;;  %3016 = vmatprep.subr.bf16.mxu1 %v14533_v7  ;;  %v1646_v60 = vadd.f32 %v17786_v47, %v1560_v29  ;;  %v1564_v2 = vmul.f32 %v17771_v30, %v1477_v27  ;;  %v1568_v42 = vmul.f32 %v17771_v30, %v1481_v37  ;;  %v21541_v28 = vld [vmem:[#allocation87_spill] sm:$0xff] }
 0x3fb   : > { %1717 = vst [vmem:[#allocation2 + $0x70] sm:$0xff] %v18072_v51  ;;  %v1641_v4 = vadd.f32 %v17790_v38, %v1555_v34  ;;  %v1645_v36 = vadd.f32 %v17790_v38, %v1559_v0  ;;  %v1476_v54 = vmul.f32 %v17912_v44, %v21537_v18  ;;  %v1480_v8 = vmul.f32 %v17922_v56, %v21538_v14  ;;  %v14548_v27 = vld [vmem:[#allocation10 + $0x3e4] ss:$16 sps:$4 sm:$0xff]  }
 0x3fc   : > { %2746 = vmatmul.mubr.bf16.gmra.mrb[24].mxu0 %v17988_v16  ;;  %2972 = vmatmul.mubr.bf16.gmra.mrb[24].mxu1 %v17988_v16  ;;  %v18088_v50 = vpack.c.bf16 %v1646_v60, %v1642_v5  ;;  %v1650_v10 = vadd.f32 %v17786_v47, %v1564_v2  ;;  %v1654_v46 = vadd.f32 %v17786_v47, %v1568_v42  ;;  %v14542_v16 = vld [vmem:[#allocation10 + $0x3c4] ss:$16 sps:$4 sm:$0xff]   ;;  %v21544_v5 = vld [vmem:[#allocation94_spill] sm:$0xff] }
 0x3fd   : > { %2791 = vmatpush1.bf16.msra.mxu0 %v14528_v35  ;;  %3017 = vmatpush1.bf16.msra.mxu1 %v14531_v19  ;;  %v18092_v6 = vpack.c.bf16 %v1645_v36, %v1641_v4  ;;  %v1563_v44 = vmul.f32 %v17780_v43, %v1476_v54  ;;  %v1567_v56 = vmul.f32 %v17780_v43, %v1480_v8  ;;  %v14551_v19 = vld [vmem:[#allocation10 + $0x3ec] ss:$16 sps:$4 sm:$0xff]   ;;  %v21545_v2 = vld [vmem:[#allocation91_spill] sm:$0xff]  ;;  %v21546_v18 = vld [vmem:[#allocation93_spill] sm:$0xff] }
 0x3fe   : > { %2755 = vmatprep.mubr.bf16.mxu0 %v18009_v22  ;;  %2981 = vmatprep.mubr.bf16.mxu1 %v18009_v22  ;;  %1722 = vst [vmem:[#allocation2 + $0x98] sm:$0xff] %v18088_v50  ;;  %v18099_v3 = vpack.c.bf16 %v1654_v46, %v1650_v10  ;;  %v1485_v61 = vmul.f32 %v17932_v13, %v21539_v33  ;;  %v1783_v14 = vld [vmem:[#allocation22 + $0x180] sm:$0xff]  ;;  %v1784_v8 = vld [vmem:[#allocation22 + $0x188] sm:$0xff] }
 0x3ff   : > { %v1489_v41 = vmul.f32 %v17944_v17, %v21540_v20  ;;  %2792 = vmatprep.subr.bf16.mxu0 %v14536_v32  ;;  %3018 = vmatprep.subr.bf16.mxu1 %v14539_v49  ;;  %1721 = vst [vmem:[#allocation2 + $0x90] sm:$0xff] %v18092_v6  ;;  %v1649_v9 = vadd.f32 %v17790_v38, %v1563_v44  ;;  %v1751_v32 = vld [vmem:[#allocation22 + $0x80] sm:$0xff]  ;;  %v1752_v49 = vld [vmem:[#allocation22 + $0x88] sm:$0xff] }
 0x400   : > { %v1653_v22 = vadd.f32 %v17790_v38, %v1567_v56  ;;  %v1484_v7 = vmul.f32 %v17932_v13, %v21541_v28  ;;  %1726 = vst [vmem:[#allocation2 + $0xb8] sm:$0xff] %v18099_v3  ;;  %v1572_v1 = vmul.f32 %v17771_v30, %v1485_v61  ;;  %v1488_v21 = vmul.f32 %v17944_v17, %v21542_v23  ;;  %v14549_v10 = vld [vmem:[#allocation10 + $0x3e8] ss:$16 sps:$4 sm:$0xff]   ;;  %v1736_v56 = vld [vmem:[#allocation22 + $0x8] sm:$0xff] }
 0x401   : > { %v1576_v59 = vmul.f32 %v17771_v30, %v1489_v41  ;;  %v1493_v12 = vmul.f32 %v17962_v55, %v21543_v57  ;;  %2793 = vmatpush1.bf16.msra.mxu0 %v14534_v62  ;;  %3019 = vmatpush1.bf16.msra.mxu1 %v14537_v39  ;;  %v1497_v52 = vmul.f32 %v17970_v58, %v21544_v5  ;;  %v1735_v44 = vld [vmem:[#allocation22] sm:$0xff]  ;;  %v1768_v33 = vld [vmem:[#allocation22 + $0x108] sm:$0xff]  ;;  %v1753_v61 = vld [vmem:[#allocation22 + $0x90] sm:$0xff] }
 0x402   : > { %v18117_v29 = vpack.c.bf16 %v1653_v22, %v1649_v9  ;;  %v1571_v13 = vmul.f32 %v17780_v43, %v1484_v7  ;;  %2794 = vmatprep.subr.bf16.mxu0 %v14542_v16  ;;  %3020 = vmatprep.subr.bf16.mxu1 %v14545_v40  ;;  %v1658_v37 = vadd.f32 %v17786_v47, %v1572_v1  ;;  %v1767_v40 = vld [vmem:[#allocation22 + $0x100] sm:$0xff]  ;;  %v1785_v41 = vld [vmem:[#allocation22 + $0x190] sm:$0xff]  ;;  %v1786_v9 = vld [vmem:[#allocation22 + $0x198] sm:$0xff] }
 0x403   : > { %v1662_v17 = vadd.f32 %v17786_v47, %v1576_v59  ;;  %v1575_v35 = vmul.f32 %v17780_v43, %v1488_v21  ;;  %v1580_v0 = vmul.f32 %v17771_v30, %v1493_v12  ;;  %v1584_v60 = vmul.f32 %v17771_v30, %v1497_v52  ;;  %v14546_v30 = vld [vmem:[#allocation10 + $0x3e0] ss:$16 sps:$4 sm:$0xff]   ;;  %v1737_v1 = vld [vmem:[#allocation22 + $0x10] sm:$0xff]  ;;  %v1755_v12 = vld [vmem:[#allocation22 + $0xa0] sm:$0xff] }
 0x404   : > { %1725 = vst [vmem:[#allocation2 + $0xb0] sm:$0xff] %v18117_v29  ;;  %v1657_v34 = vadd.f32 %v17790_v38, %v1571_v13  ;;  %v1492_v42 = vmul.f32 %v17962_v55, %v21545_v2  ;;  %2756 = vmatmul.mubr.bf16.gmra.mrb[28].mxu0 %v18014_v53  ;;  %2982 = vmatmul.mubr.bf16.gmra.mrb[28].mxu1 %v18014_v53  ;;  %v1738_v59 = vld [vmem:[#allocation22 + $0x18] sm:$0xff]  ;;  %v1769_v21 = vld [vmem:[#allocation22 + $0x110] sm:$0xff]  ;;  %v1788_v13 = vld [vmem:[#allocation22 + $0x1a8] sm:$0xff] }
 0x405   : > { %v18133_v4 = vpack.c.bf16 %v1662_v17, %v1658_v37  ;;  %v1661_v36 = vadd.f32 %v17790_v38, %v1575_v35  ;;  %v1496_v54 = vmul.f32 %v17970_v58, %v21546_v18  ;;  %2795 = vmatpush1.bf16.msra.mxu0 %v14540_v24  ;;  %3021 = vmatpush1.bf16.msra.mxu1 %v14543_v48  ;;  %v1770_v57 = vld [vmem:[#allocation22 + $0x118] sm:$0xff]  ;;  %v1756_v24 = vld [vmem:[#allocation22 + $0xa8] sm:$0xff]  ;;  %v1787_v48 = vld [vmem:[#allocation22 + $0x1a0] sm:$0xff] }
 0x406   : > { %v1666_v55 = vadd.f32 %v17786_v47, %v1580_v0  ;;  %v1670_v46 = vadd.f32 %v17786_v47, %v1584_v60  ;;  %v1579_v62 = vmul.f32 %v17780_v43, %v1492_v42  ;;  %2798 = vmatprep.mubr.bf16.mxu0 %v17847_v31  ;;  %3024 = vmatprep.mubr.bf16.mxu1 %v17847_v31  ;;  %v1740_v37 = vld [vmem:[#allocation22 + $0x28] sm:$0xff]  ;;  %v1771_v35 = vld [vmem:[#allocation22 + $0x120] sm:$0xff]  ;;  %v1789_v0 = vld [vmem:[#allocation22 + $0x1b0] sm:$0xff] }
 0x407   : > { %1730 = vst [vmem:[#allocation2 + $0xd8] sm:$0xff] %v18133_v4  ;;  %v18144_v53 = vpack.c.bf16 %v1661_v36, %v1657_v34  ;;  %v1583_v58 = vmul.f32 %v17780_v43, %v1496_v54  ;;  %v18147_v39 = vpack.c.bf16 %v1752_v49, %v1751_v32  ;;  %2796 = vmatprep.subr.bf16.mxu0 %v14548_v27  ;;  %v1754_v43 = vld [vmem:[#allocation22 + $0x98] sm:$0xff]  ;;  %v1739_v27 = vld [vmem:[#allocation22 + $0x20] sm:$0xff]  ;;  %v1741_v32 = vld [vmem:[#allocation22 + $0x30] sm:$0xff] }
 0x408   : > { %3022 = vmatprep.subr.bf16.mxu1 %v14551_v19  ;;  %v18149_v16 = vpack.c.bf16 %v1670_v46, %v1666_v55  ;;  %v18151_v47 = vpack.c.bf16 %v1784_v8, %v1783_v14  ;;  %v1665_v31 = vadd.f32 %v17790_v38, %v1579_v62  ;;  %v18161_v28 = vpack.c.bf16 %v1736_v56, %v1735_v44  ;;  %v1757_v19 = vld [vmem:[#allocation22 + $0xb0] sm:$0xff]  ;;  %v1758_v34 = vld [vmem:[#allocation22 + $0xb8] sm:$0xff]  ;;  %v1759_v8 = vld [vmem:[#allocation22 + $0xc0] sm:$0xff] }
 0x409   : > { %1729 = vst [vmem:[#allocation2 + $0xd0] sm:$0xff] %v18144_v53  ;;  %v1669_v20 = vadd.f32 %v17790_v38, %v1583_v58  ;;  %2797 = vmatpush1.bf16.msra.mxu0 %v14546_v30  ;;  %3023 = vmatpush1.bf16.msra.mxu1 %v14549_v10  ;;  %v18163_v7 = vpack.c.bf16 %v1768_v33, %v1767_v40  ;;  %v1790_v60 = vld [vmem:[#allocation22 + $0x1b8] sm:$0xff]  ;;  %v1773_v54 = vld [vmem:[#allocation22 + $0x130] sm:$0xff]  ;;  %v1760_v30 = vld [vmem:[#allocation22 + $0xc8] sm:$0xff] }
 0x40a   : > { %1734 = vst [vmem:[#allocation2 + $0xf8] sm:$0xff] %v18149_v16  ;;  %13234 = vmatprep.subr.bf16.mxu0 %v18147_v39  ;;  %13266 = vmatprep.subr.bf16.mxu1 %v18151_v47  ;;  %v18165_v38 = vpack.c.bf16 %v1754_v43, %v1753_v61  ;;  %v18167_v23 = vpack.c.bf16 %v1786_v9, %v1785_v41  ;;  %v1742_v49 = vld [vmem:[#allocation22 + $0x38] sm:$0xff]  ;;  %v1791_v10 = vld [vmem:[#allocation22 + $0x1c0] sm:$0xff]  ;;  %v1792_v55 = vld [vmem:[#allocation22 + $0x1c8] sm:$0xff] }
 0x40b   : > { %v18157_v22 = vpack.c.bf16 %v1669_v20, %v1665_v31  ;;  %v18176_v5 = vpack.c.bf16 %v1738_v59, %v1737_v1  ;;  %v18178_v52 = vpack.c.bf16 %v1770_v57, %v1769_v21  ;;  %v18184_v17 = vpack.c.bf16 %v1788_v13, %v1787_v48  ;;  %v1774_v14 = vld [vmem:[#allocation22 + $0x138] sm:$0xff]  ;;  %v1743_v58 = vld [vmem:[#allocation22 + $0x40] sm:$0xff]  ;;  %v1744_v44 = vld [vmem:[#allocation22 + $0x48] sm:$0xff] }
 0x40c   : > { %2799 = vmatmul.mubr.bf16.vlgmr.msra.gmra.mrb[0].mxu0 %v17863_v25  ;;  %3025 = vmatmul.mubr.bf16.vlgmr.msra.gmra.mrb[0].mxu1 %v17863_v25  ;;  %v18182_v25 = vpack.c.bf16 %v1756_v24, %v1755_v12  ;;  %v18188_v2 = vpack.c.bf16 %v1740_v37, %v1739_v27  ;;  %v18194_v36 = vpack.c.bf16 %v1758_v34, %v1757_v19  ;;  %v1775_v40 = vld [vmem:[#allocation22 + $0x140] sm:$0xff]  ;;  %v1761_v33 = vld [vmem:[#allocation22 + $0xd0] sm:$0xff]  ;;  %v1762_v61 = vld [vmem:[#allocation22 + $0xd8] sm:$0xff] }
 0x40d   : > { %1733 = vst [vmem:[#allocation2 + $0xf0] sm:$0xff] %v18157_v22  ;;  %2808 = vmatprep.mubr.bf16.mxu0 %v17926_v15  ;;  %3034 = vmatprep.mubr.bf16.mxu1 %v17926_v15  ;;  %v1772_v15 = vld [vmem:[#allocation22 + $0x128] sm:$0xff]  ;;  %v18196_v18 = vpack.c.bf16 %v1790_v60, %v1789_v0  ;;  %v18204_v46 = vpack.c.bf16 %v1742_v49, %v1741_v32  ;;  %v1793_v31 = vld [vmem:[#allocation22 + $0x1d0] sm:$0xff]  ;;  %v1794_v20 = vld [vmem:[#allocation22 + $0x1d8] sm:$0xff] }
 0x40e   : > { %13236 = vmatpush3.bf16.msra.mxu0 %v18161_v28  ;;  %13268 = vmatpush3.bf16.msra.mxu1 %v18163_v7  ;;  %v18190_v42 = vpack.c.bf16 %v1772_v15, %v1771_v35  ;;  %v18206_v62 = vpack.c.bf16 %v1774_v14, %v1773_v54  ;;  %v18212_v56 = vpack.c.bf16 %v1792_v55, %v1791_v10  ;;  %v1745_v9 = vld [vmem:[#allocation22 + $0x50] sm:$0xff]  ;;  %v1746_v1 = vld [vmem:[#allocation22 + $0x58] sm:$0xff]  ;;  %v1763_v24 = vld [vmem:[#allocation22 + $0xe0] sm:$0xff] }
 0x40f   : > { %13238 = vmatprep.subr.bf16.mxu0 %v18165_v38  ;;  %13270 = vmatprep.subr.bf16.mxu1 %v18167_v23  ;;  %v18216_v43 = vpack.c.bf16 %v1744_v44, %v1743_v58  ;;  %v18222_v59 = vpack.c.bf16 %v1762_v61, %v1761_v33  ;;  %v18224_v21 = vpack.c.bf16 %v1794_v20, %v1793_v31  ;;  %v1777_v57 = vld [vmem:[#allocation22 + $0x150] sm:$0xff]  ;;  %v1778_v12 = vld [vmem:[#allocation22 + $0x158] sm:$0xff]  ;;  %v1764_v48 = vld [vmem:[#allocation22 + $0xe8] sm:$0xff] }
 0x410   : > { %v1795_v13 = vld [vmem:[#allocation22 + $0x1e0] sm:$0xff]  ;;  %v1796_v27 = vld [vmem:[#allocation22 + $0x1e8] sm:$0xff]  ;;  %v18232_v37 = vpack.c.bf16 %v1746_v1, %v1745_v9  ;;  %v18234_v35 = vpack.c.bf16 %v1778_v12, %v1777_v57  ;;  %v1765_v60 = vld [vmem:[#allocation22 + $0xf0] sm:$0xff] }
 0x411   : > { %v1747_v15 = vld [vmem:[#allocation22 + $0x60] sm:$0xff]  ;;  %v1748_v19 = vld [vmem:[#allocation22 + $0x68] sm:$0xff]  ;;  %v18240_v34 = vpack.c.bf16 %v1796_v27, %v1795_v13  ;;  %v1766_v32 = vld [vmem:[#allocation22 + $0xf8] sm:$0xff] }
 0x412   : > { %13240 = vmatpush3.bf16.msra.mxu0 %v18176_v5  ;;  %13272 = vmatpush3.bf16.msra.mxu1 %v18178_v52  ;;  %v1779_v0 = vld [vmem:[#allocation22 + $0x160] sm:$0xff]  ;;  %v1797_v49 = vld [vmem:[#allocation22 + $0x1f0] sm:$0xff]  ;;  %v1798_v54 = vld [vmem:[#allocation22 + $0x1f8] sm:$0xff]  ;;  %v18244_v14 = vpack.c.bf16 %v1748_v19, %v1747_v15  ;;  %v18250_v10 = vpack.c.bf16 %v1766_v32, %v1765_v60 }
 0x413   : > { %13242 = vmatprep.subr.bf16.mxu0 %v18182_v25  ;;  %13274 = vmatprep.subr.bf16.mxu1 %v18184_v17  ;;  %v18252_v55 = vpack.c.bf16 %v1798_v54, %v1797_v49  ;;  %v1750_v58 = vld [vmem:[#allocation22 + $0x78] sm:$0xff]  ;;  %v1781_v44 = vld [vmem:[#allocation22 + $0x170] sm:$0xff]  ;;  %v21553_v1 = vld [vmem:[#allocation97_spill] sm:$0xff] }
 0x414   : > { %2809 = vmatmul.mubr.bf16.gmra.mrb[4].mxu0 %v18005_v26  ;;  %3035 = vmatmul.mubr.bf16.gmra.mrb[4].mxu1 %v18005_v26  ;;  %v18210_v26 = vpack.c.bf16 %v1760_v30, %v1759_v8  ;;  %v1749_v30 = vld [vmem:[#allocation22 + $0x70] sm:$0xff]  ;;  %v1799_v12 = vld [vmem:[#allocation24] sm:$0xff]  ;;  %v1808_v19 = vld [vmem:[#allocation24 + $0x48] sm:$0xff] }
 0x415   : > { %2818 = vmatprep.mubr.bf16.mxu0 %v18035_v11  ;;  %3044 = vmatprep.mubr.bf16.mxu1 %v18035_v11  ;;  %v1776_v11 = vld [vmem:[#allocation22 + $0x148] sm:$0xff]  ;;  %v1805_v15 = vld [vmem:[#allocation24 + $0x30] sm:$0xff] }
 0x416   : > { %13244 = vmatpush3.bf16.msra.mxu0 %v18188_v2  ;;  %13276 = vmatpush3.bf16.msra.mxu1 %v18190_v42  ;;  %v18218_v41 = vpack.c.bf16 %v1776_v11, %v1775_v40  ;;  %v1782_v40 = vld [vmem:[#allocation22 + $0x178] sm:$0xff]  ;;  %v18260_v11 = vpack.c.bf16 %v1750_v58, %v1749_v30 }
 0x417   : > { %13246 = vmatprep.subr.bf16.mxu0 %v18194_v36  ;;  %13278 = vmatprep.subr.bf16.mxu1 %v18196_v18  ;;  %v18262_v33 = vpack.c.bf16 %v1782_v40, %v1781_v44  ;;  %v1810_v40 = vld [vmem:[#allocation24 + $0x58] sm:$0xff] }
 0x419   : > { %21547 = vst [vmem:[#allocation69_spill] sm:$0xff] %v18262_v33 }
 0x41a   : > { %13248 = vmatpush3.bf16.msra.mxu0 %v18204_v46  ;;  %13280 = vmatpush3.bf16.msra.mxu1 %v18206_v62 }
 0x41b   : > { %13250 = vmatprep.subr.bf16.mxu0 %v18210_v26  ;;  %13282 = vmatprep.subr.bf16.mxu1 %v18212_v56 }
 0x41c   : > { %2819 = vmatmul.mubr.bf16.gmra.mrb[8].mxu0 %v18048_v45  ;;  %3045 = vmatmul.mubr.bf16.gmra.mrb[8].mxu1 %v18048_v45  ;;  %v18238_v45 = vpack.c.bf16 %v1764_v48, %v1763_v24  ;;  %v1803_v24 = vld [vmem:[#allocation24 + $0x20] sm:$0xff]  ;;  %v1801_v48 = vld [vmem:[#allocation24 + $0x10] sm:$0xff] }
 0x41d   : > { %2828 = vmatprep.mubr.bf16.mxu0 %v18054_v63  ;;  %3054 = vmatprep.mubr.bf16.mxu1 %v18054_v63  ;;  %v1780_v63 = vld [vmem:[#allocation22 + $0x168] sm:$0xff] }
 0x41e   : > { %13252 = vmatpush3.bf16.msra.mxu0 %v18216_v43  ;;  %13284 = vmatpush3.bf16.msra.mxu1 %v18218_v41  ;;  %v18246_v8 = vpack.c.bf16 %v1780_v63, %v1779_v0  ;;  %v1812_v0 = vld [vmem:[#allocation24 + $0x68] sm:$0xff] }
 0x41f   : > { %13254 = vmatprep.subr.bf16.mxu0 %v18222_v59  ;;  %13286 = vmatprep.subr.bf16.mxu1 %v18224_v21 }
 0x422   : > { %13256 = vmatpush3.bf16.msra.mxu0 %v18232_v37  ;;  %13288 = vmatpush3.bf16.msra.mxu1 %v18234_v35 }
 0x423   : > { %13258 = vmatprep.subr.bf16.mxu0 %v18238_v45  ;;  %13290 = vmatprep.subr.bf16.mxu1 %v18240_v34 }
 0x424   : > { %2829 = vmatmul.mubr.bf16.gmra.mrb[12].mxu0 %v18072_v51  ;;  %3055 = vmatmul.mubr.bf16.gmra.mrb[12].mxu1 %v18072_v51  ;;  %v1800_v51 = vld [vmem:[#allocation24 + $0x8] sm:$0xff] }
 0x425   : > { %2838 = vmatprep.mubr.bf16.mxu0 %v18088_v50  ;;  %3064 = vmatprep.mubr.bf16.mxu1 %v18088_v50  ;;  %v1804_v50 = vld [vmem:[#allocation24 + $0x28] sm:$0xff] }
 0x426   : > { %13260 = vmatpush3.bf16.msra.mxu0 %v18244_v14  ;;  %13292 = vmatpush3.bf16.msra.mxu1 %v18246_v8 }
 0x427   : > { %13262 = vmatprep.subr.bf16.mxu0 %v18250_v10  ;;  %13294 = vmatprep.subr.bf16.mxu1 %v18252_v55 }
 0x42a   : > { %13264 = vmatpush3.bf16.msra.mxu0 %v18260_v11  ;;  %13296 = vmatpush3.bf16.msra.mxu1 %v18262_v33 }
 0x42c   : > { %2839 = vmatmul.mubr.bf16.gmra.mrb[16].mxu0 %v18092_v6  ;;  %3065 = vmatmul.mubr.bf16.gmra.mrb[16].mxu1 %v18092_v6  ;;  %v1802_v6 = vld [vmem:[#allocation24 + $0x18] sm:$0xff] }
 0x42d   : > { %2848 = vmatprep.mubr.bf16.mxu0 %v18099_v3  ;;  %3074 = vmatprep.mubr.bf16.mxu1 %v18099_v3  ;;  %v18282_v3 = vpack.c.bf16 %v1804_v50, %v1800_v51  ;;  %v1814_v51 = vld [vmem:[#allocation24 + $0x78] sm:$0xff] }
 0x42f   : > { %21548 = vst [vmem:[#allocation74_spill] sm:$0xff] %v18282_v3  ;;  %13298 = vmatprep.subr.bf16.mxu0 %v18282_v3  ;;  %v1817_v3 = vld [vmem:[#allocation24 + $0x90] sm:$0xff] }
 0x434   : > { %2849 = vmatmul.mubr.bf16.gmra.mrb[20].mxu0 %v18117_v29  ;;  %3075 = vmatmul.mubr.bf16.gmra.mrb[20].mxu1 %v18117_v29  ;;  %v1806_v29 = vld [vmem:[#allocation24 + $0x38] sm:$0xff] }
 0x435   : > { %2858 = vmatprep.mubr.bf16.mxu0 %v18133_v4  ;;  %3084 = vmatprep.mubr.bf16.mxu1 %v18133_v4  ;;  %v18284_v61 = vpack.c.bf16 %v1806_v29, %v1802_v6  ;;  %v1991_v4 = vld [vmem:[#allocation12] sm:$0xf]  ;;  %v18312_v29 = vpack.c.bf16 %v1803_v24, %v1799_v12 }
 0x436   : > { %v18298_v57 = vrot.slane %v1991_v4, %v21553_v1 }
 0x437   : > { %21549 = vst [vmem:[#allocation70_spill] sm:$0xff] %v18284_v61  ;;  %13330 = vmatprep.subr.bf16.mxu1 %v18284_v61  ;;  %21558 = vst [vmem:[#allocation77_spill] sm:$0xff] %v18312_v29 }
 0x43c   : > { %2859 = vmatmul.mubr.bf16.gmra.mrb[24].mxu0 %v18144_v53  ;;  %3085 = vmatmul.mubr.bf16.gmra.mrb[24].mxu1 %v18144_v53  ;;  %v21550_v53 = vld [vmem:[#allocation96_spill] sm:$0xff] }
 0x43d   : > { %2868 = vmatprep.mubr.bf16.mxu0 %v18149_v16  ;;  %3094 = vmatprep.mubr.bf16.mxu1 %v18149_v16  ;;  %v18289_v31 = vrot.slane %v1991_v4, %v21550_v53  ;;  %v21551_v16 = vld [vmem:[#allocation98_spill] sm:$0xff] }
 0x43e   : > { %v18292_v20 = vrot.slane %v1991_v4, %v21551_v16 }
 0x444   : > { %2869 = vmatmul.mubr.bf16.gmra.mrb[28].mxu0 %v18157_v22  ;;  %3095 = vmatmul.mubr.bf16.gmra.mrb[28].mxu1 %v18157_v22  ;;  %v21552_v22 = vld [vmem:[#allocation95_spill] sm:$0xff] }
 0x445   : > { %v18295_v9 = vrot.slane %v1991_v4, %v21552_v22  ;;  %v18314_v4 = vpack.c.bf16 %v1805_v15, %v1801_v48  ;;  %v1807_v22 = vld [vmem:[#allocation24 + $0x40] sm:$0xff]  ;;  %v18335_v15 = vpack.c.bf16 %v1814_v51, %v1810_v40  ;;  %v1822_v40 = vld [vmem:[#allocation24 + $0xb8] sm:$0xff] }
 0x446   : > { %v1815_v51 = vld [vmem:[#allocation24 + $0x80] sm:$0xff] }
 0x447   : > { %21559 = vst [vmem:[#allocation79_spill] sm:$0xff] %v18314_v4  ;;  %21563 = vst [vmem:[#allocation83_spill] sm:$0xff] %v18335_v15 }
 0x4df   : > { %v2800_v13 = vpop.f32.mrb[0].mxu0  ;;  %v3026_v27 = vpop.f32.mrb[0].mxu1 }
 0x4e0   : > { %v18301_v63 = vadd.f32 %v2800_v13, %v18289_v31  ;;  %v18304_v60 = vadd.f32 %v3026_v27, %v18292_v20  ;;  %v2802_v32 = vpop.f32.mrb[1].mxu0  ;;  %v3028_v49 = vpop.f32.mrb[1].mxu1  ;;  %v18316_v13 = vpack.c.bf16 %v1812_v0, %v1808_v19  ;;  %v1811_v19 = vld [vmem:[#allocation24 + $0x60] sm:$0xff]  ;;  %v1809_v0 = vld [vmem:[#allocation24 + $0x50] sm:$0xff] }
 0x4e1   : > { %v18307_v54 = vadd.f32 %v2802_v32, %v18295_v9  ;;  %v18310_v30 = vadd.f32 %v3028_v49, %v18298_v57  ;;  %v2804_v58 = vpop.f32.mrb[2].mxu0  ;;  %v3030_v44 = vpop.f32.mrb[2].mxu1 }
 0x4e2   : > { %21554 = vst [vmem:[#allocation72_spill] sm:$0xff] %v18301_v63  ;;  %21555 = vst [vmem:[#allocation75_spill] sm:$0xff] %v18304_v60  ;;  %v2806_v50 = vpop.f32.mrb[3].mxu0  ;;  %v3032_v6 = vpop.f32.mrb[3].mxu1  ;;  %v3106_v12 = vmul.f32 %v18301_v63, %v18301_v63  ;;  %v3108_v24 = vmul.f32 %v18304_v60, %v18304_v60  ;;  %v18333_v48 = vadd.f32 %v2804_v58, %v18289_v31  ;;  %v1816_v60 = vld [vmem:[#allocation24 + $0x88] sm:$0xff]  ;;  %v1818_v58 = vld [vmem:[#allocation24 + $0x98] sm:$0xff] }
 0x4e3   : > { %21556 = vst [vmem:[#allocation71_spill] sm:$0xff] %v18307_v54  ;;  %21557 = vst [vmem:[#allocation73_spill] sm:$0xff] %v18310_v30  ;;  %v3107_v27 = vmul.f32 %v18307_v54, %v18307_v54  ;;  %v3109_v32 = vmul.f32 %v18310_v30, %v18310_v30  ;;  %v18323_v49 = vadd.f32 %v2806_v50, %v18295_v9  ;;  %v1813_v30 = vld [vmem:[#allocation24 + $0x70] sm:$0xff]  ;;  %v1820_v63 = vld [vmem:[#allocation24 + $0xa8] sm:$0xff] }
 0x4e4   : > { %21560 = vst [vmem:[#allocation76_spill] sm:$0xff] %v18316_v13  ;;  %v18326_v1 = vadd.f32 %v3032_v6, %v18298_v57  ;;  %v18338_v50 = vadd.f32 %v3030_v44, %v18292_v20  ;;  %v18344_v44 = vpack.c.bf16 %v1811_v19, %v1807_v22  ;;  %v18346_v61 = vpack.c.bf16 %v1813_v30, %v1809_v0 }
 0x4e5   : > { %21561 = vst [vmem:[#allocation78_spill] sm:$0xff] %v18323_v49  ;;  %v3111_v6 = vmul.f32 %v18323_v49, %v18323_v49  ;;  %3234 = vmatprep.mubr.f32.mxu0 %v3107_v27  ;;  %3379 = vmatprep.mubr.f32.mxu1 %v3109_v32  ;;  %v1819_v49 = vld [vmem:[#allocation24 + $0xa0] sm:$0xff]  ;;  %v3110_v27 = vmul.f32 %v18333_v48, %v18333_v48 }
 0x4e6   : > { %21562 = vst [vmem:[#allocation81_spill] sm:$0xff] %v18326_v1  ;;  %21564 = vst [vmem:[#allocation80_spill] sm:$0xff] %v18338_v50  ;;  %v3113_v54 = vmul.f32 %v18326_v1, %v18326_v1  ;;  %3235 = vmatmul.mubr.f32.vlgmr.msra.gmra.mrb[32].mxu0 %v3106_v12  ;;  %3380 = vmatmul.mubr.f32.vlgmr.msra.gmra.mrb[32].mxu1 %v3108_v24  ;;  %v1821_v1 = vld [vmem:[#allocation24 + $0xb0] sm:$0xff]  ;;  %v3112_v22 = vmul.f32 %v18338_v50, %v18338_v50 }
 0x4e7   : > { %v2810_v16 = vpop.f32.mrb[4].mxu0  ;;  %v3036_v53 = vpop.f32.mrb[4].mxu1  ;;  %3239 = vmatprep.mubr.f32.mxu0 %v3111_v6  ;;  %21565 = vst [vmem:[#allocation82_spill] sm:$0xff] %v18344_v44  ;;  %21566 = vst [vmem:[#allocation85_spill] sm:$0xff] %v18346_v61  ;;  %13300 = vmatpush1.bf16.msra.mxu0 %v18312_v29  ;;  %v18368_v6 = vpack.c.bf16 %v1820_v63, %v1816_v60  ;;  %v18372_v29 = vpack.c.bf16 %v1819_v49, %v1815_v51  ;;  %v1824_v63 = vld [vmem:[#allocation24 + $0xc8] sm:$0xff] }
 0x4e8   : > { %3384 = vmatprep.mubr.f32.mxu1 %v3113_v54  ;;  %v18351_v32 = vadd.f32 %v2810_v16, %v18289_v31  ;;  %v18354_v12 = vadd.f32 %v3036_v53, %v18292_v20  ;;  %v2812_v24 = vpop.f32.mrb[5].mxu0  ;;  %v3038_v33 = vpop.f32.mrb[5].mxu1  ;;  %13332 = vmatpush1.bf16.msra.mxu1 %v18314_v4  ;;  %v18370_v4 = vpack.c.bf16 %v1822_v40, %v1818_v58  ;;  %v1828_v49 = vld [vmem:[#allocation24 + $0xe8] sm:$0xff]  ;;  %v1826_v58 = vld [vmem:[#allocation24 + $0xd8] sm:$0xff] }
 0x4e9   : > { %v18361_v54 = vadd.f32 %v2812_v24, %v18295_v9  ;;  %v18364_v30 = vadd.f32 %v3038_v33, %v18298_v57  ;;  %v2814_v16 = vpop.f32.mrb[6].mxu0  ;;  %v3040_v19 = vpop.f32.mrb[6].mxu1  ;;  %13302 = vmatprep.subr.bf16.mxu0 %v18316_v13  ;;  %13334 = vmatprep.subr.bf16.mxu1 %v18335_v15  ;;  %21571 = vst [vmem:[#allocation87_spill] sm:$0xff] %v18368_v6  ;;  %21573 = vst [vmem:[#allocation92_spill] sm:$0xff] %v18372_v29  ;;  %v1830_v40 = vld [vmem:[#allocation24 + $0xf8] sm:$0xff] }
 0x4ea   : > { %21567 = vst [vmem:[#allocation84_spill] sm:$0xff] %v18351_v32  ;;  %21568 = vst [vmem:[#allocation86_spill] sm:$0xff] %v18354_v12  ;;  %v2816_v53 = vpop.f32.mrb[7].mxu0  ;;  %v3042_v0 = vpop.f32.mrb[7].mxu1  ;;  %3240 = vmatmul.mubr.f32.gmra.mrb[34].mxu0 %v3110_v27  ;;  %v18374_v24 = vpack.c.bf16 %v1821_v1, %v1817_v3  ;;  %3385 = vmatmul.mubr.f32.gmra.mrb[34].mxu1 %v3112_v22  ;;  %v3114_v60 = vmul.f32 %v18351_v32, %v18351_v32 }
 0x4eb   : > { %21569 = vst [vmem:[#allocation88_spill] sm:$0xff] %v18361_v54  ;;  %21570 = vst [vmem:[#allocation90_spill] sm:$0xff] %v18364_v30  ;;  %v3115_v33 = vmul.f32 %v18361_v54, %v18361_v54  ;;  %v3117_v50 = vmul.f32 %v18364_v30, %v18364_v30  ;;  %v18381_v13 = vadd.f32 %v2816_v53, %v18295_v9  ;;  %13304 = vmatpush1.bf16.msra.mxu0 %v18344_v44  ;;  %v1827_v53 = vld [vmem:[#allocation24 + $0xe0] sm:$0xff]  ;;  %v1832_v44 = vld [vmem:[#allocation24 + $0x108] sm:$0xff] }
 0x4ec   : > { %21572 = vst [vmem:[#allocation89_spill] sm:$0xff] %v18370_v4  ;;  %21574 = vst [vmem:[#allocation94_spill] sm:$0xff] %v18374_v24  ;;  %v18384_v15 = vadd.f32 %v3042_v0, %v18298_v57  ;;  %v3116_v3 = vmul.f32 %v18354_v12, %v18354_v12  ;;  %v18391_v1 = vadd.f32 %v2814_v16, %v18289_v31  ;;  %13336 = vmatpush1.bf16.msra.mxu1 %v18346_v61  ;;  %v1823_v16 = vld [vmem:[#allocation24 + $0xc0] sm:$0xff]  ;;  %v1825_v0 = vld [vmem:[#allocation24 + $0xd0] sm:$0xff] }
 0x4ed   : > { %21575 = vst [vmem:[#allocation91_spill] sm:$0xff] %v18381_v13  ;;  %v18396_v51 = vadd.f32 %v3040_v19, %v18292_v20  ;;  %v3119_v27 = vmul.f32 %v18381_v13, %v18381_v13  ;;  %3244 = vmatprep.mubr.f32.mxu0 %v3115_v33  ;;  %3389 = vmatprep.mubr.f32.mxu1 %v3117_v50  ;;  %v1829_v61 = vld [vmem:[#allocation24 + $0xf0] sm:$0xff]  ;;  %v1836_v12 = vld [vmem:[#allocation24 + $0x128] sm:$0xff]  ;;  %v1838_v33 = vld [vmem:[#allocation24 + $0x138] sm:$0xff] }
 0x4ee   : > { %21576 = vst [vmem:[#allocation93_spill] sm:$0xff] %v18384_v15  ;;  %21577 = vst [vmem:[#allocation99_spill] sm:$0xff] %v18391_v1  ;;  %v3121_v22 = vmul.f32 %v18384_v15, %v18384_v15  ;;  %3245 = vmatmul.mubr.f32.gmra.mrb[36].mxu0 %v3114_v60  ;;  %13306 = vmatprep.subr.bf16.mxu0 %v18368_v6  ;;  %v18403_v54 = vpack.c.bf16 %v1828_v49, %v1824_v63  ;;  %v1834_v15 = vld [vmem:[#allocation24 + $0x118] sm:$0xff] }
 0x4ef   : > { %21578 = vst [vmem:[#allocation100_spill] sm:$0xff] %v18396_v51  ;;  %3390 = vmatmul.mubr.f32.gmra.mrb[36].mxu1 %v3116_v3  ;;  %v2820_v30 = vpop.f32.mrb[8].mxu0  ;;  %v3046_v19 = vpop.f32.mrb[8].mxu1  ;;  %3249 = vmatprep.mubr.f32.mxu0 %v3119_v27  ;;  %v18405_v13 = vpack.c.bf16 %v1830_v40, %v1826_v58  ;;  %v3118_v50 = vmul.f32 %v18391_v1, %v18391_v1 }
 0x4f0   : > { %21579 = vst [vmem:[#allocation101_spill] sm:$0xff] %v18403_v54  ;;  %v18410_v60 = vadd.f32 %v2820_v30, %v18289_v31  ;;  %v18413_v6 = vadd.f32 %v3046_v19, %v18292_v20  ;;  %3394 = vmatprep.mubr.f32.mxu1 %v3121_v22  ;;  %v2822_v3 = vpop.f32.mrb[9].mxu0  ;;  %v3048_v32 = vpop.f32.mrb[9].mxu1  ;;  %13338 = vmatprep.subr.bf16.mxu1 %v18370_v4 }
 0x4f1   : > { %21580 = vst [vmem:[#allocation102_spill] sm:$0xff] %v18405_v13  ;;  %v3120_v63 = vmul.f32 %v18396_v51, %v18396_v51  ;;  %v18419_v49 = vadd.f32 %v2822_v3, %v18295_v9  ;;  %v18422_v58 = vadd.f32 %v3048_v32, %v18298_v57  ;;  %v2824_v40 = vpop.f32.mrb[10].mxu0  ;;  %v3050_v30 = vpop.f32.mrb[10].mxu1  ;;  %13308 = vmatpush1.bf16.msra.mxu0 %v18372_v29 }
 0x4f2   : > { %21581 = vst [vmem:[#allocation103_spill] sm:$0xff] %v18410_v60  ;;  %21582 = vst [vmem:[#allocation104_spill] sm:$0xff] %v18413_v6  ;;  %13340 = vmatpush1.bf16.msra.mxu1 %v18374_v24  ;;  %v2826_v27 = vpop.f32.mrb[11].mxu0  ;;  %v3052_v22 = vpop.f32.mrb[11].mxu1  ;;  %3250 = vmatmul.mubr.f32.gmra.mrb[38].mxu0 %v3118_v50  ;;  %v18426_v19 = vpack.c.bf16 %v1827_v53, %v1823_v16  ;;  %v18428_v4 = vpack.c.bf16 %v1829_v61, %v1825_v0  ;;  %v1831_v16 = vld [vmem:[#allocation24 + $0x100] sm:$0xff]  ;;  %v1833_v53 = vld [vmem:[#allocation24 + $0x110] sm:$0xff] }
 0x4f3   : > { %21583 = vst [vmem:[#allocation105_spill] sm:$0xff] %v18419_v49  ;;  %21584 = vst [vmem:[#allocation106_spill] sm:$0xff] %v18422_v58  ;;  %v18430_v51 = vpack.c.bf16 %v1836_v12, %v1832_v44  ;;  %v18432_v3 = vpack.c.bf16 %v1838_v33, %v1834_v15  ;;  %v3123_v32 = vmul.f32 %v18419_v49, %v18419_v49  ;;  %3395 = vmatmul.mubr.f32.gmra.mrb[38].mxu1 %v3120_v63  ;;  %v1835_v12 = vld [vmem:[#allocation24 + $0x120] sm:$0xff]  ;;  %v1837_v0 = vld [vmem:[#allocation24 + $0x130] sm:$0xff] }
 0x4f4   : > { %21585 = vst [vmem:[#allocation107_spill] sm:$0xff] %v18426_v19  ;;  %21586 = vst [vmem:[#allocation108_spill] sm:$0xff] %v18428_v4  ;;  %v3125_v1 = vmul.f32 %v18422_v58, %v18422_v58  ;;  %v18439_v29 = vadd.f32 %v2826_v27, %v18295_v9  ;;  %v18442_v24 = vadd.f32 %v3052_v22, %v18298_v57  ;;  %13310 = vmatprep.subr.bf16.mxu0 %v18403_v54  ;;  %v1844_v27 = vld [vmem:[#allocation24 + $0x168] sm:$0xff]  ;;  %v1842_v22 = vld [vmem:[#allocation24 + $0x158] sm:$0xff] }
 0x4f5   : > { %21587 = vst [vmem:[#allocation109_spill] sm:$0xff] %v18430_v51  ;;  %21588 = vst [vmem:[#allocation110_spill] sm:$0xff] %v18432_v3  ;;  %v3122_v61 = vmul.f32 %v18410_v60, %v18410_v60  ;;  %v3124_v15 = vmul.f32 %v18413_v6, %v18413_v6  ;;  %v18449_v44 = vadd.f32 %v2824_v40, %v18289_v31  ;;  %13342 = vmatprep.subr.bf16.mxu1 %v18405_v13  ;;  %v1840_v40 = vld [vmem:[#allocation24 + $0x148] sm:$0xff]  ;;  %v1846_v13 = vld [vmem:[#allocation24 + $0x178] sm:$0xff] }
 0x4f6   : > { %21589 = vst [vmem:[#allocation111_spill] sm:$0xff] %v18439_v29  ;;  %21590 = vst [vmem:[#allocation112_spill] sm:$0xff] %v18442_v24  ;;  %v18454_v33 = vadd.f32 %v3050_v30, %v18292_v20  ;;  %v3127_v50 = vmul.f32 %v18439_v29, %v18439_v29  ;;  %v3129_v63 = vmul.f32 %v18442_v24, %v18442_v24  ;;  %3254 = vmatprep.mubr.f32.mxu0 %v3123_v32  ;;  %v1839_v54 = vld [vmem:[#allocation24 + $0x140] sm:$0xff]  ;;  %v1841_v24 = vld [vmem:[#allocation24 + $0x150] sm:$0xff] }
 0x4f7   : > { %21591 = vst [vmem:[#allocation113_spill] sm:$0xff] %v18449_v44  ;;  %3399 = vmatprep.mubr.f32.mxu1 %v3125_v1  ;;  %3255 = vmatmul.mubr.f32.gmra.mrb[40].mxu0 %v3122_v61  ;;  %v2830_v58 = vpop.f32.mrb[12].mxu0  ;;  %v3056_v30 = vpop.f32.mrb[12].mxu1  ;;  %v18461_v49 = vpack.c.bf16 %v1835_v12, %v1831_v16  ;;  %v18463_v29 = vpack.c.bf16 %v1837_v0, %v1833_v53  ;;  %v1843_v6 = vld [vmem:[#allocation24 + $0x160] sm:$0xff]  ;;  %v1845_v32 = vld [vmem:[#allocation24 + $0x170] sm:$0xff] }
 0x4f8   : > { %21592 = vst [vmem:[#allocation114_spill] sm:$0xff] %v18454_v33  ;;  %13344 = vmatpush1.bf16.msra.mxu1 %v18428_v4  ;;  %3259 = vmatprep.mubr.f32.mxu0 %v3127_v50  ;;  %v3126_v1 = vmul.f32 %v18449_v44, %v18449_v44  ;;  %v18468_v61 = vadd.f32 %v2830_v58, %v18289_v31  ;;  %v3058_v60 = vpop.f32.mrb[13].mxu1 }
 0x4f9   : > { %3400 = vmatmul.mubr.f32.gmra.mrb[40].mxu1 %v3124_v15  ;;  %21593 = vst [vmem:[#allocation115_spill] sm:$0xff] %v18461_v49  ;;  %21594 = vst [vmem:[#allocation116_spill] sm:$0xff] %v18463_v29  ;;  %v18471_v4 = vadd.f32 %v3056_v30, %v18292_v20  ;;  %v2832_v15 = vpop.f32.mrb[13].mxu0  ;;  %13312 = vmatpush1.bf16.msra.mxu0 %v18426_v19  ;;  %v3128_v16 = vmul.f32 %v18454_v33, %v18454_v33  ;;  %v3060_v58 = vpop.f32.mrb[14].mxu1 }
 0x4fa   : > { %3404 = vmatprep.mubr.f32.mxu1 %v3129_v63  ;;  %v18477_v12 = vadd.f32 %v2832_v15, %v18295_v9  ;;  %v18480_v53 = vadd.f32 %v3058_v60, %v18298_v57  ;;  %v2834_v0 = vpop.f32.mrb[14].mxu0  ;;  %13314 = vmatprep.subr.bf16.mxu0 %v18430_v51  ;;  %v3062_v63 = vpop.f32.mrb[15].mxu1  ;;  %v18484_v30 = vpack.c.bf16 %v1844_v27, %v1840_v40 }
 0x4fb   : > { %13346 = vmatprep.subr.bf16.mxu1 %v18432_v3  ;;  %v2836_v50 = vpop.f32.mrb[15].mxu0  ;;  %3260 = vmatmul.mubr.f32.gmra.mrb[42].mxu0 %v3126_v1  ;;  %v18486_v19 = vpack.c.bf16 %v1846_v13, %v1842_v22  ;;  %v18488_v33 = vpack.c.bf16 %v1843_v6, %v1839_v54  ;;  %v18490_v15 = vpack.c.bf16 %v1845_v32, %v1841_v24 }
 0x4fc   : > { %21595 = vst [vmem:[#allocation117_spill] sm:$0xff] %v18484_v30  ;;  %v3131_v60 = vmul.f32 %v18477_v12, %v18477_v12  ;;  %v3133_v44 = vmul.f32 %v18480_v53, %v18480_v53  ;;  %v18497_v51 = vadd.f32 %v2836_v50, %v18295_v9  ;;  %v18500_v3 = vadd.f32 %v3062_v63, %v18298_v57 }
 0x4fd   : > { %21596 = vst [vmem:[#allocation118_spill] sm:$0xff] %v18486_v19  ;;  %21597 = vst [vmem:[#allocation119_spill] sm:$0xff] %v18488_v33  ;;  %3405 = vmatmul.mubr.f32.gmra.mrb[42].mxu1 %v3128_v16  ;;  %v3130_v13 = vmul.f32 %v18468_v61, %v18468_v61  ;;  %v3132_v54 = vmul.f32 %v18471_v4, %v18471_v4  ;;  %v18507_v6 = vadd.f32 %v2834_v0, %v18289_v31 }
 0x4fe   : > { %21598 = vst [vmem:[#allocation120_spill] sm:$0xff] %v18490_v15  ;;  %13316 = vmatpush1.bf16.msra.mxu0 %v18461_v49  ;;  %13348 = vmatpush1.bf16.msra.mxu1 %v18463_v29  ;;  %v18512_v24 = vadd.f32 %v3060_v58, %v18292_v20  ;;  %v3135_v40 = vmul.f32 %v18497_v51, %v18497_v51 }
 0x4ff   : > { %v3137_v27 = vmul.f32 %v18500_v3, %v18500_v3  ;;  %3264 = vmatprep.mubr.f32.mxu0 %v3131_v60  ;;  %3409 = vmatprep.mubr.f32.mxu1 %v3133_v44  ;;  %v2840_v22 = vpop.f32.mrb[16].mxu0  ;;  %v3066_v32 = vpop.f32.mrb[16].mxu1  ;;  %v3134_v1 = vmul.f32 %v18507_v6, %v18507_v6 }
 0x500   : > { %3265 = vmatmul.mubr.f32.gmra.mrb[44].mxu0 %v3130_v13  ;;  %13318 = vmatprep.subr.bf16.mxu0 %v18484_v30  ;;  %v18522_v16 = vadd.f32 %v2840_v22, %v18289_v31  ;;  %v18525_v0 = vadd.f32 %v3066_v32, %v18292_v20  ;;  %v2842_v58 = vpop.f32.mrb[17].mxu0  ;;  %v3068_v50 = vpop.f32.mrb[17].mxu1  ;;  %v3136_v44 = vmul.f32 %v18512_v24, %v18512_v24 }
 0x501   : > { %3410 = vmatmul.mubr.f32.gmra.mrb[44].mxu1 %v3132_v54  ;;  %3269 = vmatprep.mubr.f32.mxu0 %v3135_v40  ;;  %v18531_v63 = vadd.f32 %v2842_v58, %v18295_v9  ;;  %v18534_v60 = vadd.f32 %v3068_v50, %v18298_v57  ;;  %v2844_v13 = vpop.f32.mrb[18].mxu0  ;;  %v3070_v54 = vpop.f32.mrb[18].mxu1 }
 0x502   : > { %21599 = vst [vmem:[#allocation121_spill] sm:$0xff] %v18525_v0  ;;  %3414 = vmatprep.mubr.f32.mxu1 %v3137_v27  ;;  %13350 = vmatprep.subr.bf16.mxu1 %v18486_v19  ;;  %v2846_v40 = vpop.f32.mrb[19].mxu0  ;;  %v3072_v27 = vpop.f32.mrb[19].mxu1  ;;  %v18556_v19 = vadd.f32 %v3070_v54, %v18292_v20 }
 0x503   : > { %21600 = vst [vmem:[#allocation122_spill] sm:$0xff] %v18531_v63  ;;  %21601 = vst [vmem:[#allocation123_spill] sm:$0xff] %v18534_v60  ;;  %13320 = vmatpush1.bf16.msra.mxu0 %v18488_v33  ;;  %13352 = vmatpush1.bf16.msra.mxu1 %v18490_v15  ;;  %v3139_v22 = vmul.f32 %v18531_v63, %v18531_v63  ;;  %v3141_v32 = vmul.f32 %v18534_v60, %v18534_v60 }
 0x504   : > { %3270 = vmatmul.mubr.f32.gmra.mrb[46].mxu0 %v3134_v1  ;;  %v18543_v58 = vadd.f32 %v2846_v40, %v18295_v9  ;;  %v18546_v50 = vadd.f32 %v3072_v27, %v18298_v57  ;;  %v3138_v33 = vmul.f32 %v18522_v16, %v18522_v16  ;;  %v3140_v15 = vmul.f32 %v18525_v0, %v18525_v0 }
 0x505   : > { %3415 = vmatmul.mubr.f32.gmra.mrb[46].mxu1 %v3136_v44  ;;  %v18553_v1 = vadd.f32 %v2844_v13, %v18289_v31  ;;  %21605 = vst [vmem:[#allocation127_spill] sm:$0xff] %v18556_v19  ;;  %3274 = vmatprep.mubr.f32.mxu0 %v3139_v22  ;;  %v3144_v22 = vmul.f32 %v18556_v19, %v18556_v19 }
 0x506   : > { %21602 = vst [vmem:[#allocation124_spill] sm:$0xff] %v18543_v58  ;;  %21603 = vst [vmem:[#allocation125_spill] sm:$0xff] %v18546_v50  ;;  %v3143_v40 = vmul.f32 %v18543_v58, %v18543_v58  ;;  %v3145_v27 = vmul.f32 %v18546_v50, %v18546_v50  ;;  %3419 = vmatprep.mubr.f32.mxu1 %v3141_v32 }
 0x507   : > { %21604 = vst [vmem:[#allocation126_spill] sm:$0xff] %v18553_v1  ;;  %v2850_v44 = vpop.f32.mrb[20].mxu0  ;;  %v3076_v30 = vpop.f32.mrb[20].mxu1  ;;  %v3142_v13 = vmul.f32 %v18553_v1, %v18553_v1 }
 0x508   : > { %3275 = vmatmul.mubr.f32.gmra.mrb[48].mxu0 %v3138_v33  ;;  %v18565_v29 = vadd.f32 %v2850_v44, %v18289_v31  ;;  %v18568_v54 = vadd.f32 %v3076_v30, %v18292_v20  ;;  %v2852_v49 = vpop.f32.mrb[21].mxu0  ;;  %v3078_v58 = vpop.f32.mrb[21].mxu1 }
 0x509   : > { %3420 = vmatmul.mubr.f32.gmra.mrb[48].mxu1 %v3140_v15  ;;  %3279 = vmatprep.mubr.f32.mxu0 %v3143_v40  ;;  %v18573_v33 = vadd.f32 %v2852_v49, %v18295_v9  ;;  %v18576_v15 = vadd.f32 %v3078_v58, %v18298_v57  ;;  %v2854_v32 = vpop.f32.mrb[22].mxu0  ;;  %v3080_v40 = vpop.f32.mrb[22].mxu1 }
 0x50a   : > { %21606 = vst [vmem:[#allocation128_spill] sm:$0xff] %v18565_v29  ;;  %21607 = vst [vmem:[#allocation129_spill] sm:$0xff] %v18568_v54  ;;  %3424 = vmatprep.mubr.f32.mxu1 %v3145_v27  ;;  %v2856_v50 = vpop.f32.mrb[23].mxu0  ;;  %v3082_v44 = vpop.f32.mrb[23].mxu1  ;;  %v3146_v58 = vmul.f32 %v18565_v29, %v18565_v29  ;;  %v3148_v19 = vmul.f32 %v18568_v54, %v18568_v54 }
 0x50b   : > { %21608 = vst [vmem:[#allocation130_spill] sm:$0xff] %v18573_v33  ;;  %21609 = vst [vmem:[#allocation131_spill] sm:$0xff] %v18576_v15  ;;  %v3147_v30 = vmul.f32 %v18573_v33, %v18573_v33  ;;  %v3149_v27 = vmul.f32 %v18576_v15, %v18576_v15  ;;  %v18583_v1 = vadd.f32 %v2856_v50, %v18295_v9 }
 0x50c   : > { %3280 = vmatmul.mubr.f32.gmra.mrb[50].mxu0 %v3142_v13  ;;  %v18586_v49 = vadd.f32 %v3082_v44, %v18298_v57  ;;  %v18593_v13 = vadd.f32 %v2854_v32, %v18289_v31  ;;  %v18596_v33 = vadd.f32 %v3080_v40, %v18292_v20 }
 0x50d   : > { %21610 = vst [vmem:[#allocation132_spill] sm:$0xff] %v18583_v1  ;;  %3425 = vmatmul.mubr.f32.gmra.mrb[50].mxu1 %v3144_v22  ;;  %v3151_v50 = vmul.f32 %v18583_v1, %v18583_v1  ;;  %3284 = vmatprep.mubr.f32.mxu0 %v3147_v30 }
 0x50e   : > { %21611 = vst [vmem:[#allocation133_spill] sm:$0xff] %v18586_v49  ;;  %21612 = vst [vmem:[#allocation134_spill] sm:$0xff] %v18593_v13  ;;  %v3153_v44 = vmul.f32 %v18586_v49, %v18586_v49  ;;  %3429 = vmatprep.mubr.f32.mxu1 %v3149_v27  ;;  %v3150_v32 = vmul.f32 %v18593_v13, %v18593_v13  ;;  %v3152_v30 = vmul.f32 %v18596_v33, %v18596_v33 }
 0x50f   : > { %21613 = vst [vmem:[#allocation135_spill] sm:$0xff] %v18596_v33  ;;  %v2860_v22 = vpop.f32.mrb[24].mxu0  ;;  %v3086_v15 = vpop.f32.mrb[24].mxu1 }
 0x510   : > { %3285 = vmatmul.mubr.f32.gmra.mrb[52].mxu0 %v3146_v58  ;;  %v18605_v54 = vadd.f32 %v2860_v22, %v18289_v31  ;;  %v18608_v40 = vadd.f32 %v3086_v15, %v18292_v20  ;;  %v2862_v1 = vpop.f32.mrb[25].mxu0  ;;  %v3088_v29 = vpop.f32.mrb[25].mxu1 }
 0x511   : > { %3430 = vmatmul.mubr.f32.gmra.mrb[52].mxu1 %v3148_v19  ;;  %3289 = vmatprep.mubr.f32.mxu0 %v3151_v50  ;;  %v18613_v19 = vadd.f32 %v2862_v1, %v18295_v9  ;;  %v18616_v27 = vadd.f32 %v3088_v29, %v18298_v57  ;;  %v2864_v58 = vpop.f32.mrb[26].mxu0  ;;  %v3090_v50 = vpop.f32.mrb[26].mxu1 }
 0x512   : > { %21614 = vst [vmem:[#allocation136_spill] sm:$0xff] %v18605_v54  ;;  %21615 = vst [vmem:[#allocation137_spill] sm:$0xff] %v18608_v40  ;;  %3434 = vmatprep.mubr.f32.mxu1 %v3153_v44  ;;  %v2866_v49 = vpop.f32.mrb[27].mxu0  ;;  %v3092_v22 = vpop.f32.mrb[27].mxu1  ;;  %v3154_v29 = vmul.f32 %v18605_v54, %v18605_v54  ;;  %v3156_v33 = vmul.f32 %v18608_v40, %v18608_v40 }
 0x513   : > { %21616 = vst [vmem:[#allocation138_spill] sm:$0xff] %v18613_v19  ;;  %21617 = vst [vmem:[#allocation139_spill] sm:$0xff] %v18616_v27  ;;  %v3155_v15 = vmul.f32 %v18613_v19, %v18613_v19  ;;  %v3157_v44 = vmul.f32 %v18616_v27, %v18616_v27  ;;  %v18623_v13 = vadd.f32 %v2866_v49, %v18295_v9 }
 0x514   : > { %3290 = vmatmul.mubr.f32.gmra.mrb[54].mxu0 %v3150_v32  ;;  %v18626_v1 = vadd.f32 %v3092_v22, %v18298_v57  ;;  %v18633_v32 = vadd.f32 %v2864_v58, %v18289_v31  ;;  %v18636_v19 = vadd.f32 %v3090_v50, %v18292_v20 }
 0x515   : > { %21618 = vst [vmem:[#allocation140_spill] sm:$0xff] %v18623_v13  ;;  %3435 = vmatmul.mubr.f32.gmra.mrb[54].mxu1 %v3152_v30  ;;  %v3159_v49 = vmul.f32 %v18623_v13, %v18623_v13  ;;  %3294 = vmatprep.mubr.f32.mxu0 %v3155_v15 }
 0x516   : > { %21619 = vst [vmem:[#allocation141_spill] sm:$0xff] %v18626_v1  ;;  %21620 = vst [vmem:[#allocation142_spill] sm:$0xff] %v18633_v32  ;;  %v3161_v22 = vmul.f32 %v18626_v1, %v18626_v1  ;;  %3439 = vmatprep.mubr.f32.mxu1 %v3157_v44  ;;  %v3158_v58 = vmul.f32 %v18633_v32, %v18633_v32  ;;  %v3160_v15 = vmul.f32 %v18636_v19, %v18636_v19 }
 0x517   : > { %21621 = vst [vmem:[#allocation143_spill] sm:$0xff] %v18636_v19  ;;  %v2870_v30 = vpop.f32.mrb[28].mxu0  ;;  %v3096_v27 = vpop.f32.mrb[28].mxu1 }
 0x518   : > { %3295 = vmatmul.mubr.f32.gmra.mrb[56].mxu0 %v3154_v29  ;;  %v18645_v40 = vadd.f32 %v2870_v30, %v18289_v31  ;;  %v18648_v50 = vadd.f32 %v3096_v27, %v18292_v20  ;;  %v2872_v13 = vpop.f32.mrb[29].mxu0  ;;  %v3098_v54 = vpop.f32.mrb[29].mxu1 }
 0x519   : > { %3440 = vmatmul.mubr.f32.gmra.mrb[56].mxu1 %v3156_v33  ;;  %3299 = vmatprep.mubr.f32.mxu0 %v3159_v49  ;;  %v18653_v33 = vadd.f32 %v2872_v13, %v18295_v9  ;;  %v18656_v44 = vadd.f32 %v3098_v54, %v18298_v57  ;;  %v2874_v29 = vpop.f32.mrb[30].mxu0  ;;  %v3100_v49 = vpop.f32.mrb[30].mxu1 }
 0x51a   : > { %21622 = vst [vmem:[#allocation144_spill] sm:$0xff] %v18645_v40  ;;  %21623 = vst [vmem:[#allocation145_spill] sm:$0xff] %v18648_v50  ;;  %3444 = vmatprep.mubr.f32.mxu1 %v3161_v22  ;;  %v2876_v1 = vpop.f32.mrb[31].mxu0  ;;  %v3102_v30 = vpop.f32.mrb[31].mxu1  ;;  %v3162_v54 = vmul.f32 %v18645_v40, %v18645_v40  ;;  %v3164_v19 = vmul.f32 %v18648_v50, %v18648_v50 }
 0x51b   : > { %21624 = vst [vmem:[#allocation146_spill] sm:$0xff] %v18653_v33  ;;  %21625 = vst [vmem:[#allocation147_spill] sm:$0xff] %v18656_v44  ;;  %v3163_v27 = vmul.f32 %v18653_v33, %v18653_v33  ;;  %v3165_v22 = vmul.f32 %v18656_v44, %v18656_v44  ;;  %v18663_v32 = vadd.f32 %v2876_v1, %v18295_v9 }
 0x51c   : > { %3300 = vmatmul.mubr.f32.gmra.mrb[58].mxu0 %v3158_v58  ;;  %v18666_v13 = vadd.f32 %v3102_v30, %v18298_v57  ;;  %v18673_v58 = vadd.f32 %v2874_v29, %v18289_v31  ;;  %v18676_v33 = vadd.f32 %v3100_v49, %v18292_v20  ;;  %v1848_v20 = vld [vmem:[#allocation24 + $0x188] sm:$0xff]  ;;  %v1850_v29 = vld [vmem:[#allocation24 + $0x198] sm:$0xff] }
 0x51d   : > { %21626 = vst [vmem:[#allocation148_spill] sm:$0xff] %v18663_v32  ;;  %3445 = vmatmul.mubr.f32.gmra.mrb[58].mxu1 %v3160_v15  ;;  %v3167_v9 = vmul.f32 %v18663_v32, %v18663_v32  ;;  %3304 = vmatprep.mubr.f32.mxu0 %v3163_v27  ;;  %v1852_v15 = vld [vmem:[#allocation24 + $0x1a8] sm:$0xff]  ;;  %v1854_v30 = vld [vmem:[#allocation24 + $0x1b8] sm:$0xff] }
 0x51e   : > { %21627 = vst [vmem:[#allocation149_spill] sm:$0xff] %v18666_v13  ;;  %21628 = vst [vmem:[#allocation150_spill] sm:$0xff] %v18673_v58  ;;  %v3169_v57 = vmul.f32 %v18666_v13, %v18666_v13  ;;  %3449 = vmatprep.mubr.f32.mxu1 %v3165_v22  ;;  %v3166_v1 = vmul.f32 %v18673_v58, %v18673_v58  ;;  %v3168_v31 = vmul.f32 %v18676_v33, %v18676_v33  ;;  %v1851_v22 = vld [vmem:[#allocation24 + $0x1a0] sm:$0xff] }
 0x51f   : > { %21629 = vst [vmem:[#allocation151_spill] sm:$0xff] %v18676_v33  ;;  %v18686_v49 = vpack.c.bf16 %v1852_v15, %v1848_v20  ;;  %v18688_v27 = vpack.c.bf16 %v1854_v30, %v1850_v29  ;;  %v1860_v20 = vld [vmem:[#allocation24 + $0x1e8] sm:$0xff]  ;;  %v1858_v15 = vld [vmem:[#allocation24 + $0x1d8] sm:$0xff] }
 0x520   : > { %3305 = vmatmul.mubr.f32.gmra.mrb[60].mxu0 %v3162_v54  ;;  %v1849_v54 = vld [vmem:[#allocation24 + $0x190] sm:$0xff]  ;;  %v1862_v30 = vld [vmem:[#allocation24 + $0x1f8] sm:$0xff] }
 0x521   : > { %3450 = vmatmul.mubr.f32.gmra.mrb[60].mxu1 %v3164_v19  ;;  %3309 = vmatprep.mubr.f32.mxu0 %v3167_v9  ;;  %21630 = vst [vmem:[#allocation152_spill] sm:$0xff] %v18686_v49  ;;  %21631 = vst [vmem:[#allocation153_spill] sm:$0xff] %v18688_v27  ;;  %v1847_v19 = vld [vmem:[#allocation24 + $0x180] sm:$0xff] }
 0x522   : > { %3454 = vmatprep.mubr.f32.mxu1 %v3169_v57  ;;  %13322 = vmatprep.subr.bf16.mxu0 %v18686_v49  ;;  %v18692_v9 = vpack.c.bf16 %v1851_v22, %v1847_v19  ;;  %v1853_v57 = vld [vmem:[#allocation24 + $0x1b0] sm:$0xff]  ;;  %v18700_v49 = vpack.c.bf16 %v1862_v30, %v1858_v15  ;;  %v1855_v19 = vld [vmem:[#allocation24 + $0x1c0] sm:$0xff] }
 0x523   : > { %13354 = vmatprep.subr.bf16.mxu1 %v18688_v27  ;;  %v1859_v22 = vld [vmem:[#allocation24 + $0x1e0] sm:$0xff] }
 0x524   : > { %3310 = vmatmul.mubr.f32.gmra.mrb[62].mxu0 %v3166_v1  ;;  %21632 = vst [vmem:[#allocation154_spill] sm:$0xff] %v18692_v9  ;;  %v18694_v1 = vpack.c.bf16 %v1853_v57, %v1849_v54  ;;  %21635 = vst [vmem:[#allocation157_spill] sm:$0xff] %v18700_v49  ;;  %v1857_v54 = vld [vmem:[#allocation24 + $0x1d0] sm:$0xff]  ;;  %v18704_v57 = vpack.c.bf16 %v1859_v22, %v1855_v19 }
 0x525   : > { %3455 = vmatmul.mubr.f32.gmra.mrb[62].mxu1 %v3168_v31  ;;  %13324 = vmatpush1.bf16.msra.mxu0 %v18692_v9  ;;  %v1856_v31 = vld [vmem:[#allocation24 + $0x1c8] sm:$0xff]  ;;  %v1861_v9 = vld [vmem:[#allocation24 + $0x1f0] sm:$0xff] }
 0x526   : > { %21633 = vst [vmem:[#allocation155_spill] sm:$0xff] %v18694_v1  ;;  %13356 = vmatpush1.bf16.msra.mxu1 %v18694_v1  ;;  %v18698_v29 = vpack.c.bf16 %v1860_v20, %v1856_v31  ;;  %21636 = vst [vmem:[#allocation158_spill] sm:$0xff] %v18704_v57  ;;  %v18706_v27 = vpack.c.bf16 %v1861_v9, %v1857_v54  ;;  %v18710_v31 = vld [vmem:[#allocation13 + $0x4] ss:$16 sps:$4 sm:$0xff]   ;;  %v21260_v20 = vmov 0.0  }
 0x527   : > { %13358 = vmatprep.subr.bf16.mxu1 %v18700_v49  ;;  %3572 = vmatprep.mubr.f32.mxu0 %v21260_v20  ;;  %8009 = vst [vmem:[#allocation3] sm:$0xff] %v21260_v20  ;;  %8010 = vst [vmem:[#allocation3 + $0x8] sm:$0xff] %v21260_v20  ;;  %v14557_v9 = vld [vmem:[#allocation13 + $0xc] ss:$16 sps:$4 sm:$0xff]  }
 0x528   : > { %21634 = vst [vmem:[#allocation156_spill] sm:$0xff] %v18698_v29  ;;  %13326 = vmatprep.subr.bf16.mxu0 %v18698_v29  ;;  %21637 = vst [vmem:[#allocation159_spill] sm:$0xff] %v18706_v27  ;;  %3733 = vmatprep.mubr.f32.mxu1 %v21260_v20 }
 0x529   : > { %13328 = vmatpush1.bf16.msra.mxu0 %v18704_v57  ;;  %8011 = vst [vmem:[#allocation3 + $0x10] sm:$0xff] %v21260_v20  ;;  %8012 = vst [vmem:[#allocation3 + $0x18] sm:$0xff] %v21260_v20 }
 0x52a   : > { %13360 = vmatpush1.bf16.msra.mxu1 %v18706_v27  ;;  %8013 = vst [vmem:[#allocation3 + $0x20] sm:$0xff] %v21260_v20  ;;  %8014 = vst [vmem:[#allocation3 + $0x28] sm:$0xff] %v21260_v20  ;;  %4993 = vmatprep.subr.bf16.mxu0 %v18710_v31 }
 0x52b   : > { %8015 = vst [vmem:[#allocation3 + $0x30] sm:$0xff] %v21260_v20  ;;  %8016 = vst [vmem:[#allocation3 + $0x38] sm:$0xff] %v21260_v20  ;;  %5219 = vmatprep.subr.bf16.mxu1 %v14557_v9 }
 0x52c   : > { %8017 = vst [vmem:[#allocation3 + $0x40] sm:$0xff] %v21260_v20  ;;  %8018 = vst [vmem:[#allocation3 + $0x48] sm:$0xff] %v21260_v20 }
 0x52d   : > { %8019 = vst [vmem:[#allocation3 + $0x50] sm:$0xff] %v21260_v20  ;;  %8020 = vst [vmem:[#allocation3 + $0x58] sm:$0xff] %v21260_v20 }
 0x52e   : > { %8021 = vst [vmem:[#allocation3 + $0x60] sm:$0xff] %v21260_v20  ;;  %8022 = vst [vmem:[#allocation3 + $0x68] sm:$0xff] %v21260_v20 }
 0x52f   : > { %8023 = vst [vmem:[#allocation3 + $0x70] sm:$0xff] %v21260_v20  ;;  %8024 = vst [vmem:[#allocation3 + $0x78] sm:$0xff] %v21260_v20 }
 0x530   : > { %8025 = vst [vmem:[#allocation3 + $0x80] sm:$0xff] %v21260_v20  ;;  %8026 = vst [vmem:[#allocation3 + $0x88] sm:$0xff] %v21260_v20 }
 0x531   : > { %8027 = vst [vmem:[#allocation3 + $0x90] sm:$0xff] %v21260_v20  ;;  %8028 = vst [vmem:[#allocation3 + $0x98] sm:$0xff] %v21260_v20 }
 0x532   : > { %8029 = vst [vmem:[#allocation3 + $0xa0] sm:$0xff] %v21260_v20  ;;  %8030 = vst [vmem:[#allocation3 + $0xa8] sm:$0xff] %v21260_v20 }
 0x533   : > { %8031 = vst [vmem:[#allocation3 + $0xb0] sm:$0xff] %v21260_v20  ;;  %8032 = vst [vmem:[#allocation3 + $0xb8] sm:$0xff] %v21260_v20 }
 0x534   : > { %8033 = vst [vmem:[#allocation3 + $0xc0] sm:$0xff] %v21260_v20  ;;  %8034 = vst [vmem:[#allocation3 + $0xc8] sm:$0xff] %v21260_v20 }
 0x535   : > { %8035 = vst [vmem:[#allocation3 + $0xd0] sm:$0xff] %v21260_v20  ;;  %8036 = vst [vmem:[#allocation3 + $0xd8] sm:$0xff] %v21260_v20 }
 0x536   : > { %8037 = vst [vmem:[#allocation3 + $0xe0] sm:$0xff] %v21260_v20  ;;  %8038 = vst [vmem:[#allocation3 + $0xe8] sm:$0xff] %v21260_v20 }
 0x537   : > { %8039 = vst [vmem:[#allocation3 + $0xf0] sm:$0xff] %v21260_v20  ;;  %8040 = vst [vmem:[#allocation3 + $0xf8] sm:$0xff] %v21260_v20 }
 0x538   : > { %8041 = vst [vmem:[#allocation3 + $0x100] sm:$0xff] %v21260_v20  ;;  %8042 = vst [vmem:[#allocation3 + $0x108] sm:$0xff] %v21260_v20 }
 0x539   : > { %8043 = vst [vmem:[#allocation3 + $0x110] sm:$0xff] %v21260_v20  ;;  %8044 = vst [vmem:[#allocation3 + $0x118] sm:$0xff] %v21260_v20 }
 0x53a   : > { %8045 = vst [vmem:[#allocation3 + $0x120] sm:$0xff] %v21260_v20  ;;  %8046 = vst [vmem:[#allocation3 + $0x128] sm:$0xff] %v21260_v20 }
 0x53b   : > { %8047 = vst [vmem:[#allocation3 + $0x130] sm:$0xff] %v21260_v20  ;;  %8048 = vst [vmem:[#allocation3 + $0x138] sm:$0xff] %v21260_v20 }
 0x53c   : > { %8049 = vst [vmem:[#allocation3 + $0x140] sm:$0xff] %v21260_v20  ;;  %8050 = vst [vmem:[#allocation3 + $0x148] sm:$0xff] %v21260_v20 }
 0x53d   : > { %8051 = vst [vmem:[#allocation3 + $0x150] sm:$0xff] %v21260_v20  ;;  %8052 = vst [vmem:[#allocation3 + $0x158] sm:$0xff] %v21260_v20 }
 0x53e   : > { %8053 = vst [vmem:[#allocation3 + $0x160] sm:$0xff] %v21260_v20  ;;  %8054 = vst [vmem:[#allocation3 + $0x168] sm:$0xff] %v21260_v20 }
 0x53f   : > { %8055 = vst [vmem:[#allocation3 + $0x170] sm:$0xff] %v21260_v20  ;;  %8056 = vst [vmem:[#allocation3 + $0x178] sm:$0xff] %v21260_v20 }
 0x540   : > { %8057 = vst [vmem:[#allocation3 + $0x180] sm:$0xff] %v21260_v20  ;;  %8058 = vst [vmem:[#allocation3 + $0x188] sm:$0xff] %v21260_v20 }
 0x541   : > { %8059 = vst [vmem:[#allocation3 + $0x190] sm:$0xff] %v21260_v20  ;;  %8060 = vst [vmem:[#allocation3 + $0x198] sm:$0xff] %v21260_v20 }
 0x542   : > { %8061 = vst [vmem:[#allocation3 + $0x1a0] sm:$0xff] %v21260_v20  ;;  %8062 = vst [vmem:[#allocation3 + $0x1a8] sm:$0xff] %v21260_v20 }
 0x543   : > { %8063 = vst [vmem:[#allocation3 + $0x1b0] sm:$0xff] %v21260_v20  ;;  %8064 = vst [vmem:[#allocation3 + $0x1b8] sm:$0xff] %v21260_v20 }
 0x544   : > { %8065 = vst [vmem:[#allocation3 + $0x1c0] sm:$0xff] %v21260_v20  ;;  %8066 = vst [vmem:[#allocation3 + $0x1c8] sm:$0xff] %v21260_v20 }
 0x545   : > { %8067 = vst [vmem:[#allocation3 + $0x1d0] sm:$0xff] %v21260_v20  ;;  %8068 = vst [vmem:[#allocation3 + $0x1d8] sm:$0xff] %v21260_v20 }
 0x546   : > { %8069 = vst [vmem:[#allocation3 + $0x1e0] sm:$0xff] %v21260_v20  ;;  %8070 = vst [vmem:[#allocation3 + $0x1e8] sm:$0xff] %v21260_v20 }
 0x547   : > { %8071 = vst [vmem:[#allocation3 + $0x1f0] sm:$0xff] %v21260_v20  ;;  %8072 = vst [vmem:[#allocation3 + $0x1f8] sm:$0xff] %v21260_v20 }
 0x5b9   : > { %v12945_v15 = vpop.f32.mrb[32].mxu0  ;;  %v13025_v30 = vpop.f32.mrb[32].mxu1 }
 0x5ba   : > { %v12946_v19 = vpop.f32.mrb[33].mxu0  ;;  %v13026_v22 = vpop.f32.mrb[33].mxu1 }
 0x5bb   : > { %v12947_v54 = vadd.f32 %v12946_v19, %v12945_v15  ;;  %v13027_v27 = vadd.f32 %v13026_v22, %v13025_v30 }
 0x5bd   : > { %v3382_v57 = vadd.f32 %v13027_v27, %v12947_v54  ;;  %v12948_v49 = vpop.f32.mrb[34].mxu0  ;;  %v13028_v29 = vpop.f32.mrb[34].mxu1 }
 0x5be   : > { %v12949_v1 = vpop.f32.mrb[35].mxu0  ;;  %v13029_v33 = vpop.f32.mrb[35].mxu1 }
 0x5bf   : > { %v3460_v13 = vmul.f32 0.0078125, %v3382_v57  ;;  %v12950_v32 = vadd.f32 %v12949_v1, %v12948_v49  ;;  %v13030_v58 = vadd.f32 %v13029_v33, %v13028_v29 }
 0x5c1   : > { %v3476_v44 = vadd.f32 1e-06, %v3460_v13  ;;  %v12951_v20 = vpop.f32.mrb[36].mxu0  ;;  %v3387_v50 = vadd.f32 %v13030_v58, %v12950_v32 }
 0x5c2   : > { %v13031_v40 = vpop.f32.mrb[36].mxu1  ;;  %v12952_v31 = vpop.f32.mrb[37].mxu0 }
 0x5c3   : > { %14968 = vrsqrt.f32 %v3476_v44  ;;  %v12953_v9 = vadd.f32 %v12952_v31, %v12951_v20  ;;  %v13032_v60 = vpop.f32.mrb[37].mxu1  ;;  %v3461_v63 = vmul.f32 0.0078125, %v3387_v50  ;;  %v14552_v31 = vld [vmem:[#allocation13] ss:$16 sps:$4 sm:$0xff]   ;;  %v14555_v50 = vld [vmem:[#allocation13 + $0x8] ss:$16 sps:$4 sm:$0xff]  }
 0x5c4   : > { %v13033_v0 = vadd.f32 %v13032_v60, %v13031_v40 }
 0x5c5   : > { %v12954_v15 = vpop.f32.mrb[38].mxu0  ;;  %v3477_v30 = vadd.f32 1e-06, %v3461_v63 }
 0x5c6   : > { %v3392_v27 = vadd.f32 %v13033_v0, %v12953_v9  ;;  %v13034_v19 = vpop.f32.mrb[38].mxu1  ;;  %v12955_v22 = vpop.f32.mrb[39].mxu0  ;;  %v14560_v9 = vld [vmem:[#allocation13 + $0x24] ss:$16 sps:$4 sm:$0xff]  }
 0x5c7   : > { %v12956_v54 = vadd.f32 %v12955_v22, %v12954_v15  ;;  %v13035_v57 = vpop.f32.mrb[39].mxu1  ;;  %14970 = vrsqrt.f32 %v3477_v30  ;;  %v14563_v15 = vld [vmem:[#allocation13 + $0x2c] ss:$16 sps:$4 sm:$0xff]  }
 0x5c8   : > { %v3462_v49 = vmul.f32 0.0078125, %v3392_v27  ;;  %v13036_v33 = vadd.f32 %v13035_v57, %v13034_v19 }
 0x5ca   : > { %v12957_v13 = vpop.f32.mrb[40].mxu0  ;;  %v3478_v1 = vadd.f32 1e-06, %v3462_v49  ;;  %v3397_v32 = vadd.f32 %v13036_v33, %v12956_v54 }
 0x5cb   : > { %v12958_v29 = vpop.f32.mrb[41].mxu0 }
 0x5cc   : > { %v13037_v58 = vpop.f32.mrb[40].mxu1  ;;  %v12959_v44 = vadd.f32 %v12958_v29, %v12957_v13  ;;  %14972 = vrsqrt.f32 %v3478_v1  ;;  %v3463_v60 = vmul.f32 0.0078125, %v3397_v32  ;;  %v21638_v13 = vmov 0.0   ;;  %v14558_v1 = vld [vmem:[#allocation13 + $0x20] ss:$16 sps:$4 sm:$0xff]  }
 0x5cd   : > { %v13038_v20 = vpop.f32.mrb[41].mxu1  ;;  %v14969_v0 = vpop.eup %14968  ;;  %v14561_v32 = vld [vmem:[#allocation13 + $0x28] ss:$16 sps:$4 sm:$0xff]   ;;  %v14566_v29 = vld [vmem:[#allocation13 + $0x44] ss:$16 sps:$4 sm:$0xff]  }
 0x5ce   : > { %v13039_v63 = vadd.f32 %v13038_v20, %v13037_v58  ;;  %v12960_v40 = vpop.f32.mrb[42].mxu0  ;;  %v3479_v22 = vadd.f32 1e-06, %v3463_v60  ;;  %3573 = vmatmul.mubr.f32.vlgmr.msra.gmra.mrb[64].mxu0 %v14969_v0  ;;  %3734 = vmatmul.mubr.f32.vlgmr.msra.gmra.mrb[64].mxu1 %v14969_v0 }
 0x5cf   : > { %v12961_v19 = vpop.f32.mrb[43].mxu0  ;;  %4994 = vmatpush1.bf16.msra.mxu0 %v14552_v31  ;;  %5220 = vmatpush1.bf16.msra.mxu1 %v14555_v50  ;;  %v14569_v31 = vld [vmem:[#allocation13 + $0x4c] ss:$16 sps:$4 sm:$0xff]  }
 0x5d0   : > { %v3402_v30 = vadd.f32 %v13039_v63, %v12959_v44  ;;  %v13040_v27 = vpop.f32.mrb[42].mxu1  ;;  %v12962_v54 = vadd.f32 %v12961_v19, %v12960_v40  ;;  %14974 = vrsqrt.f32 %v3479_v22  ;;  %3578 = vmatprep.mubr.f32.mxu0 %v21638_v13  ;;  %3739 = vmatprep.mubr.f32.mxu1 %v21638_v13  ;;  %v14567_v19 = vld [vmem:[#allocation13 + $0x48] ss:$16 sps:$4 sm:$0xff]  }
 0x5d1   : > { %v13041_v57 = vpop.f32.mrb[43].mxu1  ;;  %4995 = vmatprep.subr.bf16.mxu0 %v14560_v9  ;;  %5221 = vmatprep.subr.bf16.mxu1 %v14563_v15  ;;  %v14971_v44 = vpop.eup %14970  ;;  %v14572_v15 = vld [vmem:[#allocation13 + $0x64] ss:$16 sps:$4 sm:$0xff]  }
 0x5d2   : > { %v3464_v49 = vmul.f32 0.0078125, %v3402_v30  ;;  %v13042_v33 = vadd.f32 %v13041_v57, %v13040_v27  ;;  %3579 = vmatmul.mubr.f32.gmra.mrb[66].mxu0 %v14971_v44  ;;  %3740 = vmatmul.mubr.f32.gmra.mrb[66].mxu1 %v14971_v44  ;;  %v14564_v27 = vld [vmem:[#allocation13 + $0x40] ss:$16 sps:$4 sm:$0xff]   ;;  %v14575_v44 = vld [vmem:[#allocation13 + $0x6c] ss:$16 sps:$4 sm:$0xff]  }
 0x5d3   : > { %v12963_v58 = vpop.f32.mrb[44].mxu0  ;;  %4996 = vmatpush1.bf16.msra.mxu0 %v14558_v1  ;;  %5222 = vmatpush1.bf16.msra.mxu1 %v14561_v32 }
 0x5d4   : > { %v3480_v20 = vadd.f32 1e-06, %v3464_v49  ;;  %v3407_v60 = vadd.f32 %v13042_v33, %v12962_v54  ;;  %v13043_v63 = vpop.f32.mrb[44].mxu1  ;;  %v12964_v0 = vpop.f32.mrb[45].mxu0  ;;  %3584 = vmatprep.mubr.f32.mxu0 %v21638_v13  ;;  %3745 = vmatprep.mubr.f32.mxu1 %v21638_v13 }
 0x5d5   : > { %v12965_v50 = vadd.f32 %v12964_v0, %v12963_v58  ;;  %v13044_v40 = vpop.f32.mrb[45].mxu1  ;;  %4997 = vmatprep.subr.bf16.mxu0 %v14566_v29  ;;  %5223 = vmatprep.subr.bf16.mxu1 %v14569_v31  ;;  %v14573_v0 = vld [vmem:[#allocation13 + $0x68] ss:$16 sps:$4 sm:$0xff]   ;;  %v14578_v29 = vld [vmem:[#allocation13 + $0x84] ss:$16 sps:$4 sm:$0xff]  }
 0x5d6   : > { %14976 = vrsqrt.f32 %v3480_v20  ;;  %v3465_v22 = vmul.f32 0.0078125, %v3407_v60  ;;  %v13045_v30 = vadd.f32 %v13044_v40, %v13043_v63  ;;  %v14973_v54 = vpop.eup %14972  ;;  %v14570_v63 = vld [vmem:[#allocation13 + $0x60] ss:$16 sps:$4 sm:$0xff]  }
 0x5d7   : > { %v12966_v9 = vpop.f32.mrb[46].mxu0  ;;  %3585 = vmatmul.mubr.f32.gmra.mrb[68].mxu0 %v14973_v54  ;;  %3746 = vmatmul.mubr.f32.gmra.mrb[68].mxu1 %v14973_v54  ;;  %v14581_v54 = vld [vmem:[#allocation13 + $0x8c] ss:$16 sps:$4 sm:$0xff]  }
 0x5d8   : > { %v3481_v57 = vadd.f32 1e-06, %v3465_v22  ;;  %v3412_v49 = vadd.f32 %v13045_v30, %v12965_v50  ;;  %v13046_v33 = vpop.f32.mrb[46].mxu1  ;;  %v12967_v58 = vpop.f32.mrb[47].mxu0  ;;  %4998 = vmatpush1.bf16.msra.mxu0 %v14564_v27  ;;  %5224 = vmatpush1.bf16.msra.mxu1 %v14567_v19 }
 0x5d9   : > { %v12968_v20 = vadd.f32 %v12967_v58, %v12966_v9  ;;  %v13047_v60 = vpop.f32.mrb[47].mxu1  ;;  %3590 = vmatprep.mubr.f32.mxu0 %v21638_v13  ;;  %3751 = vmatprep.mubr.f32.mxu1 %v21638_v13  ;;  %v14579_v58 = vld [vmem:[#allocation13 + $0x88] ss:$16 sps:$4 sm:$0xff]  }
 0x5da   : > { %14978 = vrsqrt.f32 %v3481_v57  ;;  %v3466_v1 = vmul.f32 0.0078125, %v3412_v49  ;;  %v13048_v32 = vadd.f32 %v13047_v60, %v13046_v33  ;;  %v14975_v31 = vpop.eup %14974  ;;  %4999 = vmatprep.subr.bf16.mxu0 %v14572_v15  ;;  %5225 = vmatprep.subr.bf16.mxu1 %v14575_v44  ;;  %v14576_v33 = vld [vmem:[#allocation13 + $0x80] ss:$16 sps:$4 sm:$0xff]   ;;  %v14584_v15 = vld [vmem:[#allocation13 + $0xa4] ss:$16 sps:$4 sm:$0xff]  }
 0x5db   : > { %v12969_v40 = vpop.f32.mrb[48].mxu0  ;;  %3591 = vmatmul.mubr.f32.gmra.mrb[70].mxu0 %v14975_v31  ;;  %3752 = vmatmul.mubr.f32.gmra.mrb[70].mxu1 %v14975_v31  ;;  %v14587_v31 = vld [vmem:[#allocation13 + $0xac] ss:$16 sps:$4 sm:$0xff]  }
 0x5dc   : > { %v3482_v50 = vadd.f32 1e-06, %v3466_v1  ;;  %v3417_v22 = vadd.f32 %v13048_v32, %v12968_v20  ;;  %v13049_v30 = vpop.f32.mrb[48].mxu1  ;;  %v12970_v9 = vpop.f32.mrb[49].mxu0  ;;  %5000 = vmatpush1.bf16.msra.mxu0 %v14570_v63  ;;  %5226 = vmatpush1.bf16.msra.mxu1 %v14573_v0 }
 0x5dd   : > { %v12971_v57 = vadd.f32 %v12970_v9, %v12969_v40  ;;  %v13050_v49 = vpop.f32.mrb[49].mxu1  ;;  %3596 = vmatprep.mubr.f32.mxu0 %v21638_v13  ;;  %3757 = vmatprep.mubr.f32.mxu1 %v21638_v13  ;;  %v14585_v9 = vld [vmem:[#allocation13 + $0xa8] ss:$16 sps:$4 sm:$0xff]  }
 0x5de   : > { %14980 = vrsqrt.f32 %v3482_v50  ;;  %v3467_v27 = vmul.f32 0.0078125, %v3417_v22  ;;  %v13051_v19 = vadd.f32 %v13050_v49, %v13049_v30  ;;  %5001 = vmatprep.subr.bf16.mxu0 %v14578_v29  ;;  %5227 = vmatprep.subr.bf16.mxu1 %v14581_v54  ;;  %v14582_v30 = vld [vmem:[#allocation13 + $0xa0] ss:$16 sps:$4 sm:$0xff]   ;;  %v14590_v29 = vld [vmem:[#allocation13 + $0xc4] ss:$16 sps:$4 sm:$0xff]  }
 0x5df   : > { %v12972_v60 = vpop.f32.mrb[50].mxu0 }
 0x5e0   : > { %v14977_v44 = vpop.eup %14976  ;;  %v3483_v20 = vadd.f32 1e-06, %v3467_v27  ;;  %v3422_v1 = vadd.f32 %v13051_v19, %v12971_v57  ;;  %v13052_v32 = vpop.f32.mrb[50].mxu1  ;;  %5002 = vmatpush1.bf16.msra.mxu0 %v14576_v33  ;;  %5228 = vmatpush1.bf16.msra.mxu1 %v14579_v58 }
 0x5e1   : > { %v12973_v40 = vpop.f32.mrb[51].mxu0  ;;  %v13053_v22 = vpop.f32.mrb[51].mxu1  ;;  %3597 = vmatmul.mubr.f32.gmra.mrb[72].mxu0 %v14977_v44  ;;  %3758 = vmatmul.mubr.f32.gmra.mrb[72].mxu1 %v14977_v44  ;;  %v14593_v44 = vld [vmem:[#allocation13 + $0xcc] ss:$16 sps:$4 sm:$0xff]  }
 0x5e2   : > { %v12974_v50 = vadd.f32 %v12973_v40, %v12972_v60  ;;  %14982 = vrsqrt.f32 %v3483_v20  ;;  %v3468_v63 = vmul.f32 0.0078125, %v3422_v1  ;;  %v13054_v0 = vadd.f32 %v13053_v22, %v13052_v32  ;;  %3602 = vmatprep.mubr.f32.mxu0 %v21638_v13  ;;  %3763 = vmatprep.mubr.f32.mxu1 %v21638_v13  ;;  %v14588_v32 = vld [vmem:[#allocation13 + $0xc0] ss:$16 sps:$4 sm:$0xff]   ;;  %v14591_v40 = vld [vmem:[#allocation13 + $0xc8] ss:$16 sps:$4 sm:$0xff]  }
 0x5e3   : > { %v12975_v49 = vpop.f32.mrb[52].mxu0  ;;  %5003 = vmatprep.subr.bf16.mxu0 %v14584_v15  ;;  %5229 = vmatprep.subr.bf16.mxu1 %v14587_v31  ;;  %v14596_v15 = vld [vmem:[#allocation13 + $0xe4] ss:$16 sps:$4 sm:$0xff]  }
 0x5e4   : > { %v14979_v54 = vpop.eup %14978  ;;  %v3484_v57 = vadd.f32 1e-06, %v3468_v63  ;;  %v3427_v27 = vadd.f32 %v13054_v0, %v12974_v50  ;;  %v13055_v19 = vpop.f32.mrb[52].mxu1  ;;  %5004 = vmatpush1.bf16.msra.mxu0 %v14582_v30  ;;  %5230 = vmatpush1.bf16.msra.mxu1 %v14585_v9 }
 0x5e5   : > { %v12976_v60 = vpop.f32.mrb[53].mxu0  ;;  %v13056_v1 = vpop.f32.mrb[53].mxu1  ;;  %3603 = vmatmul.mubr.f32.gmra.mrb[74].mxu0 %v14979_v54  ;;  %3764 = vmatmul.mubr.f32.gmra.mrb[74].mxu1 %v14979_v54  ;;  %v14599_v54 = vld [vmem:[#allocation13 + $0xec] ss:$16 sps:$4 sm:$0xff]  }
 0x5e6   : > { %v12977_v20 = vadd.f32 %v12976_v60, %v12975_v49  ;;  %14984 = vrsqrt.f32 %v3484_v57  ;;  %v3469_v33 = vmul.f32 0.0078125, %v3427_v27  ;;  %v13057_v58 = vadd.f32 %v13056_v1, %v13055_v19  ;;  %3608 = vmatprep.mubr.f32.mxu0 %v21638_v13  ;;  %3769 = vmatprep.mubr.f32.mxu1 %v21638_v13  ;;  %v14594_v19 = vld [vmem:[#allocation13 + $0xe0] ss:$16 sps:$4 sm:$0xff]   ;;  %v14597_v60 = vld [vmem:[#allocation13 + $0xe8] ss:$16 sps:$4 sm:$0xff]  }
 0x5e7   : > { %v12978_v22 = vpop.f32.mrb[54].mxu0  ;;  %5005 = vmatprep.subr.bf16.mxu0 %v14590_v29  ;;  %5231 = vmatprep.subr.bf16.mxu1 %v14593_v44  ;;  %v14602_v29 = vld [vmem:[#allocation13 + $0x104] ss:$16 sps:$4 sm:$0xff]  }
 0x5e8   : > { %v14981_v31 = vpop.eup %14980  ;;  %v3485_v50 = vadd.f32 1e-06, %v3469_v33  ;;  %v3432_v63 = vadd.f32 %v13057_v58, %v12977_v20  ;;  %v13058_v0 = vpop.f32.mrb[54].mxu1  ;;  %5006 = vmatpush1.bf16.msra.mxu0 %v14588_v32  ;;  %5232 = vmatpush1.bf16.msra.mxu1 %v14591_v40 }
 0x5e9   : > { %v12979_v49 = vpop.f32.mrb[55].mxu0  ;;  %v13059_v27 = vpop.f32.mrb[55].mxu1  ;;  %3609 = vmatmul.mubr.f32.gmra.mrb[76].mxu0 %v14981_v31  ;;  %3770 = vmatmul.mubr.f32.gmra.mrb[76].mxu1 %v14981_v31  ;;  %v14605_v31 = vld [vmem:[#allocation13 + $0x10c] ss:$16 sps:$4 sm:$0xff]  }
 0x5ea   : > { %v12980_v57 = vadd.f32 %v12979_v49, %v12978_v22  ;;  %14986 = vrsqrt.f32 %v3485_v50  ;;  %v3470_v30 = vmul.f32 0.0078125, %v3432_v63  ;;  %v13060_v9 = vadd.f32 %v13059_v27, %v13058_v0  ;;  %3614 = vmatprep.mubr.f32.mxu0 %v21638_v13  ;;  %3775 = vmatprep.mubr.f32.mxu1 %v21638_v13  ;;  %v14600_v0 = vld [vmem:[#allocation13 + $0x100] ss:$16 sps:$4 sm:$0xff]   ;;  %v14603_v49 = vld [vmem:[#allocation13 + $0x108] ss:$16 sps:$4 sm:$0xff]  }
 0x5eb   : > { %v12981_v1 = vpop.f32.mrb[56].mxu0  ;;  %5007 = vmatprep.subr.bf16.mxu0 %v14596_v15  ;;  %5233 = vmatprep.subr.bf16.mxu1 %v14599_v54  ;;  %v14608_v15 = vld [vmem:[#allocation13 + $0x124] ss:$16 sps:$4 sm:$0xff]  }
 0x5ec   : > { %v14983_v44 = vpop.eup %14982  ;;  %v3486_v20 = vadd.f32 1e-06, %v3470_v30  ;;  %v3437_v33 = vadd.f32 %v13060_v9, %v12980_v57  ;;  %v13061_v58 = vpop.f32.mrb[56].mxu1  ;;  %5008 = vmatpush1.bf16.msra.mxu0 %v14594_v19  ;;  %5234 = vmatpush1.bf16.msra.mxu1 %v14597_v60 }
 0x5ed   : > { %v12982_v22 = vpop.f32.mrb[57].mxu0  ;;  %v13062_v63 = vpop.f32.mrb[57].mxu1  ;;  %3615 = vmatmul.mubr.f32.gmra.mrb[78].mxu0 %v14983_v44  ;;  %3776 = vmatmul.mubr.f32.gmra.mrb[78].mxu1 %v14983_v44  ;;  %v14611_v44 = vld [vmem:[#allocation13 + $0x12c] ss:$16 sps:$4 sm:$0xff]  }
 0x5ee   : > { %v12983_v50 = vadd.f32 %v12982_v22, %v12981_v1  ;;  %14988 = vrsqrt.f32 %v3486_v20  ;;  %v3471_v32 = vmul.f32 0.0078125, %v3437_v33  ;;  %v13063_v40 = vadd.f32 %v13062_v63, %v13061_v58  ;;  %3620 = vmatprep.mubr.f32.mxu0 %v21638_v13  ;;  %3781 = vmatprep.mubr.f32.mxu1 %v21638_v13  ;;  %v14606_v58 = vld [vmem:[#allocation13 + $0x120] ss:$16 sps:$4 sm:$0xff]   ;;  %v14609_v22 = vld [vmem:[#allocation13 + $0x128] ss:$16 sps:$4 sm:$0xff]  }
 0x5ef   : > { %v12984_v27 = vpop.f32.mrb[58].mxu0  ;;  %5009 = vmatprep.subr.bf16.mxu0 %v14602_v29  ;;  %5235 = vmatprep.subr.bf16.mxu1 %v14605_v31  ;;  %v14614_v29 = vld [vmem:[#allocation13 + $0x144] ss:$16 sps:$4 sm:$0xff]  }
 0x5f0   : > { %v14985_v54 = vpop.eup %14984  ;;  %v3487_v57 = vadd.f32 1e-06, %v3471_v32  ;;  %v3442_v30 = vadd.f32 %v13063_v40, %v12983_v50  ;;  %v13064_v9 = vpop.f32.mrb[58].mxu1  ;;  %5010 = vmatpush1.bf16.msra.mxu0 %v14600_v0  ;;  %5236 = vmatpush1.bf16.msra.mxu1 %v14603_v49 }
 0x5f1   : > { %v12985_v1 = vpop.f32.mrb[59].mxu0  ;;  %v13065_v33 = vpop.f32.mrb[59].mxu1  ;;  %3621 = vmatmul.mubr.f32.gmra.mrb[80].mxu0 %v14985_v54  ;;  %3782 = vmatmul.mubr.f32.gmra.mrb[80].mxu1 %v14985_v54  ;;  %v14617_v54 = vld [vmem:[#allocation13 + $0x14c] ss:$16 sps:$4 sm:$0xff]  }
 0x5f2   : > { %v12986_v20 = vadd.f32 %v12985_v1, %v12984_v27  ;;  %14990 = vrsqrt.f32 %v3487_v57  ;;  %v3472_v19 = vmul.f32 0.0078125, %v3442_v30  ;;  %v13066_v60 = vadd.f32 %v13065_v33, %v13064_v9  ;;  %3626 = vmatprep.mubr.f32.mxu0 %v21638_v13  ;;  %3787 = vmatprep.mubr.f32.mxu1 %v21638_v13  ;;  %v14612_v9 = vld [vmem:[#allocation13 + $0x140] ss:$16 sps:$4 sm:$0xff]   ;;  %v14615_v1 = vld [vmem:[#allocation13 + $0x148] ss:$16 sps:$4 sm:$0xff]  }
 0x5f3   : > { %v12987_v63 = vpop.f32.mrb[60].mxu0  ;;  %5011 = vmatprep.subr.bf16.mxu0 %v14608_v15  ;;  %5237 = vmatprep.subr.bf16.mxu1 %v14611_v44  ;;  %v14620_v15 = vld [vmem:[#allocation13 + $0x164] ss:$16 sps:$4 sm:$0xff]  }
 0x5f4   : > { %v14987_v31 = vpop.eup %14986  ;;  %v3488_v50 = vadd.f32 1e-06, %v3472_v19  ;;  %v3447_v32 = vadd.f32 %v13066_v60, %v12986_v20  ;;  %v13067_v40 = vpop.f32.mrb[60].mxu1  ;;  %5012 = vmatpush1.bf16.msra.mxu0 %v14606_v58  ;;  %5238 = vmatpush1.bf16.msra.mxu1 %v14609_v22 }
 0x5f5   : > { %v12988_v27 = vpop.f32.mrb[61].mxu0  ;;  %v13068_v30 = vpop.f32.mrb[61].mxu1  ;;  %3627 = vmatmul.mubr.f32.gmra.mrb[82].mxu0 %v14987_v31  ;;  %3788 = vmatmul.mubr.f32.gmra.mrb[82].mxu1 %v14987_v31  ;;  %v14623_v31 = vld [vmem:[#allocation13 + $0x16c] ss:$16 sps:$4 sm:$0xff]  }
 0x5f6   : > { %v12989_v57 = vadd.f32 %v12988_v27, %v12987_v63  ;;  %14992 = vrsqrt.f32 %v3488_v50  ;;  %v3473_v0 = vmul.f32 0.0078125, %v3447_v32  ;;  %v13069_v49 = vadd.f32 %v13068_v30, %v13067_v40  ;;  %3632 = vmatprep.mubr.f32.mxu0 %v21638_v13  ;;  %3793 = vmatprep.mubr.f32.mxu1 %v21638_v13  ;;  %v14618_v40 = vld [vmem:[#allocation13 + $0x160] ss:$16 sps:$4 sm:$0xff]   ;;  %v14621_v27 = vld [vmem:[#allocation13 + $0x168] ss:$16 sps:$4 sm:$0xff]  }
 0x5f7   : > { %v12990_v33 = vpop.f32.mrb[62].mxu0  ;;  %5013 = vmatprep.subr.bf16.mxu0 %v14614_v29  ;;  %5239 = vmatprep.subr.bf16.mxu1 %v14617_v54  ;;  %v14626_v30 = vld [vmem:[#allocation13 + $0x184] ss:$16 sps:$4 sm:$0xff]  }
 0x5f8   : > { %v14989_v44 = vpop.eup %14988  ;;  %v3489_v20 = vadd.f32 1e-06, %v3473_v0  ;;  %v3452_v19 = vadd.f32 %v13069_v49, %v12989_v57  ;;  %v13070_v60 = vpop.f32.mrb[62].mxu1  ;;  %5014 = vmatpush1.bf16.msra.mxu0 %v14612_v9  ;;  %5240 = vmatpush1.bf16.msra.mxu1 %v14615_v1  ;;  %v14629_v0 = vld [vmem:[#allocation13 + $0x18c] ss:$16 sps:$4 sm:$0xff]  }
 0x5f9   : > { %v12991_v63 = vpop.f32.mrb[63].mxu0  ;;  %v13071_v32 = vpop.f32.mrb[63].mxu1  ;;  %3633 = vmatmul.mubr.f32.gmra.mrb[84].mxu0 %v14989_v44  ;;  %3794 = vmatmul.mubr.f32.gmra.mrb[84].mxu1 %v14989_v44  ;;  %v14624_v9 = vld [vmem:[#allocation13 + $0x180] ss:$16 sps:$4 sm:$0xff]   ;;  %v14627_v1 = vld [vmem:[#allocation13 + $0x188] ss:$16 sps:$4 sm:$0xff]  }
 0x5fa   : > { %v12992_v50 = vadd.f32 %v12991_v63, %v12990_v33  ;;  %14994 = vrsqrt.f32 %v3489_v20  ;;  %v3474_v58 = vmul.f32 0.0078125, %v3452_v19  ;;  %v13072_v22 = vadd.f32 %v13071_v32, %v13070_v60  ;;  %3638 = vmatprep.mubr.f32.mxu0 %v21638_v13  ;;  %3799 = vmatprep.mubr.f32.mxu1 %v21638_v13  ;;  %v14635_v20 = vld [vmem:[#allocation13 + $0x1ac] ss:$16 sps:$4 sm:$0xff]   ;;  %v14630_v19 = vld [vmem:[#allocation13 + $0x1a0] ss:$16 sps:$4 sm:$0xff]  }
 0x5fb   : > { %5015 = vmatprep.subr.bf16.mxu0 %v14620_v15  ;;  %5241 = vmatprep.subr.bf16.mxu1 %v14623_v31  ;;  %v14632_v15 = vld [vmem:[#allocation13 + $0x1a4] ss:$16 sps:$4 sm:$0xff]   ;;  %v14633_v60 = vld [vmem:[#allocation13 + $0x1a8] ss:$16 sps:$4 sm:$0xff]   ;;  %v14636_v32 = vld [vmem:[#allocation13 + $0x1c0] ss:$16 sps:$4 sm:$0xff]  }
 0x5fc   : > { %v14991_v57 = vpop.eup %14990  ;;  %v3490_v29 = vadd.f32 1e-06, %v3474_v58  ;;  %v3457_v54 = vadd.f32 %v13072_v22, %v12992_v50  ;;  %5016 = vmatpush1.bf16.msra.mxu0 %v14618_v40  ;;  %5242 = vmatpush1.bf16.msra.mxu1 %v14621_v27  ;;  %v14638_v31 = vld [vmem:[#allocation13 + $0x1c4] ss:$16 sps:$4 sm:$0xff]   ;;  %v14641_v50 = vld [vmem:[#allocation13 + $0x1cc] ss:$16 sps:$4 sm:$0xff]  }
 0x5fd   : > { %3639 = vmatmul.mubr.f32.gmra.mrb[86].mxu0 %v14991_v57  ;;  %3800 = vmatmul.mubr.f32.gmra.mrb[86].mxu1 %v14991_v57  ;;  %v14639_v58 = vld [vmem:[#allocation13 + $0x1c8] ss:$16 sps:$4 sm:$0xff]   ;;  %v14644_v40 = vld [vmem:[#allocation13 + $0x1e4] ss:$16 sps:$4 sm:$0xff]   ;;  %v14647_v27 = vld [vmem:[#allocation13 + $0x1ec] ss:$16 sps:$4 sm:$0xff]  }
 0x5fe   : > { %14996 = vrsqrt.f32 %v3490_v29  ;;  %v3475_v49 = vmul.f32 0.0078125, %v3457_v54  ;;  %3644 = vmatprep.mubr.f32.mxu0 %v21638_v13  ;;  %3805 = vmatprep.mubr.f32.mxu1 %v21638_v13  ;;  %v14642_v57 = vld [vmem:[#allocation13 + $0x1e0] ss:$16 sps:$4 sm:$0xff]   ;;  %v14645_v29 = vld [vmem:[#allocation13 + $0x1e8] ss:$16 sps:$4 sm:$0xff]  }
 0x5ff   : > { %5017 = vmatprep.subr.bf16.mxu0 %v14626_v30  ;;  %5243 = vmatprep.subr.bf16.mxu1 %v14629_v0  ;;  %v14650_v30 = vld [vmem:[#allocation13 + $0x204] ss:$16 sps:$4 sm:$0xff]   ;;  %v14653_v0 = vld [vmem:[#allocation13 + $0x20c] ss:$16 sps:$4 sm:$0xff]  }
 0x600   : > { %v14993_v33 = vpop.eup %14992  ;;  %v3491_v44 = vadd.f32 1e-06, %v3475_v49  ;;  %5018 = vmatpush1.bf16.msra.mxu0 %v14624_v9  ;;  %5244 = vmatpush1.bf16.msra.mxu1 %v14627_v1  ;;  %v14648_v49 = vld [vmem:[#allocation13 + $0x200] ss:$16 sps:$4 sm:$0xff]   ;;  %v14651_v9 = vld [vmem:[#allocation13 + $0x208] ss:$16 sps:$4 sm:$0xff]  }
 0x601   : > { %3645 = vmatmul.mubr.f32.gmra.mrb[88].mxu0 %v14993_v33  ;;  %3806 = vmatmul.mubr.f32.gmra.mrb[88].mxu1 %v14993_v33  ;;  %v15096_v1 = vld [vmem:[#allocation2 + $0x8] sm:$0xff] }
 0x602   : > { %14998 = vrsqrt.f32 %v3491_v44  ;;  %3650 = vmatprep.mubr.f32.mxu0 %v21638_v13  ;;  %3811 = vmatprep.mubr.f32.mxu1 %v21638_v13  ;;  %v14656_v33 = vld [vmem:[#allocation13 + $0x224] ss:$16 sps:$4 sm:$0xff]   ;;  %v14659_v44 = vld [vmem:[#allocation13 + $0x22c] ss:$16 sps:$4 sm:$0xff]  }
 0x603   : > { %5019 = vmatprep.subr.bf16.mxu0 %v14632_v15  ;;  %5245 = vmatprep.subr.bf16.mxu1 %v14635_v20  ;;  %v15097_v15 = vld [vmem:[#allocation2] sm:$0xff]  ;;  %v14657_v20 = vld [vmem:[#allocation13 + $0x228] ss:$16 sps:$4 sm:$0xff]  }
 0x604   : > { %v14995_v63 = vpop.eup %14994  ;;  %5020 = vmatpush1.bf16.msra.mxu0 %v14630_v19  ;;  %5246 = vmatpush1.bf16.msra.mxu1 %v14633_v60  ;;  %v15098_v19 = vld [vmem:[#allocation2 + $0x28] sm:$0xff] }
 0x605   : > { %3651 = vmatmul.mubr.f32.gmra.mrb[90].mxu0 %v14995_v63  ;;  %3812 = vmatmul.mubr.f32.gmra.mrb[90].mxu1 %v14995_v63  ;;  %v14662_v60 = vld [vmem:[#allocation13 + $0x244] ss:$16 sps:$4 sm:$0xff]   ;;  %v14665_v63 = vld [vmem:[#allocation13 + $0x24c] ss:$16 sps:$4 sm:$0xff]  }
 0x606   : > { %3656 = vmatprep.mubr.f32.mxu0 %v21638_v13  ;;  %3817 = vmatprep.mubr.f32.mxu1 %v21638_v13 }
 0x607   : > { %5021 = vmatprep.subr.bf16.mxu0 %v14638_v31  ;;  %5247 = vmatprep.subr.bf16.mxu1 %v14641_v50  ;;  %v14660_v31 = vld [vmem:[#allocation13 + $0x240] ss:$16 sps:$4 sm:$0xff]   ;;  %v14663_v50 = vld [vmem:[#allocation13 + $0x248] ss:$16 sps:$4 sm:$0xff]  }
 0x608   : > { %v14997_v22 = vpop.eup %14996  ;;  %5022 = vmatpush1.bf16.msra.mxu0 %v14636_v32  ;;  %5248 = vmatpush1.bf16.msra.mxu1 %v14639_v58  ;;  %v14668_v32 = vld [vmem:[#allocation13 + $0x264] ss:$16 sps:$4 sm:$0xff]   ;;  %v14671_v58 = vld [vmem:[#allocation13 + $0x26c] ss:$16 sps:$4 sm:$0xff]  }
 0x609   : > { %3657 = vmatmul.mubr.f32.gmra.mrb[92].mxu0 %v14997_v22  ;;  %3818 = vmatmul.mubr.f32.gmra.mrb[92].mxu1 %v14997_v22  ;;  %v15099_v22 = vld [vmem:[#allocation2 + $0x20] sm:$0xff] }
 0x60a   : > { %3662 = vmatprep.mubr.f32.mxu0 %v21638_v13  ;;  %3823 = vmatprep.mubr.f32.mxu1 %v21638_v13  ;;  %v14654_v13 = vld [vmem:[#allocation13 + $0x220] ss:$16 sps:$4 sm:$0xff]  }
 0x60b   : > { %5023 = vmatprep.subr.bf16.mxu0 %v14644_v40  ;;  %5249 = vmatprep.subr.bf16.mxu1 %v14647_v27  ;;  %v14666_v40 = vld [vmem:[#allocation13 + $0x260] ss:$16 sps:$4 sm:$0xff]   ;;  %v14669_v27 = vld [vmem:[#allocation13 + $0x268] ss:$16 sps:$4 sm:$0xff]  }
 0x60c   : > { %v14999_v54 = vpop.eup %14998  ;;  %5024 = vmatpush1.bf16.msra.mxu0 %v14642_v57  ;;  %5250 = vmatpush1.bf16.msra.mxu1 %v14645_v29  ;;  %v15100_v57 = vld [vmem:[#allocation2 + $0x48] sm:$0xff] }
 0x60d   : > { %3663 = vmatmul.mubr.f32.gmra.mrb[94].mxu0 %v14999_v54  ;;  %3824 = vmatmul.mubr.f32.gmra.mrb[94].mxu1 %v14999_v54  ;;  %v14674_v29 = vld [vmem:[#allocation13 + $0x284] ss:$16 sps:$4 sm:$0xff]   ;;  %v14677_v54 = vld [vmem:[#allocation13 + $0x28c] ss:$16 sps:$4 sm:$0xff]  }
 0x60e   : > { %5025 = vmatprep.mubr.bf16.mxu0 %v15096_v1  ;;  %5251 = vmatprep.mubr.bf16.mxu1 %v15096_v1  ;;  %v15101_v1 = vld [vmem:[#allocation2 + $0x40] sm:$0xff] }
 0x60f   : > { %5106 = vmatprep.subr.bf16.mxu0 %v14650_v30  ;;  %5332 = vmatprep.subr.bf16.mxu1 %v14653_v0  ;;  %v14672_v30 = vld [vmem:[#allocation13 + $0x280] ss:$16 sps:$4 sm:$0xff]   ;;  %v14675_v0 = vld [vmem:[#allocation13 + $0x288] ss:$16 sps:$4 sm:$0xff]  }
 0x611   : > { %5026 = vmatmul.mubr.bf16.vlgmr.msra.gmra.mrb[96].mxu0 %v15097_v15  ;;  %5252 = vmatmul.mubr.bf16.vlgmr.msra.gmra.mrb[96].mxu1 %v15097_v15  ;;  %v15102_v15 = vld [vmem:[#allocation2 + $0x68] sm:$0xff] }
 0x612   : > { %5107 = vmatpush1.bf16.msra.mxu0 %v14648_v49  ;;  %5333 = vmatpush1.bf16.msra.mxu1 %v14651_v9  ;;  %v14680_v49 = vld [vmem:[#allocation13 + $0x2a4] ss:$16 sps:$4 sm:$0xff]   ;;  %v14683_v9 = vld [vmem:[#allocation13 + $0x2ac] ss:$16 sps:$4 sm:$0xff]  }
 0x613   : > { %5035 = vmatprep.mubr.bf16.mxu0 %v15098_v19  ;;  %5261 = vmatprep.mubr.bf16.mxu1 %v15098_v19  ;;  %v14684_v19 = vld [vmem:[#allocation13 + $0x2c0] ss:$16 sps:$4 sm:$0xff]  }
 0x614   : > { %5108 = vmatprep.subr.bf16.mxu0 %v14656_v33  ;;  %5334 = vmatprep.subr.bf16.mxu1 %v14659_v44  ;;  %v14678_v33 = vld [vmem:[#allocation13 + $0x2a0] ss:$16 sps:$4 sm:$0xff]   ;;  %v14681_v44 = vld [vmem:[#allocation13 + $0x2a8] ss:$16 sps:$4 sm:$0xff]  }
 0x616   : > { %5109 = vmatpush1.bf16.msra.mxu0 %v14654_v13  ;;  %5335 = vmatpush1.bf16.msra.mxu1 %v14657_v20  ;;  %v14686_v13 = vld [vmem:[#allocation13 + $0x2c4] ss:$16 sps:$4 sm:$0xff]   ;;  %v14689_v20 = vld [vmem:[#allocation13 + $0x2cc] ss:$16 sps:$4 sm:$0xff]  }
 0x617   : > { %5110 = vmatprep.subr.bf16.mxu0 %v14662_v60  ;;  %5336 = vmatprep.subr.bf16.mxu1 %v14665_v63  ;;  %v14687_v60 = vld [vmem:[#allocation13 + $0x2c8] ss:$16 sps:$4 sm:$0xff]   ;;  %v14692_v63 = vld [vmem:[#allocation13 + $0x2e4] ss:$16 sps:$4 sm:$0xff]  }
 0x619   : > { %5036 = vmatmul.mubr.bf16.gmra.mrb[100].mxu0 %v15099_v22  ;;  %5262 = vmatmul.mubr.bf16.gmra.mrb[100].mxu1 %v15099_v22  ;;  %v15104_v22 = vld [vmem:[#allocation2 + $0x88] sm:$0xff] }
 0x61a   : > { %5111 = vmatpush1.bf16.msra.mxu0 %v14660_v31  ;;  %5337 = vmatpush1.bf16.msra.mxu1 %v14663_v50  ;;  %v14695_v31 = vld [vmem:[#allocation13 + $0x2ec] ss:$16 sps:$4 sm:$0xff]  }
 0x61b   : > { %5045 = vmatprep.mubr.bf16.mxu0 %v15100_v57  ;;  %5271 = vmatprep.mubr.bf16.mxu1 %v15100_v57  ;;  %v15103_v50 = vld [vmem:[#allocation2 + $0x60] sm:$0xff] }
 0x61c   : > { %5112 = vmatprep.subr.bf16.mxu0 %v14668_v32  ;;  %5338 = vmatprep.subr.bf16.mxu1 %v14671_v58  ;;  %v14690_v32 = vld [vmem:[#allocation13 + $0x2e0] ss:$16 sps:$4 sm:$0xff]   ;;  %v14693_v58 = vld [vmem:[#allocation13 + $0x2e8] ss:$16 sps:$4 sm:$0xff]  }
 0x61d   : > { %v14696_v57 = vld [vmem:[#allocation13 + $0x300] ss:$16 sps:$4 sm:$0xff]  }
 0x61e   : > { %5113 = vmatpush1.bf16.msra.mxu0 %v14666_v40  ;;  %5339 = vmatpush1.bf16.msra.mxu1 %v14669_v27  ;;  %v14698_v40 = vld [vmem:[#allocation13 + $0x304] ss:$16 sps:$4 sm:$0xff]   ;;  %v14701_v27 = vld [vmem:[#allocation13 + $0x30c] ss:$16 sps:$4 sm:$0xff]  }
 0x61f   : > { %5114 = vmatprep.subr.bf16.mxu0 %v14674_v29  ;;  %5340 = vmatprep.subr.bf16.mxu1 %v14677_v54  ;;  %v14699_v29 = vld [vmem:[#allocation13 + $0x308] ss:$16 sps:$4 sm:$0xff]   ;;  %v14704_v54 = vld [vmem:[#allocation13 + $0x324] ss:$16 sps:$4 sm:$0xff]  }
 0x621   : > { %5046 = vmatmul.mubr.bf16.gmra.mrb[104].mxu0 %v15101_v1  ;;  %5272 = vmatmul.mubr.bf16.gmra.mrb[104].mxu1 %v15101_v1  ;;  %v15106_v1 = vld [vmem:[#allocation2 + $0xa8] sm:$0xff] }
 0x622   : > { %5115 = vmatpush1.bf16.msra.mxu0 %v14672_v30  ;;  %5341 = vmatpush1.bf16.msra.mxu1 %v14675_v0  ;;  %v14707_v30 = vld [vmem:[#allocation13 + $0x32c] ss:$16 sps:$4 sm:$0xff]  }
 0x623   : > { %5055 = vmatprep.mubr.bf16.mxu0 %v15102_v15  ;;  %5281 = vmatprep.mubr.bf16.mxu1 %v15102_v15  ;;  %v15105_v0 = vld [vmem:[#allocation2 + $0x80] sm:$0xff] }
 0x624   : > { %5116 = vmatprep.subr.bf16.mxu0 %v14680_v49  ;;  %5342 = vmatprep.subr.bf16.mxu1 %v14683_v9  ;;  %v14702_v49 = vld [vmem:[#allocation13 + $0x320] ss:$16 sps:$4 sm:$0xff]   ;;  %v14705_v9 = vld [vmem:[#allocation13 + $0x328] ss:$16 sps:$4 sm:$0xff]  }
 0x625   : > { %v14708_v15 = vld [vmem:[#allocation13 + $0x340] ss:$16 sps:$4 sm:$0xff]  }
 0x626   : > { %5117 = vmatpush1.bf16.msra.mxu0 %v14678_v33  ;;  %5343 = vmatpush1.bf16.msra.mxu1 %v14681_v44  ;;  %v14710_v33 = vld [vmem:[#allocation13 + $0x344] ss:$16 sps:$4 sm:$0xff]   ;;  %v14713_v44 = vld [vmem:[#allocation13 + $0x34c] ss:$16 sps:$4 sm:$0xff]  }
 0x627   : > { %5118 = vmatprep.subr.bf16.mxu0 %v14686_v13  ;;  %5344 = vmatprep.subr.bf16.mxu1 %v14689_v20  ;;  %v14711_v13 = vld [vmem:[#allocation13 + $0x348] ss:$16 sps:$4 sm:$0xff]   ;;  %v14716_v20 = vld [vmem:[#allocation13 + $0x364] ss:$16 sps:$4 sm:$0xff]  }
 0x629   : > { %5056 = vmatmul.mubr.bf16.gmra.mrb[108].mxu0 %v15103_v50  ;;  %5282 = vmatmul.mubr.bf16.gmra.mrb[108].mxu1 %v15103_v50  ;;  %v15108_v50 = vld [vmem:[#allocation2 + $0xc8] sm:$0xff] }
 0x62a   : > { %5119 = vmatpush1.bf16.msra.mxu0 %v14684_v19  ;;  %5345 = vmatpush1.bf16.msra.mxu1 %v14687_v60  ;;  %v14719_v19 = vld [vmem:[#allocation13 + $0x36c] ss:$16 sps:$4 sm:$0xff]  }
 0x62b   : > { %5065 = vmatprep.mubr.bf16.mxu0 %v15104_v22  ;;  %5291 = vmatprep.mubr.bf16.mxu1 %v15104_v22  ;;  %v15107_v60 = vld [vmem:[#allocation2 + $0xa0] sm:$0xff] }
 0x62c   : > { %5120 = vmatprep.subr.bf16.mxu0 %v14692_v63  ;;  %5346 = vmatprep.subr.bf16.mxu1 %v14695_v31  ;;  %v14714_v63 = vld [vmem:[#allocation13 + $0x360] ss:$16 sps:$4 sm:$0xff]   ;;  %v14717_v31 = vld [vmem:[#allocation13 + $0x368] ss:$16 sps:$4 sm:$0xff]  }
 0x62d   : > { %v14720_v22 = vld [vmem:[#allocation13 + $0x380] ss:$16 sps:$4 sm:$0xff]  }
 0x62e   : > { %5121 = vmatpush1.bf16.msra.mxu0 %v14690_v32  ;;  %5347 = vmatpush1.bf16.msra.mxu1 %v14693_v58  ;;  %v14722_v32 = vld [vmem:[#allocation13 + $0x384] ss:$16 sps:$4 sm:$0xff]   ;;  %v14725_v58 = vld [vmem:[#allocation13 + $0x38c] ss:$16 sps:$4 sm:$0xff]  }
 0x62f   : > { %5122 = vmatprep.subr.bf16.mxu0 %v14698_v40  ;;  %5348 = vmatprep.subr.bf16.mxu1 %v14701_v27  ;;  %v14723_v40 = vld [vmem:[#allocation13 + $0x388] ss:$16 sps:$4 sm:$0xff]   ;;  %v14728_v27 = vld [vmem:[#allocation13 + $0x3a4] ss:$16 sps:$4 sm:$0xff]  }
 0x631   : > { %5066 = vmatmul.mubr.bf16.gmra.mrb[112].mxu0 %v15105_v0  ;;  %5292 = vmatmul.mubr.bf16.gmra.mrb[112].mxu1 %v15105_v0  ;;  %v15110_v0 = vld [vmem:[#allocation2 + $0xe8] sm:$0xff] }
 0x632   : > { %5123 = vmatpush1.bf16.msra.mxu0 %v14696_v57  ;;  %5349 = vmatpush1.bf16.msra.mxu1 %v14699_v29  ;;  %v14731_v57 = vld [vmem:[#allocation13 + $0x3ac] ss:$16 sps:$4 sm:$0xff]  }
 0x633   : > { %5075 = vmatprep.mubr.bf16.mxu0 %v15106_v1  ;;  %5301 = vmatprep.mubr.bf16.mxu1 %v15106_v1  ;;  %v15109_v29 = vld [vmem:[#allocation2 + $0xc0] sm:$0xff] }
 0x634   : > { %5124 = vmatprep.subr.bf16.mxu0 %v14704_v54  ;;  %5350 = vmatprep.subr.bf16.mxu1 %v14707_v30  ;;  %v14726_v54 = vld [vmem:[#allocation13 + $0x3a0] ss:$16 sps:$4 sm:$0xff]   ;;  %v14729_v30 = vld [vmem:[#allocation13 + $0x3a8] ss:$16 sps:$4 sm:$0xff]  }
 0x635   : > { %v14732_v1 = vld [vmem:[#allocation13 + $0x3c0] ss:$16 sps:$4 sm:$0xff]  }
 0x636   : > { %5125 = vmatpush1.bf16.msra.mxu0 %v14702_v49  ;;  %5351 = vmatpush1.bf16.msra.mxu1 %v14705_v9  ;;  %v14734_v49 = vld [vmem:[#allocation13 + $0x3c4] ss:$16 sps:$4 sm:$0xff]   ;;  %v14737_v9 = vld [vmem:[#allocation13 + $0x3cc] ss:$16 sps:$4 sm:$0xff]  }
 0x637   : > { %5126 = vmatprep.subr.bf16.mxu0 %v14710_v33  ;;  %5352 = vmatprep.subr.bf16.mxu1 %v14713_v44  ;;  %v14735_v33 = vld [vmem:[#allocation13 + $0x3c8] ss:$16 sps:$4 sm:$0xff]   ;;  %v14740_v44 = vld [vmem:[#allocation13 + $0x3e4] ss:$16 sps:$4 sm:$0xff]  }
 0x639   : > { %5076 = vmatmul.mubr.bf16.gmra.mrb[116].mxu0 %v15107_v60  ;;  %5302 = vmatmul.mubr.bf16.gmra.mrb[116].mxu1 %v15107_v60  ;;  %v15112_v60 = vld [vmem:[#allocation2 + $0x18] sm:$0xff] }
 0x63a   : > { %5127 = vmatpush1.bf16.msra.mxu0 %v14708_v15  ;;  %5353 = vmatpush1.bf16.msra.mxu1 %v14711_v13  ;;  %v14743_v15 = vld [vmem:[#allocation13 + $0x3ec] ss:$16 sps:$4 sm:$0xff]  }
 0x63b   : > { %5085 = vmatprep.mubr.bf16.mxu0 %v15108_v50  ;;  %5311 = vmatprep.mubr.bf16.mxu1 %v15108_v50  ;;  %v15111_v13 = vld [vmem:[#allocation2 + $0xe0] sm:$0xff] }
 0x63c   : > { %5128 = vmatprep.subr.bf16.mxu0 %v14716_v20  ;;  %5354 = vmatprep.subr.bf16.mxu1 %v14719_v19  ;;  %v14738_v20 = vld [vmem:[#allocation13 + $0x3e0] ss:$16 sps:$4 sm:$0xff]   ;;  %v14741_v19 = vld [vmem:[#allocation13 + $0x3e8] ss:$16 sps:$4 sm:$0xff]  }
 0x63e   : > { %5129 = vmatpush1.bf16.msra.mxu0 %v14714_v63  ;;  %5355 = vmatpush1.bf16.msra.mxu1 %v14717_v31  ;;  %v15113_v63 = vld [vmem:[#allocation2 + $0x10] sm:$0xff]  ;;  %v15114_v31 = vld [vmem:[#allocation2 + $0x38] sm:$0xff] }
 0x63f   : > { %5130 = vmatprep.subr.bf16.mxu0 %v14722_v32  ;;  %5356 = vmatprep.subr.bf16.mxu1 %v14725_v58  ;;  %v21648_v58 = vld [vmem:[#allocation71_spill] sm:$0xff] }
 0x641   : > { %5086 = vmatmul.mubr.bf16.gmra.mrb[120].mxu0 %v15109_v29  ;;  %5312 = vmatmul.mubr.bf16.gmra.mrb[120].mxu1 %v15109_v29 }
 0x642   : > { %5131 = vmatpush1.bf16.msra.mxu0 %v14720_v22  ;;  %5357 = vmatpush1.bf16.msra.mxu1 %v14723_v40  ;;  %v21649_v40 = vld [vmem:[#allocation73_spill] sm:$0xff] }
 0x643   : > { %5095 = vmatprep.mubr.bf16.mxu0 %v15110_v0  ;;  %5321 = vmatprep.mubr.bf16.mxu1 %v15110_v0 }
 0x644   : > { %5132 = vmatprep.subr.bf16.mxu0 %v14728_v27  ;;  %5358 = vmatprep.subr.bf16.mxu1 %v14731_v57 }
 0x646   : > { %5133 = vmatpush1.bf16.msra.mxu0 %v14726_v54  ;;  %5359 = vmatpush1.bf16.msra.mxu1 %v14729_v30 }
 0x647   : > { %5134 = vmatprep.subr.bf16.mxu0 %v14734_v49  ;;  %5360 = vmatprep.subr.bf16.mxu1 %v14737_v9 }
 0x649   : > { %5096 = vmatmul.mubr.bf16.gmra.mrb[124].mxu0 %v15111_v13  ;;  %5322 = vmatmul.mubr.bf16.gmra.mrb[124].mxu1 %v15111_v13 }
 0x64a   : > { %5135 = vmatpush1.bf16.msra.mxu0 %v14732_v1  ;;  %5361 = vmatpush1.bf16.msra.mxu1 %v14735_v33 }
 0x64b   : > { %5138 = vmatprep.mubr.bf16.mxu0 %v15112_v60  ;;  %5364 = vmatprep.mubr.bf16.mxu1 %v15112_v60 }
 0x64c   : > { %5136 = vmatprep.subr.bf16.mxu0 %v14740_v44  ;;  %5362 = vmatprep.subr.bf16.mxu1 %v14743_v15  ;;  %v21650_v44 = vld [vmem:[#allocation80_spill] sm:$0xff] }
 0x64e   : > { %5137 = vmatpush1.bf16.msra.mxu0 %v14738_v20  ;;  %5363 = vmatpush1.bf16.msra.mxu1 %v14741_v19  ;;  %v21651_v19 = vld [vmem:[#allocation78_spill] sm:$0xff] }
 0x64f   : > { %13362 = vmatprep.subr.bf16.mxu0 %v18147_v39  ;;  %13394 = vmatprep.subr.bf16.mxu1 %v18151_v47  ;;  %v15115_v39 = vld [vmem:[#allocation2 + $0x30] sm:$0xff]  ;;  %v15116_v47 = vld [vmem:[#allocation2 + $0x58] sm:$0xff] }
 0x651   : > { %5139 = vmatmul.mubr.bf16.vlgmr.msra.gmra.mrb[96].mxu0 %v15113_v63  ;;  %5365 = vmatmul.mubr.bf16.vlgmr.msra.gmra.mrb[96].mxu1 %v15113_v63  ;;  %v21652_v63 = vld [vmem:[#allocation81_spill] sm:$0xff] }
 0x652   : > { %5148 = vmatprep.mubr.bf16.mxu0 %v15114_v31  ;;  %5374 = vmatprep.mubr.bf16.mxu1 %v15114_v31 }
 0x653   : > { %13364 = vmatpush3.bf16.msra.mxu0 %v18161_v28  ;;  %13396 = vmatpush3.bf16.msra.mxu1 %v18163_v7  ;;  %v15117_v28 = vld [vmem:[#allocation2 + $0x50] sm:$0xff]  ;;  %v15118_v7 = vld [vmem:[#allocation2 + $0x78] sm:$0xff] }
 0x654   : > { %13366 = vmatprep.subr.bf16.mxu0 %v18165_v38  ;;  %13398 = vmatprep.subr.bf16.mxu1 %v18167_v23  ;;  %v15119_v38 = vld [vmem:[#allocation2 + $0x70] sm:$0xff]  ;;  %v15120_v23 = vld [vmem:[#allocation2 + $0x98] sm:$0xff] }
 0x657   : > { %13368 = vmatpush3.bf16.msra.mxu0 %v18176_v5  ;;  %13400 = vmatpush3.bf16.msra.mxu1 %v18178_v52  ;;  %v21639_v5 = vld [vmem:[#allocation69_spill] sm:$0xff]  ;;  %v21640_v52 = vld [vmem:[#allocation74_spill] sm:$0xff] }
 0x658   : > { %13370 = vmatprep.subr.bf16.mxu0 %v18182_v25  ;;  %13402 = vmatprep.subr.bf16.mxu1 %v18184_v17  ;;  %v21641_v25 = vld [vmem:[#allocation70_spill] sm:$0xff] }
 0x659   : > { %5149 = vmatmul.mubr.bf16.gmra.mrb[100].mxu0 %v15115_v39  ;;  %5375 = vmatmul.mubr.bf16.gmra.mrb[100].mxu1 %v15115_v39  ;;  %v15121_v17 = vld [vmem:[#allocation2 + $0x90] sm:$0xff] }
 0x65a   : > { %5158 = vmatprep.mubr.bf16.mxu0 %v15116_v47  ;;  %5384 = vmatprep.mubr.bf16.mxu1 %v15116_v47 }
 0x65b   : > { %13372 = vmatpush3.bf16.msra.mxu0 %v18188_v2  ;;  %13404 = vmatpush3.bf16.msra.mxu1 %v18190_v42  ;;  %v15122_v2 = vld [vmem:[#allocation2 + $0xb8] sm:$0xff]  ;;  %v15123_v42 = vld [vmem:[#allocation2 + $0xb0] sm:$0xff] }
 0x65c   : > { %13374 = vmatprep.subr.bf16.mxu0 %v18194_v36  ;;  %13406 = vmatprep.subr.bf16.mxu1 %v18196_v18  ;;  %v15124_v36 = vld [vmem:[#allocation2 + $0xd8] sm:$0xff]  ;;  %v15125_v18 = vld [vmem:[#allocation2 + $0xd0] sm:$0xff] }
 0x65f   : > { %13376 = vmatpush3.bf16.msra.mxu0 %v18204_v46  ;;  %13408 = vmatpush3.bf16.msra.mxu1 %v18206_v62  ;;  %v15126_v46 = vld [vmem:[#allocation2 + $0xf8] sm:$0xff]  ;;  %v15127_v62 = vld [vmem:[#allocation2 + $0xf0] sm:$0xff] }
 0x660   : > { %13378 = vmatprep.subr.bf16.mxu0 %v18210_v26  ;;  %13410 = vmatprep.subr.bf16.mxu1 %v18212_v56  ;;  %v3105_v26 = vld [vmem:[#allocation19] sm:$0xf] }
 0x661   : > { %5159 = vmatmul.mubr.bf16.gmra.mrb[104].mxu0 %v15117_v28  ;;  %5385 = vmatmul.mubr.bf16.gmra.mrb[104].mxu1 %v15117_v28  ;;  %v21642_v56 = vld [vmem:[#allocation96_spill] sm:$0xff] }
 0x662   : > { %5168 = vmatprep.mubr.bf16.mxu0 %v15118_v7  ;;  %5394 = vmatprep.mubr.bf16.mxu1 %v15118_v7 }
 0x663   : > { %13380 = vmatpush3.bf16.msra.mxu0 %v18216_v43  ;;  %13412 = vmatpush3.bf16.msra.mxu1 %v18218_v41  ;;  %v18844_v43 = vrot.slane %v3105_v26, %v21642_v56  ;;  %v21643_v41 = vld [vmem:[#allocation98_spill] sm:$0xff] }
 0x664   : > { %13382 = vmatprep.subr.bf16.mxu0 %v18222_v59  ;;  %13414 = vmatprep.subr.bf16.mxu1 %v18224_v21  ;;  %v18847_v59 = vrot.slane %v3105_v26, %v21643_v41 }
 0x667   : > { %13384 = vmatpush3.bf16.msra.mxu0 %v18232_v37  ;;  %13416 = vmatpush3.bf16.msra.mxu1 %v18234_v35  ;;  %v21644_v35 = vld [vmem:[#allocation95_spill] sm:$0xff] }
 0x668   : > { %13386 = vmatprep.subr.bf16.mxu0 %v18238_v45  ;;  %13418 = vmatprep.subr.bf16.mxu1 %v18240_v34  ;;  %v18850_v45 = vrot.slane %v3105_v26, %v21644_v35  ;;  %v21645_v34 = vld [vmem:[#allocation97_spill] sm:$0xff] }
 0x669   : > { %5169 = vmatmul.mubr.bf16.gmra.mrb[108].mxu0 %v15119_v38  ;;  %5395 = vmatmul.mubr.bf16.gmra.mrb[108].mxu1 %v15119_v38 }
 0x66a   : > { %5178 = vmatprep.mubr.bf16.mxu0 %v15120_v23  ;;  %5404 = vmatprep.mubr.bf16.mxu1 %v15120_v23  ;;  %v21653_v23 = vld [vmem:[#allocation84_spill] sm:$0xff] }
 0x66b   : > { %13388 = vmatpush3.bf16.msra.mxu0 %v18244_v14  ;;  %13420 = vmatpush3.bf16.msra.mxu1 %v18246_v8  ;;  %v18853_v14 = vrot.slane %v3105_v26, %v21645_v34  ;;  %v21646_v8 = vld [vmem:[#allocation72_spill] sm:$0xff] }
 0x66c   : > { %13390 = vmatprep.subr.bf16.mxu0 %v18250_v10  ;;  %13422 = vmatprep.subr.bf16.mxu1 %v18252_v55  ;;  %v21647_v55 = vld [vmem:[#allocation75_spill] sm:$0xff] }
 0x66f   : > { %13392 = vmatpush3.bf16.msra.mxu0 %v18260_v11  ;;  %13424 = vmatpush3.bf16.msra.mxu1 %v21639_v5 }
 0x670   : > { %13426 = vmatprep.subr.bf16.mxu0 %v21640_v52  ;;  %13458 = vmatprep.subr.bf16.mxu1 %v21641_v25  ;;  %v21654_v52 = vld [vmem:[#allocation86_spill] sm:$0xff] }
 0x671   : > { %5179 = vmatmul.mubr.bf16.gmra.mrb[112].mxu0 %v15121_v17  ;;  %5405 = vmatmul.mubr.bf16.gmra.mrb[112].mxu1 %v15121_v17 }
 0x672   : > { %5188 = vmatprep.mubr.bf16.mxu0 %v15122_v2  ;;  %5414 = vmatprep.mubr.bf16.mxu1 %v15122_v2 }
 0x679   : > { %5189 = vmatmul.mubr.bf16.gmra.mrb[116].mxu0 %v15123_v42  ;;  %5415 = vmatmul.mubr.bf16.gmra.mrb[116].mxu1 %v15123_v42 }
 0x67a   : > { %5198 = vmatprep.mubr.bf16.mxu0 %v15124_v36  ;;  %5424 = vmatprep.mubr.bf16.mxu1 %v15124_v36 }
 0x681   : > { %5199 = vmatmul.mubr.bf16.gmra.mrb[120].mxu0 %v15125_v18  ;;  %5425 = vmatmul.mubr.bf16.gmra.mrb[120].mxu1 %v15125_v18  ;;  %v21655_v18 = vld [vmem:[#allocation88_spill] sm:$0xff] }
 0x682   : > { %5208 = vmatprep.mubr.bf16.mxu0 %v15126_v46  ;;  %5434 = vmatprep.mubr.bf16.mxu1 %v15126_v46 }
 0x689   : > { %5209 = vmatmul.mubr.bf16.gmra.mrb[124].mxu0 %v15127_v62  ;;  %5435 = vmatmul.mubr.bf16.gmra.mrb[124].mxu1 %v15127_v62  ;;  %v21656_v62 = vld [vmem:[#allocation90_spill] sm:$0xff] }
 0x6a1   : > { %v3574_v21 = vpop.f32.mrb[64].mxu0  ;;  %v3735_v37 = vpop.f32.mrb[64].mxu1 }
 0x6a2   : > { %v3830_v10 = vmul.f32 %v21646_v8, %v3574_v21  ;;  %v3832_v11 = vmul.f32 %v21647_v55, %v3735_v37  ;;  %v3576_v50 = vpop.f32.mrb[65].mxu0  ;;  %v3737_v32 = vpop.f32.mrb[65].mxu1 }
 0x6a3   : > { %v3831_v22 = vmul.f32 %v21648_v58, %v3576_v50  ;;  %v3833_v27 = vmul.f32 %v21649_v40, %v3737_v32  ;;  %v21657_v50 = vld [vmem:[#allocation99_spill] sm:$0xff]  ;;  %v21658_v58 = vld [vmem:[#allocation100_spill] sm:$0xff] }
 0x6a4   : > { %v3915_v57 = vmul.f32 %v18844_v43, %v3830_v10  ;;  %v3917_v29 = vmul.f32 %v18847_v59, %v3832_v11 }
 0x6a5   : > { %v3916_v54 = vmul.f32 %v18850_v45, %v3831_v22  ;;  %v3918_v30 = vmul.f32 %v18853_v14, %v3833_v27  ;;  %v3580_v0 = vpop.f32.mrb[66].mxu0  ;;  %v3741_v49 = vpop.f32.mrb[66].mxu1 }
 0x6a6   : > { %v3834_v33 = vmul.f32 %v18333_v48, %v3580_v0  ;;  %v3836_v15 = vmul.f32 %v21650_v44, %v3741_v49  ;;  %v3582_v13 = vpop.f32.mrb[67].mxu0  ;;  %v3743_v20 = vpop.f32.mrb[67].mxu1  ;;  %v21660_v0 = vld [vmem:[#allocation93_spill] sm:$0xff] }
 0x6a7   : > { %v12813_v9 = vpack.c.bf16 %v3916_v54, %v3915_v57  ;;  %v12814_v1 = vpack.c.bf16 %v3918_v30, %v3917_v29  ;;  %v3835_v60 = vmul.f32 %v21651_v19, %v3582_v13  ;;  %v3837_v31 = vmul.f32 %v21652_v63, %v3743_v20  ;;  %v21659_v54 = vld [vmem:[#allocation91_spill] sm:$0xff] }
 0x6a8   : > { %v3919_v39 = vmul.f32 %v18844_v43, %v3834_v33  ;;  %v3921_v47 = vmul.f32 %v18847_v59, %v3836_v15  ;;  %v21661_v20 = vld [vmem:[#allocation103_spill] sm:$0xff] }
 0x6a9   : > { %4171 = vst [vmem:[%s17291_s11] sm:$0xff] %v12813_v9  ;;  %4172 = vst [vmem:[%s17291_s11 + $0x8] sm:$0xff] %v12814_v1  ;;  %v3920_v28 = vmul.f32 %v18850_v45, %v3835_v60  ;;  %v3922_v48 = vmul.f32 %v18853_v14, %v3837_v31  ;;  %v21662_v60 = vld [vmem:[#allocation104_spill] sm:$0xff] }
 0x6aa   : > { %v3586_v7 = vpop.f32.mrb[68].mxu0  ;;  %v3747_v38 = vpop.f32.mrb[68].mxu1 }
 0x6ab   : > { %v3838_v5 = vmul.f32 %v21653_v23, %v3586_v7  ;;  %v3840_v25 = vmul.f32 %v21654_v52, %v3747_v38  ;;  %v3588_v17 = vpop.f32.mrb[69].mxu0  ;;  %v3749_v2 = vpop.f32.mrb[69].mxu1  ;;  %v12815_v42 = vpack.c.bf16 %v3920_v28, %v3919_v39  ;;  %v12816_v36 = vpack.c.bf16 %v3922_v48, %v3921_v47  ;;  %v21663_v48 = vld [vmem:[#allocation105_spill] sm:$0xff]  ;;  %v21664_v38 = vld [vmem:[#allocation106_spill] sm:$0xff] }
 0x6ac   : > { %v3839_v46 = vmul.f32 %v21655_v18, %v3588_v17  ;;  %v3841_v26 = vmul.f32 %v21656_v62, %v3749_v2 }
 0x6ad   : > { %v3923_v21 = vmul.f32 %v18844_v43, %v3838_v5  ;;  %v3925_v37 = vmul.f32 %v18847_v59, %v3840_v25  ;;  %4173 = vst [vmem:[%s17291_s11 + $0x10] sm:$0xff] %v12815_v42  ;;  %4174 = vst [vmem:[%s17291_s11 + $0x18] sm:$0xff] %v12816_v36  ;;  %v21665_v36 = vld [vmem:[#allocation113_spill] sm:$0xff] }
 0x6ae   : > { %v3924_v8 = vmul.f32 %v18850_v45, %v3839_v46  ;;  %v3926_v10 = vmul.f32 %v18853_v14, %v3841_v26  ;;  %v3592_v55 = vpop.f32.mrb[70].mxu0  ;;  %v3753_v11 = vpop.f32.mrb[70].mxu1  ;;  %v21666_v46 = vld [vmem:[#allocation114_spill] sm:$0xff] }
 0x6af   : > { %v3842_v32 = vmul.f32 %v21657_v50, %v3592_v55  ;;  %v3844_v22 = vmul.f32 %v21658_v58, %v3753_v11  ;;  %v3594_v40 = vpop.f32.mrb[71].mxu0  ;;  %v3755_v27 = vpop.f32.mrb[71].mxu1  ;;  %v21668_v11 = vld [vmem:[#allocation112_spill] sm:$0xff] }
 0x6b0   : > { %v12817_v57 = vpack.c.bf16 %v3924_v8, %v3923_v21  ;;  %v12818_v29 = vpack.c.bf16 %v3926_v10, %v3925_v37  ;;  %v3843_v30 = vmul.f32 %v21659_v54, %v3594_v40  ;;  %v3845_v49 = vmul.f32 %v21660_v0, %v3755_v27  ;;  %v21667_v10 = vld [vmem:[#allocation111_spill] sm:$0xff] }
 0x6b1   : > { %v3927_v9 = vmul.f32 %v18844_v43, %v3842_v32  ;;  %v3929_v1 = vmul.f32 %v18847_v59, %v3844_v22 }
 0x6b2   : > { %4175 = vst [vmem:[%s17291_s11 + $0x20] sm:$0xff] %v12817_v57  ;;  %4176 = vst [vmem:[%s17291_s11 + $0x28] sm:$0xff] %v12818_v29  ;;  %v3928_v33 = vmul.f32 %v18850_v45, %v3843_v30  ;;  %v3930_v44 = vmul.f32 %v18853_v14, %v3845_v49 }
 0x6b4   : > { %v3598_v15 = vpop.f32.mrb[72].mxu0  ;;  %v3759_v13 = vpop.f32.mrb[72].mxu1  ;;  %v12819_v47 = vpack.c.bf16 %v3928_v33, %v3927_v9  ;;  %v12820_v28 = vpack.c.bf16 %v3930_v44, %v3929_v1 }
 0x6b5   : > { %v3846_v19 = vmul.f32 %v21661_v20, %v3598_v15  ;;  %v3848_v63 = vmul.f32 %v21662_v60, %v3759_v13  ;;  %v3600_v31 = vpop.f32.mrb[73].mxu0  ;;  %v3761_v39 = vpop.f32.mrb[73].mxu1 }
 0x6b6   : > { %v3847_v7 = vmul.f32 %v21663_v48, %v3600_v31  ;;  %v3849_v23 = vmul.f32 %v21664_v38, %v3761_v39  ;;  %4177 = vst [vmem:[%s17291_s11 + $0x30] sm:$0xff] %v12819_v47  ;;  %4178 = vst [vmem:[%s17291_s11 + $0x38] sm:$0xff] %v12820_v28 }
 0x6b7   : > { %v3931_v5 = vmul.f32 %v18844_v43, %v3846_v19  ;;  %v3933_v52 = vmul.f32 %v18847_v59, %v3848_v63 }
 0x6b8   : > { %v3932_v25 = vmul.f32 %v18850_v45, %v3847_v7  ;;  %v3934_v17 = vmul.f32 %v18853_v14, %v3849_v23  ;;  %v3604_v2 = vpop.f32.mrb[74].mxu0  ;;  %v3765_v42 = vpop.f32.mrb[74].mxu1 }
 0x6b9   : > { %v3850_v18 = vmul.f32 %v21665_v36, %v3604_v2  ;;  %v3852_v62 = vmul.f32 %v21666_v46, %v3765_v42  ;;  %v3606_v26 = vpop.f32.mrb[75].mxu0  ;;  %v3767_v21 = vpop.f32.mrb[75].mxu1  ;;  %v21670_v2 = vld [vmem:[#allocation122_spill] sm:$0xff]  ;;  %v21671_v36 = vld [vmem:[#allocation123_spill] sm:$0xff] }
 0x6ba   : > { %v12821_v37 = vpack.c.bf16 %v3932_v25, %v3931_v5  ;;  %v12822_v8 = vpack.c.bf16 %v3934_v17, %v3933_v52  ;;  %v3851_v55 = vmul.f32 %v21667_v10, %v3606_v26  ;;  %v3853_v50 = vmul.f32 %v21668_v11, %v3767_v21  ;;  %v21669_v5 = vld [vmem:[#allocation121_spill] sm:$0xff] }
 0x6bb   : > { %v3935_v32 = vmul.f32 %v18844_v43, %v3850_v18  ;;  %v3937_v58 = vmul.f32 %v18847_v59, %v3852_v62 }
 0x6bc   : > { %4179 = vst [vmem:[%s17291_s11 + $0x40] sm:$0xff] %v12821_v37  ;;  %4180 = vst [vmem:[%s17291_s11 + $0x48] sm:$0xff] %v12822_v8  ;;  %v3936_v22 = vmul.f32 %v18850_v45, %v3851_v55  ;;  %v3938_v40 = vmul.f32 %v18853_v14, %v3853_v50  ;;  %v3610_v27 = vpop.f32.mrb[76].mxu0  ;;  %v3771_v57 = vpop.f32.mrb[76].mxu1  ;;  %v21672_v8 = vld [vmem:[#allocation126_spill] sm:$0xff]  ;;  %v21673_v55 = vld [vmem:[#allocation127_spill] sm:$0xff] }
 0x6bd   : > { %v3854_v29 = vmul.f32 %v18468_v61, %v3610_v27  ;;  %v3856_v54 = vmul.f32 %v18471_v4, %v3771_v57  ;;  %v3612_v30 = vpop.f32.mrb[77].mxu0  ;;  %v3773_v0 = vpop.f32.mrb[77].mxu1  ;;  %v21675_v57 = vld [vmem:[#allocation125_spill] sm:$0xff] }
 0x6be   : > { %v12823_v49 = vpack.c.bf16 %v3936_v22, %v3935_v32  ;;  %v12824_v9 = vpack.c.bf16 %v3938_v40, %v3937_v58  ;;  %v3855_v1 = vmul.f32 %v18477_v12, %v3612_v30  ;;  %v3857_v33 = vmul.f32 %v18480_v53, %v3773_v0  ;;  %v21674_v40 = vld [vmem:[#allocation124_spill] sm:$0xff] }
 0x6bf   : > { %v3939_v44 = vmul.f32 %v18844_v43, %v3854_v29  ;;  %v3941_v15 = vmul.f32 %v18847_v59, %v3856_v54 }
 0x6c0   : > { %4181 = vst [vmem:[%s17291_s11 + $0x50] sm:$0xff] %v12823_v49  ;;  %4182 = vst [vmem:[%s17291_s11 + $0x58] sm:$0xff] %v12824_v9  ;;  %v3940_v61 = vmul.f32 %v18850_v45, %v3855_v1  ;;  %v3942_v4 = vmul.f32 %v18853_v14, %v3857_v33  ;;  %v3616_v13 = vpop.f32.mrb[78].mxu0  ;;  %v3777_v20 = vpop.f32.mrb[78].mxu1  ;;  %v21676_v33 = vld [vmem:[#allocation128_spill] sm:$0xff] }
 0x6c1   : > { %v3858_v19 = vmul.f32 %v18507_v6, %v3616_v13  ;;  %v3860_v12 = vmul.f32 %v18512_v24, %v3777_v20  ;;  %v3618_v60 = vpop.f32.mrb[79].mxu0  ;;  %v3779_v53 = vpop.f32.mrb[79].mxu1 }
 0x6c2   : > { %v12825_v63 = vpack.c.bf16 %v3940_v61, %v3939_v44  ;;  %v12826_v31 = vpack.c.bf16 %v3942_v4, %v3941_v15  ;;  %v3859_v39 = vmul.f32 %v18497_v51, %v3618_v60  ;;  %v3861_v47 = vmul.f32 %v18500_v3, %v3779_v53  ;;  %v21677_v15 = vld [vmem:[#allocation129_spill] sm:$0xff]  ;;  %v21679_v53 = vld [vmem:[#allocation131_spill] sm:$0xff] }
 0x6c3   : > { %v3943_v28 = vmul.f32 %v18844_v43, %v3858_v19  ;;  %v3945_v48 = vmul.f32 %v18847_v59, %v3860_v12  ;;  %v21678_v12 = vld [vmem:[#allocation130_spill] sm:$0xff] }
 0x6c4   : > { %4183 = vst [vmem:[%s17291_s11 + $0x60] sm:$0xff] %v12825_v63  ;;  %4184 = vst [vmem:[%s17291_s11 + $0x68] sm:$0xff] %v12826_v31  ;;  %v3944_v6 = vmul.f32 %v18850_v45, %v3859_v39  ;;  %v3946_v24 = vmul.f32 %v18853_v14, %v3861_v47  ;;  %v3622_v7 = vpop.f32.mrb[80].mxu0  ;;  %v3783_v38 = vpop.f32.mrb[80].mxu1 }
 0x6c5   : > { %v3862_v23 = vmul.f32 %v18522_v16, %v3622_v7  ;;  %v3864_v51 = vmul.f32 %v21669_v5, %v3783_v38  ;;  %v3624_v52 = vpop.f32.mrb[81].mxu0  ;;  %v3785_v3 = vpop.f32.mrb[81].mxu1  ;;  %v21681_v38 = vld [vmem:[#allocation135_spill] sm:$0xff] }
 0x6c6   : > { %v12827_v25 = vpack.c.bf16 %v3944_v6, %v3943_v28  ;;  %v12828_v17 = vpack.c.bf16 %v3946_v24, %v3945_v48  ;;  %v3863_v42 = vmul.f32 %v21670_v2, %v3624_v52  ;;  %v3865_v18 = vmul.f32 %v21671_v36, %v3785_v3  ;;  %v21680_v24 = vld [vmem:[#allocation134_spill] sm:$0xff]  ;;  %v21683_v2 = vld [vmem:[#allocation133_spill] sm:$0xff] }
 0x6c7   : > { %v3947_v46 = vmul.f32 %v18844_v43, %v3862_v23  ;;  %v3949_v62 = vmul.f32 %v18847_v59, %v3864_v51 }
 0x6c8   : > { %4185 = vst [vmem:[%s17291_s11 + $0x70] sm:$0xff] %v12827_v25  ;;  %4186 = vst [vmem:[%s17291_s11 + $0x78] sm:$0xff] %v12828_v17  ;;  %v3948_v16 = vmul.f32 %v18850_v45, %v3863_v42  ;;  %v3950_v26 = vmul.f32 %v18853_v14, %v3865_v18  ;;  %v3628_v21 = vpop.f32.mrb[82].mxu0  ;;  %v3789_v37 = vpop.f32.mrb[82].mxu1  ;;  %v21682_v25 = vld [vmem:[#allocation132_spill] sm:$0xff] }
 0x6c9   : > { %v3866_v10 = vmul.f32 %v21672_v8, %v3628_v21  ;;  %v3868_v11 = vmul.f32 %v21673_v55, %v3789_v37  ;;  %v3630_v50 = vpop.f32.mrb[83].mxu0  ;;  %v3791_v32 = vpop.f32.mrb[83].mxu1  ;;  %v21684_v21 = vld [vmem:[#allocation136_spill] sm:$0xff]  ;;  %v21685_v8 = vld [vmem:[#allocation137_spill] sm:$0xff] }
 0x6ca   : > { %v12829_v58 = vpack.c.bf16 %v3948_v16, %v3947_v46  ;;  %v12830_v22 = vpack.c.bf16 %v3950_v26, %v3949_v62  ;;  %v3867_v27 = vmul.f32 %v21674_v40, %v3630_v50  ;;  %v3869_v29 = vmul.f32 %v21675_v57, %v3791_v32  ;;  %v21687_v40 = vld [vmem:[#allocation139_spill] sm:$0xff] }
 0x6cb   : > { %v3951_v54 = vmul.f32 %v18844_v43, %v3866_v10  ;;  %v3953_v30 = vmul.f32 %v18847_v59, %v3868_v11 }
 0x6cc   : > { %4187 = vst [vmem:[%s17291_s11 + $0x80] sm:$0xff] %v12829_v58  ;;  %4188 = vst [vmem:[%s17291_s11 + $0x88] sm:$0xff] %v12830_v22  ;;  %v3952_v0 = vmul.f32 %v18850_v45, %v3867_v27  ;;  %v3954_v49 = vmul.f32 %v18853_v14, %v3869_v29  ;;  %v3634_v9 = vpop.f32.mrb[84].mxu0  ;;  %v3795_v1 = vpop.f32.mrb[84].mxu1  ;;  %v21686_v58 = vld [vmem:[#allocation138_spill] sm:$0xff] }
 0x6cd   : > { %v3870_v44 = vmul.f32 %v21676_v33, %v3634_v9  ;;  %v3872_v61 = vmul.f32 %v21677_v15, %v3795_v1  ;;  %v3636_v4 = vpop.f32.mrb[85].mxu0  ;;  %v3797_v13 = vpop.f32.mrb[85].mxu1  ;;  %v21688_v9 = vld [vmem:[#allocation142_spill] sm:$0xff]  ;;  %v21689_v33 = vld [vmem:[#allocation143_spill] sm:$0xff] }
 0x6ce   : > { %v12831_v20 = vpack.c.bf16 %v3952_v0, %v3951_v54  ;;  %v12832_v19 = vpack.c.bf16 %v3954_v49, %v3953_v30  ;;  %v3871_v60 = vmul.f32 %v21678_v12, %v3636_v4  ;;  %v3873_v63 = vmul.f32 %v21679_v53, %v3797_v13  ;;  %v21691_v12 = vld [vmem:[#allocation141_spill] sm:$0xff] }
 0x6cf   : > { %v3955_v31 = vmul.f32 %v18844_v43, %v3870_v44  ;;  %v3957_v39 = vmul.f32 %v18847_v59, %v3872_v61 }
 0x6d0   : > { %4189 = vst [vmem:[%s17291_s11 + $0x90] sm:$0xff] %v12831_v20  ;;  %4190 = vst [vmem:[%s17291_s11 + $0x98] sm:$0xff] %v12832_v19  ;;  %v3956_v47 = vmul.f32 %v18850_v45, %v3871_v60  ;;  %v3958_v28 = vmul.f32 %v18853_v14, %v3873_v63  ;;  %v3640_v48 = vpop.f32.mrb[86].mxu0  ;;  %v3801_v6 = vpop.f32.mrb[86].mxu1  ;;  %v21690_v20 = vld [vmem:[#allocation140_spill] sm:$0xff] }
 0x6d1   : > { %v3874_v7 = vmul.f32 %v21680_v24, %v3640_v48  ;;  %v3876_v23 = vmul.f32 %v21681_v38, %v3801_v6  ;;  %v3642_v5 = vpop.f32.mrb[87].mxu0  ;;  %v3803_v51 = vpop.f32.mrb[87].mxu1  ;;  %v21692_v48 = vld [vmem:[#allocation144_spill] sm:$0xff]  ;;  %v21693_v24 = vld [vmem:[#allocation145_spill] sm:$0xff] }
 0x6d2   : > { %v12833_v52 = vpack.c.bf16 %v3956_v47, %v3955_v31  ;;  %v12834_v3 = vpack.c.bf16 %v3958_v28, %v3957_v39  ;;  %v3875_v17 = vmul.f32 %v21682_v25, %v3642_v5  ;;  %v3877_v42 = vmul.f32 %v21683_v2, %v3803_v51  ;;  %v21695_v25 = vld [vmem:[#allocation147_spill] sm:$0xff] }
 0x6d3   : > { %v3959_v36 = vmul.f32 %v18844_v43, %v3874_v7  ;;  %v3961_v18 = vmul.f32 %v18847_v59, %v3876_v23 }
 0x6d4   : > { %4191 = vst [vmem:[%s17291_s11 + $0xa0] sm:$0xff] %v12833_v52  ;;  %4192 = vst [vmem:[%s17291_s11 + $0xa8] sm:$0xff] %v12834_v3  ;;  %v3960_v46 = vmul.f32 %v18850_v45, %v3875_v17  ;;  %v3962_v62 = vmul.f32 %v18853_v14, %v3877_v42  ;;  %v3646_v16 = vpop.f32.mrb[88].mxu0  ;;  %v3807_v26 = vpop.f32.mrb[88].mxu1  ;;  %v21694_v52 = vld [vmem:[#allocation146_spill] sm:$0xff] }
 0x6d5   : > { %v3878_v37 = vmul.f32 %v21684_v21, %v3646_v16  ;;  %v3880_v10 = vmul.f32 %v21685_v8, %v3807_v26  ;;  %v3648_v55 = vpop.f32.mrb[89].mxu0  ;;  %v3809_v11 = vpop.f32.mrb[89].mxu1  ;;  %v21696_v16 = vld [vmem:[#allocation150_spill] sm:$0xff]  ;;  %v21697_v21 = vld [vmem:[#allocation151_spill] sm:$0xff] }
 0x6d6   : > { %v12835_v50 = vpack.c.bf16 %v3960_v46, %v3959_v36  ;;  %v12836_v32 = vpack.c.bf16 %v3962_v62, %v3961_v18  ;;  %v3879_v22 = vmul.f32 %v21686_v58, %v3648_v55  ;;  %v3881_v27 = vmul.f32 %v21687_v40, %v3809_v11  ;;  %v21699_v58 = vld [vmem:[#allocation149_spill] sm:$0xff] }
 0x6d7   : > { %v3963_v57 = vmul.f32 %v18844_v43, %v3878_v37  ;;  %v3965_v29 = vmul.f32 %v18847_v59, %v3880_v10 }
 0x6d8   : > { %4193 = vst [vmem:[%s17291_s11 + $0xb0] sm:$0xff] %v12835_v50  ;;  %4194 = vst [vmem:[%s17291_s11 + $0xb8] sm:$0xff] %v12836_v32  ;;  %v3964_v54 = vmul.f32 %v18850_v45, %v3879_v22  ;;  %v3966_v30 = vmul.f32 %v18853_v14, %v3881_v27  ;;  %v3652_v0 = vpop.f32.mrb[90].mxu0  ;;  %v3813_v49 = vpop.f32.mrb[90].mxu1  ;;  %v21698_v50 = vld [vmem:[#allocation148_spill] sm:$0xff] }
 0x6d9   : > { %v3882_v1 = vmul.f32 %v21688_v9, %v3652_v0  ;;  %v3884_v44 = vmul.f32 %v21689_v33, %v3813_v49  ;;  %v3654_v15 = vpop.f32.mrb[91].mxu0  ;;  %v3815_v61 = vpop.f32.mrb[91].mxu1  ;;  %v4331_v0 = vld [vmem:[#allocation15] sm:$0xf] }
 0x6da   : > { %v12837_v4 = vpack.c.bf16 %v3964_v54, %v3963_v57  ;;  %v12838_v13 = vpack.c.bf16 %v3966_v30, %v3965_v29  ;;  %v3883_v19 = vmul.f32 %v21690_v20, %v3654_v15  ;;  %v3885_v60 = vmul.f32 %v21691_v12, %v3815_v61 }
 0x6db   : > { %v3967_v53 = vmul.f32 %v18844_v43, %v3882_v1  ;;  %v3969_v63 = vmul.f32 %v18847_v59, %v3884_v44  ;;  %v19016_v49 = vrot.slane %v4331_v0, %v21642_v56  ;;  %v19019_v9 = vrot.slane %v4331_v0, %v21643_v41 }
 0x6dc   : > { %4195 = vst [vmem:[%s17291_s11 + $0xc0] sm:$0xff] %v12837_v4  ;;  %4196 = vst [vmem:[%s17291_s11 + $0xc8] sm:$0xff] %v12838_v13  ;;  %v3968_v31 = vmul.f32 %v18850_v45, %v3883_v19  ;;  %v3970_v39 = vmul.f32 %v18853_v14, %v3885_v60  ;;  %v3658_v47 = vpop.f32.mrb[92].mxu0  ;;  %v3819_v28 = vpop.f32.mrb[92].mxu1 }
 0x6dd   : > { %v3886_v6 = vmul.f32 %v21692_v48, %v3658_v47  ;;  %v3888_v7 = vmul.f32 %v21693_v24, %v3819_v28  ;;  %v3660_v38 = vpop.f32.mrb[93].mxu0  ;;  %v3821_v23 = vpop.f32.mrb[93].mxu1 }
 0x6de   : > { %v12839_v5 = vpack.c.bf16 %v3968_v31, %v3967_v53  ;;  %v12840_v51 = vpack.c.bf16 %v3970_v39, %v3969_v63  ;;  %v3887_v3 = vmul.f32 %v21694_v52, %v3660_v38  ;;  %v3889_v17 = vmul.f32 %v21695_v25, %v3821_v23  ;;  %v21700_v25 = vld [vmem:[#allocation77_spill] sm:$0xff] }
 0x6df   : > { %v3971_v2 = vmul.f32 %v18844_v43, %v3886_v6  ;;  %v3973_v42 = vmul.f32 %v18847_v59, %v3888_v7 }
 0x6e0   : > { %4197 = vst [vmem:[%s17291_s11 + $0xd0] sm:$0xff] %v12839_v5  ;;  %4198 = vst [vmem:[%s17291_s11 + $0xd8] sm:$0xff] %v12840_v51  ;;  %v3972_v36 = vmul.f32 %v18850_v45, %v3887_v3  ;;  %v3974_v18 = vmul.f32 %v18853_v14, %v3889_v17  ;;  %v3664_v46 = vpop.f32.mrb[94].mxu0  ;;  %v3825_v62 = vpop.f32.mrb[94].mxu1  ;;  %v21701_v17 = vld [vmem:[#allocation79_spill] sm:$0xff] }
 0x6e1   : > { %v3890_v26 = vmul.f32 %v21696_v16, %v3664_v46  ;;  %v3892_v37 = vmul.f32 %v21697_v21, %v3825_v62  ;;  %v3666_v8 = vpop.f32.mrb[95].mxu0  ;;  %v3827_v10 = vpop.f32.mrb[95].mxu1  ;;  %v21702_v62 = vld [vmem:[#allocation76_spill] sm:$0xff]  ;;  %v21703_v16 = vld [vmem:[#allocation83_spill] sm:$0xff] }
 0x6e2   : > { %v12841_v55 = vpack.c.bf16 %v3972_v36, %v3971_v2  ;;  %v12842_v11 = vpack.c.bf16 %v3974_v18, %v3973_v42  ;;  %v3891_v32 = vmul.f32 %v21698_v50, %v3666_v8  ;;  %v3893_v22 = vmul.f32 %v21699_v58, %v3827_v10  ;;  %v21704_v58 = vld [vmem:[#allocation82_spill] sm:$0xff] }
 0x6e3   : > { %v3975_v40 = vmul.f32 %v18844_v43, %v3890_v26  ;;  %v3977_v27 = vmul.f32 %v18847_v59, %v3892_v37  ;;  %v19022_v43 = vrot.slane %v4331_v0, %v21644_v35  ;;  %v19025_v59 = vrot.slane %v4331_v0, %v21645_v34 }
 0x6e4   : > { %4199 = vst [vmem:[%s17291_s11 + $0xe0] sm:$0xff] %v12841_v55  ;;  %4200 = vst [vmem:[%s17291_s11 + $0xe8] sm:$0xff] %v12842_v11  ;;  %v3976_v57 = vmul.f32 %v18850_v45, %v3891_v32  ;;  %v3978_v29 = vmul.f32 %v18853_v14, %v3893_v22  ;;  %v21705_v22 = vld [vmem:[#allocation85_spill] sm:$0xff] }
 0x6e6   : > { %v12843_v54 = vpack.c.bf16 %v3976_v57, %v3975_v40  ;;  %v12844_v30 = vpack.c.bf16 %v3978_v29, %v3977_v27  ;;  %v21706_v29 = vld [vmem:[#allocation87_spill] sm:$0xff] }
 0x6e8   : > { %4201 = vst [vmem:[%s17291_s11 + $0xf0] sm:$0xff] %v12843_v54  ;;  %4202 = vst [vmem:[%s17291_s11 + $0xf8] sm:$0xff] %v12844_v30 }
 0x724   : > { %v5140_v45 = vpop.f32.mrb[96].mxu0  ;;  %v5366_v1 = vpop.f32.mrb[96].mxu1 }
 0x725   : > { %v19028_v14 = vadd.f32 %v5140_v45, %v19016_v49  ;;  %v19031_v33 = vadd.f32 %v5366_v1, %v19019_v9  ;;  %v5142_v44 = vpop.f32.mrb[97].mxu0  ;;  %v5368_v15 = vpop.f32.mrb[97].mxu1 }
 0x726   : > { %v19034_v61 = vadd.f32 %v5142_v44, %v19022_v43  ;;  %v19037_v4 = vadd.f32 %v5368_v15, %v19025_v59  ;;  %v5144_v13 = vpop.f32.mrb[98].mxu0  ;;  %v5370_v20 = vpop.f32.mrb[98].mxu1 }
 0x727   : > { %v5146_v19 = vpop.f32.mrb[99].mxu0  ;;  %v5372_v12 = vpop.f32.mrb[99].mxu1  ;;  %v5446_v39 = vmul.f32 %v19028_v14, %v19028_v14  ;;  %v5448_v47 = vmul.f32 %v19031_v33, %v19031_v33  ;;  %v19054_v28 = vadd.f32 %v5144_v13, %v19016_v49  ;;  %v19057_v48 = vadd.f32 %v5370_v20, %v19019_v9  ;;  %v21707_v13 = vld [vmem:[#allocation89_spill] sm:$0xff] }
 0x728   : > { %v5447_v60 = vmul.f32 %v19034_v61, %v19034_v61  ;;  %v5449_v53 = vmul.f32 %v19037_v4, %v19037_v4  ;;  %v19044_v63 = vadd.f32 %v5146_v19, %v19022_v43  ;;  %v19047_v31 = vadd.f32 %v5372_v12, %v19025_v59 }
 0x729   : > { %v5450_v23 = vmul.f32 %v19054_v28, %v19054_v28  ;;  %v5452_v2 = vmul.f32 %v19057_v48, %v19057_v48 }
 0x72a   : > { %v5451_v6 = vmul.f32 %v19044_v63, %v19044_v63  ;;  %v5453_v24 = vmul.f32 %v19047_v31, %v19047_v31  ;;  %5574 = vmatprep.mubr.f32.mxu0 %v5447_v60  ;;  %5719 = vmatprep.mubr.f32.mxu1 %v5449_v53 }
 0x72b   : > { %5575 = vmatmul.mubr.f32.vlgmr.msra.gmra.mrb[128].mxu0 %v5446_v39  ;;  %5720 = vmatmul.mubr.f32.vlgmr.msra.gmra.mrb[128].mxu1 %v5448_v47  ;;  %v21708_v39 = vld [vmem:[#allocation92_spill] sm:$0xff]  ;;  %v21709_v47 = vld [vmem:[#allocation94_spill] sm:$0xff] }
 0x72c   : > { %v5150_v7 = vpop.f32.mrb[100].mxu0  ;;  %v5376_v38 = vpop.f32.mrb[100].mxu1  ;;  %5579 = vmatprep.mubr.f32.mxu0 %v5451_v6  ;;  %5724 = vmatprep.mubr.f32.mxu1 %v5453_v24 }
 0x72d   : > { %v19066_v5 = vadd.f32 %v5150_v7, %v19016_v49  ;;  %v19069_v51 = vadd.f32 %v5376_v38, %v19019_v9  ;;  %v5152_v52 = vpop.f32.mrb[101].mxu0  ;;  %v5378_v3 = vpop.f32.mrb[101].mxu1  ;;  %13428 = vmatpush1.bf16.msra.mxu0 %v21700_v25  ;;  %13460 = vmatpush1.bf16.msra.mxu1 %v21701_v17 }
 0x72e   : > { %v19076_v42 = vadd.f32 %v5152_v52, %v19022_v43  ;;  %v19079_v36 = vadd.f32 %v5378_v3, %v19025_v59  ;;  %v5154_v18 = vpop.f32.mrb[102].mxu0  ;;  %v5380_v46 = vpop.f32.mrb[102].mxu1  ;;  %13430 = vmatprep.subr.bf16.mxu0 %v21702_v62  ;;  %13462 = vmatprep.subr.bf16.mxu1 %v21703_v16 }
 0x72f   : > { %v5156_v26 = vpop.f32.mrb[103].mxu0  ;;  %v5382_v21 = vpop.f32.mrb[103].mxu1  ;;  %5580 = vmatmul.mubr.f32.gmra.mrb[130].mxu0 %v5450_v23  ;;  %5725 = vmatmul.mubr.f32.gmra.mrb[130].mxu1 %v5452_v2  ;;  %v5454_v11 = vmul.f32 %v19066_v5, %v19066_v5  ;;  %v5456_v50 = vmul.f32 %v19069_v51, %v19069_v51  ;;  %v19098_v32 = vadd.f32 %v5154_v18, %v19016_v49  ;;  %v21710_v2 = vld [vmem:[#allocation101_spill] sm:$0xff]  ;;  %v21711_v18 = vld [vmem:[#allocation102_spill] sm:$0xff] }
 0x730   : > { %v5455_v37 = vmul.f32 %v19076_v42, %v19076_v42  ;;  %v5457_v8 = vmul.f32 %v19079_v36, %v19079_v36  ;;  %v19088_v10 = vadd.f32 %v5156_v26, %v19022_v43  ;;  %v19091_v55 = vadd.f32 %v5382_v21, %v19025_v59  ;;  %v21712_v26 = vld [vmem:[#allocation108_spill] sm:$0xff] }
 0x731   : > { %13432 = vmatpush1.bf16.msra.mxu0 %v21704_v58  ;;  %13464 = vmatpush1.bf16.msra.mxu1 %v21705_v22  ;;  %v19103_v40 = vadd.f32 %v5380_v46, %v19019_v9  ;;  %v5458_v0 = vmul.f32 %v19098_v32, %v19098_v32 }
 0x732   : > { %v5459_v27 = vmul.f32 %v19088_v10, %v19088_v10  ;;  %v5461_v57 = vmul.f32 %v19091_v55, %v19091_v55  ;;  %5584 = vmatprep.mubr.f32.mxu0 %v5455_v37  ;;  %5729 = vmatprep.mubr.f32.mxu1 %v5457_v8 }
 0x733   : > { %5585 = vmatmul.mubr.f32.gmra.mrb[132].mxu0 %v5454_v11  ;;  %13434 = vmatprep.subr.bf16.mxu0 %v21706_v29  ;;  %v5460_v20 = vmul.f32 %v19103_v40, %v19103_v40 }
 0x734   : > { %5730 = vmatmul.mubr.f32.gmra.mrb[132].mxu1 %v5456_v50  ;;  %v5160_v54 = vpop.f32.mrb[104].mxu0  ;;  %v5386_v30 = vpop.f32.mrb[104].mxu1  ;;  %5589 = vmatprep.mubr.f32.mxu0 %v5459_v27  ;;  %v21713_v27 = vld [vmem:[#allocation107_spill] sm:$0xff] }
 0x735   : > { %v19113_v45 = vadd.f32 %v5160_v54, %v19016_v49  ;;  %v19116_v1 = vadd.f32 %v5386_v30, %v19019_v9  ;;  %5734 = vmatprep.mubr.f32.mxu1 %v5461_v57  ;;  %v5162_v44 = vpop.f32.mrb[105].mxu0  ;;  %v5388_v15 = vpop.f32.mrb[105].mxu1  ;;  %13466 = vmatprep.subr.bf16.mxu1 %v21707_v13 }
 0x736   : > { %v19122_v19 = vadd.f32 %v5162_v44, %v19022_v43  ;;  %v19125_v12 = vadd.f32 %v5388_v15, %v19025_v59  ;;  %v5164_v60 = vpop.f32.mrb[106].mxu0  ;;  %v5390_v53 = vpop.f32.mrb[106].mxu1  ;;  %13436 = vmatpush1.bf16.msra.mxu0 %v21708_v39  ;;  %13468 = vmatpush1.bf16.msra.mxu1 %v21709_v47  ;;  %v21714_v44 = vld [vmem:[#allocation109_spill] sm:$0xff]  ;;  %v21715_v15 = vld [vmem:[#allocation110_spill] sm:$0xff] }
 0x737   : > { %v5166_v6 = vpop.f32.mrb[107].mxu0  ;;  %v5392_v24 = vpop.f32.mrb[107].mxu1  ;;  %5590 = vmatmul.mubr.f32.gmra.mrb[134].mxu0 %v5458_v0  ;;  %v5462_v3 = vmul.f32 %v19113_v45, %v19113_v45  ;;  %v5464_v25 = vmul.f32 %v19116_v1, %v19116_v1  ;;  %v19144_v17 = vadd.f32 %v5164_v60, %v19016_v49  ;;  %13438 = vmatprep.subr.bf16.mxu0 %v21710_v2 }
 0x738   : > { %v5463_v7 = vmul.f32 %v19122_v19, %v19122_v19  ;;  %v5465_v38 = vmul.f32 %v19125_v12, %v19125_v12  ;;  %v19134_v23 = vadd.f32 %v5166_v6, %v19022_v43  ;;  %v19137_v52 = vadd.f32 %v5392_v24, %v19025_v59  ;;  %5735 = vmatmul.mubr.f32.gmra.mrb[134].mxu1 %v5460_v20 }
 0x739   : > { %13470 = vmatprep.subr.bf16.mxu1 %v21711_v18  ;;  %v19149_v46 = vadd.f32 %v5390_v53, %v19019_v9  ;;  %v5466_v8 = vmul.f32 %v19144_v17, %v19144_v17 }
 0x73a   : > { %v5467_v62 = vmul.f32 %v19134_v23, %v19134_v23  ;;  %v5469_v16 = vmul.f32 %v19137_v52, %v19137_v52  ;;  %5594 = vmatprep.mubr.f32.mxu0 %v5463_v7  ;;  %5739 = vmatprep.mubr.f32.mxu1 %v5465_v38  ;;  %v21716_v38 = vld [vmem:[#allocation115_spill] sm:$0xff] }
 0x73b   : > { %5595 = vmatmul.mubr.f32.gmra.mrb[136].mxu0 %v5462_v3  ;;  %13472 = vmatpush1.bf16.msra.mxu1 %v21712_v26  ;;  %v5468_v57 = vmul.f32 %v19149_v46, %v19149_v46  ;;  %v21717_v3 = vld [vmem:[#allocation116_spill] sm:$0xff] }
 0x73c   : > { %5740 = vmatmul.mubr.f32.gmra.mrb[136].mxu1 %v5464_v25  ;;  %v5170_v21 = vpop.f32.mrb[108].mxu0  ;;  %v5396_v37 = vpop.f32.mrb[108].mxu1  ;;  %5599 = vmatprep.mubr.f32.mxu0 %v5467_v62  ;;  %v21718_v62 = vld [vmem:[#allocation117_spill] sm:$0xff] }
 0x73d   : > { %v19159_v11 = vadd.f32 %v5170_v21, %v19016_v49  ;;  %v19162_v50 = vadd.f32 %v5396_v37, %v19019_v9  ;;  %5744 = vmatprep.mubr.f32.mxu1 %v5469_v16  ;;  %v5172_v58 = vpop.f32.mrb[109].mxu0  ;;  %v5398_v22 = vpop.f32.mrb[109].mxu1  ;;  %13440 = vmatpush1.bf16.msra.mxu0 %v21713_v27  ;;  %v21719_v27 = vld [vmem:[#allocation118_spill] sm:$0xff] }
 0x73e   : > { %v19168_v29 = vadd.f32 %v5172_v58, %v19022_v43  ;;  %v19171_v54 = vadd.f32 %v5398_v22, %v19025_v59  ;;  %v5174_v30 = vpop.f32.mrb[110].mxu0  ;;  %v5400_v0 = vpop.f32.mrb[110].mxu1  ;;  %13442 = vmatprep.subr.bf16.mxu0 %v21714_v44  ;;  %13474 = vmatprep.subr.bf16.mxu1 %v21715_v15 }
 0x73f   : > { %v5176_v13 = vpop.f32.mrb[111].mxu0  ;;  %v5402_v20 = vpop.f32.mrb[111].mxu1  ;;  %5600 = vmatmul.mubr.f32.gmra.mrb[138].mxu0 %v5466_v8  ;;  %v5470_v6 = vmul.f32 %v19159_v11, %v19159_v11  ;;  %v5472_v24 = vmul.f32 %v19162_v50, %v19162_v50  ;;  %v19190_v7 = vadd.f32 %v5174_v30, %v19016_v49  ;;  %13476 = vmatpush1.bf16.msra.mxu1 %v21717_v3 }
 0x740   : > { %v5471_v60 = vmul.f32 %v19168_v29, %v19168_v29  ;;  %v5473_v53 = vmul.f32 %v19171_v54, %v19171_v54  ;;  %v19180_v39 = vadd.f32 %v5176_v13, %v19022_v43  ;;  %v19183_v47 = vadd.f32 %v5402_v20, %v19025_v59  ;;  %5745 = vmatmul.mubr.f32.gmra.mrb[138].mxu1 %v5468_v57  ;;  %v21720_v13 = vld [vmem:[#allocation119_spill] sm:$0xff]  ;;  %v21721_v20 = vld [vmem:[#allocation120_spill] sm:$0xff] }
 0x741   : > { %13444 = vmatpush1.bf16.msra.mxu0 %v21716_v38  ;;  %v19195_v25 = vadd.f32 %v5400_v0, %v19019_v9  ;;  %v5474_v21 = vmul.f32 %v19190_v7, %v19190_v7  ;;  %13478 = vmatprep.subr.bf16.mxu1 %v21719_v27  ;;  %v21728_v27 = vld [vmem:[#allocation155_spill] sm:$0xff] }
 0x742   : > { %v5475_v2 = vmul.f32 %v19180_v39, %v19180_v39  ;;  %v5477_v18 = vmul.f32 %v19183_v47, %v19183_v47  ;;  %5604 = vmatprep.mubr.f32.mxu0 %v5471_v60  ;;  %5749 = vmatprep.mubr.f32.mxu1 %v5473_v53 }
 0x743   : > { %5605 = vmatmul.mubr.f32.gmra.mrb[140].mxu0 %v5470_v6  ;;  %13446 = vmatprep.subr.bf16.mxu0 %v21718_v62  ;;  %v5476_v57 = vmul.f32 %v19195_v25, %v19195_v25 }
 0x744   : > { %5750 = vmatmul.mubr.f32.gmra.mrb[140].mxu1 %v5472_v24  ;;  %v5180_v16 = vpop.f32.mrb[112].mxu0  ;;  %v5406_v26 = vpop.f32.mrb[112].mxu1  ;;  %5609 = vmatprep.mubr.f32.mxu0 %v5475_v2 }
 0x745   : > { %v19205_v37 = vadd.f32 %v5180_v16, %v19016_v49  ;;  %v19208_v8 = vadd.f32 %v5406_v26, %v19019_v9  ;;  %5754 = vmatprep.mubr.f32.mxu1 %v5477_v18  ;;  %v5182_v58 = vpop.f32.mrb[113].mxu0  ;;  %v5408_v22 = vpop.f32.mrb[113].mxu1  ;;  %13448 = vmatpush1.bf16.msra.mxu0 %v21720_v13  ;;  %v21725_v16 = vld [vmem:[#allocation152_spill] sm:$0xff]  ;;  %v21726_v26 = vld [vmem:[#allocation153_spill] sm:$0xff] }
 0x746   : > { %v19214_v30 = vadd.f32 %v5182_v58, %v19022_v43  ;;  %v19217_v0 = vadd.f32 %v5408_v22, %v19025_v59  ;;  %v5184_v44 = vpop.f32.mrb[114].mxu0  ;;  %v5410_v15 = vpop.f32.mrb[114].mxu1  ;;  %13480 = vmatpush1.bf16.msra.mxu1 %v21721_v20  ;;  %13450 = vmatprep.subr.bf16.mxu0 %v21725_v16 }
 0x747   : > { %v5186_v60 = vpop.f32.mrb[115].mxu0  ;;  %v5412_v53 = vpop.f32.mrb[115].mxu1  ;;  %5610 = vmatmul.mubr.f32.gmra.mrb[142].mxu0 %v5474_v21  ;;  %v5478_v2 = vmul.f32 %v19205_v37, %v19205_v37  ;;  %v5480_v18 = vmul.f32 %v19208_v8, %v19208_v8  ;;  %v19236_v62 = vadd.f32 %v5184_v44, %v19016_v49  ;;  %13482 = vmatprep.subr.bf16.mxu1 %v21726_v26 }
 0x748   : > { %v5479_v6 = vmul.f32 %v19214_v30, %v19214_v30  ;;  %v5481_v24 = vmul.f32 %v19217_v0, %v19217_v0  ;;  %v19226_v38 = vadd.f32 %v5186_v60, %v19022_v43  ;;  %v19229_v3 = vadd.f32 %v5412_v53, %v19025_v59  ;;  %5755 = vmatmul.mubr.f32.gmra.mrb[142].mxu1 %v5476_v57 }
 0x749   : > { %21724 = vst [vmem:[#allocation70_spill] sm:$0xff] %v19236_v62  ;;  %v19241_v21 = vadd.f32 %v5410_v15, %v19019_v9  ;;  %v5482_v13 = vmul.f32 %v19236_v62, %v19236_v62 }
 0x74a   : > { %21722 = vst [vmem:[#allocation69_spill] sm:$0xff] %v19226_v38  ;;  %21723 = vst [vmem:[#allocation74_spill] sm:$0xff] %v19229_v3  ;;  %v5483_v58 = vmul.f32 %v19226_v38, %v19226_v38  ;;  %v5485_v22 = vmul.f32 %v19229_v3, %v19229_v3  ;;  %5614 = vmatprep.mubr.f32.mxu0 %v5479_v6  ;;  %5759 = vmatprep.mubr.f32.mxu1 %v5481_v24  ;;  %v21731_v6 = vld [vmem:[#allocation154_spill] sm:$0xff]  ;;  %v21740_v3 = vld [vmem:[#allocation159_spill] sm:$0xff] }
 0x74b   : > { %21727 = vst [vmem:[#allocation96_spill] sm:$0xff] %v19241_v21  ;;  %5615 = vmatmul.mubr.f32.gmra.mrb[144].mxu0 %v5478_v2  ;;  %13484 = vmatpush1.bf16.msra.mxu1 %v21728_v27  ;;  %v5484_v24 = vmul.f32 %v19241_v21, %v19241_v21  ;;  %v21735_v27 = vld [vmem:[#allocation157_spill] sm:$0xff] }
 0x74c   : > { %5760 = vmatmul.mubr.f32.gmra.mrb[144].mxu1 %v5480_v18  ;;  %v5190_v57 = vpop.f32.mrb[116].mxu0  ;;  %v5416_v44 = vpop.f32.mrb[116].mxu1  ;;  %5619 = vmatprep.mubr.f32.mxu0 %v5483_v58  ;;  %v21734_v58 = vld [vmem:[#allocation156_spill] sm:$0xff] }
 0x74d   : > { %v19251_v15 = vadd.f32 %v5190_v57, %v19016_v49  ;;  %v19254_v20 = vadd.f32 %v5416_v44, %v19019_v9  ;;  %5764 = vmatprep.mubr.f32.mxu1 %v5485_v22  ;;  %v5192_v60 = vpop.f32.mrb[117].mxu0  ;;  %v5418_v53 = vpop.f32.mrb[117].mxu1  ;;  %13452 = vmatpush1.bf16.msra.mxu0 %v21731_v6 }
 0x74e   : > { %v19260_v2 = vadd.f32 %v5192_v60, %v19022_v43  ;;  %v19263_v18 = vadd.f32 %v5418_v53, %v19025_v59  ;;  %v5194_v16 = vpop.f32.mrb[118].mxu0  ;;  %v5420_v26 = vpop.f32.mrb[118].mxu1  ;;  %13454 = vmatprep.subr.bf16.mxu0 %v21734_v58  ;;  %13486 = vmatprep.subr.bf16.mxu1 %v21735_v27 }
 0x74f   : > { %21729 = vst [vmem:[#allocation98_spill] sm:$0xff] %v19251_v15  ;;  %21730 = vst [vmem:[#allocation95_spill] sm:$0xff] %v19254_v20  ;;  %v5196_v22 = vpop.f32.mrb[119].mxu0  ;;  %v5422_v57 = vpop.f32.mrb[119].mxu1  ;;  %5620 = vmatmul.mubr.f32.gmra.mrb[146].mxu0 %v5482_v13  ;;  %v5486_v58 = vmul.f32 %v19251_v15, %v19251_v15  ;;  %v5488_v27 = vmul.f32 %v19254_v20, %v19254_v20  ;;  %v19282_v13 = vadd.f32 %v5194_v16, %v19016_v49 }
 0x750   : > { %21732 = vst [vmem:[#allocation97_spill] sm:$0xff] %v19260_v2  ;;  %21733 = vst [vmem:[#allocation72_spill] sm:$0xff] %v19263_v18  ;;  %v5487_v44 = vmul.f32 %v19260_v2, %v19260_v2  ;;  %v5489_v6 = vmul.f32 %v19263_v18, %v19263_v18  ;;  %v19272_v60 = vadd.f32 %v5196_v22, %v19022_v43  ;;  %5765 = vmatmul.mubr.f32.gmra.mrb[146].mxu1 %v5484_v24  ;;  %v21739_v2 = vld [vmem:[#allocation158_spill] sm:$0xff] }
 0x751   : > { %v19275_v53 = vadd.f32 %v5422_v57, %v19025_v59  ;;  %21738 = vst [vmem:[#allocation73_spill] sm:$0xff] %v19282_v13  ;;  %13456 = vmatpush1.bf16.msra.mxu0 %v21739_v2  ;;  %13488 = vmatpush1.bf16.msra.mxu1 %v21740_v3  ;;  %v19287_v22 = vadd.f32 %v5420_v26, %v19019_v9 }
 0x752   : > { %21736 = vst [vmem:[#allocation75_spill] sm:$0xff] %v19272_v60  ;;  %v5491_v57 = vmul.f32 %v19272_v60, %v19272_v60  ;;  %5624 = vmatprep.mubr.f32.mxu0 %v5487_v44  ;;  %5769 = vmatprep.mubr.f32.mxu1 %v5489_v6  ;;  %v5490_v2 = vmul.f32 %v19282_v13, %v19282_v13 }
 0x753   : > { %21737 = vst [vmem:[#allocation71_spill] sm:$0xff] %v19275_v53  ;;  %21741 = vst [vmem:[#allocation80_spill] sm:$0xff] %v19287_v22  ;;  %v5493_v24 = vmul.f32 %v19275_v53, %v19275_v53  ;;  %5625 = vmatmul.mubr.f32.gmra.mrb[148].mxu0 %v5486_v58  ;;  %v5492_v44 = vmul.f32 %v19287_v22, %v19287_v22 }
 0x754   : > { %5770 = vmatmul.mubr.f32.gmra.mrb[148].mxu1 %v5488_v27  ;;  %v5200_v18 = vpop.f32.mrb[120].mxu0  ;;  %v5426_v16 = vpop.f32.mrb[120].mxu1  ;;  %5629 = vmatprep.mubr.f32.mxu0 %v5491_v57 }
 0x755   : > { %v19296_v3 = vadd.f32 %v5200_v18, %v19016_v49  ;;  %v19299_v26 = vadd.f32 %v5426_v16, %v19019_v9  ;;  %5774 = vmatprep.mubr.f32.mxu1 %v5493_v24  ;;  %v5202_v60 = vpop.f32.mrb[121].mxu0  ;;  %v5428_v20 = vpop.f32.mrb[121].mxu1 }
 0x756   : > { %v19304_v6 = vadd.f32 %v5202_v60, %v19022_v43  ;;  %v19307_v58 = vadd.f32 %v5428_v20, %v19025_v59  ;;  %v5204_v27 = vpop.f32.mrb[122].mxu0  ;;  %v5430_v57 = vpop.f32.mrb[122].mxu1 }
 0x757   : > { %21742 = vst [vmem:[#allocation78_spill] sm:$0xff] %v19296_v3  ;;  %21743 = vst [vmem:[#allocation81_spill] sm:$0xff] %v19299_v26  ;;  %v5206_v53 = vpop.f32.mrb[123].mxu0  ;;  %v5432_v18 = vpop.f32.mrb[123].mxu1  ;;  %5630 = vmatmul.mubr.f32.gmra.mrb[150].mxu0 %v5490_v2  ;;  %v5494_v20 = vmul.f32 %v19296_v3, %v19296_v3  ;;  %v5496_v22 = vmul.f32 %v19299_v26, %v19299_v26  ;;  %v19324_v2 = vadd.f32 %v5204_v27, %v19016_v49 }
 0x758   : > { %21744 = vst [vmem:[#allocation84_spill] sm:$0xff] %v19304_v6  ;;  %21745 = vst [vmem:[#allocation86_spill] sm:$0xff] %v19307_v58  ;;  %v5495_v16 = vmul.f32 %v19304_v6, %v19304_v6  ;;  %v5497_v24 = vmul.f32 %v19307_v58, %v19307_v58  ;;  %v19314_v13 = vadd.f32 %v5206_v53, %v19022_v43  ;;  %5775 = vmatmul.mubr.f32.gmra.mrb[150].mxu1 %v5492_v44 }
 0x759   : > { %v19317_v60 = vadd.f32 %v5432_v18, %v19025_v59  ;;  %21748 = vst [vmem:[#allocation99_spill] sm:$0xff] %v19324_v2  ;;  %v19327_v6 = vadd.f32 %v5430_v57, %v19019_v9  ;;  %v5498_v27 = vmul.f32 %v19324_v2, %v19324_v2 }
 0x75a   : > { %21746 = vst [vmem:[#allocation88_spill] sm:$0xff] %v19314_v13  ;;  %v5499_v53 = vmul.f32 %v19314_v13, %v19314_v13  ;;  %5634 = vmatprep.mubr.f32.mxu0 %v5495_v16  ;;  %5779 = vmatprep.mubr.f32.mxu1 %v5497_v24 }
 0x75b   : > { %21747 = vst [vmem:[#allocation90_spill] sm:$0xff] %v19317_v60  ;;  %21749 = vst [vmem:[#allocation100_spill] sm:$0xff] %v19327_v6  ;;  %v5501_v18 = vmul.f32 %v19317_v60, %v19317_v60  ;;  %5635 = vmatmul.mubr.f32.gmra.mrb[152].mxu0 %v5494_v20  ;;  %v5500_v16 = vmul.f32 %v19327_v6, %v19327_v6 }
 0x75c   : > { %5780 = vmatmul.mubr.f32.gmra.mrb[152].mxu1 %v5496_v22  ;;  %v5210_v44 = vpop.f32.mrb[124].mxu0  ;;  %v5436_v58 = vpop.f32.mrb[124].mxu1  ;;  %5639 = vmatprep.mubr.f32.mxu0 %v5499_v53 }
 0x75d   : > { %v19336_v26 = vadd.f32 %v5210_v44, %v19016_v49  ;;  %v19339_v57 = vadd.f32 %v5436_v58, %v19019_v9  ;;  %5784 = vmatprep.mubr.f32.mxu1 %v5501_v18  ;;  %v5212_v13 = vpop.f32.mrb[125].mxu0  ;;  %v5438_v3 = vpop.f32.mrb[125].mxu1 }
 0x75e   : > { %v19344_v22 = vadd.f32 %v5212_v13, %v19022_v43  ;;  %v19347_v24 = vadd.f32 %v5438_v3, %v19025_v59  ;;  %v5214_v20 = vpop.f32.mrb[126].mxu0  ;;  %v5440_v53 = vpop.f32.mrb[126].mxu1 }
 0x75f   : > { %21750 = vst [vmem:[#allocation91_spill] sm:$0xff] %v19336_v26  ;;  %21751 = vst [vmem:[#allocation93_spill] sm:$0xff] %v19339_v57  ;;  %v5216_v60 = vpop.f32.mrb[127].mxu0  ;;  %v5442_v44 = vpop.f32.mrb[127].mxu1  ;;  %5640 = vmatmul.mubr.f32.gmra.mrb[154].mxu0 %v5498_v27  ;;  %v5502_v3 = vmul.f32 %v19336_v26, %v19336_v26  ;;  %v5504_v6 = vmul.f32 %v19339_v57, %v19339_v57  ;;  %v19364_v27 = vadd.f32 %v5214_v20, %v19016_v49  ;;  %v14749_v20 = vld [vmem:[#allocation16 + $0xc] ss:$16 sps:$4 sm:$0xff]  }
 0x760   : > { %21752 = vst [vmem:[#allocation103_spill] sm:$0xff] %v19344_v22  ;;  %21753 = vst [vmem:[#allocation104_spill] sm:$0xff] %v19347_v24  ;;  %v5503_v58 = vmul.f32 %v19344_v22, %v19344_v22  ;;  %v5505_v18 = vmul.f32 %v19347_v24, %v19347_v24  ;;  %v19354_v2 = vadd.f32 %v5216_v60, %v19022_v43  ;;  %5785 = vmatmul.mubr.f32.gmra.mrb[154].mxu1 %v5500_v16  ;;  %v14746_v16 = vld [vmem:[#allocation16 + $0x4] ss:$16 sps:$4 sm:$0xff]  }
 0x761   : > { %v19357_v13 = vadd.f32 %v5442_v44, %v19025_v59  ;;  %21756 = vst [vmem:[#allocation113_spill] sm:$0xff] %v19364_v27  ;;  %v19367_v22 = vadd.f32 %v5440_v53, %v19019_v9  ;;  %v5506_v60 = vmul.f32 %v19364_v27, %v19364_v27  ;;  %v19377_v9 = vld [vmem:[#allocation3] sm:$0xff]  ;;  %7333 = vmatprep.subr.bf16.mxu0 %v14746_v16 }
 0x762   : > { %21754 = vst [vmem:[#allocation105_spill] sm:$0xff] %v19354_v2  ;;  %v5507_v43 = vmul.f32 %v19354_v2, %v19354_v2  ;;  %5644 = vmatprep.mubr.f32.mxu0 %v5503_v58  ;;  %5789 = vmatprep.mubr.f32.mxu1 %v5505_v18 }
 0x763   : > { %21755 = vst [vmem:[#allocation106_spill] sm:$0xff] %v19357_v13  ;;  %21757 = vst [vmem:[#allocation114_spill] sm:$0xff] %v19367_v22  ;;  %v5509_v59 = vmul.f32 %v19357_v13, %v19357_v13  ;;  %5645 = vmatmul.mubr.f32.gmra.mrb[156].mxu0 %v5502_v3  ;;  %v5508_v49 = vmul.f32 %v19367_v22, %v19367_v22  ;;  %7559 = vmatprep.subr.bf16.mxu1 %v14749_v20 }
 0x764   : > { %5790 = vmatmul.mubr.f32.gmra.mrb[156].mxu1 %v5504_v6  ;;  %5649 = vmatprep.mubr.f32.mxu0 %v5507_v43 }
 0x765   : > { %5794 = vmatprep.mubr.f32.mxu1 %v5509_v59 }
 0x767   : > { %5650 = vmatmul.mubr.f32.gmra.mrb[158].mxu0 %v5506_v60 }
 0x768   : > { %5795 = vmatmul.mubr.f32.gmra.mrb[158].mxu1 %v5508_v49  ;;  %5912 = vmatprep.mubr.f32.mxu0 %v19377_v9 }
 0x769   : > { %6073 = vmatprep.mubr.f32.mxu1 %v19377_v9 }
 0x7fe   : > { %v13105_v6 = vpop.f32.mrb[128].mxu0  ;;  %v13185_v53 = vpop.f32.mrb[128].mxu1 }
 0x7ff   : > { %v13106_v44 = vpop.f32.mrb[129].mxu0  ;;  %v13186_v58 = vpop.f32.mrb[129].mxu1 }
 0x800   : > { %v13107_v18 = vadd.f32 %v13106_v44, %v13105_v6  ;;  %v13187_v3 = vadd.f32 %v13186_v58, %v13185_v53 }
 0x802   : > { %v5722_v43 = vadd.f32 %v13187_v3, %v13107_v18  ;;  %v13108_v59 = vpop.f32.mrb[130].mxu0  ;;  %v13188_v60 = vpop.f32.mrb[130].mxu1 }
 0x803   : > { %v13109_v49 = vpop.f32.mrb[131].mxu0  ;;  %v13189_v22 = vpop.f32.mrb[131].mxu1 }
 0x804   : > { %v5800_v13 = vmul.f32 0.0078125, %v5722_v43  ;;  %v13110_v2 = vadd.f32 %v13109_v49, %v13108_v59  ;;  %v13190_v27 = vadd.f32 %v13189_v22, %v13188_v60 }
 0x806   : > { %v5816_v24 = vadd.f32 1e-06, %v5800_v13  ;;  %v13111_v57 = vpop.f32.mrb[132].mxu0  ;;  %v5727_v26 = vadd.f32 %v13190_v27, %v13110_v2 }
 0x807   : > { %v13191_v15 = vpop.f32.mrb[132].mxu1  ;;  %v13112_v16 = vpop.f32.mrb[133].mxu0 }
 0x808   : > { %15000 = vrsqrt.f32 %v5816_v24  ;;  %v13113_v20 = vadd.f32 %v13112_v16, %v13111_v57  ;;  %v13192_v38 = vpop.f32.mrb[133].mxu1  ;;  %v5801_v21 = vmul.f32 0.0078125, %v5727_v26  ;;  %v14744_v16 = vld [vmem:[#allocation16] ss:$16 sps:$4 sm:$0xff]   ;;  %v14747_v26 = vld [vmem:[#allocation16 + $0x8] ss:$16 sps:$4 sm:$0xff]  }
 0x809   : > { %v13193_v62 = vadd.f32 %v13192_v38, %v13191_v15 }
 0x80a   : > { %v13114_v6 = vpop.f32.mrb[134].mxu0  ;;  %v5817_v53 = vadd.f32 1e-06, %v5801_v21 }
 0x80b   : > { %v5732_v44 = vadd.f32 %v13193_v62, %v13113_v20  ;;  %v13194_v58 = vpop.f32.mrb[134].mxu1  ;;  %v13115_v18 = vpop.f32.mrb[135].mxu0  ;;  %v14752_v20 = vld [vmem:[#allocation16 + $0x24] ss:$16 sps:$4 sm:$0xff]  }
 0x80c   : > { %v13116_v3 = vadd.f32 %v13115_v18, %v13114_v6  ;;  %v13195_v43 = vpop.f32.mrb[135].mxu1  ;;  %15002 = vrsqrt.f32 %v5817_v53  ;;  %v14755_v6 = vld [vmem:[#allocation16 + $0x2c] ss:$16 sps:$4 sm:$0xff]  }
 0x80d   : > { %v5802_v59 = vmul.f32 0.0078125, %v5732_v44  ;;  %v13196_v22 = vadd.f32 %v13195_v43, %v13194_v58 }
 0x80e   : > { %v13117_v13 = vpop.f32.mrb[136].mxu0 }
 0x80f   : > { %v5818_v60 = vadd.f32 1e-06, %v5802_v59  ;;  %v5737_v2 = vadd.f32 %v13196_v22, %v13116_v3  ;;  %v13197_v27 = vpop.f32.mrb[136].mxu1  ;;  %v13118_v49 = vpop.f32.mrb[137].mxu0 }
 0x810   : > { %v13119_v24 = vadd.f32 %v13118_v49, %v13117_v13  ;;  %v13198_v57 = vpop.f32.mrb[137].mxu1  ;;  %v14750_v13 = vld [vmem:[#allocation16 + $0x20] ss:$16 sps:$4 sm:$0xff]  }
 0x811   : > { %15004 = vrsqrt.f32 %v5818_v60  ;;  %v5803_v38 = vmul.f32 0.0078125, %v5737_v2  ;;  %v13199_v21 = vadd.f32 %v13198_v57, %v13197_v27  ;;  %v14753_v60 = vld [vmem:[#allocation16 + $0x28] ss:$16 sps:$4 sm:$0xff]   ;;  %v14758_v27 = vld [vmem:[#allocation16 + $0x44] ss:$16 sps:$4 sm:$0xff]  }
 0x812   : > { %v15001_v62 = vpop.eup %15000  ;;  %v13120_v15 = vpop.f32.mrb[138].mxu0 }
 0x813   : > { %v5819_v18 = vadd.f32 1e-06, %v5803_v38  ;;  %v5742_v53 = vadd.f32 %v13199_v21, %v13119_v24  ;;  %v13200_v44 = vpop.f32.mrb[138].mxu1  ;;  %v13121_v58 = vpop.f32.mrb[139].mxu0  ;;  %5913 = vmatmul.mubr.f32.vlgmr.msra.gmra.mrb[160].mxu0 %v15001_v62  ;;  %6074 = vmatmul.mubr.f32.vlgmr.msra.gmra.mrb[160].mxu1 %v15001_v62 }
 0x814   : > { %v13122_v3 = vadd.f32 %v13121_v58, %v13120_v15  ;;  %v13201_v43 = vpop.f32.mrb[139].mxu1  ;;  %7334 = vmatpush1.bf16.msra.mxu0 %v14744_v16  ;;  %7560 = vmatpush1.bf16.msra.mxu1 %v14747_v26  ;;  %v14761_v16 = vld [vmem:[#allocation16 + $0x4c] ss:$16 sps:$4 sm:$0xff]  }
 0x815   : > { %15006 = vrsqrt.f32 %v5819_v18  ;;  %v5804_v59 = vmul.f32 0.0078125, %v5742_v53  ;;  %v13202_v22 = vadd.f32 %v13201_v43, %v13200_v44  ;;  %5918 = vmatprep.mubr.f32.mxu0 %v19377_v9  ;;  %6079 = vmatprep.mubr.f32.mxu1 %v19377_v9  ;;  %v14756_v53 = vld [vmem:[#allocation16 + $0x40] ss:$16 sps:$4 sm:$0xff]   ;;  %v14759_v44 = vld [vmem:[#allocation16 + $0x48] ss:$16 sps:$4 sm:$0xff]  }
 0x816   : > { %v13123_v2 = vpop.f32.mrb[140].mxu0  ;;  %7335 = vmatprep.subr.bf16.mxu0 %v14752_v20  ;;  %7561 = vmatprep.subr.bf16.mxu1 %v14755_v6  ;;  %v15003_v49 = vpop.eup %15002  ;;  %v14764_v6 = vld [vmem:[#allocation16 + $0x64] ss:$16 sps:$4 sm:$0xff]  }
 0x817   : > { %v5820_v24 = vadd.f32 1e-06, %v5804_v59  ;;  %v5747_v57 = vadd.f32 %v13202_v22, %v13122_v3  ;;  %v13203_v38 = vpop.f32.mrb[140].mxu1  ;;  %v13124_v21 = vpop.f32.mrb[141].mxu0  ;;  %5919 = vmatmul.mubr.f32.gmra.mrb[162].mxu0 %v15003_v49  ;;  %6080 = vmatmul.mubr.f32.gmra.mrb[162].mxu1 %v15003_v49 }
 0x818   : > { %v13125_v26 = vadd.f32 %v13124_v21, %v13123_v2  ;;  %v13204_v62 = vpop.f32.mrb[141].mxu1  ;;  %7336 = vmatpush1.bf16.msra.mxu0 %v14750_v13  ;;  %7562 = vmatpush1.bf16.msra.mxu1 %v14753_v60  ;;  %v14767_v2 = vld [vmem:[#allocation16 + $0x6c] ss:$16 sps:$4 sm:$0xff]  }
 0x819   : > { %15008 = vrsqrt.f32 %v5820_v24  ;;  %v5805_v15 = vmul.f32 0.0078125, %v5747_v57  ;;  %v13205_v18 = vadd.f32 %v13204_v62, %v13203_v38  ;;  %5924 = vmatprep.mubr.f32.mxu0 %v19377_v9  ;;  %6085 = vmatprep.mubr.f32.mxu1 %v19377_v9  ;;  %v14762_v57 = vld [vmem:[#allocation16 + $0x60] ss:$16 sps:$4 sm:$0xff]   ;;  %v14765_v38 = vld [vmem:[#allocation16 + $0x68] ss:$16 sps:$4 sm:$0xff]  }
 0x81a   : > { %v13126_v20 = vpop.f32.mrb[142].mxu0  ;;  %7337 = vmatprep.subr.bf16.mxu0 %v14758_v27  ;;  %7563 = vmatprep.subr.bf16.mxu1 %v14761_v16  ;;  %v14770_v27 = vld [vmem:[#allocation16 + $0x84] ss:$16 sps:$4 sm:$0xff]  }
 0x81b   : > { %v15005_v58 = vpop.eup %15004  ;;  %v5821_v3 = vadd.f32 1e-06, %v5805_v15  ;;  %v5752_v43 = vadd.f32 %v13205_v18, %v13125_v26  ;;  %v13206_v59 = vpop.f32.mrb[142].mxu1 }
 0x81c   : > { %v13127_v22 = vpop.f32.mrb[143].mxu0  ;;  %v13207_v24 = vpop.f32.mrb[143].mxu1  ;;  %5925 = vmatmul.mubr.f32.gmra.mrb[164].mxu0 %v15005_v58  ;;  %6086 = vmatmul.mubr.f32.gmra.mrb[164].mxu1 %v15005_v58 }
 0x81d   : > { %v13128_v49 = vadd.f32 %v13127_v22, %v13126_v20  ;;  %15010 = vrsqrt.f32 %v5821_v3  ;;  %v5806_v13 = vmul.f32 0.0078125, %v5752_v43  ;;  %v13208_v60 = vadd.f32 %v13207_v24, %v13206_v59  ;;  %7338 = vmatpush1.bf16.msra.mxu0 %v14756_v53  ;;  %7564 = vmatpush1.bf16.msra.mxu1 %v14759_v44  ;;  %v14773_v20 = vld [vmem:[#allocation16 + $0x8c] ss:$16 sps:$4 sm:$0xff]   ;;  %v14768_v43 = vld [vmem:[#allocation16 + $0x80] ss:$16 sps:$4 sm:$0xff]  }
 0x81e   : > { %v13129_v21 = vpop.f32.mrb[144].mxu0  ;;  %5930 = vmatprep.mubr.f32.mxu0 %v19377_v9  ;;  %6091 = vmatprep.mubr.f32.mxu1 %v19377_v9  ;;  %v14771_v59 = vld [vmem:[#allocation16 + $0x88] ss:$16 sps:$4 sm:$0xff]  }
 0x81f   : > { %v15007_v16 = vpop.eup %15006  ;;  %v5822_v26 = vadd.f32 1e-06, %v5806_v13  ;;  %v5757_v62 = vadd.f32 %v13208_v60, %v13128_v49  ;;  %v13209_v15 = vpop.f32.mrb[144].mxu1  ;;  %7339 = vmatprep.subr.bf16.mxu0 %v14764_v6  ;;  %7565 = vmatprep.subr.bf16.mxu1 %v14767_v2  ;;  %v14776_v6 = vld [vmem:[#allocation16 + $0xa4] ss:$16 sps:$4 sm:$0xff]  }
 0x820   : > { %v13130_v18 = vpop.f32.mrb[145].mxu0  ;;  %v13210_v3 = vpop.f32.mrb[145].mxu1  ;;  %5931 = vmatmul.mubr.f32.gmra.mrb[166].mxu0 %v15007_v16  ;;  %6092 = vmatmul.mubr.f32.gmra.mrb[166].mxu1 %v15007_v16 }
 0x821   : > { %v13131_v58 = vadd.f32 %v13130_v18, %v13129_v21  ;;  %15012 = vrsqrt.f32 %v5822_v26  ;;  %v5807_v53 = vmul.f32 0.0078125, %v5757_v62  ;;  %v13211_v44 = vadd.f32 %v13210_v3, %v13209_v15  ;;  %7340 = vmatpush1.bf16.msra.mxu0 %v14762_v57  ;;  %7566 = vmatpush1.bf16.msra.mxu1 %v14765_v38  ;;  %v14779_v21 = vld [vmem:[#allocation16 + $0xac] ss:$16 sps:$4 sm:$0xff]   ;;  %v14774_v62 = vld [vmem:[#allocation16 + $0xa0] ss:$16 sps:$4 sm:$0xff]  }
 0x822   : > { %v13132_v22 = vpop.f32.mrb[146].mxu0  ;;  %5936 = vmatprep.mubr.f32.mxu0 %v19377_v9  ;;  %6097 = vmatprep.mubr.f32.mxu1 %v19377_v9  ;;  %v14777_v15 = vld [vmem:[#allocation16 + $0xa8] ss:$16 sps:$4 sm:$0xff]  }
 0x823   : > { %v15009_v2 = vpop.eup %15008  ;;  %v5823_v49 = vadd.f32 1e-06, %v5807_v53  ;;  %v5762_v24 = vadd.f32 %v13211_v44, %v13131_v58  ;;  %v13212_v13 = vpop.f32.mrb[146].mxu1  ;;  %7341 = vmatprep.subr.bf16.mxu0 %v14770_v27  ;;  %7567 = vmatprep.subr.bf16.mxu1 %v14773_v20  ;;  %v14782_v27 = vld [vmem:[#allocation16 + $0xc4] ss:$16 sps:$4 sm:$0xff]  }
 0x824   : > { %v13133_v60 = vpop.f32.mrb[147].mxu0  ;;  %v13213_v26 = vpop.f32.mrb[147].mxu1  ;;  %5937 = vmatmul.mubr.f32.gmra.mrb[168].mxu0 %v15009_v2  ;;  %6098 = vmatmul.mubr.f32.gmra.mrb[168].mxu1 %v15009_v2 }
 0x825   : > { %v13134_v16 = vadd.f32 %v13133_v60, %v13132_v22  ;;  %15014 = vrsqrt.f32 %v5823_v49  ;;  %v5808_v57 = vmul.f32 0.0078125, %v5762_v24  ;;  %v13214_v38 = vadd.f32 %v13213_v26, %v13212_v13  ;;  %7342 = vmatpush1.bf16.msra.mxu0 %v14768_v43  ;;  %7568 = vmatpush1.bf16.msra.mxu1 %v14771_v59  ;;  %v14785_v22 = vld [vmem:[#allocation16 + $0xcc] ss:$16 sps:$4 sm:$0xff]   ;;  %v14780_v24 = vld [vmem:[#allocation16 + $0xc0] ss:$16 sps:$4 sm:$0xff]  }
 0x826   : > { %v13135_v18 = vpop.f32.mrb[148].mxu0  ;;  %5942 = vmatprep.mubr.f32.mxu0 %v19377_v9  ;;  %6103 = vmatprep.mubr.f32.mxu1 %v19377_v9  ;;  %v14783_v13 = vld [vmem:[#allocation16 + $0xc8] ss:$16 sps:$4 sm:$0xff]  }
 0x827   : > { %v15011_v20 = vpop.eup %15010  ;;  %v5824_v58 = vadd.f32 1e-06, %v5808_v57  ;;  %v5767_v3 = vadd.f32 %v13214_v38, %v13134_v16  ;;  %v13215_v53 = vpop.f32.mrb[148].mxu1  ;;  %7343 = vmatprep.subr.bf16.mxu0 %v14776_v6  ;;  %7569 = vmatprep.subr.bf16.mxu1 %v14779_v21  ;;  %v14788_v6 = vld [vmem:[#allocation16 + $0xe4] ss:$16 sps:$4 sm:$0xff]  }
 0x828   : > { %v13136_v44 = vpop.f32.mrb[149].mxu0  ;;  %v13216_v49 = vpop.f32.mrb[149].mxu1  ;;  %5943 = vmatmul.mubr.f32.gmra.mrb[170].mxu0 %v15011_v20  ;;  %6104 = vmatmul.mubr.f32.gmra.mrb[170].mxu1 %v15011_v20 }
 0x829   : > { %v13137_v2 = vadd.f32 %v13136_v44, %v13135_v18  ;;  %15016 = vrsqrt.f32 %v5824_v58  ;;  %v5809_v43 = vmul.f32 0.0078125, %v5767_v3  ;;  %v13217_v59 = vadd.f32 %v13216_v49, %v13215_v53  ;;  %7344 = vmatpush1.bf16.msra.mxu0 %v14774_v62  ;;  %7570 = vmatpush1.bf16.msra.mxu1 %v14777_v15  ;;  %v14791_v18 = vld [vmem:[#allocation16 + $0xec] ss:$16 sps:$4 sm:$0xff]   ;;  %v14786_v3 = vld [vmem:[#allocation16 + $0xe0] ss:$16 sps:$4 sm:$0xff]  }
 0x82a   : > { %v13138_v60 = vpop.f32.mrb[150].mxu0  ;;  %5948 = vmatprep.mubr.f32.mxu0 %v19377_v9  ;;  %6109 = vmatprep.mubr.f32.mxu1 %v19377_v9  ;;  %v14789_v53 = vld [vmem:[#allocation16 + $0xe8] ss:$16 sps:$4 sm:$0xff]  }
 0x82b   : > { %v15013_v21 = vpop.eup %15012  ;;  %v5825_v16 = vadd.f32 1e-06, %v5809_v43  ;;  %v5772_v26 = vadd.f32 %v13217_v59, %v13137_v2  ;;  %v13218_v57 = vpop.f32.mrb[150].mxu1  ;;  %7345 = vmatprep.subr.bf16.mxu0 %v14782_v27  ;;  %7571 = vmatprep.subr.bf16.mxu1 %v14785_v22  ;;  %v14794_v27 = vld [vmem:[#allocation16 + $0x104] ss:$16 sps:$4 sm:$0xff]  }
 0x82c   : > { %v13139_v38 = vpop.f32.mrb[151].mxu0  ;;  %v13219_v58 = vpop.f32.mrb[151].mxu1  ;;  %5949 = vmatmul.mubr.f32.gmra.mrb[172].mxu0 %v15013_v21  ;;  %6110 = vmatmul.mubr.f32.gmra.mrb[172].mxu1 %v15013_v21 }
 0x82d   : > { %v13140_v20 = vadd.f32 %v13139_v38, %v13138_v60  ;;  %15018 = vrsqrt.f32 %v5825_v16  ;;  %v5810_v62 = vmul.f32 0.0078125, %v5772_v26  ;;  %v13220_v15 = vadd.f32 %v13219_v58, %v13218_v57  ;;  %7346 = vmatpush1.bf16.msra.mxu0 %v14780_v24  ;;  %7572 = vmatpush1.bf16.msra.mxu1 %v14783_v13  ;;  %v14797_v60 = vld [vmem:[#allocation16 + $0x10c] ss:$16 sps:$4 sm:$0xff]   ;;  %v14792_v26 = vld [vmem:[#allocation16 + $0x100] ss:$16 sps:$4 sm:$0xff]  }
 0x82e   : > { %v13141_v44 = vpop.f32.mrb[152].mxu0  ;;  %5954 = vmatprep.mubr.f32.mxu0 %v19377_v9  ;;  %6115 = vmatprep.mubr.f32.mxu1 %v19377_v9  ;;  %v14795_v57 = vld [vmem:[#allocation16 + $0x108] ss:$16 sps:$4 sm:$0xff]  }
 0x82f   : > { %v15015_v22 = vpop.eup %15014  ;;  %v5826_v2 = vadd.f32 1e-06, %v5810_v62  ;;  %v5777_v49 = vadd.f32 %v13220_v15, %v13140_v20  ;;  %v13221_v43 = vpop.f32.mrb[152].mxu1  ;;  %7347 = vmatprep.subr.bf16.mxu0 %v14788_v6  ;;  %7573 = vmatprep.subr.bf16.mxu1 %v14791_v18  ;;  %v14800_v6 = vld [vmem:[#allocation16 + $0x124] ss:$16 sps:$4 sm:$0xff]  }
 0x830   : > { %v13142_v59 = vpop.f32.mrb[153].mxu0  ;;  %v13222_v16 = vpop.f32.mrb[153].mxu1  ;;  %5955 = vmatmul.mubr.f32.gmra.mrb[174].mxu0 %v15015_v22  ;;  %6116 = vmatmul.mubr.f32.gmra.mrb[174].mxu1 %v15015_v22 }
 0x831   : > { %v13143_v21 = vadd.f32 %v13142_v59, %v13141_v44  ;;  %15020 = vrsqrt.f32 %v5826_v2  ;;  %v5811_v24 = vmul.f32 0.0078125, %v5777_v49  ;;  %v13223_v13 = vadd.f32 %v13222_v16, %v13221_v43  ;;  %7348 = vmatpush1.bf16.msra.mxu0 %v14786_v3  ;;  %7574 = vmatpush1.bf16.msra.mxu1 %v14789_v53  ;;  %v14803_v44 = vld [vmem:[#allocation16 + $0x12c] ss:$16 sps:$4 sm:$0xff]   ;;  %v14798_v49 = vld [vmem:[#allocation16 + $0x120] ss:$16 sps:$4 sm:$0xff]  }
 0x832   : > { %v13144_v38 = vpop.f32.mrb[154].mxu0  ;;  %5960 = vmatprep.mubr.f32.mxu0 %v19377_v9  ;;  %6121 = vmatprep.mubr.f32.mxu1 %v19377_v9  ;;  %v14801_v43 = vld [vmem:[#allocation16 + $0x128] ss:$16 sps:$4 sm:$0xff]  }
 0x833   : > { %v15017_v18 = vpop.eup %15016  ;;  %v5827_v20 = vadd.f32 1e-06, %v5811_v24  ;;  %v5782_v58 = vadd.f32 %v13223_v13, %v13143_v21  ;;  %v13224_v62 = vpop.f32.mrb[154].mxu1  ;;  %7349 = vmatprep.subr.bf16.mxu0 %v14794_v27  ;;  %7575 = vmatprep.subr.bf16.mxu1 %v14797_v60  ;;  %v14806_v27 = vld [vmem:[#allocation16 + $0x144] ss:$16 sps:$4 sm:$0xff]  }
 0x834   : > { %v13145_v15 = vpop.f32.mrb[155].mxu0  ;;  %v13225_v2 = vpop.f32.mrb[155].mxu1  ;;  %5961 = vmatmul.mubr.f32.gmra.mrb[176].mxu0 %v15017_v18  ;;  %6122 = vmatmul.mubr.f32.gmra.mrb[176].mxu1 %v15017_v18 }
 0x835   : > { %v13146_v22 = vadd.f32 %v13145_v15, %v13144_v38  ;;  %15022 = vrsqrt.f32 %v5827_v20  ;;  %v5812_v3 = vmul.f32 0.0078125, %v5782_v58  ;;  %v13226_v53 = vadd.f32 %v13225_v2, %v13224_v62  ;;  %7350 = vmatpush1.bf16.msra.mxu0 %v14792_v26  ;;  %7576 = vmatpush1.bf16.msra.mxu1 %v14795_v57  ;;  %v14809_v38 = vld [vmem:[#allocation16 + $0x14c] ss:$16 sps:$4 sm:$0xff]   ;;  %v14804_v58 = vld [vmem:[#allocation16 + $0x140] ss:$16 sps:$4 sm:$0xff]  }
 0x836   : > { %v13147_v59 = vpop.f32.mrb[156].mxu0  ;;  %5966 = vmatprep.mubr.f32.mxu0 %v19377_v9  ;;  %6127 = vmatprep.mubr.f32.mxu1 %v19377_v9  ;;  %v14807_v62 = vld [vmem:[#allocation16 + $0x148] ss:$16 sps:$4 sm:$0xff]  }
 0x837   : > { %v15019_v60 = vpop.eup %15018  ;;  %v5828_v21 = vadd.f32 1e-06, %v5812_v3  ;;  %v5787_v16 = vadd.f32 %v13226_v53, %v13146_v22  ;;  %v13227_v24 = vpop.f32.mrb[156].mxu1  ;;  %7351 = vmatprep.subr.bf16.mxu0 %v14800_v6  ;;  %7577 = vmatprep.subr.bf16.mxu1 %v14803_v44  ;;  %v14812_v6 = vld [vmem:[#allocation16 + $0x164] ss:$16 sps:$4 sm:$0xff]  }
 0x838   : > { %v13148_v13 = vpop.f32.mrb[157].mxu0  ;;  %v13228_v20 = vpop.f32.mrb[157].mxu1  ;;  %5967 = vmatmul.mubr.f32.gmra.mrb[178].mxu0 %v15019_v60  ;;  %6128 = vmatmul.mubr.f32.gmra.mrb[178].mxu1 %v15019_v60 }
 0x839   : > { %v13149_v18 = vadd.f32 %v13148_v13, %v13147_v59  ;;  %15024 = vrsqrt.f32 %v5828_v21  ;;  %v5813_v26 = vmul.f32 0.0078125, %v5787_v16  ;;  %v13229_v57 = vadd.f32 %v13228_v20, %v13227_v24  ;;  %7352 = vmatpush1.bf16.msra.mxu0 %v14798_v49  ;;  %7578 = vmatpush1.bf16.msra.mxu1 %v14801_v43  ;;  %v14815_v59 = vld [vmem:[#allocation16 + $0x16c] ss:$16 sps:$4 sm:$0xff]   ;;  %v14810_v16 = vld [vmem:[#allocation16 + $0x160] ss:$16 sps:$4 sm:$0xff]  }
 0x83a   : > { %v13150_v15 = vpop.f32.mrb[158].mxu0  ;;  %5972 = vmatprep.mubr.f32.mxu0 %v19377_v9  ;;  %6133 = vmatprep.mubr.f32.mxu1 %v19377_v9  ;;  %v14813_v24 = vld [vmem:[#allocation16 + $0x168] ss:$16 sps:$4 sm:$0xff]   ;;  %v14821_v20 = vld [vmem:[#allocation16 + $0x18c] ss:$16 sps:$4 sm:$0xff]  }
 0x83b   : > { %v15021_v44 = vpop.eup %15020  ;;  %v5829_v22 = vadd.f32 1e-06, %v5813_v26  ;;  %v5792_v2 = vadd.f32 %v13229_v57, %v13149_v18  ;;  %v13230_v3 = vpop.f32.mrb[158].mxu1  ;;  %7353 = vmatprep.subr.bf16.mxu0 %v14806_v27  ;;  %7579 = vmatprep.subr.bf16.mxu1 %v14809_v38  ;;  %v14818_v18 = vld [vmem:[#allocation16 + $0x184] ss:$16 sps:$4 sm:$0xff]  }
 0x83c   : > { %v13151_v53 = vpop.f32.mrb[159].mxu0  ;;  %v13231_v21 = vpop.f32.mrb[159].mxu1  ;;  %5973 = vmatmul.mubr.f32.gmra.mrb[180].mxu0 %v15021_v44  ;;  %6134 = vmatmul.mubr.f32.gmra.mrb[180].mxu1 %v15021_v44  ;;  %v14816_v57 = vld [vmem:[#allocation16 + $0x180] ss:$16 sps:$4 sm:$0xff]   ;;  %v14827_v44 = vld [vmem:[#allocation16 + $0x1ac] ss:$16 sps:$4 sm:$0xff]  }
 0x83d   : > { %v13152_v60 = vadd.f32 %v13151_v53, %v13150_v15  ;;  %15026 = vrsqrt.f32 %v5829_v22  ;;  %v5814_v49 = vmul.f32 0.0078125, %v5792_v2  ;;  %v13232_v43 = vadd.f32 %v13231_v21, %v13230_v3  ;;  %7354 = vmatpush1.bf16.msra.mxu0 %v14804_v58  ;;  %7580 = vmatpush1.bf16.msra.mxu1 %v14807_v62  ;;  %v14819_v58 = vld [vmem:[#allocation16 + $0x188] ss:$16 sps:$4 sm:$0xff]   ;;  %v14822_v22 = vld [vmem:[#allocation16 + $0x1a0] ss:$16 sps:$4 sm:$0xff]  }
 0x83e   : > { %5978 = vmatprep.mubr.f32.mxu0 %v19377_v9  ;;  %6139 = vmatprep.mubr.f32.mxu1 %v19377_v9  ;;  %v14825_v2 = vld [vmem:[#allocation16 + $0x1a8] ss:$16 sps:$4 sm:$0xff]   ;;  %v14830_v53 = vld [vmem:[#allocation16 + $0x1c4] ss:$16 sps:$4 sm:$0xff]  }
 0x83f   : > { %v15023_v13 = vpop.eup %15022  ;;  %v5830_v27 = vadd.f32 1e-06, %v5814_v49  ;;  %v5797_v38 = vadd.f32 %v13232_v43, %v13152_v60  ;;  %7355 = vmatprep.subr.bf16.mxu0 %v14812_v6  ;;  %7581 = vmatprep.subr.bf16.mxu1 %v14815_v59  ;;  %v14824_v6 = vld [vmem:[#allocation16 + $0x1a4] ss:$16 sps:$4 sm:$0xff]   ;;  %v14833_v59 = vld [vmem:[#allocation16 + $0x1cc] ss:$16 sps:$4 sm:$0xff]  }
 0x840   : > { %5979 = vmatmul.mubr.f32.gmra.mrb[182].mxu0 %v15023_v13  ;;  %6140 = vmatmul.mubr.f32.gmra.mrb[182].mxu1 %v15023_v13  ;;  %v14828_v60 = vld [vmem:[#allocation16 + $0x1c0] ss:$16 sps:$4 sm:$0xff]   ;;  %v14831_v21 = vld [vmem:[#allocation16 + $0x1c8] ss:$16 sps:$4 sm:$0xff]   ;;  %v14836_v43 = vld [vmem:[#allocation16 + $0x1e4] ss:$16 sps:$4 sm:$0xff]  }
 0x841   : > { %15028 = vrsqrt.f32 %v5830_v27  ;;  %v5815_v26 = vmul.f32 0.0078125, %v5797_v38  ;;  %7356 = vmatpush1.bf16.msra.mxu0 %v14810_v16  ;;  %7582 = vmatpush1.bf16.msra.mxu1 %v14813_v24  ;;  %v14839_v16 = vld [vmem:[#allocation16 + $0x1ec] ss:$16 sps:$4 sm:$0xff]   ;;  %v14834_v24 = vld [vmem:[#allocation16 + $0x1e0] ss:$16 sps:$4 sm:$0xff]  }
 0x842   : > { %5984 = vmatprep.mubr.f32.mxu0 %v19377_v9  ;;  %6145 = vmatprep.mubr.f32.mxu1 %v19377_v9  ;;  %v14837_v13 = vld [vmem:[#allocation16 + $0x1e8] ss:$16 sps:$4 sm:$0xff]   ;;  %v14842_v38 = vld [vmem:[#allocation16 + $0x204] ss:$16 sps:$4 sm:$0xff]  }
 0x843   : > { %v15025_v62 = vpop.eup %15024  ;;  %v5831_v15 = vadd.f32 1e-06, %v5815_v26  ;;  %7357 = vmatprep.subr.bf16.mxu0 %v14818_v18  ;;  %7583 = vmatprep.subr.bf16.mxu1 %v14821_v20  ;;  %v14845_v18 = vld [vmem:[#allocation16 + $0x20c] ss:$16 sps:$4 sm:$0xff]   ;;  %v14840_v20 = vld [vmem:[#allocation16 + $0x200] ss:$16 sps:$4 sm:$0xff]  }
 0x844   : > { %5985 = vmatmul.mubr.f32.gmra.mrb[184].mxu0 %v15025_v62  ;;  %6146 = vmatmul.mubr.f32.gmra.mrb[184].mxu1 %v15025_v62  ;;  %v14843_v26 = vld [vmem:[#allocation16 + $0x208] ss:$16 sps:$4 sm:$0xff]   ;;  %v14851_v62 = vld [vmem:[#allocation16 + $0x22c] ss:$16 sps:$4 sm:$0xff]  }
 0x845   : > { %15030 = vrsqrt.f32 %v5831_v15  ;;  %7358 = vmatpush1.bf16.msra.mxu0 %v14816_v57  ;;  %7584 = vmatpush1.bf16.msra.mxu1 %v14819_v58  ;;  %v15129_v57 = vld [vmem:[#allocation2 + $0x8] sm:$0xff]  ;;  %v15130_v15 = vld [vmem:[#allocation2] sm:$0xff] }
 0x846   : > { %5990 = vmatprep.mubr.f32.mxu0 %v19377_v9  ;;  %6151 = vmatprep.mubr.f32.mxu1 %v19377_v9  ;;  %v14848_v58 = vld [vmem:[#allocation16 + $0x224] ss:$16 sps:$4 sm:$0xff]  }
 0x847   : > { %v15027_v3 = vpop.eup %15026  ;;  %7359 = vmatprep.subr.bf16.mxu0 %v14824_v6  ;;  %7585 = vmatprep.subr.bf16.mxu1 %v14827_v44  ;;  %v14849_v6 = vld [vmem:[#allocation16 + $0x228] ss:$16 sps:$4 sm:$0xff]   ;;  %v15131_v44 = vld [vmem:[#allocation2 + $0x28] sm:$0xff] }
 0x848   : > { %5991 = vmatmul.mubr.f32.gmra.mrb[186].mxu0 %v15027_v3  ;;  %6152 = vmatmul.mubr.f32.gmra.mrb[186].mxu1 %v15027_v3  ;;  %v14852_v3 = vld [vmem:[#allocation16 + $0x240] ss:$16 sps:$4 sm:$0xff]  }
 0x849   : > { %7360 = vmatpush1.bf16.msra.mxu0 %v14822_v22  ;;  %7586 = vmatpush1.bf16.msra.mxu1 %v14825_v2  ;;  %v14854_v22 = vld [vmem:[#allocation16 + $0x244] ss:$16 sps:$4 sm:$0xff]   ;;  %v14857_v2 = vld [vmem:[#allocation16 + $0x24c] ss:$16 sps:$4 sm:$0xff]  }
 0x84a   : > { %5996 = vmatprep.mubr.f32.mxu0 %v19377_v9  ;;  %6157 = vmatprep.mubr.f32.mxu1 %v19377_v9 }
 0x84b   : > { %v15029_v49 = vpop.eup %15028  ;;  %7361 = vmatprep.subr.bf16.mxu0 %v14830_v53  ;;  %7587 = vmatprep.subr.bf16.mxu1 %v14833_v59  ;;  %v14855_v53 = vld [vmem:[#allocation16 + $0x248] ss:$16 sps:$4 sm:$0xff]   ;;  %v14860_v59 = vld [vmem:[#allocation16 + $0x264] ss:$16 sps:$4 sm:$0xff]  }
 0x84c   : > { %5997 = vmatmul.mubr.f32.gmra.mrb[188].mxu0 %v15029_v49  ;;  %6158 = vmatmul.mubr.f32.gmra.mrb[188].mxu1 %v15029_v49  ;;  %v14858_v49 = vld [vmem:[#allocation16 + $0x260] ss:$16 sps:$4 sm:$0xff]  }
 0x84d   : > { %7362 = vmatpush1.bf16.msra.mxu0 %v14828_v60  ;;  %7588 = vmatpush1.bf16.msra.mxu1 %v14831_v21  ;;  %v14863_v60 = vld [vmem:[#allocation16 + $0x26c] ss:$16 sps:$4 sm:$0xff]  }
 0x84e   : > { %6002 = vmatprep.mubr.f32.mxu0 %v19377_v9  ;;  %6163 = vmatprep.mubr.f32.mxu1 %v19377_v9  ;;  %v14846_v9 = vld [vmem:[#allocation16 + $0x220] ss:$16 sps:$4 sm:$0xff]   ;;  %v15132_v21 = vld [vmem:[#allocation2 + $0x20] sm:$0xff] }
 0x84f   : > { %v15031_v27 = vpop.eup %15030  ;;  %7363 = vmatprep.subr.bf16.mxu0 %v14836_v43  ;;  %7589 = vmatprep.subr.bf16.mxu1 %v14839_v16  ;;  %v14861_v43 = vld [vmem:[#allocation16 + $0x268] ss:$16 sps:$4 sm:$0xff]   ;;  %v15133_v16 = vld [vmem:[#allocation2 + $0x48] sm:$0xff] }
 0x850   : > { %6003 = vmatmul.mubr.f32.gmra.mrb[190].mxu0 %v15031_v27  ;;  %6164 = vmatmul.mubr.f32.gmra.mrb[190].mxu1 %v15031_v27  ;;  %v14864_v27 = vld [vmem:[#allocation16 + $0x280] ss:$16 sps:$4 sm:$0xff]  }
 0x851   : > { %7364 = vmatpush1.bf16.msra.mxu0 %v14834_v24  ;;  %7590 = vmatpush1.bf16.msra.mxu1 %v14837_v13  ;;  %v14866_v24 = vld [vmem:[#allocation16 + $0x284] ss:$16 sps:$4 sm:$0xff]   ;;  %v14869_v13 = vld [vmem:[#allocation16 + $0x28c] ss:$16 sps:$4 sm:$0xff]  }
 0x852   : > { %7365 = vmatprep.mubr.bf16.mxu0 %v15129_v57  ;;  %7591 = vmatprep.mubr.bf16.mxu1 %v15129_v57  ;;  %v14870_v57 = vld [vmem:[#allocation16 + $0x2a0] ss:$16 sps:$4 sm:$0xff]  }
 0x853   : > { %7446 = vmatprep.subr.bf16.mxu0 %v14842_v38  ;;  %7672 = vmatprep.subr.bf16.mxu1 %v14845_v18  ;;  %v14867_v38 = vld [vmem:[#allocation16 + $0x288] ss:$16 sps:$4 sm:$0xff]   ;;  %v14872_v18 = vld [vmem:[#allocation16 + $0x2a4] ss:$16 sps:$4 sm:$0xff]  }
 0x854   : > { %7366 = vmatmul.mubr.bf16.vlgmr.msra.gmra.mrb[192].mxu0 %v15130_v15  ;;  %7592 = vmatmul.mubr.bf16.vlgmr.msra.gmra.mrb[192].mxu1 %v15130_v15  ;;  %v14878_v15 = vld [vmem:[#allocation16 + $0x2c4] ss:$16 sps:$4 sm:$0xff]  }
 0x855   : > { %7447 = vmatpush1.bf16.msra.mxu0 %v14840_v20  ;;  %7673 = vmatpush1.bf16.msra.mxu1 %v14843_v26  ;;  %v14875_v20 = vld [vmem:[#allocation16 + $0x2ac] ss:$16 sps:$4 sm:$0xff]  }
 0x856   : > { %7375 = vmatprep.mubr.bf16.mxu0 %v15131_v44  ;;  %7601 = vmatprep.mubr.bf16.mxu1 %v15131_v44  ;;  %v15134_v26 = vld [vmem:[#allocation2 + $0x40] sm:$0xff] }
 0x857   : > { %7448 = vmatprep.subr.bf16.mxu0 %v14848_v58  ;;  %7674 = vmatprep.subr.bf16.mxu1 %v14851_v62  ;;  %v14873_v58 = vld [vmem:[#allocation16 + $0x2a8] ss:$16 sps:$4 sm:$0xff]   ;;  %v15135_v62 = vld [vmem:[#allocation2 + $0x68] sm:$0xff] }
 0x858   : > { %v14879_v44 = vld [vmem:[#allocation16 + $0x2c8] ss:$16 sps:$4 sm:$0xff]  }
 0x859   : > { %7449 = vmatpush1.bf16.msra.mxu0 %v14846_v9  ;;  %7675 = vmatpush1.bf16.msra.mxu1 %v14849_v6  ;;  %v14881_v9 = vld [vmem:[#allocation16 + $0x2cc] ss:$16 sps:$4 sm:$0xff]   ;;  %v14876_v6 = vld [vmem:[#allocation16 + $0x2c0] ss:$16 sps:$4 sm:$0xff]  }
 0x85a   : > { %7450 = vmatprep.subr.bf16.mxu0 %v14854_v22  ;;  %7676 = vmatprep.subr.bf16.mxu1 %v14857_v2  ;;  %v14884_v22 = vld [vmem:[#allocation16 + $0x2e4] ss:$16 sps:$4 sm:$0xff]   ;;  %v14887_v2 = vld [vmem:[#allocation16 + $0x2ec] ss:$16 sps:$4 sm:$0xff]  }
 0x85c   : > { %7376 = vmatmul.mubr.bf16.gmra.mrb[196].mxu0 %v15132_v21  ;;  %7602 = vmatmul.mubr.bf16.gmra.mrb[196].mxu1 %v15132_v21  ;;  %v14890_v21 = vld [vmem:[#allocation16 + $0x304] ss:$16 sps:$4 sm:$0xff]  }
 0x85d   : > { %7451 = vmatpush1.bf16.msra.mxu0 %v14852_v3  ;;  %7677 = vmatpush1.bf16.msra.mxu1 %v14855_v53  ;;  %v15136_v3 = vld [vmem:[#allocation2 + $0x60] sm:$0xff]  ;;  %v14882_v53 = vld [vmem:[#allocation16 + $0x2e0] ss:$16 sps:$4 sm:$0xff]  }
 0x85e   : > { %7385 = vmatprep.mubr.bf16.mxu0 %v15133_v16  ;;  %7611 = vmatprep.mubr.bf16.mxu1 %v15133_v16  ;;  %v14891_v16 = vld [vmem:[#allocation16 + $0x308] ss:$16 sps:$4 sm:$0xff]  }
 0x85f   : > { %7452 = vmatprep.subr.bf16.mxu0 %v14860_v59  ;;  %7678 = vmatprep.subr.bf16.mxu1 %v14863_v60  ;;  %v14885_v59 = vld [vmem:[#allocation16 + $0x2e8] ss:$16 sps:$4 sm:$0xff]   ;;  %v15137_v60 = vld [vmem:[#allocation2 + $0x88] sm:$0xff] }
 0x861   : > { %7453 = vmatpush1.bf16.msra.mxu0 %v14858_v49  ;;  %7679 = vmatpush1.bf16.msra.mxu1 %v14861_v43  ;;  %v14893_v49 = vld [vmem:[#allocation16 + $0x30c] ss:$16 sps:$4 sm:$0xff]   ;;  %v14888_v43 = vld [vmem:[#allocation16 + $0x300] ss:$16 sps:$4 sm:$0xff]  }
 0x862   : > { %7454 = vmatprep.subr.bf16.mxu0 %v14866_v24  ;;  %7680 = vmatprep.subr.bf16.mxu1 %v14869_v13  ;;  %v14896_v24 = vld [vmem:[#allocation16 + $0x324] ss:$16 sps:$4 sm:$0xff]   ;;  %v14899_v13 = vld [vmem:[#allocation16 + $0x32c] ss:$16 sps:$4 sm:$0xff]  }
 0x864   : > { %7386 = vmatmul.mubr.bf16.gmra.mrb[200].mxu0 %v15134_v26  ;;  %7612 = vmatmul.mubr.bf16.gmra.mrb[200].mxu1 %v15134_v26  ;;  %v14902_v26 = vld [vmem:[#allocation16 + $0x344] ss:$16 sps:$4 sm:$0xff]  }
 0x865   : > { %7455 = vmatpush1.bf16.msra.mxu0 %v14864_v27  ;;  %7681 = vmatpush1.bf16.msra.mxu1 %v14867_v38  ;;  %v15138_v27 = vld [vmem:[#allocation2 + $0x80] sm:$0xff]  ;;  %v14894_v38 = vld [vmem:[#allocation16 + $0x320] ss:$16 sps:$4 sm:$0xff]  }
 0x866   : > { %7395 = vmatprep.mubr.bf16.mxu0 %v15135_v62  ;;  %7621 = vmatprep.mubr.bf16.mxu1 %v15135_v62  ;;  %v14903_v62 = vld [vmem:[#allocation16 + $0x348] ss:$16 sps:$4 sm:$0xff]  }
 0x867   : > { %7456 = vmatprep.subr.bf16.mxu0 %v14872_v18  ;;  %7682 = vmatprep.subr.bf16.mxu1 %v14875_v20  ;;  %v14897_v18 = vld [vmem:[#allocation16 + $0x328] ss:$16 sps:$4 sm:$0xff]   ;;  %v15139_v20 = vld [vmem:[#allocation2 + $0xa8] sm:$0xff] }
 0x869   : > { %7457 = vmatpush1.bf16.msra.mxu0 %v14870_v57  ;;  %7683 = vmatpush1.bf16.msra.mxu1 %v14873_v58  ;;  %v14905_v57 = vld [vmem:[#allocation16 + $0x34c] ss:$16 sps:$4 sm:$0xff]   ;;  %v14900_v58 = vld [vmem:[#allocation16 + $0x340] ss:$16 sps:$4 sm:$0xff]  }
 0x86a   : > { %7458 = vmatprep.subr.bf16.mxu0 %v14878_v15  ;;  %7684 = vmatprep.subr.bf16.mxu1 %v14881_v9  ;;  %v14908_v15 = vld [vmem:[#allocation16 + $0x364] ss:$16 sps:$4 sm:$0xff]   ;;  %v14911_v9 = vld [vmem:[#allocation16 + $0x36c] ss:$16 sps:$4 sm:$0xff]  }
 0x86c   : > { %7396 = vmatmul.mubr.bf16.gmra.mrb[204].mxu0 %v15136_v3  ;;  %7622 = vmatmul.mubr.bf16.gmra.mrb[204].mxu1 %v15136_v3  ;;  %v14914_v3 = vld [vmem:[#allocation16 + $0x384] ss:$16 sps:$4 sm:$0xff]  }
 0x86d   : > { %7459 = vmatpush1.bf16.msra.mxu0 %v14876_v6  ;;  %7685 = vmatpush1.bf16.msra.mxu1 %v14879_v44  ;;  %v15140_v6 = vld [vmem:[#allocation2 + $0xa0] sm:$0xff]  ;;  %v14906_v44 = vld [vmem:[#allocation16 + $0x360] ss:$16 sps:$4 sm:$0xff]  }
 0x86e   : > { %7405 = vmatprep.mubr.bf16.mxu0 %v15137_v60  ;;  %7631 = vmatprep.mubr.bf16.mxu1 %v15137_v60  ;;  %v14915_v60 = vld [vmem:[#allocation16 + $0x388] ss:$16 sps:$4 sm:$0xff]  }
 0x86f   : > { %7460 = vmatprep.subr.bf16.mxu0 %v14884_v22  ;;  %7686 = vmatprep.subr.bf16.mxu1 %v14887_v2  ;;  %v14909_v22 = vld [vmem:[#allocation16 + $0x368] ss:$16 sps:$4 sm:$0xff]   ;;  %v15141_v2 = vld [vmem:[#allocation2 + $0xc8] sm:$0xff] }
 0x871   : > { %7461 = vmatpush1.bf16.msra.mxu0 %v14882_v53  ;;  %7687 = vmatpush1.bf16.msra.mxu1 %v14885_v59  ;;  %v14917_v53 = vld [vmem:[#allocation16 + $0x38c] ss:$16 sps:$4 sm:$0xff]   ;;  %v14912_v59 = vld [vmem:[#allocation16 + $0x380] ss:$16 sps:$4 sm:$0xff]  }
 0x872   : > { %7462 = vmatprep.subr.bf16.mxu0 %v14890_v21  ;;  %7688 = vmatprep.subr.bf16.mxu1 %v14893_v49  ;;  %v14920_v21 = vld [vmem:[#allocation16 + $0x3a4] ss:$16 sps:$4 sm:$0xff]   ;;  %v14923_v49 = vld [vmem:[#allocation16 + $0x3ac] ss:$16 sps:$4 sm:$0xff]  }
 0x874   : > { %7406 = vmatmul.mubr.bf16.gmra.mrb[208].mxu0 %v15138_v27  ;;  %7632 = vmatmul.mubr.bf16.gmra.mrb[208].mxu1 %v15138_v27  ;;  %v14926_v27 = vld [vmem:[#allocation16 + $0x3c4] ss:$16 sps:$4 sm:$0xff]  }
 0x875   : > { %7463 = vmatpush1.bf16.msra.mxu0 %v14888_v43  ;;  %7689 = vmatpush1.bf16.msra.mxu1 %v14891_v16  ;;  %v15142_v43 = vld [vmem:[#allocation2 + $0xc0] sm:$0xff]  ;;  %v14918_v16 = vld [vmem:[#allocation16 + $0x3a0] ss:$16 sps:$4 sm:$0xff]  }
 0x876   : > { %7415 = vmatprep.mubr.bf16.mxu0 %v15139_v20  ;;  %7641 = vmatprep.mubr.bf16.mxu1 %v15139_v20  ;;  %v14927_v20 = vld [vmem:[#allocation16 + $0x3c8] ss:$16 sps:$4 sm:$0xff]  }
 0x877   : > { %7464 = vmatprep.subr.bf16.mxu0 %v14896_v24  ;;  %7690 = vmatprep.subr.bf16.mxu1 %v14899_v13  ;;  %v14921_v24 = vld [vmem:[#allocation16 + $0x3a8] ss:$16 sps:$4 sm:$0xff]   ;;  %v15143_v13 = vld [vmem:[#allocation2 + $0xe8] sm:$0xff] }
 0x879   : > { %7465 = vmatpush1.bf16.msra.mxu0 %v14894_v38  ;;  %7691 = vmatpush1.bf16.msra.mxu1 %v14897_v18  ;;  %v14929_v38 = vld [vmem:[#allocation16 + $0x3cc] ss:$16 sps:$4 sm:$0xff]   ;;  %v14924_v18 = vld [vmem:[#allocation16 + $0x3c0] ss:$16 sps:$4 sm:$0xff]  }
 0x87a   : > { %7466 = vmatprep.subr.bf16.mxu0 %v14902_v26  ;;  %7692 = vmatprep.subr.bf16.mxu1 %v14905_v57  ;;  %v14932_v26 = vld [vmem:[#allocation16 + $0x3e4] ss:$16 sps:$4 sm:$0xff]   ;;  %v14935_v57 = vld [vmem:[#allocation16 + $0x3ec] ss:$16 sps:$4 sm:$0xff]  }
 0x87c   : > { %7416 = vmatmul.mubr.bf16.gmra.mrb[212].mxu0 %v15140_v6  ;;  %7642 = vmatmul.mubr.bf16.gmra.mrb[212].mxu1 %v15140_v6  ;;  %v15146_v6 = vld [vmem:[#allocation2 + $0x10] sm:$0xff] }
 0x87d   : > { %7467 = vmatpush1.bf16.msra.mxu0 %v14900_v58  ;;  %7693 = vmatpush1.bf16.msra.mxu1 %v14903_v62  ;;  %v15144_v58 = vld [vmem:[#allocation2 + $0xe0] sm:$0xff]  ;;  %v14930_v62 = vld [vmem:[#allocation16 + $0x3e0] ss:$16 sps:$4 sm:$0xff]  }
 0x87e   : > { %7425 = vmatprep.mubr.bf16.mxu0 %v15141_v2  ;;  %7651 = vmatprep.mubr.bf16.mxu1 %v15141_v2  ;;  %v15149_v2 = vld [vmem:[#allocation2 + $0x58] sm:$0xff] }
 0x87f   : > { %7468 = vmatprep.subr.bf16.mxu0 %v14908_v15  ;;  %7694 = vmatprep.subr.bf16.mxu1 %v14911_v9  ;;  %v14933_v15 = vld [vmem:[#allocation16 + $0x3e8] ss:$16 sps:$4 sm:$0xff]   ;;  %v15145_v9 = vld [vmem:[#allocation2 + $0x18] sm:$0xff] }
 0x881   : > { %7469 = vmatpush1.bf16.msra.mxu0 %v14906_v44  ;;  %7695 = vmatpush1.bf16.msra.mxu1 %v14909_v22  ;;  %v15147_v44 = vld [vmem:[#allocation2 + $0x38] sm:$0xff]  ;;  %v15148_v22 = vld [vmem:[#allocation2 + $0x30] sm:$0xff] }
 0x882   : > { %7470 = vmatprep.subr.bf16.mxu0 %v14914_v3  ;;  %7696 = vmatprep.subr.bf16.mxu1 %v14917_v53  ;;  %v15150_v3 = vld [vmem:[#allocation2 + $0x50] sm:$0xff]  ;;  %v15151_v53 = vld [vmem:[#allocation2 + $0x78] sm:$0xff] }
 0x884   : > { %7426 = vmatmul.mubr.bf16.gmra.mrb[216].mxu0 %v15142_v43  ;;  %7652 = vmatmul.mubr.bf16.gmra.mrb[216].mxu1 %v15142_v43  ;;  %v15156_v43 = vld [vmem:[#allocation2 + $0xb0] sm:$0xff] }
 0x885   : > { %7471 = vmatpush1.bf16.msra.mxu0 %v14912_v59  ;;  %7697 = vmatpush1.bf16.msra.mxu1 %v14915_v60  ;;  %v15152_v59 = vld [vmem:[#allocation2 + $0x70] sm:$0xff]  ;;  %v15153_v60 = vld [vmem:[#allocation2 + $0x98] sm:$0xff] }
 0x886   : > { %7435 = vmatprep.mubr.bf16.mxu0 %v15143_v13  ;;  %7661 = vmatprep.mubr.bf16.mxu1 %v15143_v13  ;;  %v15159_v13 = vld [vmem:[#allocation2 + $0xf8] sm:$0xff] }
 0x887   : > { %7472 = vmatprep.subr.bf16.mxu0 %v14920_v21  ;;  %7698 = vmatprep.subr.bf16.mxu1 %v14923_v49  ;;  %v15154_v21 = vld [vmem:[#allocation2 + $0x90] sm:$0xff]  ;;  %v15155_v49 = vld [vmem:[#allocation2 + $0xb8] sm:$0xff] }
 0x889   : > { %7473 = vmatpush1.bf16.msra.mxu0 %v14918_v16  ;;  %7699 = vmatpush1.bf16.msra.mxu1 %v14921_v24  ;;  %v15157_v16 = vld [vmem:[#allocation2 + $0xd8] sm:$0xff]  ;;  %v15158_v24 = vld [vmem:[#allocation2 + $0xd0] sm:$0xff] }
 0x88a   : > { %7474 = vmatprep.subr.bf16.mxu0 %v14926_v27  ;;  %7700 = vmatprep.subr.bf16.mxu1 %v14929_v38  ;;  %v15160_v27 = vld [vmem:[#allocation2 + $0xf0] sm:$0xff]  ;;  %v5445_v38 = vld [vmem:[#allocation21] sm:$0xf] }
 0x88c   : > { %7436 = vmatmul.mubr.bf16.gmra.mrb[220].mxu0 %v15144_v58  ;;  %7662 = vmatmul.mubr.bf16.gmra.mrb[220].mxu1 %v15144_v58  ;;  %v19418_v58 = vrot.slane %v5445_v38, %v21644_v35 }
 0x88d   : > { %7475 = vmatpush1.bf16.msra.mxu0 %v14924_v18  ;;  %7701 = vmatpush1.bf16.msra.mxu1 %v14927_v20  ;;  %v19412_v18 = vrot.slane %v5445_v38, %v21642_v56  ;;  %v19415_v20 = vrot.slane %v5445_v38, %v21643_v41 }
 0x88e   : > { %7478 = vmatprep.mubr.bf16.mxu0 %v15145_v9  ;;  %7704 = vmatprep.mubr.bf16.mxu1 %v15145_v9 }
 0x88f   : > { %7476 = vmatprep.subr.bf16.mxu0 %v14932_v26  ;;  %7702 = vmatprep.subr.bf16.mxu1 %v14935_v57 }
 0x891   : > { %7477 = vmatpush1.bf16.msra.mxu0 %v14930_v62  ;;  %7703 = vmatpush1.bf16.msra.mxu1 %v14933_v15  ;;  %v19421_v62 = vrot.slane %v5445_v38, %v21645_v34 }
 0x894   : > { %7479 = vmatmul.mubr.bf16.vlgmr.msra.gmra.mrb[192].mxu0 %v15146_v6  ;;  %7705 = vmatmul.mubr.bf16.vlgmr.msra.gmra.mrb[192].mxu1 %v15146_v6 }
 0x895   : > { %7488 = vmatprep.mubr.bf16.mxu0 %v15147_v44  ;;  %7714 = vmatprep.mubr.bf16.mxu1 %v15147_v44 }
 0x89c   : > { %7489 = vmatmul.mubr.bf16.gmra.mrb[196].mxu0 %v15148_v22  ;;  %7715 = vmatmul.mubr.bf16.gmra.mrb[196].mxu1 %v15148_v22 }
 0x89d   : > { %7498 = vmatprep.mubr.bf16.mxu0 %v15149_v2  ;;  %7724 = vmatprep.mubr.bf16.mxu1 %v15149_v2 }
 0x8a4   : > { %7499 = vmatmul.mubr.bf16.gmra.mrb[200].mxu0 %v15150_v3  ;;  %7725 = vmatmul.mubr.bf16.gmra.mrb[200].mxu1 %v15150_v3 }
 0x8a5   : > { %7508 = vmatprep.mubr.bf16.mxu0 %v15151_v53  ;;  %7734 = vmatprep.mubr.bf16.mxu1 %v15151_v53 }
 0x8ac   : > { %7509 = vmatmul.mubr.bf16.gmra.mrb[204].mxu0 %v15152_v59  ;;  %7735 = vmatmul.mubr.bf16.gmra.mrb[204].mxu1 %v15152_v59 }
 0x8ad   : > { %7518 = vmatprep.mubr.bf16.mxu0 %v15153_v60  ;;  %7744 = vmatprep.mubr.bf16.mxu1 %v15153_v60 }
 0x8b4   : > { %7519 = vmatmul.mubr.bf16.gmra.mrb[208].mxu0 %v15154_v21  ;;  %7745 = vmatmul.mubr.bf16.gmra.mrb[208].mxu1 %v15154_v21 }
 0x8b5   : > { %7528 = vmatprep.mubr.bf16.mxu0 %v15155_v49  ;;  %7754 = vmatprep.mubr.bf16.mxu1 %v15155_v49 }
 0x8bc   : > { %7529 = vmatmul.mubr.bf16.gmra.mrb[212].mxu0 %v15156_v43  ;;  %7755 = vmatmul.mubr.bf16.gmra.mrb[212].mxu1 %v15156_v43 }
 0x8bd   : > { %7538 = vmatprep.mubr.bf16.mxu0 %v15157_v16  ;;  %7764 = vmatprep.mubr.bf16.mxu1 %v15157_v16 }
 0x8c4   : > { %7539 = vmatmul.mubr.bf16.gmra.mrb[216].mxu0 %v15158_v24  ;;  %7765 = vmatmul.mubr.bf16.gmra.mrb[216].mxu1 %v15158_v24 }
 0x8c5   : > { %7548 = vmatprep.mubr.bf16.mxu0 %v15159_v13  ;;  %7774 = vmatprep.mubr.bf16.mxu1 %v15159_v13 }
 0x8cc   : > { %7549 = vmatmul.mubr.bf16.gmra.mrb[220].mxu0 %v15160_v27  ;;  %7775 = vmatmul.mubr.bf16.gmra.mrb[220].mxu1 %v15160_v27 }
 0x8e6   : > { %v5914_v26 = vpop.f32.mrb[160].mxu0  ;;  %v6075_v57 = vpop.f32.mrb[160].mxu1 }
 0x8e7   : > { %v6170_v15 = vmul.f32 %v19028_v14, %v5914_v26  ;;  %v6172_v9 = vmul.f32 %v19031_v33, %v6075_v57  ;;  %v5916_v6 = vpop.f32.mrb[161].mxu0  ;;  %v6077_v44 = vpop.f32.mrb[161].mxu1 }
 0x8e8   : > { %v6171_v22 = vmul.f32 %v19034_v61, %v5916_v6  ;;  %v6173_v2 = vmul.f32 %v19037_v4, %v6077_v44 }
 0x8e9   : > { %v6255_v3 = vmul.f32 %v19412_v18, %v6170_v15  ;;  %v6257_v53 = vmul.f32 %v19415_v20, %v6172_v9 }
 0x8ea   : > { %v6256_v59 = vmul.f32 %v19418_v58, %v6171_v22  ;;  %v6258_v60 = vmul.f32 %v19421_v62, %v6173_v2  ;;  %v5920_v21 = vpop.f32.mrb[162].mxu0  ;;  %v6081_v14 = vpop.f32.mrb[162].mxu1 }
 0x8eb   : > { %v6174_v43 = vmul.f32 %v19054_v28, %v5920_v21  ;;  %v6176_v61 = vmul.f32 %v19057_v48, %v6081_v14  ;;  %v5922_v16 = vpop.f32.mrb[163].mxu0  ;;  %v6083_v24 = vpop.f32.mrb[163].mxu1 }
 0x8ec   : > { %v12845_v49 = vpack.c.bf16 %v6256_v59, %v6255_v3  ;;  %v12846_v33 = vpack.c.bf16 %v6258_v60, %v6257_v53  ;;  %v6175_v4 = vmul.f32 %v19044_v63, %v5922_v16  ;;  %v6177_v13 = vmul.f32 %v19047_v31, %v6083_v24 }
 0x8ed   : > { %v6259_v27 = vmul.f32 %v19412_v18, %v6174_v43  ;;  %v6261_v38 = vmul.f32 %v19415_v20, %v6176_v61 }
 0x8ee   : > { %6511 = vst [vmem:[%s17293_s2] sm:$0xff] %v12845_v49  ;;  %6512 = vst [vmem:[%s17293_s2 + $0x8] sm:$0xff] %v12846_v33  ;;  %v6260_v26 = vmul.f32 %v19418_v58, %v6175_v4  ;;  %v6262_v28 = vmul.f32 %v19421_v62, %v6177_v13 }
 0x8ef   : > { %v5926_v57 = vpop.f32.mrb[164].mxu0  ;;  %v6087_v48 = vpop.f32.mrb[164].mxu1 }
 0x8f0   : > { %v6178_v15 = vmul.f32 %v19066_v5, %v5926_v57  ;;  %v6180_v63 = vmul.f32 %v19069_v51, %v6087_v48  ;;  %v5928_v9 = vpop.f32.mrb[165].mxu0  ;;  %v6089_v31 = vpop.f32.mrb[165].mxu1  ;;  %v12847_v6 = vpack.c.bf16 %v6260_v26, %v6259_v27  ;;  %v12848_v44 = vpack.c.bf16 %v6262_v28, %v6261_v38 }
 0x8f1   : > { %v6179_v22 = vmul.f32 %v19076_v42, %v5928_v9  ;;  %v6181_v2 = vmul.f32 %v19079_v36, %v6089_v31 }
 0x8f2   : > { %v6263_v3 = vmul.f32 %v19412_v18, %v6178_v15  ;;  %v6265_v53 = vmul.f32 %v19415_v20, %v6180_v63  ;;  %6513 = vst [vmem:[%s17293_s2 + $0x10] sm:$0xff] %v12847_v6  ;;  %6514 = vst [vmem:[%s17293_s2 + $0x18] sm:$0xff] %v12848_v44 }
 0x8f3   : > { %v6264_v5 = vmul.f32 %v19418_v58, %v6179_v22  ;;  %v6266_v51 = vmul.f32 %v19421_v62, %v6181_v2  ;;  %v5932_v59 = vpop.f32.mrb[166].mxu0  ;;  %v6093_v60 = vpop.f32.mrb[166].mxu1 }
 0x8f4   : > { %v6182_v21 = vmul.f32 %v19098_v32, %v5932_v59  ;;  %v6184_v42 = vmul.f32 %v19103_v40, %v6093_v60  ;;  %v5934_v14 = vpop.f32.mrb[167].mxu0  ;;  %v6095_v36 = vpop.f32.mrb[167].mxu1 }
 0x8f5   : > { %v12849_v49 = vpack.c.bf16 %v6264_v5, %v6263_v3  ;;  %v12850_v33 = vpack.c.bf16 %v6266_v51, %v6265_v53  ;;  %v6183_v43 = vmul.f32 %v19088_v10, %v5934_v14  ;;  %v6185_v61 = vmul.f32 %v19091_v55, %v6095_v36 }
 0x8f6   : > { %v6267_v16 = vmul.f32 %v19412_v18, %v6182_v21  ;;  %v6269_v24 = vmul.f32 %v19415_v20, %v6184_v42 }
 0x8f7   : > { %6515 = vst [vmem:[%s17293_s2 + $0x20] sm:$0xff] %v12849_v49  ;;  %6516 = vst [vmem:[%s17293_s2 + $0x28] sm:$0xff] %v12850_v33  ;;  %v6268_v32 = vmul.f32 %v19418_v58, %v6183_v43  ;;  %v6270_v40 = vmul.f32 %v19421_v62, %v6185_v61  ;;  %v5938_v4 = vpop.f32.mrb[168].mxu0  ;;  %v6099_v13 = vpop.f32.mrb[168].mxu1 }
 0x8f8   : > { %v6186_v27 = vmul.f32 %v19113_v45, %v5938_v4  ;;  %v6188_v10 = vmul.f32 %v19116_v1, %v6099_v13  ;;  %v5940_v38 = vpop.f32.mrb[169].mxu0  ;;  %v6101_v55 = vpop.f32.mrb[169].mxu1 }
 0x8f9   : > { %v12851_v26 = vpack.c.bf16 %v6268_v32, %v6267_v16  ;;  %v12852_v28 = vpack.c.bf16 %v6270_v40, %v6269_v24  ;;  %v6187_v57 = vmul.f32 %v19122_v19, %v5940_v38  ;;  %v6189_v48 = vmul.f32 %v19125_v12, %v6101_v55 }
 0x8fa   : > { %v6271_v15 = vmul.f32 %v19412_v18, %v6186_v27  ;;  %v6273_v63 = vmul.f32 %v19415_v20, %v6188_v10 }
 0x8fb   : > { %6517 = vst [vmem:[%s17293_s2 + $0x30] sm:$0xff] %v12851_v26  ;;  %6518 = vst [vmem:[%s17293_s2 + $0x38] sm:$0xff] %v12852_v28  ;;  %v6272_v45 = vmul.f32 %v19418_v58, %v6187_v57  ;;  %v6274_v1 = vmul.f32 %v19421_v62, %v6189_v48  ;;  %v5944_v9 = vpop.f32.mrb[170].mxu0  ;;  %v6105_v31 = vpop.f32.mrb[170].mxu1 }
 0x8fc   : > { %v6190_v6 = vmul.f32 %v19144_v17, %v5944_v9  ;;  %v6192_v19 = vmul.f32 %v19149_v46, %v6105_v31  ;;  %v5946_v44 = vpop.f32.mrb[171].mxu0  ;;  %v6107_v12 = vpop.f32.mrb[171].mxu1 }
 0x8fd   : > { %v12853_v22 = vpack.c.bf16 %v6272_v45, %v6271_v15  ;;  %v12854_v2 = vpack.c.bf16 %v6274_v1, %v6273_v63  ;;  %v6191_v3 = vmul.f32 %v19134_v23, %v5946_v44  ;;  %v6193_v53 = vmul.f32 %v19137_v52, %v6107_v12  ;;  %v21758_v44 = vld [vmem:[#allocation70_spill] sm:$0xff] }
 0x8fe   : > { %v6275_v5 = vmul.f32 %v19412_v18, %v6190_v6  ;;  %v6277_v51 = vmul.f32 %v19415_v20, %v6192_v19 }
 0x8ff   : > { %6519 = vst [vmem:[%s17293_s2 + $0x40] sm:$0xff] %v12853_v22  ;;  %6520 = vst [vmem:[%s17293_s2 + $0x48] sm:$0xff] %v12854_v2  ;;  %v6276_v17 = vmul.f32 %v19418_v58, %v6191_v3  ;;  %v6278_v46 = vmul.f32 %v19421_v62, %v6193_v53  ;;  %v5950_v59 = vpop.f32.mrb[172].mxu0  ;;  %v6111_v60 = vpop.f32.mrb[172].mxu1  ;;  %v21759_v22 = vld [vmem:[#allocation96_spill] sm:$0xff] }
 0x900   : > { %v6194_v21 = vmul.f32 %v19159_v11, %v5950_v59  ;;  %v6196_v23 = vmul.f32 %v19162_v50, %v6111_v60  ;;  %v5952_v42 = vpop.f32.mrb[173].mxu0  ;;  %v6113_v52 = vpop.f32.mrb[173].mxu1 }
 0x901   : > { %v12855_v14 = vpack.c.bf16 %v6276_v17, %v6275_v5  ;;  %v12856_v36 = vpack.c.bf16 %v6278_v46, %v6277_v51  ;;  %v6195_v49 = vmul.f32 %v19168_v29, %v5952_v42  ;;  %v6197_v33 = vmul.f32 %v19171_v54, %v6113_v52  ;;  %v21760_v5 = vld [vmem:[#allocation69_spill] sm:$0xff]  ;;  %v21761_v17 = vld [vmem:[#allocation74_spill] sm:$0xff] }
 0x902   : > { %v6279_v43 = vmul.f32 %v19412_v18, %v6194_v21  ;;  %v6281_v61 = vmul.f32 %v19415_v20, %v6196_v23 }
 0x903   : > { %6521 = vst [vmem:[%s17293_s2 + $0x50] sm:$0xff] %v12855_v14  ;;  %6522 = vst [vmem:[%s17293_s2 + $0x58] sm:$0xff] %v12856_v36  ;;  %v6280_v11 = vmul.f32 %v19418_v58, %v6195_v49  ;;  %v6282_v50 = vmul.f32 %v19421_v62, %v6197_v33  ;;  %v5956_v16 = vpop.f32.mrb[174].mxu0  ;;  %v6117_v24 = vpop.f32.mrb[174].mxu1  ;;  %v21762_v14 = vld [vmem:[#allocation98_spill] sm:$0xff]  ;;  %v21763_v49 = vld [vmem:[#allocation95_spill] sm:$0xff] }
 0x904   : > { %v6198_v32 = vmul.f32 %v19190_v7, %v5956_v16  ;;  %v6200_v29 = vmul.f32 %v19195_v25, %v6117_v24  ;;  %v5958_v40 = vpop.f32.mrb[175].mxu0  ;;  %v6119_v54 = vpop.f32.mrb[175].mxu1  ;;  %v21764_v16 = vld [vmem:[#allocation97_spill] sm:$0xff] }
 0x905   : > { %v12857_v4 = vpack.c.bf16 %v6280_v11, %v6279_v43  ;;  %v12858_v13 = vpack.c.bf16 %v6282_v50, %v6281_v61  ;;  %v6199_v27 = vmul.f32 %v19180_v39, %v5958_v40  ;;  %v6201_v10 = vmul.f32 %v19183_v47, %v6119_v54 }
 0x906   : > { %v6283_v38 = vmul.f32 %v19412_v18, %v6198_v32  ;;  %v6285_v55 = vmul.f32 %v19415_v20, %v6200_v29  ;;  %v21765_v32 = vld [vmem:[#allocation72_spill] sm:$0xff] }
 0x907   : > { %6523 = vst [vmem:[%s17293_s2 + $0x60] sm:$0xff] %v12857_v4  ;;  %6524 = vst [vmem:[%s17293_s2 + $0x68] sm:$0xff] %v12858_v13  ;;  %v6284_v7 = vmul.f32 %v19418_v58, %v6199_v27  ;;  %v6286_v25 = vmul.f32 %v19421_v62, %v6201_v10  ;;  %v5962_v26 = vpop.f32.mrb[176].mxu0  ;;  %v6123_v28 = vpop.f32.mrb[176].mxu1 }
 0x908   : > { %v6202_v57 = vmul.f32 %v19205_v37, %v5962_v26  ;;  %v6204_v39 = vmul.f32 %v19208_v8, %v6123_v28  ;;  %v5964_v48 = vpop.f32.mrb[177].mxu0  ;;  %v6125_v47 = vpop.f32.mrb[177].mxu1 }
 0x909   : > { %v12859_v15 = vpack.c.bf16 %v6284_v7, %v6283_v38  ;;  %v12860_v63 = vpack.c.bf16 %v6286_v25, %v6285_v55  ;;  %v6203_v45 = vmul.f32 %v19214_v30, %v5964_v48  ;;  %v6205_v1 = vmul.f32 %v19217_v0, %v6125_v47  ;;  %v21766_v38 = vld [vmem:[#allocation73_spill] sm:$0xff]  ;;  %v21767_v7 = vld [vmem:[#allocation80_spill] sm:$0xff]  ;;  %v21768_v48 = vld [vmem:[#allocation75_spill] sm:$0xff] }
 0x90a   : > { %v6287_v9 = vmul.f32 %v19412_v18, %v6202_v57  ;;  %v6289_v31 = vmul.f32 %v19415_v20, %v6204_v39 }
 0x90b   : > { %6525 = vst [vmem:[%s17293_s2 + $0x70] sm:$0xff] %v12859_v15  ;;  %6526 = vst [vmem:[%s17293_s2 + $0x78] sm:$0xff] %v12860_v63  ;;  %v6288_v37 = vmul.f32 %v19418_v58, %v6203_v45  ;;  %v6290_v8 = vmul.f32 %v19421_v62, %v6205_v1  ;;  %v5968_v6 = vpop.f32.mrb[178].mxu0  ;;  %v6129_v19 = vpop.f32.mrb[178].mxu1  ;;  %v21769_v15 = vld [vmem:[#allocation71_spill] sm:$0xff] }
 0x90c   : > { %v6206_v12 = vmul.f32 %v21758_v44, %v5968_v6  ;;  %v6208_v30 = vmul.f32 %v21759_v22, %v6129_v19  ;;  %v5970_v2 = vpop.f32.mrb[179].mxu0  ;;  %v6131_v0 = vpop.f32.mrb[179].mxu1  ;;  %v21770_v6 = vld [vmem:[#allocation78_spill] sm:$0xff]  ;;  %v21771_v44 = vld [vmem:[#allocation81_spill] sm:$0xff] }
 0x90d   : > { %v12861_v3 = vpack.c.bf16 %v6288_v37, %v6287_v9  ;;  %v12862_v53 = vpack.c.bf16 %v6290_v8, %v6289_v31  ;;  %v6207_v51 = vmul.f32 %v21760_v5, %v5970_v2  ;;  %v6209_v46 = vmul.f32 %v21761_v17, %v6131_v0  ;;  %v21773_v5 = vld [vmem:[#allocation86_spill] sm:$0xff] }
 0x90e   : > { %v6291_v59 = vmul.f32 %v19412_v18, %v6206_v12  ;;  %v6293_v60 = vmul.f32 %v19415_v20, %v6208_v30 }
 0x90f   : > { %6527 = vst [vmem:[%s17293_s2 + $0x80] sm:$0xff] %v12861_v3  ;;  %6528 = vst [vmem:[%s17293_s2 + $0x88] sm:$0xff] %v12862_v53  ;;  %v6292_v21 = vmul.f32 %v19418_v58, %v6207_v51  ;;  %v6294_v23 = vmul.f32 %v19421_v62, %v6209_v46  ;;  %v5974_v42 = vpop.f32.mrb[180].mxu0  ;;  %v6135_v52 = vpop.f32.mrb[180].mxu1  ;;  %v21772_v3 = vld [vmem:[#allocation84_spill] sm:$0xff] }
 0x910   : > { %v6210_v36 = vmul.f32 %v21762_v14, %v5974_v42  ;;  %v6212_v33 = vmul.f32 %v21763_v49, %v6135_v52  ;;  %v5976_v43 = vpop.f32.mrb[181].mxu0  ;;  %v6137_v61 = vpop.f32.mrb[181].mxu1  ;;  %v21774_v42 = vld [vmem:[#allocation99_spill] sm:$0xff]  ;;  %v21775_v14 = vld [vmem:[#allocation100_spill] sm:$0xff] }
 0x911   : > { %v12863_v11 = vpack.c.bf16 %v6292_v21, %v6291_v59  ;;  %v12864_v50 = vpack.c.bf16 %v6294_v23, %v6293_v60  ;;  %v6211_v24 = vmul.f32 %v21764_v16, %v5976_v43  ;;  %v6213_v29 = vmul.f32 %v21765_v32, %v6137_v61  ;;  %v21777_v16 = vld [vmem:[#allocation90_spill] sm:$0xff] }
 0x912   : > { %v6295_v40 = vmul.f32 %v19412_v18, %v6210_v36  ;;  %v6297_v54 = vmul.f32 %v19415_v20, %v6212_v33 }
 0x913   : > { %6529 = vst [vmem:[%s17293_s2 + $0x90] sm:$0xff] %v12863_v11  ;;  %6530 = vst [vmem:[%s17293_s2 + $0x98] sm:$0xff] %v12864_v50  ;;  %v6296_v4 = vmul.f32 %v19418_v58, %v6211_v24  ;;  %v6298_v13 = vmul.f32 %v19421_v62, %v6213_v29  ;;  %v5980_v27 = vpop.f32.mrb[182].mxu0  ;;  %v6141_v10 = vpop.f32.mrb[182].mxu1  ;;  %v21776_v11 = vld [vmem:[#allocation88_spill] sm:$0xff] }
 0x914   : > { %v6214_v55 = vmul.f32 %v21766_v38, %v5980_v27  ;;  %v6216_v25 = vmul.f32 %v21767_v7, %v6141_v10  ;;  %v5982_v26 = vpop.f32.mrb[183].mxu0  ;;  %v6143_v28 = vpop.f32.mrb[183].mxu1  ;;  %v21778_v27 = vld [vmem:[#allocation91_spill] sm:$0xff]  ;;  %v21779_v38 = vld [vmem:[#allocation93_spill] sm:$0xff] }
 0x915   : > { %v12865_v57 = vpack.c.bf16 %v6296_v4, %v6295_v40  ;;  %v12866_v39 = vpack.c.bf16 %v6298_v13, %v6297_v54  ;;  %v6215_v47 = vmul.f32 %v21768_v48, %v5982_v26  ;;  %v6217_v63 = vmul.f32 %v21769_v15, %v6143_v28  ;;  %v21781_v48 = vld [vmem:[#allocation104_spill] sm:$0xff] }
 0x916   : > { %v6299_v45 = vmul.f32 %v19412_v18, %v6214_v55  ;;  %v6301_v1 = vmul.f32 %v19415_v20, %v6216_v25 }
 0x917   : > { %6531 = vst [vmem:[%s17293_s2 + $0xa0] sm:$0xff] %v12865_v57  ;;  %6532 = vst [vmem:[%s17293_s2 + $0xa8] sm:$0xff] %v12866_v39  ;;  %v6300_v9 = vmul.f32 %v19418_v58, %v6215_v47  ;;  %v6302_v31 = vmul.f32 %v19421_v62, %v6217_v63  ;;  %v5986_v37 = vpop.f32.mrb[184].mxu0  ;;  %v6147_v8 = vpop.f32.mrb[184].mxu1  ;;  %v21780_v57 = vld [vmem:[#allocation103_spill] sm:$0xff] }
 0x918   : > { %v6218_v19 = vmul.f32 %v21770_v6, %v5986_v37  ;;  %v6220_v12 = vmul.f32 %v21771_v44, %v6147_v8  ;;  %v5988_v22 = vpop.f32.mrb[185].mxu0  ;;  %v6149_v30 = vpop.f32.mrb[185].mxu1  ;;  %v21782_v37 = vld [vmem:[#allocation113_spill] sm:$0xff]  ;;  %v21783_v6 = vld [vmem:[#allocation114_spill] sm:$0xff] }
 0x919   : > { %v12867_v2 = vpack.c.bf16 %v6300_v9, %v6299_v45  ;;  %v12868_v0 = vpack.c.bf16 %v6302_v31, %v6301_v1  ;;  %v6219_v53 = vmul.f32 %v21772_v3, %v5988_v22  ;;  %v6221_v51 = vmul.f32 %v21773_v5, %v6149_v30  ;;  %v21785_v3 = vld [vmem:[#allocation106_spill] sm:$0xff] }
 0x91a   : > { %v6303_v17 = vmul.f32 %v19412_v18, %v6218_v19  ;;  %v6305_v46 = vmul.f32 %v19415_v20, %v6220_v12 }
 0x91b   : > { %6533 = vst [vmem:[%s17293_s2 + $0xb0] sm:$0xff] %v12867_v2  ;;  %6534 = vst [vmem:[%s17293_s2 + $0xb8] sm:$0xff] %v12868_v0  ;;  %v6304_v59 = vmul.f32 %v19418_v58, %v6219_v53  ;;  %v6306_v60 = vmul.f32 %v19421_v62, %v6221_v51  ;;  %v5992_v21 = vpop.f32.mrb[186].mxu0  ;;  %v6153_v23 = vpop.f32.mrb[186].mxu1  ;;  %v21784_v2 = vld [vmem:[#allocation105_spill] sm:$0xff] }
 0x91c   : > { %v6222_v52 = vmul.f32 %v21774_v42, %v5992_v21  ;;  %v6224_v36 = vmul.f32 %v21775_v14, %v6153_v23  ;;  %v5994_v49 = vpop.f32.mrb[187].mxu0  ;;  %v6155_v33 = vpop.f32.mrb[187].mxu1  ;;  %v6671_v21 = vld [vmem:[#allocation18] sm:$0xf] }
 0x91d   : > { %v12869_v43 = vpack.c.bf16 %v6304_v59, %v6303_v17  ;;  %v12870_v61 = vpack.c.bf16 %v6306_v60, %v6305_v46  ;;  %v6223_v50 = vmul.f32 %v21776_v11, %v5994_v49  ;;  %v6225_v24 = vmul.f32 %v21777_v16, %v6155_v33 }
 0x91e   : > { %v6307_v32 = vmul.f32 %v19412_v18, %v6222_v52  ;;  %v6309_v29 = vmul.f32 %v19415_v20, %v6224_v36  ;;  %v19584_v23 = vrot.slane %v6671_v21, %v21642_v56  ;;  %v19587_v42 = vrot.slane %v6671_v21, %v21643_v41 }
 0x91f   : > { %6535 = vst [vmem:[%s17293_s2 + $0xc0] sm:$0xff] %v12869_v43  ;;  %6536 = vst [vmem:[%s17293_s2 + $0xc8] sm:$0xff] %v12870_v61  ;;  %v6308_v40 = vmul.f32 %v19418_v58, %v6223_v50  ;;  %v6310_v54 = vmul.f32 %v19421_v62, %v6225_v24  ;;  %v5998_v4 = vpop.f32.mrb[188].mxu0  ;;  %v6159_v13 = vpop.f32.mrb[188].mxu1 }
 0x920   : > { %v6226_v10 = vmul.f32 %v21778_v27, %v5998_v4  ;;  %v6228_v55 = vmul.f32 %v21779_v38, %v6159_v13  ;;  %v6000_v7 = vpop.f32.mrb[189].mxu0  ;;  %v6161_v25 = vpop.f32.mrb[189].mxu1 }
 0x921   : > { %v12871_v26 = vpack.c.bf16 %v6308_v40, %v6307_v32  ;;  %v12872_v28 = vpack.c.bf16 %v6310_v54, %v6309_v29  ;;  %v6227_v39 = vmul.f32 %v21780_v57, %v6000_v7  ;;  %v6229_v47 = vmul.f32 %v21781_v48, %v6161_v25 }
 0x922   : > { %v6311_v15 = vmul.f32 %v19412_v18, %v6226_v10  ;;  %v6313_v63 = vmul.f32 %v19415_v20, %v6228_v55 }
 0x923   : > { %6537 = vst [vmem:[%s17293_s2 + $0xd0] sm:$0xff] %v12871_v26  ;;  %6538 = vst [vmem:[%s17293_s2 + $0xd8] sm:$0xff] %v12872_v28  ;;  %v6312_v45 = vmul.f32 %v19418_v58, %v6227_v39  ;;  %v6314_v1 = vmul.f32 %v19421_v62, %v6229_v47  ;;  %v6004_v9 = vpop.f32.mrb[190].mxu0  ;;  %v6165_v31 = vpop.f32.mrb[190].mxu1 }
 0x924   : > { %v6230_v8 = vmul.f32 %v21782_v37, %v6004_v9  ;;  %v6232_v19 = vmul.f32 %v21783_v6, %v6165_v31  ;;  %v6006_v44 = vpop.f32.mrb[191].mxu0  ;;  %v6167_v12 = vpop.f32.mrb[191].mxu1 }
 0x925   : > { %v12873_v22 = vpack.c.bf16 %v6312_v45, %v6311_v15  ;;  %v12874_v30 = vpack.c.bf16 %v6314_v1, %v6313_v63  ;;  %v6231_v0 = vmul.f32 %v21784_v2, %v6006_v44  ;;  %v6233_v53 = vmul.f32 %v21785_v3, %v6167_v12 }
 0x926   : > { %v6315_v5 = vmul.f32 %v19412_v18, %v6230_v8  ;;  %v6317_v51 = vmul.f32 %v19415_v20, %v6232_v19  ;;  %v19590_v18 = vrot.slane %v6671_v21, %v21644_v35  ;;  %v19593_v20 = vrot.slane %v6671_v21, %v21645_v34 }
 0x927   : > { %6539 = vst [vmem:[%s17293_s2 + $0xe0] sm:$0xff] %v12873_v22  ;;  %6540 = vst [vmem:[%s17293_s2 + $0xe8] sm:$0xff] %v12874_v30  ;;  %v6316_v17 = vmul.f32 %v19418_v58, %v6231_v0  ;;  %v6318_v46 = vmul.f32 %v19421_v62, %v6233_v53 }
 0x929   : > { %v12875_v59 = vpack.c.bf16 %v6316_v17, %v6315_v5  ;;  %v12876_v60 = vpack.c.bf16 %v6318_v46, %v6317_v51 }
 0x92b   : > { %6541 = vst [vmem:[%s17293_s2 + $0xf0] sm:$0xff] %v12875_v59  ;;  %6542 = vst [vmem:[%s17293_s2 + $0xf8] sm:$0xff] %v12876_v60 }
 0x967   : > { %v7480_v58 = vpop.f32.mrb[192].mxu0  ;;  %v7706_v52 = vpop.f32.mrb[192].mxu1 }
 0x968   : > { %v13617_v62 = vadd.f32 %v7480_v58, %v19584_v23  ;;  %v13649_v14 = vadd.f32 %v7706_v52, %v19587_v42  ;;  %v7482_v36 = vpop.f32.mrb[193].mxu0  ;;  %v7708_v56 = vpop.f32.mrb[193].mxu1 }
 0x969   : > { %v13618_v49 = vadd.f32 %v7482_v36, %v19590_v18  ;;  %v13650_v41 = vadd.f32 %v7708_v56, %v19593_v20  ;;  %v7484_v35 = vpop.f32.mrb[194].mxu0  ;;  %v7710_v33 = vpop.f32.mrb[194].mxu1 }
 0x96a   : > { %v13619_v34 = vadd.f32 %v7484_v35, %v19584_v23  ;;  %v13651_v43 = vadd.f32 %v7710_v33, %v19587_v42  ;;  %v7486_v61 = vpop.f32.mrb[195].mxu0  ;;  %v7712_v11 = vpop.f32.mrb[195].mxu1 }
 0x96b   : > { %v12877_v50 = vpack.c.bf16 %v13618_v49, %v13617_v62  ;;  %v12878_v16 = vpack.c.bf16 %v13650_v41, %v13649_v14  ;;  %v13620_v24 = vadd.f32 %v7486_v61, %v19590_v18  ;;  %v13652_v32 = vadd.f32 %v7712_v11, %v19593_v20 }
 0x96d   : > { %7977 = vst [vmem:[%s17295_s26] sm:$0xff] %v12877_v50  ;;  %7978 = vst [vmem:[%s17295_s26 + $0x8] sm:$0xff] %v12878_v16  ;;  %v12879_v29 = vpack.c.bf16 %v13620_v24, %v13619_v34  ;;  %v12880_v40 = vpack.c.bf16 %v13652_v32, %v13651_v43 }
 0x96f   : > { %7979 = vst [vmem:[%s17295_s26 + $0x10] sm:$0xff] %v12879_v29  ;;  %7980 = vst [vmem:[%s17295_s26 + $0x18] sm:$0xff] %v12880_v40  ;;  %v7490_v54 = vpop.f32.mrb[196].mxu0  ;;  %v7716_v4 = vpop.f32.mrb[196].mxu1 }
 0x970   : > { %v13621_v13 = vadd.f32 %v7490_v54, %v19584_v23  ;;  %v13653_v27 = vadd.f32 %v7716_v4, %v19587_v42  ;;  %v7492_v10 = vpop.f32.mrb[197].mxu0  ;;  %v7718_v38 = vpop.f32.mrb[197].mxu1 }
 0x971   : > { %v13622_v55 = vadd.f32 %v7492_v10, %v19590_v18  ;;  %v13654_v7 = vadd.f32 %v7718_v38, %v19593_v20  ;;  %v7494_v25 = vpop.f32.mrb[198].mxu0  ;;  %v7720_v26 = vpop.f32.mrb[198].mxu1 }
 0x972   : > { %v13623_v28 = vadd.f32 %v7494_v25, %v19584_v23  ;;  %v13655_v57 = vadd.f32 %v7720_v26, %v19587_v42  ;;  %v7496_v39 = vpop.f32.mrb[199].mxu0  ;;  %v7722_v48 = vpop.f32.mrb[199].mxu1 }
 0x973   : > { %v12881_v47 = vpack.c.bf16 %v13622_v55, %v13621_v13  ;;  %v12882_v15 = vpack.c.bf16 %v13654_v7, %v13653_v27  ;;  %v13624_v63 = vadd.f32 %v7496_v39, %v19590_v18  ;;  %v13656_v45 = vadd.f32 %v7722_v48, %v19593_v20 }
 0x975   : > { %7981 = vst [vmem:[%s17295_s26 + $0x20] sm:$0xff] %v12881_v47  ;;  %7982 = vst [vmem:[%s17295_s26 + $0x28] sm:$0xff] %v12882_v15  ;;  %v12883_v1 = vpack.c.bf16 %v13624_v63, %v13623_v28  ;;  %v12884_v9 = vpack.c.bf16 %v13656_v45, %v13655_v57 }
 0x977   : > { %7983 = vst [vmem:[%s17295_s26 + $0x30] sm:$0xff] %v12883_v1  ;;  %7984 = vst [vmem:[%s17295_s26 + $0x38] sm:$0xff] %v12884_v9  ;;  %v7500_v31 = vpop.f32.mrb[200].mxu0  ;;  %v7726_v37 = vpop.f32.mrb[200].mxu1 }
 0x978   : > { %v13625_v8 = vadd.f32 %v7500_v31, %v19584_v23  ;;  %v13657_v6 = vadd.f32 %v7726_v37, %v19587_v42  ;;  %v7502_v19 = vpop.f32.mrb[201].mxu0  ;;  %v7728_v44 = vpop.f32.mrb[201].mxu1 }
 0x979   : > { %v13626_v12 = vadd.f32 %v7502_v19, %v19590_v18  ;;  %v13658_v22 = vadd.f32 %v7728_v44, %v19593_v20  ;;  %v7504_v30 = vpop.f32.mrb[202].mxu0  ;;  %v7730_v2 = vpop.f32.mrb[202].mxu1 }
 0x97a   : > { %v13627_v0 = vadd.f32 %v7504_v30, %v19584_v23  ;;  %v13659_v3 = vadd.f32 %v7730_v2, %v19587_v42  ;;  %v7506_v53 = vpop.f32.mrb[203].mxu0  ;;  %v7732_v5 = vpop.f32.mrb[203].mxu1 }
 0x97b   : > { %v12885_v51 = vpack.c.bf16 %v13626_v12, %v13625_v8  ;;  %v12886_v17 = vpack.c.bf16 %v13658_v22, %v13657_v6  ;;  %v13628_v46 = vadd.f32 %v7506_v53, %v19590_v18  ;;  %v13660_v59 = vadd.f32 %v7732_v5, %v19593_v20 }
 0x97d   : > { %7985 = vst [vmem:[%s17295_s26 + $0x40] sm:$0xff] %v12885_v51  ;;  %7986 = vst [vmem:[%s17295_s26 + $0x48] sm:$0xff] %v12886_v17  ;;  %v12887_v60 = vpack.c.bf16 %v13628_v46, %v13627_v0  ;;  %v12888_v21 = vpack.c.bf16 %v13660_v59, %v13659_v3 }
 0x97f   : > { %7987 = vst [vmem:[%s17295_s26 + $0x50] sm:$0xff] %v12887_v60  ;;  %7988 = vst [vmem:[%s17295_s26 + $0x58] sm:$0xff] %v12888_v21  ;;  %v7510_v58 = vpop.f32.mrb[204].mxu0  ;;  %v7736_v52 = vpop.f32.mrb[204].mxu1 }
 0x980   : > { %v13629_v62 = vadd.f32 %v7510_v58, %v19584_v23  ;;  %v13661_v14 = vadd.f32 %v7736_v52, %v19587_v42  ;;  %v7512_v36 = vpop.f32.mrb[205].mxu0  ;;  %v7738_v56 = vpop.f32.mrb[205].mxu1 }
 0x981   : > { %v13630_v49 = vadd.f32 %v7512_v36, %v19590_v18  ;;  %v13662_v41 = vadd.f32 %v7738_v56, %v19593_v20  ;;  %v7514_v35 = vpop.f32.mrb[206].mxu0  ;;  %v7740_v33 = vpop.f32.mrb[206].mxu1 }
 0x982   : > { %v13631_v34 = vadd.f32 %v7514_v35, %v19584_v23  ;;  %v13663_v43 = vadd.f32 %v7740_v33, %v19587_v42  ;;  %v7516_v61 = vpop.f32.mrb[207].mxu0  ;;  %v7742_v11 = vpop.f32.mrb[207].mxu1 }
 0x983   : > { %v12889_v50 = vpack.c.bf16 %v13630_v49, %v13629_v62  ;;  %v12890_v16 = vpack.c.bf16 %v13662_v41, %v13661_v14  ;;  %v13632_v24 = vadd.f32 %v7516_v61, %v19590_v18  ;;  %v13664_v32 = vadd.f32 %v7742_v11, %v19593_v20 }
 0x985   : > { %7989 = vst [vmem:[%s17295_s26 + $0x60] sm:$0xff] %v12889_v50  ;;  %7990 = vst [vmem:[%s17295_s26 + $0x68] sm:$0xff] %v12890_v16  ;;  %v12891_v29 = vpack.c.bf16 %v13632_v24, %v13631_v34  ;;  %v12892_v40 = vpack.c.bf16 %v13664_v32, %v13663_v43 }
 0x987   : > { %7991 = vst [vmem:[%s17295_s26 + $0x70] sm:$0xff] %v12891_v29  ;;  %7992 = vst [vmem:[%s17295_s26 + $0x78] sm:$0xff] %v12892_v40  ;;  %v7520_v54 = vpop.f32.mrb[208].mxu0  ;;  %v7746_v4 = vpop.f32.mrb[208].mxu1 }
 0x988   : > { %v13633_v13 = vadd.f32 %v7520_v54, %v19584_v23  ;;  %v13665_v27 = vadd.f32 %v7746_v4, %v19587_v42  ;;  %v7522_v10 = vpop.f32.mrb[209].mxu0  ;;  %v7748_v38 = vpop.f32.mrb[209].mxu1 }
 0x989   : > { %v13634_v55 = vadd.f32 %v7522_v10, %v19590_v18  ;;  %v13666_v7 = vadd.f32 %v7748_v38, %v19593_v20  ;;  %v7524_v25 = vpop.f32.mrb[210].mxu0  ;;  %v7750_v26 = vpop.f32.mrb[210].mxu1 }
 0x98a   : > { %v13635_v28 = vadd.f32 %v7524_v25, %v19584_v23  ;;  %v13667_v57 = vadd.f32 %v7750_v26, %v19587_v42  ;;  %v7526_v39 = vpop.f32.mrb[211].mxu0  ;;  %v7752_v48 = vpop.f32.mrb[211].mxu1 }
 0x98b   : > { %v12893_v47 = vpack.c.bf16 %v13634_v55, %v13633_v13  ;;  %v12894_v15 = vpack.c.bf16 %v13666_v7, %v13665_v27  ;;  %v13636_v63 = vadd.f32 %v7526_v39, %v19590_v18  ;;  %v13668_v45 = vadd.f32 %v7752_v48, %v19593_v20 }
 0x98d   : > { %7993 = vst [vmem:[%s17295_s26 + $0x80] sm:$0xff] %v12893_v47  ;;  %7994 = vst [vmem:[%s17295_s26 + $0x88] sm:$0xff] %v12894_v15  ;;  %v12895_v1 = vpack.c.bf16 %v13636_v63, %v13635_v28  ;;  %v12896_v9 = vpack.c.bf16 %v13668_v45, %v13667_v57 }
 0x98f   : > { %7995 = vst [vmem:[%s17295_s26 + $0x90] sm:$0xff] %v12895_v1  ;;  %7996 = vst [vmem:[%s17295_s26 + $0x98] sm:$0xff] %v12896_v9  ;;  %v7530_v31 = vpop.f32.mrb[212].mxu0  ;;  %v7756_v37 = vpop.f32.mrb[212].mxu1 }
 0x990   : > { %v13637_v8 = vadd.f32 %v7530_v31, %v19584_v23  ;;  %v13669_v6 = vadd.f32 %v7756_v37, %v19587_v42  ;;  %v7532_v19 = vpop.f32.mrb[213].mxu0  ;;  %v7758_v44 = vpop.f32.mrb[213].mxu1 }
 0x991   : > { %v13638_v12 = vadd.f32 %v7532_v19, %v19590_v18  ;;  %v13670_v22 = vadd.f32 %v7758_v44, %v19593_v20  ;;  %v7534_v30 = vpop.f32.mrb[214].mxu0  ;;  %v7760_v2 = vpop.f32.mrb[214].mxu1 }
 0x992   : > { %v13639_v0 = vadd.f32 %v7534_v30, %v19584_v23  ;;  %v13671_v3 = vadd.f32 %v7760_v2, %v19587_v42  ;;  %v7536_v53 = vpop.f32.mrb[215].mxu0  ;;  %v7762_v5 = vpop.f32.mrb[215].mxu1 }
 0x993   : > { %v12897_v51 = vpack.c.bf16 %v13638_v12, %v13637_v8  ;;  %v12898_v17 = vpack.c.bf16 %v13670_v22, %v13669_v6  ;;  %v13640_v46 = vadd.f32 %v7536_v53, %v19590_v18  ;;  %v13672_v59 = vadd.f32 %v7762_v5, %v19593_v20 }
 0x995   : > { %7997 = vst [vmem:[%s17295_s26 + $0xa0] sm:$0xff] %v12897_v51  ;;  %7998 = vst [vmem:[%s17295_s26 + $0xa8] sm:$0xff] %v12898_v17  ;;  %v12899_v60 = vpack.c.bf16 %v13640_v46, %v13639_v0  ;;  %v12900_v21 = vpack.c.bf16 %v13672_v59, %v13671_v3 }
 0x997   : > { %7999 = vst [vmem:[%s17295_s26 + $0xb0] sm:$0xff] %v12899_v60  ;;  %8000 = vst [vmem:[%s17295_s26 + $0xb8] sm:$0xff] %v12900_v21  ;;  %v7540_v58 = vpop.f32.mrb[216].mxu0  ;;  %v7766_v52 = vpop.f32.mrb[216].mxu1 }
 0x998   : > { %v13641_v62 = vadd.f32 %v7540_v58, %v19584_v23  ;;  %v13673_v14 = vadd.f32 %v7766_v52, %v19587_v42  ;;  %v7542_v36 = vpop.f32.mrb[217].mxu0  ;;  %v7768_v56 = vpop.f32.mrb[217].mxu1 }
 0x999   : > { %v13642_v49 = vadd.f32 %v7542_v36, %v19590_v18  ;;  %v13674_v41 = vadd.f32 %v7768_v56, %v19593_v20  ;;  %v7544_v35 = vpop.f32.mrb[218].mxu0  ;;  %v7770_v33 = vpop.f32.mrb[218].mxu1 }
 0x99a   : > { %v13643_v34 = vadd.f32 %v7544_v35, %v19584_v23  ;;  %v13675_v43 = vadd.f32 %v7770_v33, %v19587_v42  ;;  %v7546_v61 = vpop.f32.mrb[219].mxu0  ;;  %v7772_v11 = vpop.f32.mrb[219].mxu1 }
 0x99b   : > { %v12901_v50 = vpack.c.bf16 %v13642_v49, %v13641_v62  ;;  %v12902_v16 = vpack.c.bf16 %v13674_v41, %v13673_v14  ;;  %v13644_v24 = vadd.f32 %v7546_v61, %v19590_v18  ;;  %v13676_v32 = vadd.f32 %v7772_v11, %v19593_v20 }
 0x99d   : > { %8001 = vst [vmem:[%s17295_s26 + $0xc0] sm:$0xff] %v12901_v50  ;;  %8002 = vst [vmem:[%s17295_s26 + $0xc8] sm:$0xff] %v12902_v16  ;;  %v12903_v29 = vpack.c.bf16 %v13644_v24, %v13643_v34  ;;  %v12904_v40 = vpack.c.bf16 %v13676_v32, %v13675_v43 }
 0x99f   : > { %8003 = vst [vmem:[%s17295_s26 + $0xd0] sm:$0xff] %v12903_v29  ;;  %8004 = vst [vmem:[%s17295_s26 + $0xd8] sm:$0xff] %v12904_v40  ;;  %v7550_v54 = vpop.f32.mrb[220].mxu0  ;;  %v7776_v4 = vpop.f32.mrb[220].mxu1 }
 0x9a0   : > { %v13645_v13 = vadd.f32 %v7550_v54, %v19584_v23  ;;  %v13677_v27 = vadd.f32 %v7776_v4, %v19587_v42  ;;  %v7552_v10 = vpop.f32.mrb[221].mxu0  ;;  %v7778_v38 = vpop.f32.mrb[221].mxu1 }
 0x9a1   : > { %v13646_v55 = vadd.f32 %v7552_v10, %v19590_v18  ;;  %v13678_v7 = vadd.f32 %v7778_v38, %v19593_v20  ;;  %v7554_v25 = vpop.f32.mrb[222].mxu0  ;;  %v7780_v26 = vpop.f32.mrb[222].mxu1 }
 0x9a2   : > { %v13647_v28 = vadd.f32 %v7554_v25, %v19584_v23  ;;  %v13679_v57 = vadd.f32 %v7780_v26, %v19587_v42  ;;  %v7556_v39 = vpop.f32.mrb[223].mxu0  ;;  %v7782_v48 = vpop.f32.mrb[223].mxu1 }
 0x9a3   : > { %v12905_v47 = vpack.c.bf16 %v13646_v55, %v13645_v13  ;;  %v12906_v15 = vpack.c.bf16 %v13678_v7, %v13677_v27  ;;  %v13648_v63 = vadd.f32 %v7556_v39, %v19590_v18  ;;  %v13680_v45 = vadd.f32 %v7782_v48, %v19593_v20 }
 0x9a5   : > { %8005 = vst [vmem:[%s17295_s26 + $0xe0] sm:$0xff] %v12905_v47  ;;  %8006 = vst [vmem:[%s17295_s26 + $0xe8] sm:$0xff] %v12906_v15  ;;  %v12907_v1 = vpack.c.bf16 %v13648_v63, %v13647_v28  ;;  %v12908_v9 = vpack.c.bf16 %v13680_v45, %v13679_v57 }
 0x9a7   : > { %8007 = vst [vmem:[%s17295_s26 + $0xf0] sm:$0xff] %v12907_v1  ;;  %8008 = vst [vmem:[%s17295_s26 + $0xf8] sm:$0xff] %v12908_v9 }
 0x9a8 PF: > { %v15161_v23 = vld [vmem:[%s17276_s30 + $0x4] ss:$16 sps:$4 sm:$0xff]   ;;  %v15163_v42 = vld [vmem:[%s17276_s30 + $0xc] ss:$16 sps:$4 sm:$0xff]   ;;  %v15165_v18 = vld [vmem:[%s17276_s30] ss:$16 sps:$4 sm:$0xff]  }
 0x9a9   : > { %8895 = vmatprep.subr.bf16.mxu0 %v15161_v23  ;;  %v15166_v20 = vld [vmem:[%s17276_s30 + $0x8] ss:$16 sps:$4 sm:$0xff]   ;;  %9121 = vmatprep.subr.bf16.mxu1 %v15163_v42  ;;  %v15167_v31 = vld [vmem:[%s17276_s30 + $0x24] ss:$16 sps:$4 sm:$0xff]   ;;  %v15169_v37 = vld [vmem:[%s17276_s30 + $0x2c] ss:$16 sps:$4 sm:$0xff]  }
 0x9aa   : > { %8896 = vmatpush1.bf16.msra.mxu0 %v15165_v18  ;;  %9122 = vmatpush1.bf16.msra.mxu1 %v15166_v20  ;;  %v15171_v8 = vld [vmem:[%s17276_s30 + $0x20] ss:$16 sps:$4 sm:$0xff]   ;;  %v15172_v6 = vld [vmem:[%s17276_s30 + $0x28] ss:$16 sps:$4 sm:$0xff]   ;;  %v15173_v19 = vld [vmem:[%s17276_s30 + $0x44] ss:$16 sps:$4 sm:$0xff]  }
 0x9ab   : > { %8897 = vmatprep.subr.bf16.mxu0 %v15167_v31  ;;  %9123 = vmatprep.subr.bf16.mxu1 %v15169_v37  ;;  %v15175_v44 = vld [vmem:[%s17276_s30 + $0x4c] ss:$16 sps:$4 sm:$0xff]   ;;  %v15177_v12 = vld [vmem:[%s17276_s30 + $0x40] ss:$16 sps:$4 sm:$0xff]   ;;  %v15178_v22 = vld [vmem:[%s17276_s30 + $0x48] ss:$16 sps:$4 sm:$0xff]  }
 0x9ac   : > { %v15179_v30 = vld [vmem:[%s17276_s30 + $0x64] ss:$16 sps:$4 sm:$0xff]   ;;  %v15181_v2 = vld [vmem:[%s17276_s30 + $0x6c] ss:$16 sps:$4 sm:$0xff]   ;;  %v15183_v0 = vld [vmem:[%s17276_s30 + $0x60] ss:$16 sps:$4 sm:$0xff]  }
 0x9ad   : > { %v15184_v3 = vld [vmem:[%s17276_s30 + $0x68] ss:$16 sps:$4 sm:$0xff]   ;;  %v15185_v53 = vld [vmem:[%s17276_s30 + $0x84] ss:$16 sps:$4 sm:$0xff]   ;;  %v15187_v5 = vld [vmem:[%s17276_s30 + $0x8c] ss:$16 sps:$4 sm:$0xff]  }
 0x9ae   : > { %8898 = vmatpush1.bf16.msra.mxu0 %v15171_v8  ;;  %9124 = vmatpush1.bf16.msra.mxu1 %v15172_v6  ;;  %v15189_v51 = vld [vmem:[%s17276_s30 + $0x80] ss:$16 sps:$4 sm:$0xff]   ;;  %v15190_v17 = vld [vmem:[%s17276_s30 + $0x88] ss:$16 sps:$4 sm:$0xff]   ;;  %v15191_v46 = vld [vmem:[%s17276_s30 + $0xa4] ss:$16 sps:$4 sm:$0xff]  }
 0x9af   : > { %8899 = vmatprep.subr.bf16.mxu0 %v15173_v19  ;;  %9125 = vmatprep.subr.bf16.mxu1 %v15175_v44  ;;  %v15193_v59 = vld [vmem:[%s17276_s30 + $0xac] ss:$16 sps:$4 sm:$0xff]   ;;  %v15195_v60 = vld [vmem:[%s17276_s30 + $0xa0] ss:$16 sps:$4 sm:$0xff]   ;;  %v15196_v21 = vld [vmem:[%s17276_s30 + $0xa8] ss:$16 sps:$4 sm:$0xff]  }
 0x9b0   : > { %v15197_v58 = vld [vmem:[%s17276_s30 + $0xc4] ss:$16 sps:$4 sm:$0xff]   ;;  %v15199_v52 = vld [vmem:[%s17276_s30 + $0xcc] ss:$16 sps:$4 sm:$0xff]   ;;  %v15201_v62 = vld [vmem:[%s17276_s30 + $0xc0] ss:$16 sps:$4 sm:$0xff]  }
 0x9b1   : > { %v15202_v14 = vld [vmem:[%s17276_s30 + $0xc8] ss:$16 sps:$4 sm:$0xff]   ;;  %v15203_v36 = vld [vmem:[%s17276_s30 + $0xe4] ss:$16 sps:$4 sm:$0xff]   ;;  %v15205_v56 = vld [vmem:[%s17276_s30 + $0xec] ss:$16 sps:$4 sm:$0xff]  }
 0x9b2   : > { %8900 = vmatpush1.bf16.msra.mxu0 %v15177_v12  ;;  %9126 = vmatpush1.bf16.msra.mxu1 %v15178_v22  ;;  %v15207_v49 = vld [vmem:[%s17276_s30 + $0xe0] ss:$16 sps:$4 sm:$0xff]   ;;  %v15208_v41 = vld [vmem:[%s17276_s30 + $0xe8] ss:$16 sps:$4 sm:$0xff]   ;;  %v15209_v35 = vld [vmem:[%s17276_s30 + $0x104] ss:$16 sps:$4 sm:$0xff]  }
 0x9b3   : > { %8901 = vmatprep.subr.bf16.mxu0 %v15179_v30  ;;  %9127 = vmatprep.subr.bf16.mxu1 %v15181_v2  ;;  %v15211_v33 = vld [vmem:[%s17276_s30 + $0x10c] ss:$16 sps:$4 sm:$0xff]   ;;  %v15213_v34 = vld [vmem:[%s17276_s30 + $0x100] ss:$16 sps:$4 sm:$0xff]   ;;  %v15214_v43 = vld [vmem:[%s17276_s30 + $0x108] ss:$16 sps:$4 sm:$0xff]  }
 0x9b4   : > { %v15215_v61 = vld [vmem:[%s17276_s30 + $0x124] ss:$16 sps:$4 sm:$0xff]   ;;  %v15217_v11 = vld [vmem:[%s17276_s30 + $0x12c] ss:$16 sps:$4 sm:$0xff]   ;;  %v15219_v50 = vld [vmem:[%s17276_s30 + $0x120] ss:$16 sps:$4 sm:$0xff]  }
 0x9b5   : > { %v15220_v16 = vld [vmem:[%s17276_s30 + $0x128] ss:$16 sps:$4 sm:$0xff]   ;;  %v15221_v24 = vld [vmem:[%s17276_s30 + $0x144] ss:$16 sps:$4 sm:$0xff]   ;;  %v15223_v32 = vld [vmem:[%s17276_s30 + $0x14c] ss:$16 sps:$4 sm:$0xff]  }
 0x9b6   : > { %8902 = vmatpush1.bf16.msra.mxu0 %v15183_v0  ;;  %9128 = vmatpush1.bf16.msra.mxu1 %v15184_v3  ;;  %v15225_v29 = vld [vmem:[%s17276_s30 + $0x140] ss:$16 sps:$4 sm:$0xff]   ;;  %v15226_v40 = vld [vmem:[%s17276_s30 + $0x148] ss:$16 sps:$4 sm:$0xff]   ;;  %v15227_v54 = vld [vmem:[%s17276_s30 + $0x164] ss:$16 sps:$4 sm:$0xff]  }
 0x9b7   : > { %8903 = vmatprep.subr.bf16.mxu0 %v15185_v53  ;;  %9129 = vmatprep.subr.bf16.mxu1 %v15187_v5  ;;  %v15229_v4 = vld [vmem:[%s17276_s30 + $0x16c] ss:$16 sps:$4 sm:$0xff]   ;;  %v8074_v13 = vld [vmem:[#allocation2 + $0x8] sm:$0xff]  ;;  %v15231_v27 = vld [vmem:[%s17276_s30 + $0x160] ss:$16 sps:$4 sm:$0xff]   ;;  %s21920_s13 = sld [smem:[#allocation56_spill]] }
 0x9b8   : > { %8927 = vmatprep.mubr.bf16.mxu0 %v8074_v13  ;;  %9153 = vmatprep.mubr.bf16.mxu1 %v8074_v13  ;;  %v15232_v10 = vld [vmem:[%s17276_s30 + $0x168] ss:$16 sps:$4 sm:$0xff]   ;;  %v15233_v38 = vld [vmem:[%s17276_s30 + $0x184] ss:$16 sps:$4 sm:$0xff]   ;;  %v15235_v55 = vld [vmem:[%s17276_s30 + $0x18c] ss:$16 sps:$4 sm:$0xff]  }
 0x9b9   : > { %v15237_v7 = vld [vmem:[%s17276_s30 + $0x180] ss:$16 sps:$4 sm:$0xff]   ;;  %v15238_v25 = vld [vmem:[%s17276_s30 + $0x188] ss:$16 sps:$4 sm:$0xff]   ;;  %v15239_v26 = vld [vmem:[%s17276_s30 + $0x1a4] ss:$16 sps:$4 sm:$0xff]  }
 0x9ba   : > { %8904 = vmatpush1.bf16.msra.mxu0 %v15189_v51  ;;  %9130 = vmatpush1.bf16.msra.mxu1 %v15190_v17  ;;  %v15241_v28 = vld [vmem:[%s17276_s30 + $0x1ac] ss:$16 sps:$4 sm:$0xff]   ;;  %v15243_v57 = vld [vmem:[%s17276_s30 + $0x1a0] ss:$16 sps:$4 sm:$0xff]   ;;  %v15244_v39 = vld [vmem:[%s17276_s30 + $0x1a8] ss:$16 sps:$4 sm:$0xff]  }
 0x9bb   : > { %8905 = vmatprep.subr.bf16.mxu0 %v15191_v46  ;;  %9131 = vmatprep.subr.bf16.mxu1 %v15193_v59  ;;  %v15245_v48 = vld [vmem:[%s17276_s30 + $0x1c4] ss:$16 sps:$4 sm:$0xff]   ;;  %v15247_v47 = vld [vmem:[%s17276_s30 + $0x1cc] ss:$16 sps:$4 sm:$0xff]   ;;  %v15249_v15 = vld [vmem:[%s17276_s30 + $0x1c0] ss:$16 sps:$4 sm:$0xff]  }
 0x9bc   : > { %v15250_v63 = vld [vmem:[%s17276_s30 + $0x1c8] ss:$16 sps:$4 sm:$0xff]   ;;  %v15251_v45 = vld [vmem:[%s17276_s30 + $0x1e4] ss:$16 sps:$4 sm:$0xff]   ;;  %v15253_v1 = vld [vmem:[%s17276_s30 + $0x1ec] ss:$16 sps:$4 sm:$0xff]  }
 0x9bd   : > { %v15255_v9 = vld [vmem:[%s17276_s30 + $0x1e0] ss:$16 sps:$4 sm:$0xff]   ;;  %v15256_v23 = vld [vmem:[%s17276_s30 + $0x1e8] ss:$16 sps:$4 sm:$0xff]   ;;  %v15259_v42 = vld [vmem:[%s17276_s30 + $0x204] ss:$16 sps:$4 sm:$0xff]  }
 0x9be   : > { %8906 = vmatpush1.bf16.msra.mxu0 %v15195_v60  ;;  %9132 = vmatpush1.bf16.msra.mxu1 %v15196_v21  ;;  %v15262_v18 = vld [vmem:[%s17276_s30 + $0x20c] ss:$16 sps:$4 sm:$0xff]   ;;  %v15257_v31 = vld [vmem:[%s17276_s30 + $0x200] ss:$16 sps:$4 sm:$0xff]   ;;  %v15260_v37 = vld [vmem:[%s17276_s30 + $0x208] ss:$16 sps:$4 sm:$0xff]  }
 0x9bf   : > { %8907 = vmatprep.subr.bf16.mxu0 %v15197_v58  ;;  %9133 = vmatprep.subr.bf16.mxu1 %v15199_v52  ;;  %v8073_v20 = vld [vmem:[#allocation2] sm:$0xff]  ;;  %v15265_v8 = vld [vmem:[%s17276_s30 + $0x224] ss:$16 sps:$4 sm:$0xff]   ;;  %v15266_v12 = vld [vmem:[%s17276_s30 + $0x228] ss:$16 sps:$4 sm:$0xff]   ;;  %p12783_p13 = scmp.ne.s32.totalorder %s21920_s13, 3 }
 0x9c0   : > { %v15268_v6 = vld [vmem:[%s17276_s30 + $0x22c] ss:$16 sps:$4 sm:$0xff]   ;;  %v8078_v19 = vld [vmem:[#allocation2 + $0x28] sm:$0xff]  ;;  %v15263_v44 = vld [vmem:[%s17276_s30 + $0x220] ss:$16 sps:$4 sm:$0xff]  }
 0x9c1   : > { %v15271_v22 = vld [vmem:[%s17276_s30 + $0x244] ss:$16 sps:$4 sm:$0xff]   ;;  %v15274_v30 = vld [vmem:[%s17276_s30 + $0x24c] ss:$16 sps:$4 sm:$0xff]   ;;  %v15269_v0 = vld [vmem:[%s17276_s30 + $0x240] ss:$16 sps:$4 sm:$0xff]  }
 0x9c2   : > { %8908 = vmatpush1.bf16.msra.mxu0 %v15201_v62  ;;  %9134 = vmatpush1.bf16.msra.mxu1 %v15202_v14  ;;  %v8077_v2 = vld [vmem:[#allocation2 + $0x20] sm:$0xff]  ;;  %v15272_v3 = vld [vmem:[%s17276_s30 + $0x248] ss:$16 sps:$4 sm:$0xff]   ;;  %v15277_v53 = vld [vmem:[%s17276_s30 + $0x264] ss:$16 sps:$4 sm:$0xff]  }
 0x9c3   : > { %8909 = vmatprep.subr.bf16.mxu0 %v15203_v36  ;;  %9135 = vmatprep.subr.bf16.mxu1 %v15205_v56  ;;  %v15280_v5 = vld [vmem:[%s17276_s30 + $0x26c] ss:$16 sps:$4 sm:$0xff]   ;;  %v15275_v51 = vld [vmem:[%s17276_s30 + $0x260] ss:$16 sps:$4 sm:$0xff]   ;;  %v15278_v17 = vld [vmem:[%s17276_s30 + $0x268] ss:$16 sps:$4 sm:$0xff]  }
 0x9c4   : > { %v8082_v46 = vld [vmem:[#allocation2 + $0x48] sm:$0xff]  ;;  %v15286_v60 = vld [vmem:[%s17276_s30 + $0x28c] ss:$16 sps:$4 sm:$0xff]   ;;  %v15281_v58 = vld [vmem:[%s17276_s30 + $0x280] ss:$16 sps:$4 sm:$0xff]  }
 0x9c5   : > { %v15283_v59 = vld [vmem:[%s17276_s30 + $0x284] ss:$16 sps:$4 sm:$0xff]   ;;  %v8081_v21 = vld [vmem:[#allocation2 + $0x40] sm:$0xff]  ;;  %v15284_v52 = vld [vmem:[%s17276_s30 + $0x288] ss:$16 sps:$4 sm:$0xff]  }
 0x9c6   : > { %8910 = vmatpush1.bf16.msra.mxu0 %v15207_v49  ;;  %9136 = vmatpush1.bf16.msra.mxu1 %v15208_v41  ;;  %v15289_v62 = vld [vmem:[%s17276_s30 + $0x2a4] ss:$16 sps:$4 sm:$0xff]   ;;  %v15292_v14 = vld [vmem:[%s17276_s30 + $0x2ac] ss:$16 sps:$4 sm:$0xff]   ;;  %v15287_v56 = vld [vmem:[%s17276_s30 + $0x2a0] ss:$16 sps:$4 sm:$0xff]  }
 0x9c7   : > { %8911 = vmatprep.subr.bf16.mxu0 %v15209_v35  ;;  %9137 = vmatprep.subr.bf16.mxu1 %v15211_v33  ;;  %v8086_v36 = vld [vmem:[#allocation2 + $0x68] sm:$0xff]  ;;  %v15298_v35 = vld [vmem:[%s17276_s30 + $0x2cc] ss:$16 sps:$4 sm:$0xff]  }
 0x9c8   : > { %v15290_v49 = vld [vmem:[%s17276_s30 + $0x2a8] ss:$16 sps:$4 sm:$0xff]   ;;  %v15295_v41 = vld [vmem:[%s17276_s30 + $0x2c4] ss:$16 sps:$4 sm:$0xff]   ;;  %v8085_v33 = vld [vmem:[#allocation2 + $0x60] sm:$0xff] }
 0x9c9   : > { %v15313_v13 = vld [vmem:[%s17276_s30 + $0x324] ss:$16 sps:$4 sm:$0xff]  }
 0x9ca   : > { %8912 = vmatpush1.bf16.msra.mxu0 %v15213_v34  ;;  %9138 = vmatpush1.bf16.msra.mxu1 %v15214_v43  ;;  %v15293_v34 = vld [vmem:[%s17276_s30 + $0x2c0] ss:$16 sps:$4 sm:$0xff]   ;;  %v15296_v43 = vld [vmem:[%s17276_s30 + $0x2c8] ss:$16 sps:$4 sm:$0xff]  }
 0x9cb   : > { %8913 = vmatprep.subr.bf16.mxu0 %v15215_v61  ;;  %9139 = vmatprep.subr.bf16.mxu1 %v15217_v11  ;;  %v15301_v61 = vld [vmem:[%s17276_s30 + $0x2e4] ss:$16 sps:$4 sm:$0xff]   ;;  %v15304_v11 = vld [vmem:[%s17276_s30 + $0x2ec] ss:$16 sps:$4 sm:$0xff]  }
 0x9ce   : > { %8914 = vmatpush1.bf16.msra.mxu0 %v15219_v50  ;;  %9140 = vmatpush1.bf16.msra.mxu1 %v15220_v16  ;;  %v8090_v50 = vld [vmem:[#allocation2 + $0x88] sm:$0xff]  ;;  %v15299_v16 = vld [vmem:[%s17276_s30 + $0x2e0] ss:$16 sps:$4 sm:$0xff]  }
 0x9cf   : > { %8915 = vmatprep.subr.bf16.mxu0 %v15221_v24  ;;  %9141 = vmatprep.subr.bf16.mxu1 %v15223_v32  ;;  %v15302_v24 = vld [vmem:[%s17276_s30 + $0x2e8] ss:$16 sps:$4 sm:$0xff]   ;;  %v15307_v32 = vld [vmem:[%s17276_s30 + $0x304] ss:$16 sps:$4 sm:$0xff]  }
 0x9d2   : > { %8916 = vmatpush1.bf16.msra.mxu0 %v15225_v29  ;;  %9142 = vmatpush1.bf16.msra.mxu1 %v15226_v40  ;;  %v15310_v29 = vld [vmem:[%s17276_s30 + $0x30c] ss:$16 sps:$4 sm:$0xff]  }
 0x9d3   : > { %8917 = vmatprep.subr.bf16.mxu0 %v15227_v54  ;;  %9143 = vmatprep.subr.bf16.mxu1 %v15229_v4  ;;  %v8089_v40 = vld [vmem:[#allocation2 + $0x80] sm:$0xff]  ;;  %v15308_v4 = vld [vmem:[%s17276_s30 + $0x308] ss:$16 sps:$4 sm:$0xff]  }
 0x9d4   : > { %v15305_v54 = vld [vmem:[%s17276_s30 + $0x300] ss:$16 sps:$4 sm:$0xff]  }
 0x9d6   : > { %8918 = vmatpush1.bf16.msra.mxu0 %v15231_v27  ;;  %9144 = vmatpush1.bf16.msra.mxu1 %v15232_v10  ;;  %v15316_v27 = vld [vmem:[%s17276_s30 + $0x32c] ss:$16 sps:$4 sm:$0xff]   ;;  %v15311_v10 = vld [vmem:[%s17276_s30 + $0x320] ss:$16 sps:$4 sm:$0xff]  }
 0x9d7   : > { %8919 = vmatprep.subr.bf16.mxu0 %v15233_v38  ;;  %9145 = vmatprep.subr.bf16.mxu1 %v15235_v55  ;;  %v15314_v38 = vld [vmem:[%s17276_s30 + $0x328] ss:$16 sps:$4 sm:$0xff]  }
 0x9d8   : > { %v8094_v55 = vld [vmem:[#allocation2 + $0xa8] sm:$0xff] }
 0x9da   : > { %8920 = vmatpush1.bf16.msra.mxu0 %v15237_v7  ;;  %9146 = vmatpush1.bf16.msra.mxu1 %v15238_v25  ;;  %v15319_v7 = vld [vmem:[%s17276_s30 + $0x344] ss:$16 sps:$4 sm:$0xff]   ;;  %v15322_v25 = vld [vmem:[%s17276_s30 + $0x34c] ss:$16 sps:$4 sm:$0xff]  }
 0x9db   : > { %8921 = vmatprep.subr.bf16.mxu0 %v15239_v26  ;;  %9147 = vmatprep.subr.bf16.mxu1 %v15241_v28  ;;  %v8093_v26 = vld [vmem:[#allocation2 + $0xa0] sm:$0xff] }
 0x9dc   : > { %v15317_v28 = vld [vmem:[%s17276_s30 + $0x340] ss:$16 sps:$4 sm:$0xff]  }
 0x9de   : > { %8922 = vmatpush1.bf16.msra.mxu0 %v15243_v57  ;;  %9148 = vmatpush1.bf16.msra.mxu1 %v15244_v39  ;;  %v15320_v57 = vld [vmem:[%s17276_s30 + $0x348] ss:$16 sps:$4 sm:$0xff]   ;;  %v15325_v39 = vld [vmem:[%s17276_s30 + $0x364] ss:$16 sps:$4 sm:$0xff]  }
 0x9df   : > { %8923 = vmatprep.subr.bf16.mxu0 %v15245_v48  ;;  %9149 = vmatprep.subr.bf16.mxu1 %v15247_v47  ;;  %v15328_v48 = vld [vmem:[%s17276_s30 + $0x36c] ss:$16 sps:$4 sm:$0xff]   ;;  %v15323_v47 = vld [vmem:[%s17276_s30 + $0x360] ss:$16 sps:$4 sm:$0xff]  }
 0x9e2   : > { %8924 = vmatpush1.bf16.msra.mxu0 %v15249_v15  ;;  %9150 = vmatpush1.bf16.msra.mxu1 %v15250_v63  ;;  %v15326_v15 = vld [vmem:[%s17276_s30 + $0x368] ss:$16 sps:$4 sm:$0xff]  }
 0x9e3   : > { %8925 = vmatprep.subr.bf16.mxu0 %v15251_v45  ;;  %9151 = vmatprep.subr.bf16.mxu1 %v15253_v1  ;;  %v8098_v63 = vld [vmem:[#allocation2 + $0xc8] sm:$0xff]  ;;  %v15334_v1 = vld [vmem:[%s17276_s30 + $0x38c] ss:$16 sps:$4 sm:$0xff]  }
 0x9e4   : > { %v15331_v45 = vld [vmem:[%s17276_s30 + $0x384] ss:$16 sps:$4 sm:$0xff]  }
 0x9e6   : > { %8926 = vmatpush1.bf16.msra.mxu0 %v15255_v9  ;;  %9152 = vmatpush1.bf16.msra.mxu1 %v15256_v23  ;;  %v8097_v9 = vld [vmem:[#allocation2 + $0xc0] sm:$0xff] }
 0x9e7   : > { %9008 = vmatprep.subr.bf16.mxu0 %v15259_v42  ;;  %9234 = vmatprep.subr.bf16.mxu1 %v15262_v18  ;;  %v15329_v23 = vld [vmem:[%s17276_s30 + $0x380] ss:$16 sps:$4 sm:$0xff]   ;;  %v15332_v42 = vld [vmem:[%s17276_s30 + $0x388] ss:$16 sps:$4 sm:$0xff]   ;;  %v15337_v18 = vld [vmem:[%s17276_s30 + $0x3a4] ss:$16 sps:$4 sm:$0xff]  }
 0x9e9   : > { %8928 = vmatmul.mubr.bf16.vlgmr.msra.gmra.mrb[0].mxu0 %v8073_v20  ;;  %9154 = vmatmul.mubr.bf16.vlgmr.msra.gmra.mrb[0].mxu1 %v8073_v20  ;;  %v15340_v20 = vld [vmem:[%s17276_s30 + $0x3ac] ss:$16 sps:$4 sm:$0xff]  }
 0x9ea   : > { %9009 = vmatpush1.bf16.msra.mxu0 %v15257_v31  ;;  %9235 = vmatpush1.bf16.msra.mxu1 %v15260_v37  ;;  %v15335_v31 = vld [vmem:[%s17276_s30 + $0x3a0] ss:$16 sps:$4 sm:$0xff]   ;;  %v8102_v37 = vld [vmem:[#allocation2 + $0xe8] sm:$0xff] }
 0x9eb   : > { %9010 = vmatprep.subr.bf16.mxu0 %v15265_v8  ;;  %9236 = vmatprep.subr.bf16.mxu1 %v15268_v6  ;;  %v15338_v8 = vld [vmem:[%s17276_s30 + $0x3a8] ss:$16 sps:$4 sm:$0xff]   ;;  %v15343_v6 = vld [vmem:[%s17276_s30 + $0x3c4] ss:$16 sps:$4 sm:$0xff]  }
 0x9ec   : > { %8937 = vmatprep.mubr.bf16.mxu0 %v8078_v19  ;;  %9163 = vmatprep.mubr.bf16.mxu1 %v8078_v19  ;;  %v15346_v19 = vld [vmem:[%s17276_s30 + $0x3cc] ss:$16 sps:$4 sm:$0xff]  }
 0x9ee   : > { %9011 = vmatpush1.bf16.msra.mxu0 %v15263_v44  ;;  %9237 = vmatpush1.bf16.msra.mxu1 %v15266_v12  ;;  %v8101_v44 = vld [vmem:[#allocation2 + $0xe0] sm:$0xff] }
 0x9ef   : > { %9012 = vmatprep.subr.bf16.mxu0 %v15271_v22  ;;  %9238 = vmatprep.subr.bf16.mxu1 %v15274_v30  ;;  %v15341_v12 = vld [vmem:[%s17276_s30 + $0x3c0] ss:$16 sps:$4 sm:$0xff]   ;;  %v15344_v22 = vld [vmem:[%s17276_s30 + $0x3c8] ss:$16 sps:$4 sm:$0xff]   ;;  %v15349_v30 = vld [vmem:[%s17276_s30 + $0x3e4] ss:$16 sps:$4 sm:$0xff]  }
 0x9f1   : > { %8938 = vmatmul.mubr.bf16.gmra.mrb[4].mxu0 %v8077_v2  ;;  %9164 = vmatmul.mubr.bf16.gmra.mrb[4].mxu1 %v8077_v2  ;;  %v15352_v2 = vld [vmem:[%s17276_s30 + $0x3ec] ss:$16 sps:$4 sm:$0xff]  }
 0x9f2   : > { %9013 = vmatpush1.bf16.msra.mxu0 %v15269_v0  ;;  %9239 = vmatpush1.bf16.msra.mxu1 %v15272_v3  ;;  %v8076_v0 = vld [vmem:[#allocation2 + $0x18] sm:$0xff]  ;;  %v15347_v3 = vld [vmem:[%s17276_s30 + $0x3e0] ss:$16 sps:$4 sm:$0xff]  }
 0x9f3   : > { %9014 = vmatprep.subr.bf16.mxu0 %v15277_v53  ;;  %9240 = vmatprep.subr.bf16.mxu1 %v15280_v5  ;;  %v15350_v53 = vld [vmem:[%s17276_s30 + $0x3e8] ss:$16 sps:$4 sm:$0xff]   ;;  %v15355_v5 = vld [vmem:[%s17284_s18 + $0x4] ss:$16 sps:$4 sm:$0xff]  }
 0x9f4   : > { %8947 = vmatprep.mubr.bf16.mxu0 %v8082_v46  ;;  %9173 = vmatprep.mubr.bf16.mxu1 %v8082_v46  ;;  %v8080_v46 = vld [vmem:[#allocation2 + $0x38] sm:$0xff] }
 0x9f6   : > { %9015 = vmatpush1.bf16.msra.mxu0 %v15275_v51  ;;  %9241 = vmatpush1.bf16.msra.mxu1 %v15278_v17  ;;  %v15358_v51 = vld [vmem:[%s17284_s18 + $0xc] ss:$16 sps:$4 sm:$0xff]   ;;  %v8075_v17 = vld [vmem:[#allocation2 + $0x10] sm:$0xff] }
 0x9f7   : > { %9016 = vmatprep.subr.bf16.mxu0 %v15283_v59  ;;  %9242 = vmatprep.subr.bf16.mxu1 %v15286_v60  ;;  %v15353_v59 = vld [vmem:[%s17284_s18] ss:$16 sps:$4 sm:$0xff]   ;;  %v15356_v60 = vld [vmem:[%s17284_s18 + $0x8] ss:$16 sps:$4 sm:$0xff]  }
 0x9f9   : > { %8948 = vmatmul.mubr.bf16.gmra.mrb[8].mxu0 %v8081_v21  ;;  %9174 = vmatmul.mubr.bf16.gmra.mrb[8].mxu1 %v8081_v21  ;;  %v15361_v21 = vld [vmem:[%s17284_s18 + $0x24] ss:$16 sps:$4 sm:$0xff]  }
 0x9fa   : > { %9017 = vmatpush1.bf16.msra.mxu0 %v15281_v58  ;;  %9243 = vmatpush1.bf16.msra.mxu1 %v15284_v52  ;;  %v15364_v58 = vld [vmem:[%s17284_s18 + $0x2c] ss:$16 sps:$4 sm:$0xff]   ;;  %v15359_v52 = vld [vmem:[%s17284_s18 + $0x20] ss:$16 sps:$4 sm:$0xff]  }
 0x9fb   : > { %9018 = vmatprep.subr.bf16.mxu0 %v15289_v62  ;;  %9244 = vmatprep.subr.bf16.mxu1 %v15292_v14  ;;  %v15362_v62 = vld [vmem:[%s17284_s18 + $0x28] ss:$16 sps:$4 sm:$0xff]   ;;  %v15367_v14 = vld [vmem:[%s17284_s18 + $0x44] ss:$16 sps:$4 sm:$0xff]  }
 0x9fc   : > { %8957 = vmatprep.mubr.bf16.mxu0 %v8086_v36  ;;  %9183 = vmatprep.mubr.bf16.mxu1 %v8086_v36  ;;  %v15370_v36 = vld [vmem:[%s17284_s18 + $0x4c] ss:$16 sps:$4 sm:$0xff]  }
 0x9fe   : > { %9019 = vmatpush1.bf16.msra.mxu0 %v15287_v56  ;;  %9245 = vmatpush1.bf16.msra.mxu1 %v15290_v49  ;;  %v8079_v56 = vld [vmem:[#allocation2 + $0x30] sm:$0xff]  ;;  %v8084_v49 = vld [vmem:[#allocation2 + $0x58] sm:$0xff] }
 0x9ff   : > { %9020 = vmatprep.subr.bf16.mxu0 %v15295_v41  ;;  %9246 = vmatprep.subr.bf16.mxu1 %v15298_v35  ;;  %v15365_v41 = vld [vmem:[%s17284_s18 + $0x40] ss:$16 sps:$4 sm:$0xff]   ;;  %v15368_v35 = vld [vmem:[%s17284_s18 + $0x48] ss:$16 sps:$4 sm:$0xff]  }
 0xa01   : > { %8958 = vmatmul.mubr.bf16.gmra.mrb[12].mxu0 %v8085_v33  ;;  %9184 = vmatmul.mubr.bf16.gmra.mrb[12].mxu1 %v8085_v33  ;;  %v15373_v33 = vld [vmem:[%s17284_s18 + $0x64] ss:$16 sps:$4 sm:$0xff]  }
 0xa02   : > { %9021 = vmatpush1.bf16.msra.mxu0 %v15293_v34  ;;  %9247 = vmatpush1.bf16.msra.mxu1 %v15296_v43  ;;  %v15376_v34 = vld [vmem:[%s17284_s18 + $0x6c] ss:$16 sps:$4 sm:$0xff]   ;;  %v15371_v43 = vld [vmem:[%s17284_s18 + $0x60] ss:$16 sps:$4 sm:$0xff]  }
 0xa03   : > { %9022 = vmatprep.subr.bf16.mxu0 %v15301_v61  ;;  %9248 = vmatprep.subr.bf16.mxu1 %v15304_v11  ;;  %v15374_v61 = vld [vmem:[%s17284_s18 + $0x68] ss:$16 sps:$4 sm:$0xff]   ;;  %v15379_v11 = vld [vmem:[%s17284_s18 + $0x84] ss:$16 sps:$4 sm:$0xff]  }
 0xa04   : > { %8967 = vmatprep.mubr.bf16.mxu0 %v8090_v50  ;;  %9193 = vmatprep.mubr.bf16.mxu1 %v8090_v50  ;;  %v15382_v50 = vld [vmem:[%s17284_s18 + $0x8c] ss:$16 sps:$4 sm:$0xff]  }
 0xa06   : > { %9023 = vmatpush1.bf16.msra.mxu0 %v15299_v16  ;;  %9249 = vmatpush1.bf16.msra.mxu1 %v15302_v24  ;;  %v8083_v16 = vld [vmem:[#allocation2 + $0x50] sm:$0xff]  ;;  %v8088_v24 = vld [vmem:[#allocation2 + $0x78] sm:$0xff] }
 0xa07   : > { %9024 = vmatprep.subr.bf16.mxu0 %v15307_v32  ;;  %9250 = vmatprep.subr.bf16.mxu1 %v15310_v29  ;;  %v15377_v32 = vld [vmem:[%s17284_s18 + $0x80] ss:$16 sps:$4 sm:$0xff]   ;;  %v15380_v29 = vld [vmem:[%s17284_s18 + $0x88] ss:$16 sps:$4 sm:$0xff]  }
 0xa09   : > { %8968 = vmatmul.mubr.bf16.gmra.mrb[16].mxu0 %v8089_v40  ;;  %9194 = vmatmul.mubr.bf16.gmra.mrb[16].mxu1 %v8089_v40  ;;  %v15385_v40 = vld [vmem:[%s17284_s18 + $0xa4] ss:$16 sps:$4 sm:$0xff]  }
 0xa0a   : > { %9025 = vmatpush1.bf16.msra.mxu0 %v15305_v54  ;;  %9251 = vmatpush1.bf16.msra.mxu1 %v15308_v4  ;;  %v15388_v54 = vld [vmem:[%s17284_s18 + $0xac] ss:$16 sps:$4 sm:$0xff]   ;;  %v15383_v4 = vld [vmem:[%s17284_s18 + $0xa0] ss:$16 sps:$4 sm:$0xff]  }
 0xa0b   : > { %9026 = vmatprep.subr.bf16.mxu0 %v15313_v13  ;;  %9252 = vmatprep.subr.bf16.mxu1 %v15316_v27  ;;  %v15386_v13 = vld [vmem:[%s17284_s18 + $0xa8] ss:$16 sps:$4 sm:$0xff]   ;;  %v15391_v27 = vld [vmem:[%s17284_s18 + $0xc4] ss:$16 sps:$4 sm:$0xff]  }
 0xa0c   : > { %8977 = vmatprep.mubr.bf16.mxu0 %v8094_v55  ;;  %9203 = vmatprep.mubr.bf16.mxu1 %v8094_v55  ;;  %v8092_v55 = vld [vmem:[#allocation2 + $0x98] sm:$0xff] }
 0xa0e   : > { %9027 = vmatpush1.bf16.msra.mxu0 %v15311_v10  ;;  %9253 = vmatpush1.bf16.msra.mxu1 %v15314_v38  ;;  %v15394_v10 = vld [vmem:[%s17284_s18 + $0xcc] ss:$16 sps:$4 sm:$0xff]   ;;  %v8087_v38 = vld [vmem:[#allocation2 + $0x70] sm:$0xff] }
 0xa0f   : > { %9028 = vmatprep.subr.bf16.mxu0 %v15319_v7  ;;  %9254 = vmatprep.subr.bf16.mxu1 %v15322_v25  ;;  %v15389_v7 = vld [vmem:[%s17284_s18 + $0xc0] ss:$16 sps:$4 sm:$0xff]   ;;  %v15392_v25 = vld [vmem:[%s17284_s18 + $0xc8] ss:$16 sps:$4 sm:$0xff]  }
 0xa11   : > { %8978 = vmatmul.mubr.bf16.gmra.mrb[20].mxu0 %v8093_v26  ;;  %9204 = vmatmul.mubr.bf16.gmra.mrb[20].mxu1 %v8093_v26  ;;  %v15397_v26 = vld [vmem:[%s17284_s18 + $0xe4] ss:$16 sps:$4 sm:$0xff]  }
 0xa12   : > { %9029 = vmatpush1.bf16.msra.mxu0 %v15317_v28  ;;  %9255 = vmatpush1.bf16.msra.mxu1 %v15320_v57  ;;  %v15400_v28 = vld [vmem:[%s17284_s18 + $0xec] ss:$16 sps:$4 sm:$0xff]   ;;  %v15395_v57 = vld [vmem:[%s17284_s18 + $0xe0] ss:$16 sps:$4 sm:$0xff]  }
 0xa13   : > { %9030 = vmatprep.subr.bf16.mxu0 %v15325_v39  ;;  %9256 = vmatprep.subr.bf16.mxu1 %v15328_v48  ;;  %v15398_v39 = vld [vmem:[%s17284_s18 + $0xe8] ss:$16 sps:$4 sm:$0xff]  }
 0xa14   : > { %8987 = vmatprep.mubr.bf16.mxu0 %v8098_v63  ;;  %9213 = vmatprep.mubr.bf16.mxu1 %v8098_v63  ;;  %v8091_v48 = vld [vmem:[#allocation2 + $0x90] sm:$0xff]  ;;  %v8100_v63 = vld [vmem:[#allocation2 + $0xd8] sm:$0xff] }
 0xa16   : > { %9031 = vmatpush1.bf16.msra.mxu0 %v15323_v47  ;;  %9257 = vmatpush1.bf16.msra.mxu1 %v15326_v15  ;;  %v8096_v47 = vld [vmem:[#allocation2 + $0xb8] sm:$0xff]  ;;  %v8095_v15 = vld [vmem:[#allocation2 + $0xb0] sm:$0xff] }
 0xa17   : > { %9032 = vmatprep.subr.bf16.mxu0 %v15331_v45  ;;  %9258 = vmatprep.subr.bf16.mxu1 %v15334_v1  ;;  %v8099_v45 = vld [vmem:[#allocation2 + $0xd0] sm:$0xff]  ;;  %v8104_v1 = vld [vmem:[#allocation2 + $0xf8] sm:$0xff] }
 0xa19   : > { %8988 = vmatmul.mubr.bf16.gmra.mrb[24].mxu0 %v8097_v9  ;;  %9214 = vmatmul.mubr.bf16.gmra.mrb[24].mxu1 %v8097_v9  ;;  %v8103_v9 = vld [vmem:[#allocation2 + $0xf0] sm:$0xff] }
 0xa1a   : > { %9033 = vmatpush1.bf16.msra.mxu0 %v15329_v23  ;;  %9259 = vmatpush1.bf16.msra.mxu1 %v15332_v42  ;;  %v15403_v23 = vld [vmem:[%s17284_s18 + $0x104] ss:$16 sps:$4 sm:$0xff]   ;;  %v15406_v42 = vld [vmem:[%s17284_s18 + $0x10c] ss:$16 sps:$4 sm:$0xff]  }
 0xa1b   : > { %9034 = vmatprep.subr.bf16.mxu0 %v15337_v18  ;;  %9260 = vmatprep.subr.bf16.mxu1 %v15340_v20  ;;  %v15401_v18 = vld [vmem:[%s17284_s18 + $0x100] ss:$16 sps:$4 sm:$0xff]   ;;  %v15404_v20 = vld [vmem:[%s17284_s18 + $0x108] ss:$16 sps:$4 sm:$0xff]  }
 0xa1c   : > { %8997 = vmatprep.mubr.bf16.mxu0 %v8102_v37  ;;  %9223 = vmatprep.mubr.bf16.mxu1 %v8102_v37  ;;  %v15412_v37 = vld [vmem:[%s17284_s18 + $0x12c] ss:$16 sps:$4 sm:$0xff]  }
 0xa1e   : > { %9035 = vmatpush1.bf16.msra.mxu0 %v15335_v31  ;;  %9261 = vmatpush1.bf16.msra.mxu1 %v15338_v8  ;;  %v15409_v31 = vld [vmem:[%s17284_s18 + $0x124] ss:$16 sps:$4 sm:$0xff]   ;;  %v15407_v8 = vld [vmem:[%s17284_s18 + $0x120] ss:$16 sps:$4 sm:$0xff]  }
 0xa1f   : > { %9036 = vmatprep.subr.bf16.mxu0 %v15343_v6  ;;  %9262 = vmatprep.subr.bf16.mxu1 %v15346_v19  ;;  %v15410_v6 = vld [vmem:[%s17284_s18 + $0x128] ss:$16 sps:$4 sm:$0xff]   ;;  %v15415_v19 = vld [vmem:[%s17284_s18 + $0x144] ss:$16 sps:$4 sm:$0xff]  }
 0xa21   : > { %8998 = vmatmul.mubr.bf16.gmra.mrb[28].mxu0 %v8101_v44  ;;  %9224 = vmatmul.mubr.bf16.gmra.mrb[28].mxu1 %v8101_v44  ;;  %v15418_v44 = vld [vmem:[%s17284_s18 + $0x14c] ss:$16 sps:$4 sm:$0xff]  }
 0xa22   : > { %9037 = vmatpush1.bf16.msra.mxu0 %v15341_v12  ;;  %9263 = vmatpush1.bf16.msra.mxu1 %v15344_v22  ;;  %v15413_v12 = vld [vmem:[%s17284_s18 + $0x140] ss:$16 sps:$4 sm:$0xff]   ;;  %v15416_v22 = vld [vmem:[%s17284_s18 + $0x148] ss:$16 sps:$4 sm:$0xff]  }
 0xa23   : > { %9038 = vmatprep.subr.bf16.mxu0 %v15349_v30  ;;  %9264 = vmatprep.subr.bf16.mxu1 %v15352_v2  ;;  %v15421_v30 = vld [vmem:[%s17284_s18 + $0x164] ss:$16 sps:$4 sm:$0xff]   ;;  %v15424_v2 = vld [vmem:[%s17284_s18 + $0x16c] ss:$16 sps:$4 sm:$0xff]  }
 0xa24   : > { %9040 = vmatprep.mubr.bf16.mxu0 %v8076_v0  ;;  %9266 = vmatprep.mubr.bf16.mxu1 %v8076_v0  ;;  %v15419_v0 = vld [vmem:[%s17284_s18 + $0x160] ss:$16 sps:$4 sm:$0xff]  }
 0xa26   : > { %9039 = vmatpush1.bf16.msra.mxu0 %v15347_v3  ;;  %9265 = vmatpush1.bf16.msra.mxu1 %v15350_v53  ;;  %v15422_v3 = vld [vmem:[%s17284_s18 + $0x168] ss:$16 sps:$4 sm:$0xff]   ;;  %v15427_v53 = vld [vmem:[%s17284_s18 + $0x184] ss:$16 sps:$4 sm:$0xff]  }
 0xa27   : > { %10787 = vmatprep.subr.bf16.mxu0 %v15355_v5  ;;  %11013 = vmatprep.subr.bf16.mxu1 %v15358_v51  ;;  %v15430_v5 = vld [vmem:[%s17284_s18 + $0x18c] ss:$16 sps:$4 sm:$0xff]   ;;  %v15425_v51 = vld [vmem:[%s17284_s18 + $0x180] ss:$16 sps:$4 sm:$0xff]  }
 0xa29   : > { %9041 = vmatmul.mubr.bf16.vlgmr.msra.gmra.mrb[0].mxu0 %v8075_v17  ;;  %9267 = vmatmul.mubr.bf16.vlgmr.msra.gmra.mrb[0].mxu1 %v8075_v17  ;;  %v15428_v17 = vld [vmem:[%s17284_s18 + $0x188] ss:$16 sps:$4 sm:$0xff]  }
 0xa2a   : > { %9050 = vmatprep.mubr.bf16.mxu0 %v8080_v46  ;;  %9276 = vmatprep.mubr.bf16.mxu1 %v8080_v46  ;;  %v15433_v46 = vld [vmem:[%s17284_s18 + $0x1a4] ss:$16 sps:$4 sm:$0xff]  }
 0xa2b   : > { %10788 = vmatpush1.bf16.msra.mxu0 %v15353_v59  ;;  %11014 = vmatpush1.bf16.msra.mxu1 %v15356_v60  ;;  %v15436_v59 = vld [vmem:[%s17284_s18 + $0x1ac] ss:$16 sps:$4 sm:$0xff]   ;;  %v15431_v60 = vld [vmem:[%s17284_s18 + $0x1a0] ss:$16 sps:$4 sm:$0xff]  }
 0xa2c   : > { %10789 = vmatprep.subr.bf16.mxu0 %v15361_v21  ;;  %11015 = vmatprep.subr.bf16.mxu1 %v15364_v58  ;;  %v15434_v21 = vld [vmem:[%s17284_s18 + $0x1a8] ss:$16 sps:$4 sm:$0xff]   ;;  %v15439_v58 = vld [vmem:[%s17284_s18 + $0x1c4] ss:$16 sps:$4 sm:$0xff]  }
 0xa2f   : > { %10790 = vmatpush1.bf16.msra.mxu0 %v15359_v52  ;;  %11016 = vmatpush1.bf16.msra.mxu1 %v15362_v62  ;;  %v15442_v52 = vld [vmem:[%s17284_s18 + $0x1cc] ss:$16 sps:$4 sm:$0xff]   ;;  %v15437_v62 = vld [vmem:[%s17284_s18 + $0x1c0] ss:$16 sps:$4 sm:$0xff]  }
 0xa30   : > { %10791 = vmatprep.subr.bf16.mxu0 %v15367_v14  ;;  %11017 = vmatprep.subr.bf16.mxu1 %v15370_v36  ;;  %v15440_v14 = vld [vmem:[%s17284_s18 + $0x1c8] ss:$16 sps:$4 sm:$0xff]   ;;  %v15445_v36 = vld [vmem:[%s17284_s18 + $0x1e4] ss:$16 sps:$4 sm:$0xff]  }
 0xa31   : > { %9051 = vmatmul.mubr.bf16.gmra.mrb[4].mxu0 %v8079_v56  ;;  %9277 = vmatmul.mubr.bf16.gmra.mrb[4].mxu1 %v8079_v56  ;;  %v15448_v56 = vld [vmem:[%s17284_s18 + $0x1ec] ss:$16 sps:$4 sm:$0xff]  }
 0xa32   : > { %9060 = vmatprep.mubr.bf16.mxu0 %v8084_v49  ;;  %9286 = vmatprep.mubr.bf16.mxu1 %v8084_v49  ;;  %v15443_v49 = vld [vmem:[%s17284_s18 + $0x1e0] ss:$16 sps:$4 sm:$0xff]  }
 0xa33   : > { %10792 = vmatpush1.bf16.msra.mxu0 %v15365_v41  ;;  %11018 = vmatpush1.bf16.msra.mxu1 %v15368_v35  ;;  %v15446_v41 = vld [vmem:[%s17284_s18 + $0x1e8] ss:$16 sps:$4 sm:$0xff]   ;;  %v15451_v35 = vld [vmem:[%s17284_s18 + $0x204] ss:$16 sps:$4 sm:$0xff]  }
 0xa34   : > { %10793 = vmatprep.subr.bf16.mxu0 %v15373_v33  ;;  %11019 = vmatprep.subr.bf16.mxu1 %v15376_v34  ;;  %v15454_v33 = vld [vmem:[%s17284_s18 + $0x20c] ss:$16 sps:$4 sm:$0xff]   ;;  %v8235_v34 = vlaneseq }
 0xa37   : > { %10794 = vmatpush1.bf16.msra.mxu0 %v15371_v43  ;;  %11020 = vmatpush1.bf16.msra.mxu1 %v15374_v61  ;;  %v8236_v43 = vshrl.u32 %v8235_v34, 7 }
 0xa38   : > { %10795 = vmatprep.subr.bf16.mxu0 %v15379_v11  ;;  %11021 = vmatprep.subr.bf16.mxu1 %v15382_v50  ;;  %v8233_v50 = vld [vmem:[%s17282_s27] sm:$0xf] }
 0xa39   : > { %9061 = vmatmul.mubr.bf16.gmra.mrb[8].mxu0 %v8083_v16  ;;  %9287 = vmatmul.mubr.bf16.gmra.mrb[8].mxu1 %v8083_v16  ;;  %v8237_v61 = vsub.s32 0, %v8236_v43  ;;  %v8245_v11 = vsub.s32 2, %v8236_v43  ;;  %v8241_v16 = vsub.s32 1, %v8236_v43 }
 0xa3a   : > { %9070 = vmatprep.mubr.bf16.mxu0 %v8088_v24  ;;  %9296 = vmatprep.mubr.bf16.mxu1 %v8088_v24  ;;  %v8249_v24 = vsub.s32 3, %v8236_v43 }
 0xa3b   : > { %10796 = vmatpush1.bf16.msra.mxu0 %v15377_v32  ;;  %11022 = vmatpush1.bf16.msra.mxu1 %v15380_v29  ;;  %v19886_v32 = vrot.slane %v8233_v50, %v8237_v61  ;;  %v19888_v29 = vrot.slane %v8233_v50, %v8245_v11 }
 0xa3c   : > { %10797 = vmatprep.subr.bf16.mxu0 %v15385_v40  ;;  %11023 = vmatprep.subr.bf16.mxu1 %v15388_v54  ;;  %v19890_v40 = vrot.slane %v8233_v50, %v8241_v16  ;;  %v19892_v54 = vrot.slane %v8233_v50, %v8249_v24 }
 0xa3f   : > { %10798 = vmatpush1.bf16.msra.mxu0 %v15383_v4  ;;  %11024 = vmatpush1.bf16.msra.mxu1 %v15386_v13 }
 0xa40   : > { %10799 = vmatprep.subr.bf16.mxu0 %v15391_v27  ;;  %11025 = vmatprep.subr.bf16.mxu1 %v15394_v10 }
 0xa41   : > { %9071 = vmatmul.mubr.bf16.gmra.mrb[12].mxu0 %v8087_v38  ;;  %9297 = vmatmul.mubr.bf16.gmra.mrb[12].mxu1 %v8087_v38 }
 0xa42   : > { %9080 = vmatprep.mubr.bf16.mxu0 %v8092_v55  ;;  %9306 = vmatprep.mubr.bf16.mxu1 %v8092_v55 }
 0xa43   : > { %10800 = vmatpush1.bf16.msra.mxu0 %v15389_v7  ;;  %11026 = vmatpush1.bf16.msra.mxu1 %v15392_v25 }
 0xa44   : > { %10801 = vmatprep.subr.bf16.mxu0 %v15397_v26  ;;  %11027 = vmatprep.subr.bf16.mxu1 %v15400_v28 }
 0xa47   : > { %10802 = vmatpush1.bf16.msra.mxu0 %v15395_v57  ;;  %11028 = vmatpush1.bf16.msra.mxu1 %v15398_v39 }
 0xa48   : > { %10803 = vmatprep.subr.bf16.mxu0 %v15403_v23  ;;  %11029 = vmatprep.subr.bf16.mxu1 %v15406_v42 }
 0xa49   : > { %9081 = vmatmul.mubr.bf16.gmra.mrb[16].mxu0 %v8091_v48  ;;  %9307 = vmatmul.mubr.bf16.gmra.mrb[16].mxu1 %v8091_v48 }
 0xa4a   : > { %9090 = vmatprep.mubr.bf16.mxu0 %v8096_v47  ;;  %9316 = vmatprep.mubr.bf16.mxu1 %v8096_v47 }
 0xa4b   : > { %10804 = vmatpush1.bf16.msra.mxu0 %v15401_v18  ;;  %11030 = vmatpush1.bf16.msra.mxu1 %v15404_v20 }
 0xa4c   : > { %10805 = vmatprep.subr.bf16.mxu0 %v15409_v31  ;;  %11031 = vmatprep.subr.bf16.mxu1 %v15412_v37 }
 0xa4f   : > { %10806 = vmatpush1.bf16.msra.mxu0 %v15407_v8  ;;  %11032 = vmatpush1.bf16.msra.mxu1 %v15410_v6 }
 0xa50   : > { %10807 = vmatprep.subr.bf16.mxu0 %v15415_v19  ;;  %11033 = vmatprep.subr.bf16.mxu1 %v15418_v44 }
 0xa51   : > { %9091 = vmatmul.mubr.bf16.gmra.mrb[20].mxu0 %v8095_v15  ;;  %9317 = vmatmul.mubr.bf16.gmra.mrb[20].mxu1 %v8095_v15 }
 0xa52   : > { %9100 = vmatprep.mubr.bf16.mxu0 %v8100_v63  ;;  %9326 = vmatprep.mubr.bf16.mxu1 %v8100_v63 }
 0xa53   : > { %10808 = vmatpush1.bf16.msra.mxu0 %v15413_v12  ;;  %11034 = vmatpush1.bf16.msra.mxu1 %v15416_v22 }
 0xa54   : > { %10809 = vmatprep.subr.bf16.mxu0 %v15421_v30  ;;  %11035 = vmatprep.subr.bf16.mxu1 %v15424_v2 }
 0xa57   : > { %10810 = vmatpush1.bf16.msra.mxu0 %v15419_v0  ;;  %11036 = vmatpush1.bf16.msra.mxu1 %v15422_v3 }
 0xa58   : > { %10811 = vmatprep.subr.bf16.mxu0 %v15427_v53  ;;  %11037 = vmatprep.subr.bf16.mxu1 %v15430_v5 }
 0xa59   : > { %9101 = vmatmul.mubr.bf16.gmra.mrb[24].mxu0 %v8099_v45  ;;  %9327 = vmatmul.mubr.bf16.gmra.mrb[24].mxu1 %v8099_v45 }
 0xa5a   : > { %9110 = vmatprep.mubr.bf16.mxu0 %v8104_v1  ;;  %9336 = vmatprep.mubr.bf16.mxu1 %v8104_v1 }
 0xa5b   : > { %10812 = vmatpush1.bf16.msra.mxu0 %v15425_v51  ;;  %11038 = vmatpush1.bf16.msra.mxu1 %v15428_v17 }
 0xa5c   : > { %10813 = vmatprep.subr.bf16.mxu0 %v15433_v46  ;;  %11039 = vmatprep.subr.bf16.mxu1 %v15436_v59 }
 0xa5f   : > { %10814 = vmatpush1.bf16.msra.mxu0 %v15431_v60  ;;  %11040 = vmatpush1.bf16.msra.mxu1 %v15434_v21 }
 0xa60   : > { %10815 = vmatprep.subr.bf16.mxu0 %v15439_v58  ;;  %11041 = vmatprep.subr.bf16.mxu1 %v15442_v52 }
 0xa61   : > { %9111 = vmatmul.mubr.bf16.gmra.mrb[28].mxu0 %v8103_v9  ;;  %9337 = vmatmul.mubr.bf16.gmra.mrb[28].mxu1 %v8103_v9 }
 0xa63   : > { %10816 = vmatpush1.bf16.msra.mxu0 %v15437_v62  ;;  %11042 = vmatpush1.bf16.msra.mxu1 %v15440_v14 }
 0xa64   : > { %10817 = vmatprep.subr.bf16.mxu0 %v15445_v36  ;;  %11043 = vmatprep.subr.bf16.mxu1 %v15448_v56 }
 0xa67   : > { %10818 = vmatpush1.bf16.msra.mxu0 %v15443_v49  ;;  %11044 = vmatpush1.bf16.msra.mxu1 %v15446_v41 }
 0xa68   : > { %10900 = vmatprep.subr.bf16.mxu0 %v15451_v35  ;;  %11126 = vmatprep.subr.bf16.mxu1 %v15454_v33 }
 0xafc   : > { %v9042_v4 = vpop.f32.mrb[0].mxu0  ;;  %v9268_v13 = vpop.f32.mrb[0].mxu1 }
 0xafd   : > { %v13873_v27 = vadd.f32 %v9042_v4, %v19886_v32  ;;  %v13905_v10 = vadd.f32 %v9268_v13, %v19888_v29  ;;  %v9044_v38 = vpop.f32.mrb[1].mxu0  ;;  %v9270_v55 = vpop.f32.mrb[1].mxu1 }
 0xafe   : > { %v19897_v7 = vadd.f32 %v9044_v38, %v19890_v40  ;;  %v19900_v25 = vadd.f32 %v9270_v55, %v19892_v54  ;;  %v9046_v26 = vpop.f32.mrb[2].mxu0  ;;  %v9272_v28 = vpop.f32.mrb[2].mxu1 }
 0xaff   : > { %v9411_v57 = vmul.f32 0.044715, %v13873_v27  ;;  %v9413_v39 = vmul.f32 0.044715, %v13905_v10  ;;  %v13875_v48 = vadd.f32 %v9046_v26, %v19886_v32  ;;  %v13907_v47 = vadd.f32 %v9272_v28, %v19888_v29  ;;  %v9048_v15 = vpop.f32.mrb[3].mxu0  ;;  %v9274_v63 = vpop.f32.mrb[3].mxu1 }
 0xb00   : > { %21786 = vst [vmem:[#allocation160_spill] sm:$0xff] %v19900_v25  ;;  %v9412_v9 = vmul.f32 0.044715, %v19897_v7  ;;  %v19906_v23 = vadd.f32 %v9048_v15, %v19890_v40  ;;  %v9414_v42 = vmul.f32 0.044715, %v19900_v25  ;;  %v19911_v19 = vadd.f32 %v9274_v63, %v19892_v54 }
 0xb01   : > { %v9475_v45 = vmul.f32 %v13873_v27, %v9411_v57  ;;  %v9477_v1 = vmul.f32 %v13905_v10, %v9413_v39  ;;  %v9415_v18 = vmul.f32 0.044715, %v13875_v48  ;;  %v9417_v37 = vmul.f32 0.044715, %v13907_v47 }
 0xb02   : > { %v9416_v6 = vmul.f32 0.044715, %v19906_v23  ;;  %21787 = vst [vmem:[#allocation161_spill] sm:$0xff] %v19911_v19  ;;  %v9476_v22 = vmul.f32 %v19897_v7, %v9412_v9  ;;  %v9478_v3 = vmul.f32 %v19900_v25, %v9414_v42  ;;  %v19921_v59 = vmul.f32 0.5, %v13873_v27 }
 0xb03   : > { %v9539_v20 = vmul.f32 %v13873_v27, %v9475_v45  ;;  %v9541_v31 = vmul.f32 %v13905_v10, %v9477_v1  ;;  %v9479_v8 = vmul.f32 %v13875_v48, %v9415_v18  ;;  %v9481_v30 = vmul.f32 %v13907_v47, %v9417_v37 }
 0xb04   : > { %v9052_v44 = vpop.f32.mrb[4].mxu0  ;;  %v9278_v12 = vpop.f32.mrb[4].mxu1  ;;  %v19923_v14 = vmul.f32 0.5, %v13905_v10  ;;  %v19925_v36 = vmul.f32 0.5, %v13875_v48  ;;  %v9480_v56 = vmul.f32 %v19906_v23, %v9416_v6  ;;  %v9418_v49 = vmul.f32 0.044715, %v19911_v19 }
 0xb05   : > { %v9054_v2 = vpop.f32.mrb[5].mxu0  ;;  %v9280_v0 = vpop.f32.mrb[5].mxu1  ;;  %v9543_v53 = vmul.f32 %v13875_v48, %v9479_v8  ;;  %v19916_v5 = vadd.f32 %v9052_v44, %v19886_v32  ;;  %v19919_v51 = vadd.f32 %v9278_v12, %v19888_v29  ;;  %v9603_v60 = vadd.f32 %v13873_v27, %v9539_v20 }
 0xb06   : > { %v9056_v17 = vpop.f32.mrb[6].mxu0  ;;  %v9282_v46 = vpop.f32.mrb[6].mxu1  ;;  %v9605_v21 = vadd.f32 %v13905_v10, %v9541_v31  ;;  %v9545_v58 = vmul.f32 %v13907_v47, %v9481_v30  ;;  %21789 = vst [vmem:[#allocation163_spill] sm:$0xff] %v19923_v14  ;;  %v19932_v34 = vadd.f32 %v9054_v2, %v19890_v40  ;;  %v19935_v43 = vmul.f32 %v19897_v7, %v9476_v22 }
 0xb07   : > { %21788 = vst [vmem:[#allocation162_spill] sm:$0xff] %v19919_v51  ;;  %v9058_v52 = vpop.f32.mrb[7].mxu0  ;;  %v9284_v62 = vpop.f32.mrb[7].mxu1  ;;  %v9607_v41 = vadd.f32 %v13875_v48, %v9543_v53  ;;  %v9419_v35 = vmul.f32 0.044715, %v19916_v5  ;;  %v19938_v61 = vmul.f32 %v19900_v25, %v9478_v3  ;;  %v19940_v11 = vmul.f32 0.5, %v13907_v47 }
 0xb08   : > { %v9421_v33 = vmul.f32 0.044715, %v19919_v51  ;;  %v9609_v50 = vadd.f32 %v13907_v47, %v9545_v58  ;;  %v9667_v16 = vmul.f32 0.7978846, %v9603_v60  ;;  %v9669_v24 = vmul.f32 0.7978846, %v9605_v21 }
 0xb09   : > { %21790 = vst [vmem:[#allocation164_spill] sm:$0xff] %v19938_v61  ;;  %21791 = vst [vmem:[#allocation165_spill] sm:$0xff] %v19940_v11  ;;  %v19943_v4 = vadd.f32 %v9280_v0, %v19892_v54  ;;  %v19946_v13 = vadd.f32 %v9056_v17, %v19886_v32  ;;  %v19949_v27 = vmul.f32 %v19906_v23, %v9480_v56  ;;  %v9420_v38 = vmul.f32 0.044715, %v19932_v34 }
 0xb0a   : > { %v9482_v10 = vmul.f32 %v19911_v19, %v9418_v49  ;;  %v19954_v55 = vadd.f32 %v9282_v46, %v19888_v29  ;;  %v9671_v57 = vmul.f32 0.7978846, %v9607_v41  ;;  %v9483_v39 = vmul.f32 %v19916_v5, %v9419_v35 }
 0xb0b   : > { %21792 = vst [vmem:[#allocation166_spill] sm:$0xff] %v19943_v4  ;;  %v9485_v48 = vmul.f32 %v19919_v51, %v9421_v33  ;;  %v9422_v47 = vmul.f32 0.044715, %v19943_v4  ;;  %v9673_v45 = vmul.f32 0.7978846, %v9609_v50  ;;  %v19960_v1 = vadd.f32 %v9058_v52, %v19890_v40 }
 0xb0c   : > { %21793 = vst [vmem:[#allocation167_spill] sm:$0xff] %v19954_v55  ;;  %v9062_v26 = vpop.f32.mrb[8].mxu0  ;;  %v9288_v28 = vpop.f32.mrb[8].mxu1  ;;  %v19963_v9 = vadd.f32 %v9284_v62, %v19892_v54  ;;  %15545 = vtanh.f32 %v9667_v16  ;;  %v9423_v31 = vmul.f32 0.044715, %v19946_v13  ;;  %v19974_v12 = vmul.f32 %v19911_v19, %v9482_v10 }
 0xb0d   : > { %v9064_v15 = vpop.f32.mrb[9].mxu0  ;;  %v9290_v63 = vpop.f32.mrb[9].mxu1  ;;  %v19966_v42 = vadd.f32 %v9062_v26, %v19886_v32  ;;  %v9425_v37 = vmul.f32 0.044715, %v19954_v55  ;;  %v19971_v8 = vadd.f32 %v9288_v28, %v19888_v29  ;;  %15547 = vtanh.f32 %v9669_v24 }
 0xb0e   : > { %21794 = vst [vmem:[#allocation168_spill] sm:$0xff] %v19963_v9  ;;  %v9066_v18 = vpop.f32.mrb[10].mxu0  ;;  %v9292_v20 = vpop.f32.mrb[10].mxu1  ;;  %21796 = vst [vmem:[#allocation170_spill] sm:$0xff] %v19974_v12  ;;  %v9484_v22 = vmul.f32 %v19932_v34, %v9420_v38  ;;  %v9424_v30 = vmul.f32 0.044715, %v19960_v1  ;;  %v9486_v2 = vmul.f32 %v19943_v4, %v9422_v47  ;;  %v19982_v53 = vadd.f32 %v9064_v15, %v19890_v40 }
 0xb0f   : > { %21795 = vst [vmem:[#allocation169_spill] sm:$0xff] %v19971_v8  ;;  %v9068_v6 = vpop.f32.mrb[11].mxu0  ;;  %v9294_v44 = vpop.f32.mrb[11].mxu1  ;;  %v9426_v0 = vmul.f32 0.044715, %v19963_v9  ;;  %15549 = vtanh.f32 %v9671_v57  ;;  %v19985_v17 = vmul.f32 %v19916_v5, %v9483_v39  ;;  %v19988_v46 = vmul.f32 %v19919_v51, %v9485_v48 }
 0xb10   : > { %v9427_v3 = vmul.f32 0.044715, %v19966_v42  ;;  %v9429_v60 = vmul.f32 0.044715, %v19971_v8  ;;  %15551 = vtanh.f32 %v9673_v45  ;;  %v9487_v21 = vmul.f32 %v19946_v13, %v9423_v31 }
 0xb11   : > { %21797 = vst [vmem:[#allocation171_spill] sm:$0xff] %v19988_v46  ;;  %v9489_v58 = vmul.f32 %v19954_v55, %v9425_v37  ;;  %v19994_v52 = vadd.f32 %v9290_v63, %v19892_v54  ;;  %v9488_v62 = vmul.f32 %v19960_v1, %v9424_v30  ;;  %v9428_v56 = vmul.f32 0.044715, %v19982_v53 }
 0xb12   : > { %v19999_v49 = vadd.f32 %v9066_v18, %v19886_v32  ;;  %v20002_v41 = vadd.f32 %v9292_v20, %v19888_v29  ;;  %v20005_v50 = vmul.f32 %v19932_v34, %v9484_v22  ;;  %v20008_v16 = vmul.f32 %v19943_v4, %v9486_v2 }
 0xb13   : > { %21798 = vst [vmem:[#allocation172_spill] sm:$0xff] %v19994_v52  ;;  %v9490_v24 = vmul.f32 %v19963_v9, %v9426_v0  ;;  %v9491_v10 = vmul.f32 %v19966_v42, %v9427_v3  ;;  %v9493_v28 = vmul.f32 %v19971_v8, %v9429_v60  ;;  %v20014_v57 = vadd.f32 %v9068_v6, %v19890_v40 }
 0xb14   : > { %21799 = vst [vmem:[#allocation173_spill] sm:$0xff] %v20002_v41  ;;  %v9072_v35 = vpop.f32.mrb[12].mxu0  ;;  %v9298_v33 = vpop.f32.mrb[12].mxu1  ;;  %21800 = vst [vmem:[#allocation174_spill] sm:$0xff] %v20008_v16  ;;  %v20017_v39 = vadd.f32 %v9294_v44, %v19892_v54  ;;  %v20023_v63 = vmul.f32 %v19946_v13, %v9487_v21  ;;  %v20026_v45 = vmul.f32 %v19954_v55, %v9489_v58  ;;  %v9430_v18 = vmul.f32 0.044715, %v19994_v52 }
 0xb15   : > { %v9074_v38 = vpop.f32.mrb[13].mxu0  ;;  %v9300_v26 = vpop.f32.mrb[13].mxu1  ;;  %v20020_v48 = vadd.f32 %v9072_v35, %v19886_v32  ;;  %v20030_v20 = vadd.f32 %v9298_v33, %v19888_v29  ;;  %v20033_v6 = vmul.f32 %v19960_v1, %v9488_v62  ;;  %v9492_v44 = vmul.f32 %v19982_v53, %v9428_v56 }
 0xb16   : > { %21801 = vst [vmem:[#allocation175_spill] sm:$0xff] %v20017_v39  ;;  %v9076_v47 = vpop.f32.mrb[14].mxu0  ;;  %v9302_v15 = vpop.f32.mrb[14].mxu1  ;;  %21803 = vst [vmem:[#allocation177_spill] sm:$0xff] %v20026_v45  ;;  %v9431_v22 = vmul.f32 0.044715, %v19999_v49  ;;  %v20041_v0 = vmul.f32 %v19963_v9, %v9490_v24  ;;  %v20046_v21 = vadd.f32 %v9074_v38, %v19890_v40  ;;  %v20051_v62 = vmul.f32 %v19966_v42, %v9491_v10 }
 0xb17   : > { %21802 = vst [vmem:[#allocation176_spill] sm:$0xff] %v20020_v48  ;;  %21804 = vst [vmem:[#allocation178_spill] sm:$0xff] %v20030_v20  ;;  %v9078_v31 = vpop.f32.mrb[15].mxu0  ;;  %v9304_v37 = vpop.f32.mrb[15].mxu1  ;;  %v9433_v30 = vmul.f32 0.044715, %v20002_v41  ;;  %v20054_v56 = vmul.f32 %v19971_v8, %v9493_v28  ;;  %v9494_v24 = vmul.f32 %v19994_v52, %v9430_v18  ;;  %v20061_v45 = vadd.f32 %v9300_v26, %v19892_v54 }
 0xb18   : > { %v20038_v2 = vpop.eup %15545  ;;  %21805 = vst [vmem:[#allocation179_spill] sm:$0xff] %v20041_v0  ;;  %v9432_v3 = vmul.f32 0.044715, %v20014_v57  ;;  %v9434_v60 = vmul.f32 0.044715, %v20017_v39  ;;  %v20064_v38 = vadd.f32 %v9076_v47, %v19886_v32  ;;  %v20067_v10 = vmul.f32 %v19982_v53, %v9492_v44 }
 0xb19   : > { %v20048_v58 = vpop.eup %15547  ;;  %21807 = vst [vmem:[#allocation181_spill] sm:$0xff] %v20054_v56  ;;  %v9435_v35 = vmul.f32 0.044715, %v20020_v48  ;;  %v9437_v33 = vmul.f32 0.044715, %v20030_v20  ;;  %21808 = vst [vmem:[#allocation182_spill] sm:$0xff] %v20061_v45  ;;  %v9495_v28 = vmul.f32 %v19999_v49, %v9431_v22  ;;  %v9497_v8 = vmul.f32 %v20002_v41, %v9433_v30 }
 0xb1a   : > { %21806 = vst [vmem:[#allocation180_spill] sm:$0xff] %v20048_v58  ;;  %v9436_v55 = vmul.f32 0.044715, %v20046_v21  ;;  %21809 = vst [vmem:[#allocation183_spill] sm:$0xff] %v20064_v38  ;;  %v15550_v51 = vpop.eup %15549  ;;  %v20072_v56 = vadd.f32 %v9302_v15, %v19888_v29  ;;  %v9496_v26 = vmul.f32 %v20014_v57, %v9432_v3  ;;  %v9498_v47 = vmul.f32 %v20017_v39, %v9434_v60 }
 0xb1b   : > { %v20074_v9 = vpop.eup %15551  ;;  %v9438_v0 = vmul.f32 0.044715, %v20061_v45  ;;  %v9439_v44 = vmul.f32 0.044715, %v20064_v38  ;;  %v9499_v22 = vmul.f32 %v20020_v48, %v9435_v35  ;;  %v9501_v30 = vmul.f32 %v20030_v20, %v9437_v33 }
 0xb1c   : > { %21810 = vst [vmem:[#allocation184_spill] sm:$0xff] %v20072_v56  ;;  %v9082_v18 = vpop.f32.mrb[16].mxu0  ;;  %v9308_v46 = vpop.f32.mrb[16].mxu1  ;;  %21811 = vst [vmem:[#allocation185_spill] sm:$0xff] %v20074_v9  ;;  %v9441_v15 = vmul.f32 0.044715, %v20072_v56  ;;  %v20084_v11 = vadd.f32 %v9078_v31, %v19890_v40  ;;  %v20087_v3 = vmul.f32 %v19994_v52, %v9494_v24  ;;  %v9500_v60 = vmul.f32 %v20046_v21, %v9436_v55 }
 0xb1d   : > { %v9084_v4 = vpop.f32.mrb[17].mxu0  ;;  %v9310_v16 = vpop.f32.mrb[17].mxu1  ;;  %v20091_v58 = vadd.f32 %v9304_v37, %v19892_v54  ;;  %v20094_v19 = vadd.f32 %v9082_v18, %v19886_v32  ;;  %v9502_v12 = vmul.f32 %v20061_v45, %v9438_v0  ;;  %v9503_v31 = vmul.f32 %v20064_v38, %v9439_v44 }
 0xb1e   : > { %v9086_v14 = vpop.f32.mrb[18].mxu0  ;;  %v9312_v9 = vpop.f32.mrb[18].mxu1  ;;  %21812 = vst [vmem:[#allocation186_spill] sm:$0xff] %v20087_v3  ;;  %v9505_v25 = vmul.f32 %v20072_v56, %v9441_v15  ;;  %v20100_v61 = vadd.f32 %v9308_v46, %v19888_v29  ;;  %v20103_v24 = vmul.f32 %v19999_v49, %v9495_v28  ;;  %v20106_v55 = vmul.f32 %v20002_v41, %v9497_v8 }
 0xb1f   : > { %21813 = vst [vmem:[#allocation187_spill] sm:$0xff] %v20091_v58  ;;  %21814 = vst [vmem:[#allocation188_spill] sm:$0xff] %v20094_v19  ;;  %v9088_v35 = vpop.f32.mrb[19].mxu0  ;;  %v9314_v33 = vpop.f32.mrb[19].mxu1  ;;  %v9440_v37 = vmul.f32 0.044715, %v20084_v11  ;;  %v20110_v18 = vadd.f32 %v9084_v4, %v19890_v40  ;;  %v20113_v0 = vmul.f32 %v20014_v57, %v9496_v26  ;;  %v20116_v44 = vmul.f32 %v20017_v39, %v9498_v47 }
 0xb20   : > { %21815 = vst [vmem:[#allocation189_spill] sm:$0xff] %v20100_v61  ;;  %21816 = vst [vmem:[#allocation190_spill] sm:$0xff] %v20106_v55  ;;  %v20119_v46 = vmul.f32 %v20020_v48, %v9499_v22  ;;  %v20122_v28 = vmul.f32 %v20030_v20, %v9501_v30  ;;  %v20125_v8 = vmul.f32 %v20046_v21, %v9500_v60  ;;  %v9442_v15 = vmul.f32 0.044715, %v20091_v58 }
 0xb21   : > { %21817 = vst [vmem:[#allocation191_spill] sm:$0xff] %v20110_v18  ;;  %21818 = vst [vmem:[#allocation192_spill] sm:$0xff] %v20116_v44  ;;  %v9443_v4 = vmul.f32 0.044715, %v20094_v19  ;;  %v20130_v41 = vadd.f32 %v9310_v16, %v19892_v54  ;;  %v20133_v26 = vmul.f32 %v20061_v45, %v9502_v12  ;;  %v20136_v47 = vmul.f32 %v20064_v38, %v9503_v31 }
 0xb22   : > { %21819 = vst [vmem:[#allocation193_spill] sm:$0xff] %v20119_v46  ;;  %21820 = vst [vmem:[#allocation194_spill] sm:$0xff] %v20122_v28  ;;  %v20139_v22 = vmul.f32 %v20072_v56, %v9505_v25  ;;  %v9445_v30 = vmul.f32 0.044715, %v20100_v61  ;;  %v9504_v28 = vmul.f32 %v20084_v11, %v9440_v37  ;;  %v9444_v55 = vmul.f32 0.044715, %v20110_v18 }
 0xb23   : > { %21821 = vst [vmem:[#allocation195_spill] sm:$0xff] %v20130_v41  ;;  %21822 = vst [vmem:[#allocation196_spill] sm:$0xff] %v20133_v26  ;;  %v9446_v16 = vmul.f32 0.044715, %v20130_v41  ;;  %v9604_v12 = vadd.f32 %v19897_v7, %v19935_v43  ;;  %v9608_v31 = vadd.f32 %v19906_v23, %v19949_v27  ;;  %v20150_v25 = vadd.f32 %v9086_v14, %v19886_v32 }
 0xb24   : > { %21823 = vst [vmem:[#allocation197_spill] sm:$0xff] %v20136_v47  ;;  %21824 = vst [vmem:[#allocation198_spill] sm:$0xff] %v20139_v22  ;;  %v9092_v60 = vpop.f32.mrb[20].mxu0  ;;  %v9318_v20 = vpop.f32.mrb[20].mxu1  ;;  %v20153_v56 = vadd.f32 %v9312_v9, %v19888_v29  ;;  %v9795_v37 = vadd.f32 1.0, %v20038_v2  ;;  %v9506_v44 = vmul.f32 %v20091_v58, %v9442_v15  ;;  %v9507_v52 = vmul.f32 %v20094_v19, %v9443_v4 }
 0xb25   : > { %v9094_v45 = vpop.f32.mrb[21].mxu0  ;;  %v9320_v26 = vpop.f32.mrb[21].mxu1  ;;  %21825 = vst [vmem:[#allocation199_spill] sm:$0xff] %v20150_v25  ;;  %v9668_v43 = vmul.f32 0.7978846, %v9604_v12  ;;  %v9799_v3 = vadd.f32 1.0, %v15550_v51  ;;  %v9509_v14 = vmul.f32 %v20100_v61, %v9445_v30  ;;  %v20168_v4 = vadd.f32 %v9088_v35, %v19890_v40 }
 0xb26   : > { %21826 = vst [vmem:[#allocation200_spill] sm:$0xff] %v20153_v56  ;;  %v9096_v22 = vpop.f32.mrb[22].mxu0  ;;  %v9322_v39 = vpop.f32.mrb[22].mxu1  ;;  %v9672_v27 = vmul.f32 0.7978846, %v9608_v31  ;;  %v9859_v2 = vmul.f32 %v9795_v37, %v19921_v59  ;;  %v9508_v51 = vmul.f32 %v20110_v18, %v9444_v55  ;;  %v9510_v12 = vmul.f32 %v20130_v41, %v9446_v16 }
 0xb27   : > { %v20158_v38 = vpop.f32.mrb[23].mxu0  ;;  %v20160_v47 = vpop.f32.mrb[23].mxu1  ;;  %v9447_v9 = vmul.f32 0.044715, %v20150_v25  ;;  %v9449_v48 = vmul.f32 0.044715, %v20153_v56  ;;  %15553 = vtanh.f32 %v9668_v43  ;;  %v9863_v15 = vmul.f32 %v9799_v3, %v19925_v36 }
 0xb28   : > { %21827 = vst [vmem:[#allocation201_spill] sm:$0xff] %v20168_v4  ;;  %15555 = vtanh.f32 %v9672_v27  ;;  %v20173_v30 = vadd.f32 %v9314_v33, %v19892_v54  ;;  %v9448_v46 = vmul.f32 0.044715, %v20168_v4  ;;  %v20179_v43 = vadd.f32 %v9092_v60, %v19886_v32 }
 0xb29   : > { %v20175_v31 = vpack.c.bf16 %v9863_v15, %v9859_v2  ;;  %v20182_v59 = vadd.f32 %v9318_v20, %v19888_v29  ;;  %v20185_v36 = vmul.f32 %v20084_v11, %v9504_v28  ;;  %v9348_v3 = vmul.f32 0.5, %v19897_v7 }
 0xb2a   : > { %v9511_v35 = vmul.f32 %v20150_v25, %v9447_v9  ;;  %v9513_v33 = vmul.f32 %v20153_v56, %v9449_v48  ;;  %v20195_v37 = vmul.f32 %v20091_v58, %v9506_v44  ;;  %v20198_v60 = vmul.f32 %v20094_v19, %v9507_v52 }
 0xb2b   : > { %21828 = vst [vmem:[#allocation202_spill] sm:$0xff] %v20182_v59  ;;  %v9450_v20 = vmul.f32 0.044715, %v20173_v30  ;;  %v20202_v28 = vadd.f32 %v9094_v45, %v19890_v40  ;;  %v20209_v48 = vmul.f32 %v20100_v61, %v9509_v14  ;;  %v20212_v9 = vmul.f32 %v20110_v18, %v9508_v51 }
 0xb2c   : > { %v20190_v55 = vpop.f32.mrb[24].mxu0  ;;  %v20192_v16 = vpop.f32.mrb[24].mxu1  ;;  %21829 = vst [vmem:[#allocation203_spill] sm:$0xff] %v20195_v37  ;;  %21830 = vst [vmem:[#allocation204_spill] sm:$0xff] %v20198_v60  ;;  %v9352_v44 = vmul.f32 0.5, %v19906_v23  ;;  %v20216_v52 = vadd.f32 %v9320_v26, %v19892_v54  ;;  %v20223_v45 = vmul.f32 %v20130_v41, %v9510_v12  ;;  %v9512_v58 = vmul.f32 %v20168_v4, %v9448_v46 }
 0xb2d   : > { %v20204_v7 = vpop.f32.mrb[25].mxu0  ;;  %v20206_v27 = vpop.f32.mrb[25].mxu1  ;;  %21831 = vst [vmem:[#allocation205_spill] sm:$0xff] %v20209_v48  ;;  %21832 = vst [vmem:[#allocation206_spill] sm:$0xff] %v20212_v9  ;;  %v9451_v14 = vmul.f32 0.044715, %v20179_v43  ;;  %v20233_v23 = vmul.f32 %v20150_v25, %v9511_v35  ;;  %v20236_v26 = vmul.f32 %v20153_v56, %v9513_v33  ;;  %v9612_v12 = vadd.f32 %v19932_v34, %v20005_v50 }
 0xb2e   : > { %21833 = vst [vmem:[#allocation207_spill] sm:$0xff] %v20216_v52  ;;  %v20218_v2 = vpop.f32.mrb[26].mxu0  ;;  %v20220_v15 = vpop.f32.mrb[26].mxu1  ;;  %21834 = vst [vmem:[#allocation208_spill] sm:$0xff] %v20223_v45  ;;  %v9453_v61 = vmul.f32 0.044715, %v20182_v59  ;;  %v9616_v46 = vadd.f32 %v19960_v1, %v20033_v6  ;;  %v9514_v41 = vmul.f32 %v20173_v30, %v9450_v20  ;;  %v20248_v19 = vadd.f32 %v9096_v22, %v19886_v32 }
 0xb2f   : > { %v20228_v51 = vpop.f32.mrb[27].mxu0  ;;  %v20230_v48 = vpop.f32.mrb[27].mxu1  ;;  %21835 = vst [vmem:[#allocation209_spill] sm:$0xff] %v20233_v23  ;;  %21836 = vst [vmem:[#allocation210_spill] sm:$0xff] %v20236_v26  ;;  %v9452_v45 = vmul.f32 0.044715, %v20202_v28  ;;  %v20252_v26 = vadd.f32 %v9322_v39, %v19888_v29  ;;  %v20255_v6 = vmul.f32 %v20168_v4, %v9512_v58  ;;  %v9515_v20 = vmul.f32 %v20179_v43, %v9451_v14 }
 0xb30   : > { %v20245_v37 = vmul.f32 0.5, %v19932_v34  ;;  %v9454_v35 = vmul.f32 0.044715, %v20216_v52  ;;  %v9676_v33 = vmul.f32 0.7978846, %v9612_v12  ;;  %v9517_v25 = vmul.f32 %v20182_v59, %v9453_v61 }
 0xb31   : > { %v9680_v56 = vmul.f32 0.7978846, %v9616_v46  ;;  %21837 = vst [vmem:[#allocation211_spill] sm:$0xff] %v20252_v26  ;;  %v15554_v50 = vpop.eup %15553  ;;  %21838 = vst [vmem:[#allocation212_spill] sm:$0xff] %v20255_v6  ;;  %v20260_v34 = vmul.f32 0.5, %v19960_v1  ;;  %v9611_v39 = vadd.f32 %v19916_v5, %v19985_v17  ;;  %v9615_v61 = vadd.f32 %v19946_v13, %v20023_v63 }
 0xb32   : > { %v15556_v22 = vpop.eup %15555  ;;  %v9796_v23 = vadd.f32 1.0, %v15554_v50  ;;  %15557 = vtanh.f32 %v9676_v33  ;;  %v9455_v12 = vmul.f32 0.044715, %v20248_v19  ;;  %v9457_v14 = vmul.f32 0.044715, %v20252_v26 }
 0xb33   : > { %v9800_v58 = vadd.f32 1.0, %v15556_v22  ;;  %15559 = vtanh.f32 %v9680_v56  ;;  %v9516_v33 = vmul.f32 %v20202_v28, %v9452_v45  ;;  %v9518_v4 = vmul.f32 %v20216_v52, %v9454_v35 }
 0xb34   : > { %v20265_v46 = vpop.f32.mrb[28].mxu0  ;;  %v20267_v60 = vpop.f32.mrb[28].mxu1  ;;  %v9675_v17 = vmul.f32 0.7978846, %v9611_v39  ;;  %v20280_v22 = vadd.f32 %v20158_v38, %v19890_v40  ;;  %v9860_v63 = vmul.f32 %v9796_v23, %v9348_v3  ;;  %v9679_v9 = vmul.f32 0.7978846, %v9615_v61 }
 0xb35   : > { %v20272_v1 = vpop.f32.mrb[29].mxu0  ;;  %v20274_v50 = vpop.f32.mrb[29].mxu1  ;;  %v9864_v18 = vmul.f32 %v9800_v58, %v9352_v44  ;;  %v20288_v45 = vadd.f32 %v20160_v47, %v19892_v54  ;;  %v9519_v38 = vmul.f32 %v20248_v19, %v9455_v12  ;;  %v20298_v3 = vadd.f32 %v20190_v55, %v19886_v32  ;;  %v15449_v23 = vld [vmem:[%s17284_s18 + $0x200] ss:$16 sps:$4 sm:$0xff]   ;;  %v15452_v58 = vld [vmem:[%s17284_s18 + $0x208] ss:$16 sps:$4 sm:$0xff]  }
 0xb36   : > { %v20282_v56 = vpop.f32.mrb[30].mxu0  ;;  %v20284_v6 = vpop.f32.mrb[30].mxu1  ;;  %15561 = vtanh.f32 %v9675_v17  ;;  %v9521_v61 = vmul.f32 %v20252_v26, %v9457_v14  ;;  %v15457_v12 = vld [vmem:[%s17284_s18 + $0x224] ss:$16 sps:$4 sm:$0xff]   ;;  %v15460_v17 = vld [vmem:[%s17284_s18 + $0x22c] ss:$16 sps:$4 sm:$0xff]   ;;  %v20324_v14 = vmul.f32 %v20216_v52, %v9518_v4  ;;  %v20339_v4 = vadd.f32 %v20204_v7, %v19890_v40 }
 0xb37   : > { %21839 = vst [vmem:[#allocation213_spill] sm:$0xff] %v20282_v56  ;;  %21840 = vst [vmem:[#allocation214_spill] sm:$0xff] %v20288_v45  ;;  %v20290_v35 = vpop.f32.mrb[31].mxu0  ;;  %v20292_v39 = vpop.f32.mrb[31].mxu1  ;;  %v9456_v56 = vmul.f32 0.044715, %v20280_v22  ;;  %v9988_v44 = vpack.c.bf16 %v9864_v18, %v9860_v63  ;;  %15563 = vtanh.f32 %v9679_v9  ;;  %v20315_v18 = vadd.f32 %v20192_v16, %v19888_v29 }
 0xb38   : > { %21841 = vst [vmem:[#allocation215_spill] sm:$0xff] %v20290_v35  ;;  %21842 = vst [vmem:[#allocation216_spill] sm:$0xff] %v20292_v39  ;;  %v9458_v47 = vmul.f32 0.044715, %v20288_v45  ;;  %v20305_v39 = vmul.f32 %v20173_v30, %v9514_v41  ;;  %v20310_v35 = vmul.f32 %v20179_v43, %v9515_v20  ;;  %v20318_v9 = vmul.f32 %v20182_v59, %v9517_v25  ;;  %v15455_v16 = vld [vmem:[%s17284_s18 + $0x220] ss:$16 sps:$4 sm:$0xff]  }
 0xb39   : > { %v9520_v55 = vmul.f32 %v20280_v22, %v9456_v56  ;;  %10819 = vmatprep.mubr.bf16.mxu0 %v9988_v44  ;;  %11045 = vmatprep.mubr.bf16.mxu1 %v9988_v44  ;;  %v20321_v41 = vmul.f32 %v20202_v28, %v9516_v33  ;;  %v9459_v20 = vmul.f32 0.044715, %v20298_v3  ;;  %v20331_v56 = vmul.f32 %v20248_v19, %v9519_v38  ;;  %v15458_v63 = vld [vmem:[%s17284_s18 + $0x228] ss:$16 sps:$4 sm:$0xff]   ;;  %v15463_v59 = vld [vmem:[%s17284_s18 + $0x244] ss:$16 sps:$4 sm:$0xff]  }
 0xb3a   : > { %21843 = vst [vmem:[#allocation217_spill] sm:$0xff] %v20318_v9  ;;  %10820 = vmatmul.mubr.bf16.vlgmr.msra.gmra.mrb[32].mxu0 %v20175_v31  ;;  %11046 = vmatmul.mubr.bf16.vlgmr.msra.gmra.mrb[32].mxu1 %v20175_v31  ;;  %v20334_v25 = vmul.f32 0.5, %v19916_v5  ;;  %v9522_v33 = vmul.f32 %v20288_v45, %v9458_v47  ;;  %v20343_v44 = vmul.f32 %v20252_v26, %v9521_v61  ;;  %v9359_v31 = vmul.f32 0.5, %v19946_v13  ;;  %v15466_v7 = vld [vmem:[%s17284_s18 + $0x24c] ss:$16 sps:$4 sm:$0xff]  }
 0xb3b   : > { %10901 = vmatpush1.bf16.msra.mxu0 %v15449_v23  ;;  %11127 = vmatpush1.bf16.msra.mxu1 %v15452_v58  ;;  %v20349_v38 = vadd.f32 %v20206_v27, %v19892_v54  ;;  %v9620_v5 = vadd.f32 %v19982_v53, %v20067_v10  ;;  %v20355_v23 = vmul.f32 %v20280_v22, %v9520_v55  ;;  %v9461_v58 = vmul.f32 0.044715, %v20315_v18 }
 0xb3c   : > { %21844 = vst [vmem:[#allocation218_spill] sm:$0xff] %v20343_v44  ;;  %v15558_v47 = vpop.eup %15557  ;;  %10902 = vmatprep.subr.bf16.mxu0 %v15457_v12  ;;  %11128 = vmatprep.subr.bf16.mxu1 %v15460_v17  ;;  %v20359_v13 = vmul.f32 0.5, %v19982_v53  ;;  %v20362_v27 = vmul.f32 0.5, %v20014_v57  ;;  %v9523_v10 = vmul.f32 %v20298_v3, %v9459_v20  ;;  %v9624_v12 = vadd.f32 %v20014_v57, %v20113_v0  ;;  %v15461_v20 = vld [vmem:[%s17284_s18 + $0x240] ss:$16 sps:$4 sm:$0xff]  }
 0xb3d   : > { %v15560_v61 = vpop.eup %15559  ;;  %v9804_v26 = vadd.f32 1.0, %v15558_v47  ;;  %v9684_v17 = vmul.f32 0.7978846, %v9620_v5  ;;  %v20368_v44 = vmul.f32 %v20288_v45, %v9522_v33  ;;  %v9460_v9 = vmul.f32 0.044715, %v20339_v4 }
 0xb3e   : > { %v9808_v55 = vadd.f32 1.0, %v15560_v61  ;;  %v20373_v53 = vadd.f32 %v20218_v2, %v19886_v32  ;;  %v15464_v57 = vld [vmem:[%s17284_s18 + $0x248] ss:$16 sps:$4 sm:$0xff]   ;;  %v9688_v0 = vmul.f32 0.7978846, %v9624_v12  ;;  %v20380_v33 = vadd.f32 %v20220_v15, %v19888_v29 }
 0xb3f   : > { %21845 = vst [vmem:[#allocation219_spill] sm:$0xff] %v20368_v44  ;;  %10903 = vmatpush1.bf16.msra.mxu0 %v15455_v16  ;;  %11129 = vmatpush1.bf16.msra.mxu1 %v15458_v63  ;;  %v9868_v47 = vmul.f32 %v9804_v26, %v20245_v37  ;;  %15565 = vtanh.f32 %v9684_v17  ;;  %v15469_v2 = vld [vmem:[%s17284_s18 + $0x264] ss:$16 sps:$4 sm:$0xff]   ;;  %v9462_v16 = vmul.f32 0.044715, %v20349_v38  ;;  %v9619_v37 = vadd.f32 %v19966_v42, %v20051_v62 }
 0xb40   : > { %21846 = vst [vmem:[#allocation220_spill] sm:$0xff] %v20380_v33  ;;  %v15562_v5 = vpop.eup %15561  ;;  %v9872_v61 = vmul.f32 %v9808_v55, %v20260_v34  ;;  %10904 = vmatprep.subr.bf16.mxu0 %v15463_v59  ;;  %11130 = vmatprep.subr.bf16.mxu1 %v15466_v7  ;;  %v9623_v26 = vadd.f32 %v19999_v49, %v20103_v24  ;;  %v15467_v17 = vld [vmem:[%s17284_s18 + $0x260] ss:$16 sps:$4 sm:$0xff]   ;;  %v15472_v15 = vld [vmem:[%s17284_s18 + $0x26c] ss:$16 sps:$4 sm:$0xff]   ;;  %15567 = vtanh.f32 %v9688_v0 }
 0xb41   : > { %v15564_v63 = vpop.eup %15563  ;;  %v9803_v12 = vadd.f32 1.0, %v15562_v5  ;;  %v9463_v45 = vmul.f32 0.044715, %v20373_v53  ;;  %v20394_v59 = vadd.f32 %v20228_v51, %v19890_v40  ;;  %v9465_v55 = vmul.f32 0.044715, %v20380_v33 }
 0xb42   : > { %v9992_v34 = vpack.c.bf16 %v9872_v61, %v9868_v47  ;;  %v9807_v7 = vadd.f32 1.0, %v15564_v63  ;;  %v9683_v44 = vmul.f32 0.7978846, %v9619_v37  ;;  %v15470_v62 = vld [vmem:[%s17284_s18 + $0x268] ss:$16 sps:$4 sm:$0xff]   ;;  %v9525_v24 = vmul.f32 %v20315_v18, %v9461_v58 }
 0xb43   : > { %10905 = vmatpush1.bf16.msra.mxu0 %v15461_v20  ;;  %11131 = vmatpush1.bf16.msra.mxu1 %v15464_v57  ;;  %v9524_v0 = vmul.f32 %v20339_v4, %v9460_v9  ;;  %v9687_v5 = vmul.f32 0.7978846, %v9623_v26  ;;  %v9464_v52 = vmul.f32 0.044715, %v20394_v59  ;;  %v9867_v51 = vmul.f32 %v9803_v12, %v20334_v25  ;;  %v15475_v57 = vld [vmem:[%s17284_s18 + $0x284] ss:$16 sps:$4 sm:$0xff]  }
 0xb44   : > { %10829 = vmatprep.mubr.bf16.mxu0 %v9992_v34  ;;  %11055 = vmatprep.mubr.bf16.mxu1 %v9992_v34  ;;  %v9871_v47 = vmul.f32 %v9807_v7, %v9359_v31  ;;  %15569 = vtanh.f32 %v9683_v44  ;;  %v20404_v20 = vadd.f32 %v20230_v48, %v19892_v54  ;;  %v9526_v58 = vmul.f32 %v20349_v38, %v9462_v16  ;;  %v15478_v61 = vld [vmem:[%s17284_s18 + $0x28c] ss:$16 sps:$4 sm:$0xff]  }
 0xb45   : > { %10906 = vmatprep.subr.bf16.mxu0 %v15469_v2  ;;  %11132 = vmatprep.subr.bf16.mxu1 %v15472_v15  ;;  %v20408_v9 = vmul.f32 0.5, %v19966_v42  ;;  %15571 = vtanh.f32 %v9687_v5  ;;  %v20414_v25 = vadd.f32 %v20265_v46, %v19886_v32  ;;  %v9527_v48 = vmul.f32 %v20373_v53, %v9463_v45  ;;  %v15473_v2 = vld [vmem:[%s17284_s18 + $0x280] ss:$16 sps:$4 sm:$0xff]   ;;  %v15476_v46 = vld [vmem:[%s17284_s18 + $0x288] ss:$16 sps:$4 sm:$0xff]  }
 0xb46   : > { %v9991_v44 = vpack.c.bf16 %v9871_v47, %v9867_v51  ;;  %v9529_v31 = vmul.f32 %v20380_v33, %v9465_v55  ;;  %v20421_v16 = vadd.f32 %v20267_v60, %v19888_v29  ;;  %v20424_v42 = vmul.f32 %v20298_v3, %v9523_v10  ;;  %v15481_v45 = vld [vmem:[%s17284_s18 + $0x2a4] ss:$16 sps:$4 sm:$0xff]   ;;  %v15484_v12 = vld [vmem:[%s17284_s18 + $0x2ac] ss:$16 sps:$4 sm:$0xff]   ;;  %v15479_v5 = vld [vmem:[%s17284_s18 + $0x2a0] ss:$16 sps:$4 sm:$0xff]  }
 0xb47   : > { %10907 = vmatpush1.bf16.msra.mxu0 %v15467_v17  ;;  %11133 = vmatpush1.bf16.msra.mxu1 %v15470_v62  ;;  %v20427_v37 = vmul.f32 0.5, %v19999_v49  ;;  %v9528_v26 = vmul.f32 %v20394_v59, %v9464_v52  ;;  %v20434_v63 = vadd.f32 %v20272_v1, %v19890_v40  ;;  %v20437_v60 = vmul.f32 %v20315_v18, %v9525_v24 }
 0xb48   : > { %21847 = vst [vmem:[#allocation221_spill] sm:$0xff] %v20421_v16  ;;  %10830 = vmatmul.mubr.bf16.gmra.mrb[36].mxu0 %v9991_v44  ;;  %11056 = vmatmul.mubr.bf16.gmra.mrb[36].mxu1 %v9991_v44  ;;  %v20440_v10 = vmul.f32 %v20339_v4, %v9524_v0  ;;  %v9466_v49 = vmul.f32 0.044715, %v20404_v20  ;;  %v9467_v52 = vmul.f32 0.044715, %v20414_v25  ;;  %v20448_v15 = vadd.f32 %v20274_v50, %v19892_v54 }
 0xb49   : > { %v15566_v17 = vpop.eup %15565  ;;  %10908 = vmatprep.subr.bf16.mxu0 %v15475_v57  ;;  %11134 = vmatprep.subr.bf16.mxu1 %v15478_v61  ;;  %v9469_v1 = vmul.f32 0.044715, %v20421_v16  ;;  %v9628_v34 = vadd.f32 %v20046_v21, %v20125_v8  ;;  %v9632_v7 = vadd.f32 %v20084_v11, %v20185_v36  ;;  %v20455_v55 = vmul.f32 %v20349_v38, %v9526_v58  ;;  %v15482_v50 = vld [vmem:[%s17284_s18 + $0x2a8] ss:$16 sps:$4 sm:$0xff]  }
 0xb4a   : > { %21848 = vst [vmem:[#allocation222_spill] sm:$0xff] %v20448_v15  ;;  %v9812_v62 = vadd.f32 1.0, %v15566_v17  ;;  %v20458_v24 = vmul.f32 %v20373_v53, %v9527_v48  ;;  %v20461_v0 = vmul.f32 %v20380_v33, %v9529_v31  ;;  %v15568_v51 = vpop.eup %15567  ;;  %v20466_v8 = vmul.f32 %v20394_v59, %v9528_v26  ;;  %v15487_v31 = vld [vmem:[%s17284_s18 + $0x2c4] ss:$16 sps:$4 sm:$0xff]   ;;  %v15490_v26 = vld [vmem:[%s17284_s18 + $0x2cc] ss:$16 sps:$4 sm:$0xff]  }
 0xb4b   : > { %10909 = vmatpush1.bf16.msra.mxu0 %v15473_v2  ;;  %11135 = vmatpush1.bf16.msra.mxu1 %v15476_v46  ;;  %v9468_v36 = vmul.f32 0.044715, %v20434_v63  ;;  %v9692_v47 = vmul.f32 0.7978846, %v9628_v34  ;;  %v9696_v58 = vmul.f32 0.7978846, %v9632_v7  ;;  %v9530_v61 = vmul.f32 %v20404_v20, %v9466_v49 }
 0xb4c   : > { %v9816_v57 = vadd.f32 1.0, %v15568_v51  ;;  %10910 = vmatprep.subr.bf16.mxu0 %v15481_v45  ;;  %11136 = vmatprep.subr.bf16.mxu1 %v15484_v12  ;;  %v9531_v44 = vmul.f32 %v20414_v25, %v9467_v52  ;;  %v20472_v48 = vmul.f32 0.5, %v20046_v21  ;;  %v9533_v2 = vmul.f32 %v20421_v16, %v9469_v1  ;;  %v21849_v17 = vld [vmem:[#allocation213_spill] sm:$0xff]  ;;  %v15485_v52 = vld [vmem:[%s17284_s18 + $0x2c0] ss:$16 sps:$4 sm:$0xff]   ;;  %v21855_v33 = vld [vmem:[#allocation215_spill] sm:$0xff] }
 0xb4d   : > { %v9470_v46 = vmul.f32 0.044715, %v20448_v15  ;;  %15573 = vtanh.f32 %v9692_v47  ;;  %v20480_v34 = vadd.f32 %v21849_v17, %v19886_v32  ;;  %v9876_v45 = vmul.f32 %v9812_v62, %v20359_v13  ;;  %v21851_v47 = vld [vmem:[#allocation193_spill] sm:$0xff]  ;;  %v21852_v13 = vld [vmem:[#allocation176_spill] sm:$0xff] }
 0xb4e   : > { %v15570_v49 = vpop.eup %15569  ;;  %v9880_v12 = vmul.f32 %v9816_v57, %v20362_v27  ;;  %15575 = vtanh.f32 %v9696_v58  ;;  %v20486_v21 = vadd.f32 %v20284_v6, %v19888_v29  ;;  %v9532_v32 = vmul.f32 %v20434_v63, %v9468_v36  ;;  %v15488_v27 = vld [vmem:[%s17284_s18 + $0x2c8] ss:$16 sps:$4 sm:$0xff]  }
 0xb4f   : > { %v15572_v1 = vpop.eup %15571  ;;  %v9811_v7 = vadd.f32 1.0, %v15570_v49  ;;  %10911 = vmatpush1.bf16.msra.mxu0 %v15479_v5  ;;  %11137 = vmatpush1.bf16.msra.mxu1 %v15482_v50  ;;  %v9471_v51 = vmul.f32 0.044715, %v20480_v34  ;;  %v9627_v62 = vadd.f32 %v21852_v13, %v21851_v47  ;;  %v21853_v17 = vld [vmem:[#allocation197_spill] sm:$0xff]  ;;  %v21854_v29 = vld [vmem:[#allocation183_spill] sm:$0xff]  ;;  %v20498_v49 = vadd.f32 %v21855_v33, %v19890_v40 }
 0xb50   : > { %21850 = vst [vmem:[#allocation213_spill] sm:$0xff] %v20486_v21  ;;  %v9996_v58 = vpack.c.bf16 %v9880_v12, %v9876_v45  ;;  %v9815_v57 = vadd.f32 1.0, %v15572_v1  ;;  %v9631_v6 = vadd.f32 %v21854_v29, %v21853_v17  ;;  %10912 = vmatprep.subr.bf16.mxu0 %v15487_v31  ;;  %11138 = vmatprep.subr.bf16.mxu1 %v15490_v26  ;;  %v15493_v5 = vld [vmem:[%s17284_s18 + $0x2e4] ss:$16 sps:$4 sm:$0xff]   ;;  %v15496_v50 = vld [vmem:[%s17284_s18 + $0x2ec] ss:$16 sps:$4 sm:$0xff]  }
 0xb51   : > { %v20503_v36 = vmul.f32 %v20404_v20, %v9530_v61  ;;  %v9534_v47 = vmul.f32 %v20448_v15, %v9470_v46  ;;  %v9376_v45 = vmul.f32 0.5, %v20084_v11  ;;  %v9691_v12 = vmul.f32 0.7978846, %v9627_v62  ;;  %v15491_v1 = vld [vmem:[%s17284_s18 + $0x2e0] ss:$16 sps:$4 sm:$0xff]   ;;  %v21861_v17 = vld [vmem:[#allocation201_spill] sm:$0xff] }
 0xb52   : > { %10839 = vmatprep.mubr.bf16.mxu0 %v9996_v58  ;;  %11065 = vmatprep.mubr.bf16.mxu1 %v9996_v58  ;;  %v9875_v31 = vmul.f32 %v9811_v7, %v20408_v9  ;;  %v9879_v26 = vmul.f32 %v9815_v57, %v20427_v37  ;;  %v9473_v40 = vmul.f32 0.044715, %v20486_v21  ;;  %v9695_v33 = vmul.f32 0.7978846, %v9631_v6  ;;  %v15494_v9 = vld [vmem:[%s17284_s18 + $0x2e8] ss:$16 sps:$4 sm:$0xff]  }
 0xb53   : > { %v20511_v61 = vmul.f32 %v20414_v25, %v9531_v44  ;;  %v20514_v46 = vmul.f32 %v20421_v16, %v9533_v2  ;;  %v9535_v11 = vmul.f32 %v20480_v34, %v9471_v51  ;;  %15577 = vtanh.f32 %v9691_v12  ;;  %10913 = vmatpush1.bf16.msra.mxu0 %v15485_v52  ;;  %11139 = vmatpush1.bf16.msra.mxu1 %v15488_v27  ;;  %v15499_v44 = vld [vmem:[%s17284_s18 + $0x304] ss:$16 sps:$4 sm:$0xff]   ;;  %v15502_v2 = vld [vmem:[%s17284_s18 + $0x30c] ss:$16 sps:$4 sm:$0xff]  }
 0xb54   : > { %v9995_v7 = vpack.c.bf16 %v9879_v26, %v9875_v31  ;;  %v20520_v37 = vmul.f32 %v20434_v63, %v9532_v32  ;;  %15579 = vtanh.f32 %v9695_v33  ;;  %v9472_v62 = vmul.f32 0.044715, %v20498_v49  ;;  %10914 = vmatprep.subr.bf16.mxu0 %v15493_v5  ;;  %11140 = vmatprep.subr.bf16.mxu1 %v15496_v50  ;;  %v21858_v27 = vld [vmem:[#allocation206_spill] sm:$0xff]  ;;  %v21859_v58 = vld [vmem:[#allocation191_spill] sm:$0xff]  ;;  %v21860_v32 = vld [vmem:[#allocation212_spill] sm:$0xff] }
 0xb55   : > { %21856 = vst [vmem:[#allocation193_spill] sm:$0xff] %v20514_v46  ;;  %v20526_v51 = vmul.f32 %v20448_v15, %v9534_v47  ;;  %v20529_v52 = vmul.f32 0.5, %v21852_v13  ;;  %v9636_v57 = vadd.f32 %v21859_v58, %v21858_v27  ;;  %v9640_v6 = vadd.f32 %v21861_v17, %v21860_v32  ;;  %v21863_v47 = vld [vmem:[#allocation216_spill] sm:$0xff]  ;;  %v15500_v27 = vld [vmem:[%s17284_s18 + $0x308] ss:$16 sps:$4 sm:$0xff]  }
 0xb56   : > { %10840 = vmatmul.mubr.bf16.gmra.mrb[40].mxu0 %v9995_v7  ;;  %11066 = vmatmul.mubr.bf16.gmra.mrb[40].mxu1 %v9995_v7  ;;  %v20536_v5 = vmul.f32 %v20486_v21, %v9473_v40  ;;  %v20539_v50 = vmul.f32 0.5, %v21854_v29  ;;  %v20543_v12 = vadd.f32 %v21863_v47, %v19892_v54  ;;  %v21864_v13 = vld [vmem:[#allocation204_spill] sm:$0xff]  ;;  %v20550_v16 = vmul.f32 %v20480_v34, %v9535_v11  ;;  %v21866_v29 = vld [vmem:[#allocation209_spill] sm:$0xff]  ;;  %v21867_v46 = vld [vmem:[#allocation199_spill] sm:$0xff] }
 0xb57   : > { %21857 = vst [vmem:[#allocation176_spill] sm:$0xff] %v20526_v51  ;;  %v21865_v31 = vld [vmem:[#allocation188_spill] sm:$0xff]  ;;  %v15574_v32 = vpop.eup %15573  ;;  %10915 = vmatpush1.bf16.msra.mxu0 %v15491_v1  ;;  %11141 = vmatpush1.bf16.msra.mxu1 %v15494_v9  ;;  %v9700_v40 = vmul.f32 0.7978846, %v9636_v57  ;;  %v9704_v7 = vmul.f32 0.7978846, %v9640_v6  ;;  %v9639_v15 = vadd.f32 %v21867_v46, %v21866_v29  ;;  %v9536_v21 = vmul.f32 %v20498_v49, %v9472_v62 }
 0xb58   : > { %21862 = vst [vmem:[#allocation197_spill] sm:$0xff] %v20536_v5  ;;  %v9635_v26 = vadd.f32 %v21865_v31, %v21864_v13  ;;  %v15497_v33 = vld [vmem:[%s17284_s18 + $0x300] ss:$16 sps:$4 sm:$0xff]   ;;  %v15505_v51 = vld [vmem:[%s17284_s18 + $0x324] ss:$16 sps:$4 sm:$0xff]   ;;  %v15576_v54 = vpop.eup %15575  ;;  %v9820_v47 = vadd.f32 1.0, %v15574_v32  ;;  %10916 = vmatprep.subr.bf16.mxu0 %v15499_v44  ;;  %11142 = vmatprep.subr.bf16.mxu1 %v15502_v2  ;;  %v9644_v57 = vadd.f32 %v20202_v28, %v20321_v41 }
 0xb59   : > { %v20557_v13 = vmul.f32 0.5, %v21859_v58  ;;  %v15508_v11 = vld [vmem:[%s17284_s18 + $0x32c] ss:$16 sps:$4 sm:$0xff]   ;;  %v9824_v1 = vadd.f32 1.0, %v15576_v54  ;;  %15581 = vtanh.f32 %v9700_v40  ;;  %v9703_v9 = vmul.f32 0.7978846, %v9639_v15 }
 0xb5a   : > { %v9699_v5 = vmul.f32 0.7978846, %v9635_v26  ;;  %v20563_v6 = vmul.f32 0.5, %v21861_v17  ;;  %15583 = vtanh.f32 %v9704_v7  ;;  %v20566_v62 = vmul.f32 0.5, %v21865_v31  ;;  %v15503_v41 = vld [vmem:[%s17284_s18 + $0x320] ss:$16 sps:$4 sm:$0xff]  }
 0xb5b   : > { %v9648_v44 = vadd.f32 %v20280_v22, %v20355_v23  ;;  %v9884_v2 = vmul.f32 %v9820_v47, %v20472_v48  ;;  %v9888_v58 = vmul.f32 %v9824_v1, %v9376_v45  ;;  %10917 = vmatpush1.bf16.msra.mxu0 %v15497_v33  ;;  %11143 = vmatpush1.bf16.msra.mxu1 %v15500_v27  ;;  %v9708_v15 = vmul.f32 0.7978846, %v9644_v57  ;;  %v15506_v17 = vld [vmem:[%s17284_s18 + $0x328] ss:$16 sps:$4 sm:$0xff]   ;;  %v15511_v27 = vld [vmem:[%s17284_s18 + $0x344] ss:$16 sps:$4 sm:$0xff]  }
 0xb5c   : > { %15585 = vtanh.f32 %v9699_v5  ;;  %10918 = vmatprep.subr.bf16.mxu0 %v15505_v51  ;;  %11144 = vmatprep.subr.bf16.mxu1 %v15508_v11  ;;  %v9643_v31 = vadd.f32 %v20179_v43, %v20310_v35  ;;  %v9647_v23 = vadd.f32 %v20248_v19, %v20331_v56  ;;  %v9600_v5 = vmul.f32 %v20498_v49, %v9536_v21  ;;  %v15514_v32 = vld [vmem:[%s17284_s18 + $0x34c] ss:$16 sps:$4 sm:$0xff]   ;;  %v15509_v11 = vld [vmem:[%s17284_s18 + $0x340] ss:$16 sps:$4 sm:$0xff]   ;;  %v15512_v1 = vld [vmem:[%s17284_s18 + $0x348] ss:$16 sps:$4 sm:$0xff]  }
 0xb5d   : > { %15587 = vtanh.f32 %v9703_v9  ;;  %v9712_v26 = vmul.f32 0.7978846, %v9648_v44  ;;  %v15578_v48 = vpop.eup %15577  ;;  %v10000_v45 = vpack.c.bf16 %v9888_v58, %v9884_v2  ;;  %v20579_v33 = vmul.f32 0.5, %v21867_v46  ;;  %v15520_v44 = vld [vmem:[%s17284_s18 + $0x36c] ss:$16 sps:$4 sm:$0xff]  }
 0xb5e   : > { %15589 = vtanh.f32 %v9708_v15  ;;  %v15580_v51 = vpop.eup %15579  ;;  %v9819_v40 = vadd.f32 1.0, %v15578_v48  ;;  %v9707_v7 = vmul.f32 0.7978846, %v9643_v31  ;;  %v9711_v35 = vmul.f32 0.7978846, %v9647_v23 }
 0xb5f   : > { %15591 = vtanh.f32 %v9712_v26  ;;  %10849 = vmatprep.mubr.bf16.mxu0 %v10000_v45  ;;  %11075 = vmatprep.mubr.bf16.mxu1 %v10000_v45  ;;  %v9823_v56 = vadd.f32 1.0, %v15580_v51  ;;  %v20584_v29 = vmul.f32 0.5, %v20202_v28  ;;  %v9652_v21 = vadd.f32 %v20339_v4, %v20440_v10  ;;  %v15515_v15 = vld [vmem:[%s17284_s18 + $0x360] ss:$16 sps:$4 sm:$0xff]   ;;  %v15526_v48 = vld [vmem:[%s17284_s18 + $0x38c] ss:$16 sps:$4 sm:$0xff]  }
 0xb60   : > { %v9656_v46 = vadd.f32 %v20394_v59, %v20466_v8  ;;  %v9883_v54 = vmul.f32 %v9819_v40, %v20529_v52  ;;  %10919 = vmatpush1.bf16.msra.mxu0 %v15503_v41  ;;  %11145 = vmatpush1.bf16.msra.mxu1 %v15506_v17  ;;  %v20592_v47 = vmul.f32 0.5, %v20280_v22  ;;  %15593 = vtanh.f32 %v9707_v7  ;;  %v15517_v8 = vld [vmem:[%s17284_s18 + $0x364] ss:$16 sps:$4 sm:$0xff]   ;;  %v15518_v41 = vld [vmem:[%s17284_s18 + $0x368] ss:$16 sps:$4 sm:$0xff]  }
 0xb61   : > { %v9651_v28 = vadd.f32 %v20298_v3, %v20424_v42  ;;  %v9887_v10 = vmul.f32 %v9823_v56, %v20539_v50  ;;  %15595 = vtanh.f32 %v9711_v35  ;;  %10920 = vmatprep.subr.bf16.mxu0 %v15511_v27  ;;  %11146 = vmatprep.subr.bf16.mxu1 %v15514_v32  ;;  %v9716_v52 = vmul.f32 0.7978846, %v9652_v21  ;;  %v15523_v17 = vld [vmem:[%s17284_s18 + $0x384] ss:$16 sps:$4 sm:$0xff]  }
 0xb62   : > { %v9720_v9 = vmul.f32 0.7978846, %v9656_v46  ;;  %v20601_v22 = vmul.f32 0.5, %v20179_v43  ;;  %v20604_v57 = vmul.f32 0.5, %v20248_v19  ;;  %v9655_v42 = vadd.f32 %v20373_v53, %v20458_v24 }
 0xb63   : > { %v9715_v2 = vmul.f32 0.7978846, %v9651_v28  ;;  %v15582_v50 = vpop.eup %15581  ;;  %v9999_v58 = vpack.c.bf16 %v9887_v10, %v9883_v54  ;;  %15597 = vtanh.f32 %v9716_v52  ;;  %v9660_v26 = vadd.f32 %v20434_v63, %v20520_v37 }
 0xb64   : > { %v9664_v43 = vadd.f32 %v20498_v49, %v9600_v5  ;;  %v15584_v31 = vpop.eup %15583  ;;  %v9828_v19 = vadd.f32 1.0, %v15582_v50  ;;  %10921 = vmatpush1.bf16.msra.mxu0 %v15509_v11  ;;  %11147 = vmatpush1.bf16.msra.mxu1 %v15512_v1  ;;  %v20616_v23 = vmul.f32 0.5, %v20339_v4  ;;  %15599 = vtanh.f32 %v9720_v9  ;;  %v15521_v11 = vld [vmem:[%s17284_s18 + $0x380] ss:$16 sps:$4 sm:$0xff]  }
 0xb65   : > { %v9719_v24 = vmul.f32 0.7978846, %v9655_v42  ;;  %10850 = vmatmul.mubr.bf16.gmra.mrb[44].mxu0 %v9999_v58  ;;  %11076 = vmatmul.mubr.bf16.gmra.mrb[44].mxu1 %v9999_v58  ;;  %v9832_v27 = vadd.f32 1.0, %v15584_v31  ;;  %15601 = vtanh.f32 %v9715_v2  ;;  %v9724_v32 = vmul.f32 0.7978846, %v9660_v26  ;;  %v21870_v26 = vld [vmem:[#allocation170_spill] sm:$0xff] }
 0xb66   : > { %v15586_v45 = vpop.eup %15585  ;;  %v9728_v51 = vmul.f32 0.7978846, %v9664_v43  ;;  %v9892_v5 = vmul.f32 %v9828_v19, %v20557_v13  ;;  %10922 = vmatprep.subr.bf16.mxu0 %v15517_v8  ;;  %11148 = vmatprep.subr.bf16.mxu1 %v15520_v44  ;;  %v20621_v4 = vmul.f32 0.5, %v20394_v59  ;;  %v9659_v21 = vadd.f32 %v20414_v25, %v20511_v61  ;;  %v15524_v59 = vld [vmem:[%s17284_s18 + $0x388] ss:$16 sps:$4 sm:$0xff]  }
 0xb67   : > { %v15588_v37 = vpop.eup %15587  ;;  %v9827_v40 = vadd.f32 1.0, %v15586_v45  ;;  %15603 = vtanh.f32 %v9719_v24  ;;  %v9896_v35 = vmul.f32 %v9832_v27, %v20563_v6  ;;  %v9663_v1 = vadd.f32 %v20480_v34, %v20550_v16  ;;  %v15529_v61 = vld [vmem:[%s17284_s18 + $0x3a4] ss:$16 sps:$4 sm:$0xff]   ;;  %v15532_v42 = vld [vmem:[%s17284_s18 + $0x3ac] ss:$16 sps:$4 sm:$0xff]  }
 0xb68   : > { %v15590_v7 = vpop.eup %15589  ;;  %v9831_v56 = vadd.f32 1.0, %v15588_v37  ;;  %15605 = vtanh.f32 %v9724_v32  ;;  %10923 = vmatpush1.bf16.msra.mxu0 %v15515_v15  ;;  %11149 = vmatpush1.bf16.msra.mxu1 %v15518_v41  ;;  %v9723_v8 = vmul.f32 0.7978846, %v9659_v21  ;;  %v9395_v9 = vmul.f32 0.5, %v20298_v3  ;;  %v15530_v3 = vld [vmem:[%s17284_s18 + $0x3a8] ss:$16 sps:$4 sm:$0xff]  }
 0xb69   : > { %v15592_v46 = vpop.eup %15591  ;;  %v9891_v13 = vmul.f32 %v9827_v40, %v20566_v62  ;;  %v9836_v54 = vadd.f32 1.0, %v15590_v7  ;;  %15607 = vtanh.f32 %v9728_v51  ;;  %v10004_v6 = vpack.c.bf16 %v9896_v35, %v9892_v5  ;;  %10924 = vmatprep.subr.bf16.mxu0 %v15523_v17  ;;  %11150 = vmatprep.subr.bf16.mxu1 %v15526_v48  ;;  %v21869_v41 = vld [vmem:[#allocation160_spill] sm:$0xff]  ;;  %v21871_v43 = vld [vmem:[#allocation161_spill] sm:$0xff] }
 0xb6a   : > { %v9895_v28 = vmul.f32 %v9831_v56, %v20579_v33  ;;  %v9840_v10 = vadd.f32 1.0, %v15592_v46  ;;  %v15594_v52 = vpop.eup %15593  ;;  %v20636_v44 = vmul.f32 0.5, %v20373_v53  ;;  %v9727_v16 = vmul.f32 0.7978846, %v9663_v1  ;;  %v21868_v53 = vld [vmem:[#allocation164_spill] sm:$0xff]  ;;  %v21873_v51 = vld [vmem:[#allocation185_spill] sm:$0xff] }
 0xb6b   : > { %v9900_v62 = vmul.f32 %v9836_v54, %v20584_v29  ;;  %v15596_v2 = vpop.eup %15595  ;;  %10859 = vmatprep.mubr.bf16.mxu0 %v10004_v6  ;;  %11085 = vmatprep.mubr.bf16.mxu1 %v10004_v6  ;;  %v9835_v58 = vadd.f32 1.0, %v15594_v52  ;;  %15609 = vtanh.f32 %v9723_v8  ;;  %v15527_v29 = vld [vmem:[%s17284_s18 + $0x3a0] ss:$16 sps:$4 sm:$0xff]   ;;  %v9606_v17 = vadd.f32 %v21869_v41, %v21868_v53  ;;  %v15535_v48 = vld [vmem:[%s17284_s18 + $0x3c4] ss:$16 sps:$4 sm:$0xff]  }
 0xb6c   : > { %v10003_v33 = vpack.c.bf16 %v9895_v28, %v9891_v13  ;;  %v9904_v50 = vmul.f32 %v9840_v10, %v20592_v47  ;;  %v9839_v15 = vadd.f32 1.0, %v15596_v2  ;;  %10925 = vmatpush1.bf16.msra.mxu0 %v15521_v11  ;;  %11151 = vmatpush1.bf16.msra.mxu1 %v15524_v59  ;;  %15611 = vtanh.f32 %v9727_v16  ;;  %v15538_v45 = vld [vmem:[%s17284_s18 + $0x3cc] ss:$16 sps:$4 sm:$0xff]   ;;  %v21872_v27 = vld [vmem:[#allocation180_spill] sm:$0xff] }
 0xb6d   : > { %v9610_v31 = vadd.f32 %v21871_v43, %v21870_v26  ;;  %v15598_v19 = vpop.eup %15597  ;;  %v9899_v24 = vmul.f32 %v9835_v58, %v20601_v22  ;;  %v9797_v32 = vadd.f32 1.0, %v21872_v27  ;;  %v9801_v37 = vadd.f32 1.0, %v21873_v51  ;;  %10926 = vmatprep.subr.bf16.mxu0 %v15529_v61  ;;  %11152 = vmatprep.subr.bf16.mxu1 %v15532_v42  ;;  %v21874_v13 = vld [vmem:[#allocation163_spill] sm:$0xff]  ;;  %v21875_v11 = vld [vmem:[#allocation165_spill] sm:$0xff]  ;;  %v15533_v10 = vld [vmem:[%s17284_s18 + $0x3c0] ss:$16 sps:$4 sm:$0xff]  }
 0xb6e   : > { %10860 = vmatmul.mubr.bf16.gmra.mrb[48].mxu0 %v10003_v33  ;;  %11086 = vmatmul.mubr.bf16.gmra.mrb[48].mxu1 %v10003_v33  ;;  %v10008_v47 = vpack.c.bf16 %v9904_v50, %v9900_v62  ;;  %v15600_v5 = vpop.eup %15599  ;;  %v9903_v40 = vmul.f32 %v9839_v15, %v20604_v57  ;;  %v9844_v7 = vadd.f32 1.0, %v15598_v19  ;;  %v9670_v35 = vmul.f32 0.7978846, %v9606_v17  ;;  %v15536_v61 = vld [vmem:[%s17284_s18 + $0x3c8] ss:$16 sps:$4 sm:$0xff]   ;;  %v21876_v58 = vld [vmem:[#allocation174_spill] sm:$0xff] }
 0xb6f   : > { %v9674_v56 = vmul.f32 0.7978846, %v9610_v31  ;;  %v15602_v21 = vpop.eup %15601  ;;  %v9848_v22 = vadd.f32 1.0, %v15600_v5  ;;  %v9404_v46 = vmul.f32 0.5, %v20434_v63  ;;  %v9861_v54 = vmul.f32 %v9797_v32, %v21874_v13  ;;  %v15539_v33 = vld [vmem:[%s17284_s18 + $0x3e0] ss:$16 sps:$4 sm:$0xff]  }
 0xb70   : > { %10869 = vmatprep.mubr.bf16.mxu0 %v10008_v47  ;;  %11095 = vmatprep.mubr.bf16.mxu1 %v10008_v47  ;;  %v9865_v59 = vmul.f32 %v9801_v37, %v21875_v11  ;;  %v10007_v6 = vpack.c.bf16 %v9903_v40, %v9899_v24  ;;  %v9908_v57 = vmul.f32 %v9844_v7, %v20616_v23  ;;  %v9843_v28 = vadd.f32 1.0, %v15602_v21  ;;  %v15541_v50 = vld [vmem:[%s17284_s18 + $0x3e4] ss:$16 sps:$4 sm:$0xff]   ;;  %v15542_v17 = vld [vmem:[%s17284_s18 + $0x3e8] ss:$16 sps:$4 sm:$0xff]  }
 0xb71   : > { %v15604_v1 = vpop.eup %15603  ;;  %10927 = vmatpush1.bf16.msra.mxu0 %v15527_v29  ;;  %11153 = vmatpush1.bf16.msra.mxu1 %v15530_v3  ;;  %15613 = vtanh.f32 %v9670_v35  ;;  %v9912_v52 = vmul.f32 %v9848_v22, %v20621_v4  ;;  %v9408_v16 = vmul.f32 0.5, %v20498_v49  ;;  %v21877_v15 = vld [vmem:[#allocation166_spill] sm:$0xff]  ;;  %v15544_v26 = vld [vmem:[%s17284_s18 + $0x3ec] ss:$16 sps:$4 sm:$0xff]   ;;  %v21879_v19 = vld [vmem:[#allocation168_spill] sm:$0xff]  ;;  %v9403_v49 = vmul.f32 0.5, %v20414_v25 }
 0xb72   : > { %v15606_v8 = vpop.eup %15605  ;;  %v9847_v63 = vadd.f32 1.0, %v15604_v1  ;;  %10928 = vmatprep.subr.bf16.mxu0 %v15535_v48  ;;  %11154 = vmatprep.subr.bf16.mxu1 %v15538_v45  ;;  %15615 = vtanh.f32 %v9674_v56  ;;  %v20659_v62 = vpack.c.bf16 %v9865_v59, %v9861_v54  ;;  %v9907_v42 = vmul.f32 %v9843_v28, %v9395_v9  ;;  %v21878_v31 = vld [vmem:[#allocation179_spill] sm:$0xff]  ;;  %v21881_v37 = vld [vmem:[#allocation162_spill] sm:$0xff]  ;;  %v21882_v25 = vld [vmem:[#allocation177_spill] sm:$0xff] }
 0xb73   : > { %v15608_v23 = vpop.eup %15607  ;;  %v9852_v2 = vadd.f32 1.0, %v15606_v8  ;;  %v9614_v29 = vadd.f32 %v21877_v15, %v21876_v58  ;;  %v10012_v3 = vpack.c.bf16 %v9912_v52, %v9908_v57  ;;  %v9618_v47 = vadd.f32 %v21879_v19, %v21878_v31  ;;  %v21880_v51 = vld [vmem:[#allocation171_spill] sm:$0xff]  ;;  %v21885_v1 = vld [vmem:[#allocation172_spill] sm:$0xff] }
 0xb74   : > { %v9911_v4 = vmul.f32 %v9847_v63, %v20636_v44  ;;  %v9856_v53 = vadd.f32 1.0, %v15608_v23  ;;  %v9474_v24 = vmul.f32 0.044715, %v20543_v12  ;;  %v9613_v5 = vadd.f32 %v21881_v37, %v21880_v51  ;;  %v21883_v56 = vld [vmem:[#allocation167_spill] sm:$0xff] }
 0xb75   : > { %v9916_v9 = vmul.f32 %v9852_v2, %v9404_v46  ;;  %10929 = vmatpush1.bf16.msra.mxu0 %v15533_v10  ;;  %11155 = vmatpush1.bf16.msra.mxu1 %v15536_v61  ;;  %v9678_v48 = vmul.f32 0.7978846, %v9614_v29  ;;  %v15610_v45 = vpop.eup %15609  ;;  %v9682_v44 = vmul.f32 0.7978846, %v9618_v47  ;;  %v9407_v7 = vmul.f32 0.5, %v20480_v34  ;;  %v21884_v34 = vld [vmem:[#allocation186_spill] sm:$0xff] }
 0xb76   : > { %10870 = vmatmul.mubr.bf16.gmra.mrb[52].mxu0 %v10007_v6  ;;  %11096 = vmatmul.mubr.bf16.gmra.mrb[52].mxu1 %v10007_v6  ;;  %v10011_v27 = vpack.c.bf16 %v9911_v4, %v9907_v42  ;;  %v9920_v32 = vmul.f32 %v9856_v53, %v9408_v16  ;;  %v15612_v40 = vpop.eup %15611  ;;  %v9851_v35 = vadd.f32 1.0, %v15610_v45  ;;  %v9617_v21 = vadd.f32 %v21883_v56, %v21882_v25  ;;  %v21886_v10 = vld [vmem:[#allocation192_spill] sm:$0xff]  ;;  %v21887_v61 = vld [vmem:[#allocation175_spill] sm:$0xff]  ;;  %v21888_v42 = vld [vmem:[#allocation181_spill] sm:$0xff] }
 0xb77   : > { %10879 = vmatprep.mubr.bf16.mxu0 %v10012_v3  ;;  %11105 = vmatprep.mubr.bf16.mxu1 %v10012_v3  ;;  %15617 = vtanh.f32 %v9678_v48  ;;  %v9855_v46 = vadd.f32 1.0, %v15612_v40  ;;  %v9677_v13 = vmul.f32 0.7978846, %v9613_v5  ;;  %v20679_v54 = vmul.f32 %v20543_v12, %v9474_v24  ;;  %v21889_v16 = vld [vmem:[#allocation169_spill] sm:$0xff]  ;;  %v21890_v29 = vld [vmem:[#allocation190_spill] sm:$0xff]  ;;  %v21894_v45 = vld [vmem:[#allocation203_spill] sm:$0xff] }
 0xb78   : > { %v10016_v22 = vpack.c.bf16 %v9920_v32, %v9916_v9  ;;  %10930 = vmatprep.subr.bf16.mxu0 %v15541_v50  ;;  %11156 = vmatprep.subr.bf16.mxu1 %v15544_v26  ;;  %15619 = vtanh.f32 %v9682_v44  ;;  %v9350_v11 = vmul.f32 0.5, %v21869_v41  ;;  %v9681_v59 = vmul.f32 0.7978846, %v9617_v21  ;;  %v21891_v3 = vld [vmem:[#allocation173_spill] sm:$0xff]  ;;  %v21892_v9 = vld [vmem:[#allocation196_spill] sm:$0xff]  ;;  %v21895_v32 = vld [vmem:[#allocation187_spill] sm:$0xff] }
 0xb79   : > { %10931 = vmatpush1.bf16.msra.mxu0 %v15539_v33  ;;  %11157 = vmatpush1.bf16.msra.mxu1 %v15542_v17  ;;  %v9622_v6 = vadd.f32 %v21885_v1, %v21884_v34  ;;  %v9915_v57 = vmul.f32 %v9851_v35, %v9403_v49  ;;  %v9919_v28 = vmul.f32 %v9855_v46, %v9407_v7  ;;  %15621 = vtanh.f32 %v9677_v13  ;;  %v21893_v49 = vld [vmem:[#allocation182_spill] sm:$0xff] }
 0xb7a   : > { %v9626_v8 = vadd.f32 %v21887_v61, %v21886_v10  ;;  %v9354_v63 = vmul.f32 0.5, %v21871_v43  ;;  %15623 = vtanh.f32 %v9681_v59  ;;  %v9621_v41 = vadd.f32 %v21889_v16, %v21888_v42  ;;  %v21897_v5 = vld [vmem:[#allocation178_spill] sm:$0xff] }
 0xb7b   : > { %v15614_v52 = vpop.eup %15613  ;;  %v9686_v23 = vmul.f32 0.7978846, %v9622_v6  ;;  %v10015_v33 = vpack.c.bf16 %v9919_v28, %v9915_v57  ;;  %v9625_v4 = vadd.f32 %v21891_v3, %v21890_v29  ;;  %v9358_v17 = vmul.f32 0.5, %v21877_v15  ;;  %v21898_v21 = vld [vmem:[#allocation198_spill] sm:$0xff]  ;;  %v21900_v57 = vld [vmem:[#allocation208_spill] sm:$0xff]  ;;  %v21901_v28 = vld [vmem:[#allocation195_spill] sm:$0xff] }
 0xb7c   : > { %v15616_v2 = vpop.eup %15615  ;;  %v9798_v50 = vadd.f32 1.0, %v15614_v52  ;;  %v9690_v58 = vmul.f32 0.7978846, %v9626_v8  ;;  %v9685_v26 = vmul.f32 0.7978846, %v9621_v41  ;;  %v9362_v31 = vmul.f32 0.5, %v21879_v19 }
 0xb7d   : > { %v9802_v53 = vadd.f32 1.0, %v15616_v2  ;;  %15625 = vtanh.f32 %v9686_v23  ;;  %v9689_v47 = vmul.f32 0.7978846, %v9625_v4  ;;  %v9630_v48 = vadd.f32 %v21893_v49, %v21892_v9 }
 0xb7e   : > { %10880 = vmatmul.mubr.bf16.gmra.mrb[56].mxu0 %v10011_v27  ;;  %11106 = vmatmul.mubr.bf16.gmra.mrb[56].mxu1 %v10011_v27  ;;  %v9862_v43 = vmul.f32 %v9798_v50, %v9350_v11  ;;  %15627 = vtanh.f32 %v9690_v58  ;;  %v9634_v44 = vadd.f32 %v21895_v32, %v21894_v45  ;;  %v9357_v15 = vmul.f32 0.5, %v21881_v37  ;;  %v21896_v27 = vld [vmem:[#allocation194_spill] sm:$0xff] }
 0xb7f   : > { %10889 = vmatprep.mubr.bf16.mxu0 %v10016_v22  ;;  %11115 = vmatprep.mubr.bf16.mxu1 %v10016_v22  ;;  %v9866_v24 = vmul.f32 %v9802_v53, %v9354_v63  ;;  %15629 = vtanh.f32 %v9685_v26  ;;  %v9361_v51 = vmul.f32 0.5, %v21883_v56  ;;  %v9629_v19 = vadd.f32 %v21897_v5, %v21896_v27  ;;  %v21899_v22 = vld [vmem:[#allocation184_spill] sm:$0xff]  ;;  %v21902_v53 = vld [vmem:[#allocation205_spill] sm:$0xff] }
 0xb80   : > { %15631 = vtanh.f32 %v9689_v47  ;;  %v9694_v35 = vmul.f32 0.7978846, %v9630_v48  ;;  %v9698_v25 = vmul.f32 0.7978846, %v9634_v44  ;;  %v9633_v46 = vadd.f32 %v21899_v22, %v21898_v21  ;;  %v21904_v47 = vld [vmem:[#allocation210_spill] sm:$0xff] }
 0xb81   : > { %v15618_v40 = vpop.eup %15617  ;;  %v9990_v7 = vpack.c.bf16 %v9866_v24, %v9862_v43  ;;  %v9366_v59 = vmul.f32 0.5, %v21885_v1  ;;  %v9370_v34 = vmul.f32 0.5, %v21887_v61  ;;  %v9693_v37 = vmul.f32 0.7978846, %v9629_v19 }
 0xb82   : > { %v15620_v13 = vpop.eup %15619  ;;  %v9806_v11 = vadd.f32 1.0, %v15618_v40  ;;  %15633 = vtanh.f32 %v9694_v35  ;;  %v9697_v56 = vmul.f32 0.7978846, %v9633_v46  ;;  %v9638_v10 = vadd.f32 %v21901_v28, %v21900_v57 }
 0xb83   : > { %v9810_v6 = vadd.f32 1.0, %v15620_v13  ;;  %v15622_v8 = vpop.eup %15621  ;;  %v9365_v63 = vmul.f32 0.5, %v21889_v16  ;;  %15635 = vtanh.f32 %v9698_v25  ;;  %v9642_v23 = vadd.f32 %v20173_v30, %v20305_v39  ;;  %v21903_v39 = vld [vmem:[#allocation189_spill] sm:$0xff] }
 0xb84   : > { %v9870_v52 = vmul.f32 %v9806_v11, %v9358_v17  ;;  %v15624_v42 = vpop.eup %15623  ;;  %v9805_v1 = vadd.f32 1.0, %v15622_v8  ;;  %15637 = vtanh.f32 %v9693_v37  ;;  %v9702_v61 = vmul.f32 0.7978846, %v9638_v10  ;;  %v21908_v11 = vld [vmem:[#allocation214_spill] sm:$0xff]  ;;  %v21909_v8 = vld [vmem:[#allocation217_spill] sm:$0xff] }
 0xb85   : > { %v9874_v41 = vmul.f32 %v9810_v6, %v9362_v31  ;;  %v9809_v2 = vadd.f32 1.0, %v15624_v42  ;;  %v9369_v50 = vmul.f32 0.5, %v21891_v3  ;;  %15639 = vtanh.f32 %v9697_v56 }
 0xb86   : > { %10890 = vmatmul.mubr.bf16.gmra.mrb[60].mxu0 %v10015_v33  ;;  %11116 = vmatmul.mubr.bf16.gmra.mrb[60].mxu1 %v10015_v33  ;;  %v9706_v58 = vmul.f32 0.7978846, %v9642_v23  ;;  %v9869_v4 = vmul.f32 %v9805_v1, %v9357_v15  ;;  %15641 = vtanh.f32 %v9702_v61  ;;  %v9637_v17 = vadd.f32 %v21903_v39, %v21902_v53  ;;  %v21905_v33 = vld [vmem:[#allocation200_spill] sm:$0xff]  ;;  %v21912_v23 = vld [vmem:[#allocation211_spill] sm:$0xff] }
 0xb87   : > { %v15626_v29 = vpop.eup %15625  ;;  %10932 = vmatprep.mubr.bf16.mxu0 %v9990_v7  ;;  %11158 = vmatprep.mubr.bf16.mxu1 %v9990_v7  ;;  %v9994_v16 = vpack.c.bf16 %v9874_v41, %v9870_v52  ;;  %v9873_v43 = vmul.f32 %v9809_v2, %v9361_v51  ;;  %v9641_v24 = vadd.f32 %v21905_v33, %v21904_v47  ;;  %v9374_v48 = vmul.f32 0.5, %v21893_v49  ;;  %v21906_v51 = vld [vmem:[#allocation207_spill] sm:$0xff] }
 0xb88   : > { %v15628_v26 = vpop.eup %15627  ;;  %v9814_v31 = vadd.f32 1.0, %v15626_v29  ;;  %15643 = vtanh.f32 %v9706_v58  ;;  %v9378_v45 = vmul.f32 0.5, %v21895_v32  ;;  %v9701_v44 = vmul.f32 0.7978846, %v9637_v17  ;;  %v21907_v49 = vld [vmem:[#allocation219_spill] sm:$0xff] }
 0xb89   : > { %v15630_v9 = vpop.eup %15629  ;;  %v9818_v3 = vadd.f32 1.0, %v15628_v26  ;;  %v9993_v15 = vpack.c.bf16 %v9873_v43, %v9869_v4  ;;  %v9705_v7 = vmul.f32 0.7978846, %v9641_v24  ;;  %v9646_v21 = vadd.f32 %v21906_v51, %v20324_v14 }
 0xb8a   : > { %v15632_v27 = vpop.eup %15631  ;;  %v9878_v19 = vmul.f32 %v9814_v31, %v9366_v59  ;;  %v9813_v40 = vadd.f32 1.0, %v15630_v9  ;;  %15645 = vtanh.f32 %v9701_v44  ;;  %v9373_v46 = vmul.f32 0.5, %v21897_v5  ;;  %v21910_v5 = vld [vmem:[#allocation202_spill] sm:$0xff] }
 0xb8b   : > { %v9882_v35 = vmul.f32 %v9818_v3, %v9370_v34  ;;  %v9817_v25 = vadd.f32 1.0, %v15632_v27  ;;  %v9377_v13 = vmul.f32 0.5, %v21899_v22  ;;  %15647 = vtanh.f32 %v9705_v7  ;;  %v21911_v22 = vld [vmem:[#allocation218_spill] sm:$0xff] }
 0xb8c   : > { %v9650_v32 = vadd.f32 %v21908_v11, %v21907_v49  ;;  %v15634_v37 = vpop.eup %15633  ;;  %v9877_v56 = vmul.f32 %v9813_v40, %v9365_v63  ;;  %v9710_v57 = vmul.f32 0.7978846, %v9646_v21  ;;  %v9645_v52 = vadd.f32 %v21910_v5, %v21909_v8  ;;  %v21914_v49 = vld [vmem:[#allocation197_spill] sm:$0xff] }
 0xb8d   : > { %v9998_v6 = vpack.c.bf16 %v9882_v35, %v9878_v19  ;;  %v9881_v59 = vmul.f32 %v9817_v25, %v9369_v50  ;;  %v15636_v10 = vpop.eup %15635  ;;  %v9822_v34 = vadd.f32 1.0, %v15634_v37  ;;  %v9649_v42 = vadd.f32 %v21912_v23, %v21911_v22 }
 0xb8e   : > { %10933 = vmatmul.mubr.bf16.vlgmr.msra.gmra.mrb[32].mxu0 %v20659_v62  ;;  %11159 = vmatmul.mubr.bf16.vlgmr.msra.gmra.mrb[32].mxu1 %v20659_v62  ;;  %v9714_v14 = vmul.f32 0.7978846, %v9650_v32  ;;  %v15638_v41 = vpop.eup %15637  ;;  %v9826_v63 = vadd.f32 1.0, %v15636_v10  ;;  %v9382_v61 = vmul.f32 0.5, %v21901_v28  ;;  %15649 = vtanh.f32 %v9710_v57  ;;  %v21915_v32 = vld [vmem:[#allocation213_spill] sm:$0xff]  ;;  %v21916_v57 = vld [vmem:[#allocation176_spill] sm:$0xff] }
 0xb8f   : > { %10942 = vmatprep.mubr.bf16.mxu0 %v9994_v16  ;;  %11168 = vmatprep.mubr.bf16.mxu1 %v9994_v16  ;;  %v20729_v1 = vpack.c.bf16 %v9881_v59, %v9877_v56  ;;  %v15640_v2 = vpop.eup %15639  ;;  %v9821_v50 = vadd.f32 1.0, %v15638_v41  ;;  %v9386_v62 = vmul.f32 0.5, %v20173_v30  ;;  %v9709_v58 = vmul.f32 0.7978846, %v9645_v52  ;;  %v21917_v10 = vld [vmem:[#allocation222_spill] sm:$0xff] }
 0xb90   : > { %15651 = vtanh.f32 %v9714_v14  ;;  %v15642_v29 = vpop.eup %15641  ;;  %v9886_v4 = vmul.f32 %v9822_v34, %v9374_v48  ;;  %v9890_v53 = vmul.f32 %v9826_v63, %v9378_v45  ;;  %v9825_v17 = vadd.f32 1.0, %v15640_v2 }
 0xb91   : > { %v9713_v26 = vmul.f32 0.7978846, %v9649_v42  ;;  %v9885_v31 = vmul.f32 %v9821_v50, %v9373_v46  ;;  %v9830_v16 = vadd.f32 1.0, %v15642_v29  ;;  %15653 = vtanh.f32 %v9709_v58  ;;  %v21918_v50 = vld [vmem:[#allocation193_spill] sm:$0xff] }
 0xb92   : > { %v15644_v43 = vpop.eup %15643  ;;  %v9654_v47 = vadd.f32 %v20349_v38, %v20455_v55  ;;  %v10002_v28 = vpack.c.bf16 %v9890_v53, %v9886_v4  ;;  %v9889_v24 = vmul.f32 %v9825_v17, %v9377_v13  ;;  %v9602_v30 = vmul.f32 %v20543_v12, %v20679_v54  ;;  %v21913_v54 = vld [vmem:[#allocation220_spill] sm:$0xff] }
 0xb93   : > { %v9834_v9 = vadd.f32 1.0, %v15644_v43  ;;  %15655 = vtanh.f32 %v9713_v26  ;;  %v9381_v3 = vmul.f32 0.5, %v21903_v39  ;;  %v9658_v48 = vadd.f32 %v20404_v20, %v20503_v36 }
 0xb94   : > { %v9718_v45 = vmul.f32 0.7978846, %v9654_v47  ;;  %v15646_v44 = vpop.eup %15645  ;;  %v20740_v27 = vpack.c.bf16 %v9889_v24, %v9885_v31  ;;  %v9894_v19 = vmul.f32 %v9830_v16, %v9382_v61  ;;  %v9653_v55 = vadd.f32 %v20315_v18, %v20437_v60 }
 0xb95   : > { %v9898_v40 = vmul.f32 %v9834_v9, %v9386_v62  ;;  %v15648_v7 = vpop.eup %15647  ;;  %v9829_v35 = vadd.f32 1.0, %v15646_v44  ;;  %v9722_v25 = vmul.f32 0.7978846, %v9658_v48  ;;  %v9657_v39 = vadd.f32 %v21913_v54, %v20461_v0  ;;  %v21919_v62 = vld [vmem:[#allocation221_spill] sm:$0xff] }
 0xb96   : > { %10943 = vmatmul.mubr.bf16.gmra.mrb[36].mxu0 %v9993_v15  ;;  %11169 = vmatmul.mubr.bf16.gmra.mrb[36].mxu1 %v9993_v15  ;;  %15657 = vtanh.f32 %v9718_v45  ;;  %v9385_v21 = vmul.f32 0.5, %v21905_v33  ;;  %v9833_v46 = vadd.f32 1.0, %v15648_v7  ;;  %v9717_v13 = vmul.f32 0.7978846, %v9653_v55 }
 0xb97   : > { %10952 = vmatprep.mubr.bf16.mxu0 %v9998_v6  ;;  %11178 = vmatprep.mubr.bf16.mxu1 %v9998_v6  ;;  %v20746_v36 = vpack.c.bf16 %v9898_v40, %v9894_v19  ;;  %v9601_v60 = vmul.f32 %v21915_v32, %v21914_v49  ;;  %v9893_v37 = vmul.f32 %v9829_v35, %v9381_v3  ;;  %15659 = vtanh.f32 %v9722_v25 }
 0xb98   : > { %v9721_v15 = vmul.f32 0.7978846, %v9657_v39  ;;  %v15650_v56 = vpop.eup %15649  ;;  %v9897_v59 = vmul.f32 %v9833_v46, %v9385_v21  ;;  %15661 = vtanh.f32 %v9717_v13  ;;  %v9662_v0 = vadd.f32 %v21917_v10, %v21916_v57 }
 0xb99   : > { %v9666_v6 = vadd.f32 %v20543_v12, %v9602_v30  ;;  %v9390_v14 = vmul.f32 0.5, %v21906_v51  ;;  %v9394_v33 = vmul.f32 0.5, %v21908_v11  ;;  %v9838_v8 = vadd.f32 1.0, %v15650_v56 }
 0xb9a   : > { %v15652_v34 = vpop.eup %15651  ;;  %15663 = vtanh.f32 %v9721_v15  ;;  %v20756_v52 = vpack.c.bf16 %v9897_v59, %v9893_v37  ;;  %v9726_v42 = vmul.f32 0.7978846, %v9662_v0  ;;  %v9389_v61 = vmul.f32 0.5, %v21910_v5 }
 0xb9b   : > { %v9842_v22 = vadd.f32 1.0, %v15652_v34  ;;  %v9730_v41 = vmul.f32 0.7978846, %v9666_v6  ;;  %v15654_v63 = vpop.eup %15653  ;;  %v9393_v2 = vmul.f32 0.5, %v21912_v23  ;;  %v9661_v58 = vadd.f32 %v21919_v62, %v21918_v50  ;;  %v9925_v6 = vld [vmem:[#allocation3 + $0x10] sm:$0xff]  ;;  %v9924_v34 = vld [vmem:[#allocation3 + $0x8] sm:$0xff] }
 0xb9c   : > { %v9665_v29 = vadd.f32 %v21915_v32, %v9601_v60  ;;  %v9902_v4 = vmul.f32 %v9838_v8, %v9390_v14  ;;  %v9837_v53 = vadd.f32 1.0, %v15654_v63  ;;  %15665 = vtanh.f32 %v9726_v42  ;;  %v9926_v14 = vld [vmem:[#allocation3 + $0x18] sm:$0xff] }
 0xb9d   : > { %v15656_v51 = vpop.eup %15655  ;;  %v9906_v11 = vmul.f32 %v9842_v22, %v9394_v33  ;;  %15667 = vtanh.f32 %v9730_v41  ;;  %v9725_v26 = vmul.f32 0.7978846, %v9661_v58  ;;  %v9398_v3 = vmul.f32 0.5, %v20349_v38  ;;  %v9929_v22 = vld [vmem:[#allocation3 + $0x30] sm:$0xff]  ;;  %v9930_v50 = vld [vmem:[#allocation3 + $0x38] sm:$0xff] }
 0xb9e   : > { %10953 = vmatmul.mubr.bf16.gmra.mrb[40].mxu0 %v20729_v1  ;;  %11179 = vmatmul.mubr.bf16.gmra.mrb[40].mxu1 %v20729_v1  ;;  %v9841_v17 = vadd.f32 1.0, %v15656_v51  ;;  %v9729_v5 = vmul.f32 0.7978846, %v9665_v29  ;;  %v9901_v31 = vmul.f32 %v9837_v53, %v9389_v61  ;;  %v9402_v1 = vmul.f32 0.5, %v20404_v20 }
 0xb9f   : > { %10962 = vmatprep.mubr.bf16.mxu0 %v10002_v28  ;;  %11188 = vmatprep.mubr.bf16.mxu1 %v10002_v28  ;;  %v10010_v23 = vpack.c.bf16 %v9906_v11, %v9902_v4  ;;  %15669 = vtanh.f32 %v9725_v26  ;;  %v9397_v44 = vmul.f32 0.5, %v20315_v18  ;;  %v9401_v55 = vmul.f32 0.5, %v21913_v54 }
 0xba0   : > { %v15658_v43 = vpop.eup %15657  ;;  %v9905_v16 = vmul.f32 %v9841_v17, %v9393_v2  ;;  %15671 = vtanh.f32 %v9729_v5  ;;  %v9406_v46 = vmul.f32 0.5, %v21917_v10  ;;  %v9410_v54 = vmul.f32 0.5, %v20543_v12  ;;  %v9928_v2 = vld [vmem:[#allocation3 + $0x28] sm:$0xff] }
 0xba1   : > { %v9846_v47 = vadd.f32 1.0, %v15658_v43  ;;  %v15660_v24 = vpop.eup %15659  ;;  %v9405_v56 = vmul.f32 0.5, %v21919_v62  ;;  %v9933_v43 = vld [vmem:[#allocation3 + $0x50] sm:$0xff] }
 0xba2   : > { %v10009_v9 = vpack.c.bf16 %v9905_v16, %v9901_v31  ;;  %v15662_v30 = vpop.eup %15661  ;;  %v9850_v48 = vadd.f32 1.0, %v15660_v24  ;;  %v9932_v31 = vld [vmem:[#allocation3 + $0x48] sm:$0xff]  ;;  %v9934_v16 = vld [vmem:[#allocation3 + $0x58] sm:$0xff] }
 0xba3   : > { %v9845_v19 = vadd.f32 1.0, %v15662_v30  ;;  %v9910_v28 = vmul.f32 %v9846_v47, %v9398_v3  ;;  %v9937_v30 = vld [vmem:[#allocation3 + $0x70] sm:$0xff] }
 0xba4   : > { %v15664_v45 = vpop.eup %15663  ;;  %v9914_v40 = vmul.f32 %v9850_v48, %v9402_v1 }
 0xba5   : > { %v9849_v7 = vadd.f32 1.0, %v15664_v45  ;;  %v9909_v20 = vmul.f32 %v9845_v19, %v9397_v44  ;;  %v9936_v44 = vld [vmem:[#allocation3 + $0x68] sm:$0xff]  ;;  %v9938_v19 = vld [vmem:[#allocation3 + $0x78] sm:$0xff] }
 0xba6   : > { %10963 = vmatmul.mubr.bf16.gmra.mrb[44].mxu0 %v20740_v27  ;;  %11189 = vmatmul.mubr.bf16.gmra.mrb[44].mxu1 %v20740_v27  ;;  %v15666_v35 = vpop.eup %15665  ;;  %v10014_v38 = vpack.c.bf16 %v9914_v40, %v9910_v28 }
 0xba7   : > { %10972 = vmatprep.mubr.bf16.mxu0 %v20746_v36  ;;  %11198 = vmatprep.mubr.bf16.mxu1 %v20746_v36  ;;  %v9913_v25 = vmul.f32 %v9849_v7, %v9401_v55  ;;  %v15668_v39 = vpop.eup %15667  ;;  %v9854_v18 = vadd.f32 1.0, %v15666_v35  ;;  %v9409_v36 = vmul.f32 0.5, %v21915_v32  ;;  %v9923_v32 = vld [vmem:[#allocation3] sm:$0xff] }
 0xba8   : > { %v9858_v13 = vadd.f32 1.0, %v15668_v39 }
 0xba9   : > { %v10013_v21 = vpack.c.bf16 %v9913_v25, %v9909_v20  ;;  %v15670_v49 = vpop.eup %15669  ;;  %v9918_v37 = vmul.f32 %v9854_v18, %v9406_v46  ;;  %v9941_v46 = vld [vmem:[#allocation3 + $0x90] sm:$0xff] }
 0xbaa   : > { %v15672_v60 = vpop.eup %15671  ;;  %v9922_v27 = vmul.f32 %v9858_v13, %v9410_v54  ;;  %v9853_v15 = vadd.f32 1.0, %v15670_v49  ;;  %v9940_v54 = vld [vmem:[#allocation3 + $0x88] sm:$0xff]  ;;  %v9942_v13 = vld [vmem:[#allocation3 + $0x98] sm:$0xff] }
 0xbab   : > { %v9857_v59 = vadd.f32 1.0, %v15672_v60 }
 0xbac   : > { %v10018_v57 = vpack.c.bf16 %v9922_v27, %v9918_v37  ;;  %v9917_v0 = vmul.f32 %v9853_v15, %v9405_v56  ;;  %v9943_v37 = vld [vmem:[#allocation3 + $0xa0] sm:$0xff]  ;;  %v9945_v27 = vld [vmem:[#allocation3 + $0xb0] sm:$0xff] }
 0xbad   : > { %v9921_v10 = vmul.f32 %v9857_v59, %v9409_v36 }
 0xbae   : > { %10973 = vmatmul.mubr.bf16.gmra.mrb[48].mxu0 %v20756_v52  ;;  %11199 = vmatmul.mubr.bf16.gmra.mrb[48].mxu1 %v20756_v52  ;;  %v9927_v52 = vld [vmem:[#allocation3 + $0x20] sm:$0xff] }
 0xbaf   : > { %10982 = vmatprep.mubr.bf16.mxu0 %v10010_v23  ;;  %11208 = vmatprep.mubr.bf16.mxu1 %v10010_v23  ;;  %v10017_v12 = vpack.c.bf16 %v9921_v10, %v9917_v0  ;;  %v9931_v23 = vld [vmem:[#allocation3 + $0x40] sm:$0xff]  ;;  %v9946_v0 = vld [vmem:[#allocation3 + $0xb8] sm:$0xff] }
 0xbb6   : > { %10983 = vmatmul.mubr.bf16.gmra.mrb[52].mxu0 %v10009_v9  ;;  %11209 = vmatmul.mubr.bf16.gmra.mrb[52].mxu1 %v10009_v9  ;;  %v9935_v9 = vld [vmem:[#allocation3 + $0x60] sm:$0xff] }
 0xbb7   : > { %10992 = vmatprep.mubr.bf16.mxu0 %v10014_v38  ;;  %11218 = vmatprep.mubr.bf16.mxu1 %v10014_v38 }
 0xbbe   : > { %10993 = vmatmul.mubr.bf16.gmra.mrb[56].mxu0 %v10013_v21  ;;  %11219 = vmatmul.mubr.bf16.gmra.mrb[56].mxu1 %v10013_v21  ;;  %v9939_v21 = vld [vmem:[#allocation3 + $0x80] sm:$0xff] }
 0xbbf   : > { %11002 = vmatprep.mubr.bf16.mxu0 %v10018_v57  ;;  %11228 = vmatprep.mubr.bf16.mxu1 %v10018_v57  ;;  %v9944_v57 = vld [vmem:[#allocation3 + $0xa8] sm:$0xff] }
 0xbc6   : > { %11003 = vmatmul.mubr.bf16.gmra.mrb[60].mxu0 %v10017_v12  ;;  %11229 = vmatmul.mubr.bf16.gmra.mrb[60].mxu1 %v10017_v12 }
 0xc61   : > { %v10934_v33 = vpop.f32.mrb[32].mxu0  ;;  %v11160_v8 = vpop.f32.mrb[32].mxu1 }
 0xc62   : > { %v11239_v42 = vadd.f32 %v10934_v33, %v9923_v32  ;;  %v11241_v41 = vadd.f32 %v11160_v8, %v9925_v6  ;;  %v10936_v63 = vpop.f32.mrb[33].mxu0  ;;  %v11162_v61 = vpop.f32.mrb[33].mxu1 }
 0xc63   : > { %v11240_v62 = vadd.f32 %v10936_v63, %v9924_v34  ;;  %v11242_v58 = vadd.f32 %v11162_v61, %v9926_v14  ;;  %v10938_v29 = vpop.f32.mrb[34].mxu0  ;;  %v11164_v51 = vpop.f32.mrb[34].mxu1  ;;  %v9948_v63 = vld [vmem:[#allocation3 + $0xc8] sm:$0xff]  ;;  %v9950_v61 = vld [vmem:[#allocation3 + $0xd8] sm:$0xff] }
 0xc64   : > { %11303 = vst [vmem:[#allocation3] sm:$0xff] %v11239_v42  ;;  %11305 = vst [vmem:[#allocation3 + $0x10] sm:$0xff] %v11241_v41  ;;  %v11243_v4 = vadd.f32 %v10938_v29, %v9927_v52  ;;  %v11245_v11 = vadd.f32 %v11164_v51, %v9929_v22  ;;  %v10940_v53 = vpop.f32.mrb[35].mxu0  ;;  %v11166_v17 = vpop.f32.mrb[35].mxu1  ;;  %v9947_v42 = vld [vmem:[#allocation3 + $0xc0] sm:$0xff]  ;;  %v9949_v41 = vld [vmem:[#allocation3 + $0xd0] sm:$0xff] }
 0xc65   : > { %11304 = vst [vmem:[#allocation3 + $0x8] sm:$0xff] %v11240_v62  ;;  %11306 = vst [vmem:[#allocation3 + $0x18] sm:$0xff] %v11242_v58  ;;  %v11244_v26 = vadd.f32 %v10940_v53, %v9928_v2  ;;  %v11246_v5 = vadd.f32 %v11166_v17, %v9930_v50  ;;  %v9951_v62 = vld [vmem:[#allocation3 + $0xe0] sm:$0xff]  ;;  %v9953_v58 = vld [vmem:[#allocation3 + $0xf0] sm:$0xff] }
 0xc66   : > { %11307 = vst [vmem:[#allocation3 + $0x20] sm:$0xff] %v11243_v4  ;;  %11309 = vst [vmem:[#allocation3 + $0x30] sm:$0xff] %v11245_v11  ;;  %v9952_v53 = vld [vmem:[#allocation3 + $0xe8] sm:$0xff]  ;;  %v9954_v17 = vld [vmem:[#allocation3 + $0xf8] sm:$0xff] }
 0xc67   : > { %11308 = vst [vmem:[#allocation3 + $0x28] sm:$0xff] %v11244_v26  ;;  %11310 = vst [vmem:[#allocation3 + $0x38] sm:$0xff] %v11246_v5 }
 0xc69   : > { %v10944_v47 = vpop.f32.mrb[36].mxu0  ;;  %v11170_v24 = vpop.f32.mrb[36].mxu1 }
 0xc6a   : > { %v11247_v3 = vadd.f32 %v10944_v47, %v9931_v23  ;;  %v11249_v1 = vadd.f32 %v11170_v24, %v9933_v43  ;;  %v10946_v48 = vpop.f32.mrb[37].mxu0  ;;  %v11172_v45 = vpop.f32.mrb[37].mxu1 }
 0xc6b   : > { %v11248_v28 = vadd.f32 %v10946_v48, %v9932_v31  ;;  %v11250_v40 = vadd.f32 %v11172_v45, %v9934_v16  ;;  %v10948_v55 = vpop.f32.mrb[38].mxu0  ;;  %v11174_v7 = vpop.f32.mrb[38].mxu1  ;;  %v9956_v48 = vld [vmem:[#allocation3 + $0x108] sm:$0xff]  ;;  %v9958_v45 = vld [vmem:[#allocation3 + $0x118] sm:$0xff] }
 0xc6c   : > { %11311 = vst [vmem:[#allocation3 + $0x40] sm:$0xff] %v11247_v3  ;;  %11313 = vst [vmem:[#allocation3 + $0x50] sm:$0xff] %v11249_v1  ;;  %v11251_v35 = vadd.f32 %v10948_v55, %v9935_v9  ;;  %v11253_v38 = vadd.f32 %v11174_v7, %v9937_v30  ;;  %v10950_v20 = vpop.f32.mrb[39].mxu0  ;;  %v11176_v25 = vpop.f32.mrb[39].mxu1  ;;  %v9955_v3 = vld [vmem:[#allocation3 + $0x100] sm:$0xff]  ;;  %v9957_v1 = vld [vmem:[#allocation3 + $0x110] sm:$0xff] }
 0xc6d   : > { %11312 = vst [vmem:[#allocation3 + $0x48] sm:$0xff] %v11248_v28  ;;  %11314 = vst [vmem:[#allocation3 + $0x58] sm:$0xff] %v11250_v40  ;;  %v11252_v39 = vadd.f32 %v10950_v20, %v9936_v44  ;;  %v11254_v18 = vadd.f32 %v11176_v25, %v9938_v19  ;;  %v9959_v28 = vld [vmem:[#allocation3 + $0x120] sm:$0xff]  ;;  %v9961_v40 = vld [vmem:[#allocation3 + $0x130] sm:$0xff] }
 0xc6e   : > { %11315 = vst [vmem:[#allocation3 + $0x60] sm:$0xff] %v11251_v35  ;;  %11317 = vst [vmem:[#allocation3 + $0x70] sm:$0xff] %v11253_v38  ;;  %v9960_v20 = vld [vmem:[#allocation3 + $0x128] sm:$0xff]  ;;  %v9962_v25 = vld [vmem:[#allocation3 + $0x138] sm:$0xff] }
 0xc6f   : > { %11316 = vst [vmem:[#allocation3 + $0x68] sm:$0xff] %v11252_v39  ;;  %11318 = vst [vmem:[#allocation3 + $0x78] sm:$0xff] %v11254_v18 }
 0xc71   : > { %v10954_v49 = vpop.f32.mrb[40].mxu0  ;;  %v11180_v60 = vpop.f32.mrb[40].mxu1 }
 0xc72   : > { %v11255_v15 = vadd.f32 %v10954_v49, %v9939_v21  ;;  %v11257_v56 = vadd.f32 %v11180_v60, %v9941_v46  ;;  %v10956_v36 = vpop.f32.mrb[41].mxu0  ;;  %v11182_v59 = vpop.f32.mrb[41].mxu1 }
 0xc73   : > { %v11256_v10 = vadd.f32 %v10956_v36, %v9940_v54  ;;  %v11258_v12 = vadd.f32 %v11182_v59, %v9942_v13  ;;  %v10958_v32 = vpop.f32.mrb[42].mxu0  ;;  %v11184_v6 = vpop.f32.mrb[42].mxu1  ;;  %v9964_v36 = vld [vmem:[#allocation3 + $0x148] sm:$0xff]  ;;  %v9966_v59 = vld [vmem:[#allocation3 + $0x158] sm:$0xff] }
 0xc74   : > { %11319 = vst [vmem:[#allocation3 + $0x80] sm:$0xff] %v11255_v15  ;;  %11321 = vst [vmem:[#allocation3 + $0x90] sm:$0xff] %v11257_v56  ;;  %v11259_v34 = vadd.f32 %v10958_v32, %v9943_v37  ;;  %v11261_v14 = vadd.f32 %v11184_v6, %v9945_v27  ;;  %v10960_v33 = vpop.f32.mrb[43].mxu0  ;;  %v11186_v8 = vpop.f32.mrb[43].mxu1  ;;  %v9963_v15 = vld [vmem:[#allocation3 + $0x140] sm:$0xff]  ;;  %v9965_v56 = vld [vmem:[#allocation3 + $0x150] sm:$0xff] }
 0xc75   : > { %11320 = vst [vmem:[#allocation3 + $0x88] sm:$0xff] %v11256_v10  ;;  %11322 = vst [vmem:[#allocation3 + $0x98] sm:$0xff] %v11258_v12  ;;  %v11260_v52 = vadd.f32 %v10960_v33, %v9944_v57  ;;  %v11262_v22 = vadd.f32 %v11186_v8, %v9946_v0  ;;  %v9967_v10 = vld [vmem:[#allocation3 + $0x160] sm:$0xff]  ;;  %v9969_v12 = vld [vmem:[#allocation3 + $0x170] sm:$0xff] }
 0xc76   : > { %11323 = vst [vmem:[#allocation3 + $0xa0] sm:$0xff] %v11259_v34  ;;  %11325 = vst [vmem:[#allocation3 + $0xb0] sm:$0xff] %v11261_v14  ;;  %v9968_v33 = vld [vmem:[#allocation3 + $0x168] sm:$0xff]  ;;  %v9970_v8 = vld [vmem:[#allocation3 + $0x178] sm:$0xff] }
 0xc77   : > { %11324 = vst [vmem:[#allocation3 + $0xa8] sm:$0xff] %v11260_v52  ;;  %11326 = vst [vmem:[#allocation3 + $0xb8] sm:$0xff] %v11262_v22 }
 0xc79   : > { %v10964_v2 = vpop.f32.mrb[44].mxu0  ;;  %v11190_v50 = vpop.f32.mrb[44].mxu1 }
 0xc7a   : > { %v11263_v29 = vadd.f32 %v10964_v2, %v9947_v42  ;;  %v11265_v51 = vadd.f32 %v11190_v50, %v9949_v41  ;;  %v10966_v4 = vpop.f32.mrb[45].mxu0  ;;  %v11192_v11 = vpop.f32.mrb[45].mxu1 }
 0xc7b   : > { %v11264_v26 = vadd.f32 %v10966_v4, %v9948_v63  ;;  %v11266_v5 = vadd.f32 %v11192_v11, %v9950_v61  ;;  %v10968_v23 = vpop.f32.mrb[46].mxu0  ;;  %v11194_v43 = vpop.f32.mrb[46].mxu1  ;;  %v9972_v4 = vld [vmem:[#allocation3 + $0x188] sm:$0xff]  ;;  %v9974_v11 = vld [vmem:[#allocation3 + $0x198] sm:$0xff] }
 0xc7c   : > { %11327 = vst [vmem:[#allocation3 + $0xc0] sm:$0xff] %v11263_v29  ;;  %11329 = vst [vmem:[#allocation3 + $0xd0] sm:$0xff] %v11265_v51  ;;  %v11267_v31 = vadd.f32 %v10968_v23, %v9951_v62  ;;  %v11269_v16 = vadd.f32 %v11194_v43, %v9953_v58  ;;  %v10970_v47 = vpop.f32.mrb[47].mxu0  ;;  %v11196_v24 = vpop.f32.mrb[47].mxu1  ;;  %v9971_v29 = vld [vmem:[#allocation3 + $0x180] sm:$0xff]  ;;  %v9973_v51 = vld [vmem:[#allocation3 + $0x190] sm:$0xff] }
 0xc7d   : > { %11328 = vst [vmem:[#allocation3 + $0xc8] sm:$0xff] %v11264_v26  ;;  %11330 = vst [vmem:[#allocation3 + $0xd8] sm:$0xff] %v11266_v5  ;;  %v11268_v9 = vadd.f32 %v10970_v47, %v9952_v53  ;;  %v11270_v30 = vadd.f32 %v11196_v24, %v9954_v17  ;;  %v9975_v26 = vld [vmem:[#allocation3 + $0x1a0] sm:$0xff]  ;;  %v9977_v5 = vld [vmem:[#allocation3 + $0x1b0] sm:$0xff] }
 0xc7e   : > { %11331 = vst [vmem:[#allocation3 + $0xe0] sm:$0xff] %v11267_v31  ;;  %11333 = vst [vmem:[#allocation3 + $0xf0] sm:$0xff] %v11269_v16  ;;  %v9976_v47 = vld [vmem:[#allocation3 + $0x1a8] sm:$0xff]  ;;  %v9978_v24 = vld [vmem:[#allocation3 + $0x1b8] sm:$0xff] }
 0xc7f   : > { %11332 = vst [vmem:[#allocation3 + $0xe8] sm:$0xff] %v11268_v9  ;;  %11334 = vst [vmem:[#allocation3 + $0xf8] sm:$0xff] %v11270_v30 }
 0xc81   : > { %v10974_v44 = vpop.f32.mrb[48].mxu0  ;;  %v11200_v19 = vpop.f32.mrb[48].mxu1 }
 0xc82   : > { %v11271_v55 = vadd.f32 %v10974_v44, %v9955_v3  ;;  %v11273_v7 = vadd.f32 %v11200_v19, %v9957_v1  ;;  %v10976_v35 = vpop.f32.mrb[49].mxu0  ;;  %v11202_v38 = vpop.f32.mrb[49].mxu1 }
 0xc83   : > { %v11272_v39 = vadd.f32 %v10976_v35, %v9956_v48  ;;  %v11274_v18 = vadd.f32 %v11202_v38, %v9958_v45  ;;  %v10978_v21 = vpop.f32.mrb[50].mxu0  ;;  %v11204_v46 = vpop.f32.mrb[50].mxu1  ;;  %v9980_v35 = vld [vmem:[#allocation3 + $0x1c8] sm:$0xff]  ;;  %v9982_v38 = vld [vmem:[#allocation3 + $0x1d8] sm:$0xff] }
 0xc84   : > { %11335 = vst [vmem:[#allocation3 + $0x100] sm:$0xff] %v11271_v55  ;;  %11337 = vst [vmem:[#allocation3 + $0x110] sm:$0xff] %v11273_v7  ;;  %v11275_v54 = vadd.f32 %v10978_v21, %v9959_v28  ;;  %v11277_v13 = vadd.f32 %v11204_v46, %v9961_v40  ;;  %v10980_v49 = vpop.f32.mrb[51].mxu0  ;;  %v11206_v60 = vpop.f32.mrb[51].mxu1  ;;  %v9979_v55 = vld [vmem:[#allocation3 + $0x1c0] sm:$0xff]  ;;  %v9981_v7 = vld [vmem:[#allocation3 + $0x1d0] sm:$0xff] }
 0xc85   : > { %11336 = vst [vmem:[#allocation3 + $0x108] sm:$0xff] %v11272_v39  ;;  %11338 = vst [vmem:[#allocation3 + $0x118] sm:$0xff] %v11274_v18  ;;  %v11276_v37 = vadd.f32 %v10980_v49, %v9960_v20  ;;  %v11278_v27 = vadd.f32 %v11206_v60, %v9962_v25  ;;  %v9983_v39 = vld [vmem:[#allocation3 + $0x1e0] sm:$0xff]  ;;  %v9985_v18 = vld [vmem:[#allocation3 + $0x1f0] sm:$0xff] }
 0xc86   : > { %11339 = vst [vmem:[#allocation3 + $0x120] sm:$0xff] %v11275_v54  ;;  %11341 = vst [vmem:[#allocation3 + $0x130] sm:$0xff] %v11277_v13  ;;  %v9984_v49 = vld [vmem:[#allocation3 + $0x1e8] sm:$0xff]  ;;  %v9986_v60 = vld [vmem:[#allocation3 + $0x1f8] sm:$0xff] }
 0xc87   : > { %11340 = vst [vmem:[#allocation3 + $0x128] sm:$0xff] %v11276_v37  ;;  %11342 = vst [vmem:[#allocation3 + $0x138] sm:$0xff] %v11278_v27 }
 0xc89   : > { %v10984_v57 = vpop.f32.mrb[52].mxu0  ;;  %v11210_v0 = vpop.f32.mrb[52].mxu1 }
 0xc8a   : > { %v11279_v32 = vadd.f32 %v10984_v57, %v9963_v15  ;;  %v11281_v6 = vadd.f32 %v11210_v0, %v9965_v56  ;;  %v10986_v34 = vpop.f32.mrb[53].mxu0  ;;  %v11212_v14 = vpop.f32.mrb[53].mxu1 }
 0xc8b   : > { %v11280_v52 = vadd.f32 %v10986_v34, %v9964_v36  ;;  %v11282_v22 = vadd.f32 %v11212_v14, %v9966_v59  ;;  %v10988_v42 = vpop.f32.mrb[54].mxu0  ;;  %v11214_v41 = vpop.f32.mrb[54].mxu1  ;;  %v11373_v34 = vld [vmem:[#allocation3 + $0x10] sm:$0xff] (!%p12783_p13)  ;;  %v11374_v14 = vld [vmem:[#allocation3 + $0x18] sm:$0xff] (!%p12783_p13) }
 0xc8c   : > { %11343 = vst [vmem:[#allocation3 + $0x140] sm:$0xff] %v11279_v32  ;;  %11345 = vst [vmem:[#allocation3 + $0x150] sm:$0xff] %v11281_v6  ;;  %v11283_v63 = vadd.f32 %v10988_v42, %v9967_v10  ;;  %v11285_v61 = vadd.f32 %v11214_v41, %v9969_v12  ;;  %v10990_v2 = vpop.f32.mrb[55].mxu0  ;;  %v11216_v50 = vpop.f32.mrb[55].mxu1  ;;  %v11371_v32 = vld [vmem:[#allocation3] sm:$0xff] (!%p12783_p13)  ;;  %v11372_v6 = vld [vmem:[#allocation3 + $0x8] sm:$0xff] (!%p12783_p13) }
 0xc8d   : > { %11344 = vst [vmem:[#allocation3 + $0x148] sm:$0xff] %v11280_v52  ;;  %11346 = vst [vmem:[#allocation3 + $0x158] sm:$0xff] %v11282_v22  ;;  %v11284_v62 = vadd.f32 %v10990_v2, %v9968_v33  ;;  %v11286_v58 = vadd.f32 %v11216_v50, %v9970_v8  ;;  %v11375_v33 = vld [vmem:[#allocation3 + $0x20] sm:$0xff] (!%p12783_p13)  ;;  %v11376_v8 = vld [vmem:[#allocation3 + $0x28] sm:$0xff] (!%p12783_p13) }
 0xc8e   : > { %11347 = vst [vmem:[#allocation3 + $0x160] sm:$0xff] %v11283_v63  ;;  %11349 = vst [vmem:[#allocation3 + $0x170] sm:$0xff] %v11285_v61  ;;  %v11377_v52 = vld [vmem:[#allocation3 + $0x30] sm:$0xff] (!%p12783_p13)  ;;  %v11378_v22 = vld [vmem:[#allocation3 + $0x38] sm:$0xff] (!%p12783_p13) }
 0xc8f   : > { %11348 = vst [vmem:[#allocation3 + $0x168] sm:$0xff] %v11284_v62  ;;  %11350 = vst [vmem:[#allocation3 + $0x178] sm:$0xff] %v11286_v58  ;;  %v11379_v42 = vld [vmem:[#allocation3 + $0x40] sm:$0xff] (!%p12783_p13)  ;;  %v11380_v41 = vld [vmem:[#allocation3 + $0x48] sm:$0xff] (!%p12783_p13) }
 0xc90   : > { %11435 = vst [vmem:[%s17299_s12] sm:$0xff] (!%p12783_p13), %v11371_v32  ;;  %11436 = vst [vmem:[%s17299_s12 + $0x8] sm:$0xff] (!%p12783_p13), %v11372_v6  ;;  %v11381_v63 = vld [vmem:[#allocation3 + $0x50] sm:$0xff] (!%p12783_p13)  ;;  %v11382_v61 = vld [vmem:[#allocation3 + $0x58] sm:$0xff] (!%p12783_p13) }
 0xc91   : > { %v10994_v53 = vpop.f32.mrb[56].mxu0  ;;  %v11220_v17 = vpop.f32.mrb[56].mxu1  ;;  %11437 = vst [vmem:[%s17299_s12 + $0x10] sm:$0xff] (!%p12783_p13), %v11373_v34  ;;  %11438 = vst [vmem:[%s17299_s12 + $0x18] sm:$0xff] (!%p12783_p13), %v11374_v14  ;;  %v11383_v2 = vld [vmem:[#allocation3 + $0x60] sm:$0xff] (!%p12783_p13)  ;;  %v11384_v50 = vld [vmem:[#allocation3 + $0x68] sm:$0xff] (!%p12783_p13) }
 0xc92   : > { %v11287_v23 = vadd.f32 %v10994_v53, %v9971_v29  ;;  %v11289_v43 = vadd.f32 %v11220_v17, %v9973_v51  ;;  %v10996_v31 = vpop.f32.mrb[57].mxu0  ;;  %v11222_v16 = vpop.f32.mrb[57].mxu1  ;;  %11439 = vst [vmem:[%s17299_s12 + $0x20] sm:$0xff] (!%p12783_p13), %v11375_v33  ;;  %11440 = vst [vmem:[%s17299_s12 + $0x28] sm:$0xff] (!%p12783_p13), %v11376_v8  ;;  %v11385_v62 = vld [vmem:[#allocation3 + $0x70] sm:$0xff] (!%p12783_p13)  ;;  %v11386_v58 = vld [vmem:[#allocation3 + $0x78] sm:$0xff] (!%p12783_p13) }
 0xc93   : > { %v11288_v9 = vadd.f32 %v10996_v31, %v9972_v4  ;;  %v11290_v30 = vadd.f32 %v11222_v16, %v9974_v11  ;;  %v10998_v3 = vpop.f32.mrb[58].mxu0  ;;  %v11224_v1 = vpop.f32.mrb[58].mxu1  ;;  %11441 = vst [vmem:[%s17299_s12 + $0x30] sm:$0xff] (!%p12783_p13), %v11377_v52  ;;  %11442 = vst [vmem:[%s17299_s12 + $0x38] sm:$0xff] (!%p12783_p13), %v11378_v22  ;;  %v11387_v29 = vld [vmem:[#allocation3 + $0x80] sm:$0xff] (!%p12783_p13)  ;;  %v11388_v51 = vld [vmem:[#allocation3 + $0x88] sm:$0xff] (!%p12783_p13) }
 0xc94   : > { %11351 = vst [vmem:[#allocation3 + $0x180] sm:$0xff] %v11287_v23  ;;  %11353 = vst [vmem:[#allocation3 + $0x190] sm:$0xff] %v11289_v43  ;;  %v11291_v48 = vadd.f32 %v10998_v3, %v9975_v26  ;;  %v11293_v45 = vadd.f32 %v11224_v1, %v9977_v5  ;;  %v11000_v44 = vpop.f32.mrb[59].mxu0  ;;  %v11226_v19 = vpop.f32.mrb[59].mxu1  ;;  %v11389_v4 = vld [vmem:[#allocation3 + $0x90] sm:$0xff] (!%p12783_p13)  ;;  %v11390_v11 = vld [vmem:[#allocation3 + $0x98] sm:$0xff] (!%p12783_p13) }
 0xc95   : > { %11352 = vst [vmem:[#allocation3 + $0x188] sm:$0xff] %v11288_v9  ;;  %11354 = vst [vmem:[#allocation3 + $0x198] sm:$0xff] %v11290_v30  ;;  %v11292_v28 = vadd.f32 %v11000_v44, %v9976_v47  ;;  %v11294_v40 = vadd.f32 %v11226_v19, %v9978_v24  ;;  %v11391_v53 = vld [vmem:[#allocation3 + $0xa0] sm:$0xff] (!%p12783_p13)  ;;  %v11392_v17 = vld [vmem:[#allocation3 + $0xa8] sm:$0xff] (!%p12783_p13) }
 0xc96   : > { %11355 = vst [vmem:[#allocation3 + $0x1a0] sm:$0xff] %v11291_v48  ;;  %11357 = vst [vmem:[#allocation3 + $0x1b0] sm:$0xff] %v11293_v45  ;;  %v11393_v26 = vld [vmem:[#allocation3 + $0xb0] sm:$0xff] (!%p12783_p13)  ;;  %v11394_v5 = vld [vmem:[#allocation3 + $0xb8] sm:$0xff] (!%p12783_p13) }
 0xc97   : > { %11356 = vst [vmem:[#allocation3 + $0x1a8] sm:$0xff] %v11292_v28  ;;  %11358 = vst [vmem:[#allocation3 + $0x1b8] sm:$0xff] %v11294_v40  ;;  %v11395_v23 = vld [vmem:[#allocation3 + $0xc0] sm:$0xff] (!%p12783_p13)  ;;  %v11396_v43 = vld [vmem:[#allocation3 + $0xc8] sm:$0xff] (!%p12783_p13) }
 0xc98   : > { %11443 = vst [vmem:[%s17299_s12 + $0x40] sm:$0xff] (!%p12783_p13), %v11379_v42  ;;  %11444 = vst [vmem:[%s17299_s12 + $0x48] sm:$0xff] (!%p12783_p13), %v11380_v41  ;;  %v11397_v31 = vld [vmem:[#allocation3 + $0xd0] sm:$0xff] (!%p12783_p13)  ;;  %v11398_v16 = vld [vmem:[#allocation3 + $0xd8] sm:$0xff] (!%p12783_p13) }
 0xc99   : > { %v11004_v20 = vpop.f32.mrb[60].mxu0  ;;  %v11230_v25 = vpop.f32.mrb[60].mxu1  ;;  %11370 = sbr.rel (%p12783_p13) target bundleno = 3256 (0xcb8), region = 156  ;;  %11445 = vst [vmem:[%s17299_s12 + $0x50] sm:$0xff] (!%p12783_p13), %v11381_v63  ;;  %11446 = vst [vmem:[%s17299_s12 + $0x58] sm:$0xff] (!%p12783_p13), %v11382_v61  ;;  %v11399_v47 = vld [vmem:[#allocation3 + $0xe0] sm:$0xff] (!%p12783_p13) }
 0xc9a   : > { %v11295_v21 = vadd.f32 %v11004_v20, %v9979_v55  ;;  %v11297_v46 = vadd.f32 %v11230_v25, %v9981_v7  ;;  %v11006_v54 = vpop.f32.mrb[61].mxu0  ;;  %v11232_v13 = vpop.f32.mrb[61].mxu1  ;;  %11447 = vst [vmem:[%s17299_s12 + $0x60] sm:$0xff] (!%p12783_p13), %v11383_v2  ;;  %11448 = vst [vmem:[%s17299_s12 + $0x68] sm:$0xff] (!%p12783_p13), %v11384_v50  ;;  %v11400_v24 = vld [vmem:[#allocation3 + $0xe8] sm:$0xff] (!%p12783_p13)  ;;  %v11401_v9 = vld [vmem:[#allocation3 + $0xf0] sm:$0xff] (!%p12783_p13) }
 0xc9b   : > { %v11296_v37 = vadd.f32 %v11006_v54, %v9980_v35  ;;  %v11298_v27 = vadd.f32 %v11232_v13, %v9982_v38  ;;  %v11008_v15 = vpop.f32.mrb[62].mxu0  ;;  %v11234_v56 = vpop.f32.mrb[62].mxu1  ;;  %11449 = vst [vmem:[%s17299_s12 + $0x70] sm:$0xff] (!%p12783_p13), %v11385_v62  ;;  %11450 = vst [vmem:[%s17299_s12 + $0x78] sm:$0xff] (!%p12783_p13), %v11386_v58  ;;  %v11402_v30 = vld [vmem:[#allocation3 + $0xf8] sm:$0xff] (!%p12783_p13)  ;;  %v11403_v3 = vld [vmem:[#allocation3 + $0x100] sm:$0xff] (!%p12783_p13) }
 0xc9c   : > { %11359 = vst [vmem:[#allocation3 + $0x1c0] sm:$0xff] %v11295_v21  ;;  %11361 = vst [vmem:[#allocation3 + $0x1d0] sm:$0xff] %v11297_v46  ;;  %v11299_v36 = vadd.f32 %v11008_v15, %v9983_v39  ;;  %v11301_v59 = vadd.f32 %v11234_v56, %v9985_v18  ;;  %v11010_v57 = vpop.f32.mrb[63].mxu0  ;;  %v11236_v0 = vpop.f32.mrb[63].mxu1  ;;  %v11404_v1 = vld [vmem:[#allocation3 + $0x108] sm:$0xff] (!%p12783_p13)  ;;  %v11405_v48 = vld [vmem:[#allocation3 + $0x110] sm:$0xff] (!%p12783_p13) }
 0xc9d   : > { %11360 = vst [vmem:[#allocation3 + $0x1c8] sm:$0xff] %v11296_v37  ;;  %11362 = vst [vmem:[#allocation3 + $0x1d8] sm:$0xff] %v11298_v27  ;;  %v11300_v10 = vadd.f32 %v11010_v57, %v9984_v49  ;;  %v11302_v12 = vadd.f32 %v11236_v0, %v9986_v60  ;;  %v11406_v45 = vld [vmem:[#allocation3 + $0x118] sm:$0xff] (!%p12783_p13)  ;;  %v11407_v44 = vld [vmem:[#allocation3 + $0x120] sm:$0xff] (!%p12783_p13) }
 0xc9e   : > { %11363 = vst [vmem:[#allocation3 + $0x1e0] sm:$0xff] %v11299_v36  ;;  %11365 = vst [vmem:[#allocation3 + $0x1f0] sm:$0xff] %v11301_v59  ;;  %v11408_v19 = vld [vmem:[#allocation3 + $0x128] sm:$0xff] (!%p12783_p13)  ;;  %v11409_v28 = vld [vmem:[#allocation3 + $0x130] sm:$0xff] (!%p12783_p13) }
 0xc9f   : > { %11364 = vst [vmem:[#allocation3 + $0x1e8] sm:$0xff] %v11300_v10  ;;  %11366 = vst [vmem:[#allocation3 + $0x1f8] sm:$0xff] %v11302_v12  ;;  %v11410_v40 = vld [vmem:[#allocation3 + $0x138] sm:$0xff] (!%p12783_p13)  ;;  %v11411_v55 = vld [vmem:[#allocation3 + $0x140] sm:$0xff] (!%p12783_p13) }
 0xca0   : > { %11451 = vst [vmem:[%s17299_s12 + $0x80] sm:$0xff] %v11387_v29  ;;  %11452 = vst [vmem:[%s17299_s12 + $0x88] sm:$0xff] %v11388_v51  ;;  %v11412_v7 = vld [vmem:[#allocation3 + $0x148] sm:$0xff]  ;;  %v11413_v35 = vld [vmem:[#allocation3 + $0x150] sm:$0xff] }
 0xca1   : > { %11453 = vst [vmem:[%s17299_s12 + $0x90] sm:$0xff] %v11389_v4  ;;  %11454 = vst [vmem:[%s17299_s12 + $0x98] sm:$0xff] %v11390_v11  ;;  %v11414_v38 = vld [vmem:[#allocation3 + $0x158] sm:$0xff]  ;;  %v11415_v20 = vld [vmem:[#allocation3 + $0x160] sm:$0xff] }
 0xca2   : > { %11455 = vst [vmem:[%s17299_s12 + $0xa0] sm:$0xff] %v11391_v53  ;;  %11456 = vst [vmem:[%s17299_s12 + $0xa8] sm:$0xff] %v11392_v17  ;;  %v11416_v25 = vld [vmem:[#allocation3 + $0x168] sm:$0xff]  ;;  %v11417_v39 = vld [vmem:[#allocation3 + $0x170] sm:$0xff] }
 0xca3   : > { %11457 = vst [vmem:[%s17299_s12 + $0xb0] sm:$0xff] %v11393_v26  ;;  %11458 = vst [vmem:[%s17299_s12 + $0xb8] sm:$0xff] %v11394_v5  ;;  %v11418_v18 = vld [vmem:[#allocation3 + $0x178] sm:$0xff]  ;;  %v11419_v21 = vld [vmem:[#allocation3 + $0x180] sm:$0xff] }
 0xca4   : > { %11459 = vst [vmem:[%s17299_s12 + $0xc0] sm:$0xff] %v11395_v23  ;;  %11460 = vst [vmem:[%s17299_s12 + $0xc8] sm:$0xff] %v11396_v43  ;;  %v11420_v46 = vld [vmem:[#allocation3 + $0x188] sm:$0xff]  ;;  %v11421_v54 = vld [vmem:[#allocation3 + $0x190] sm:$0xff] }
 0xca5   : > { %11461 = vst [vmem:[%s17299_s12 + $0xd0] sm:$0xff] %v11397_v31  ;;  %11462 = vst [vmem:[%s17299_s12 + $0xd8] sm:$0xff] %v11398_v16  ;;  %v11422_v13 = vld [vmem:[#allocation3 + $0x198] sm:$0xff]  ;;  %v11423_v49 = vld [vmem:[#allocation3 + $0x1a0] sm:$0xff] }
 0xca6   : > { %11463 = vst [vmem:[%s17299_s12 + $0xe0] sm:$0xff] %v11399_v47  ;;  %11464 = vst [vmem:[%s17299_s12 + $0xe8] sm:$0xff] %v11400_v24  ;;  %v11424_v60 = vld [vmem:[#allocation3 + $0x1a8] sm:$0xff]  ;;  %v11425_v37 = vld [vmem:[#allocation3 + $0x1b0] sm:$0xff] }
 0xca7   : > { %11465 = vst [vmem:[%s17299_s12 + $0xf0] sm:$0xff] %v11401_v9  ;;  %11466 = vst [vmem:[%s17299_s12 + $0xf8] sm:$0xff] %v11402_v30  ;;  %v11426_v27 = vld [vmem:[#allocation3 + $0x1b8] sm:$0xff]  ;;  %v11427_v15 = vld [vmem:[#allocation3 + $0x1c0] sm:$0xff] }
 0xca8   : > { %11467 = vst [vmem:[%s17299_s12 + $0x100] sm:$0xff] %v11403_v3  ;;  %11468 = vst [vmem:[%s17299_s12 + $0x108] sm:$0xff] %v11404_v1  ;;  %v11428_v56 = vld [vmem:[#allocation3 + $0x1c8] sm:$0xff]  ;;  %v11429_v36 = vld [vmem:[#allocation3 + $0x1d0] sm:$0xff] }
 0xca9   : > { %11469 = vst [vmem:[%s17299_s12 + $0x110] sm:$0xff] %v11405_v48  ;;  %11470 = vst [vmem:[%s17299_s12 + $0x118] sm:$0xff] %v11406_v45  ;;  %v11430_v59 = vld [vmem:[#allocation3 + $0x1d8] sm:$0xff]  ;;  %v11431_v57 = vld [vmem:[#allocation3 + $0x1e0] sm:$0xff] }
 0xcaa   : > { %11471 = vst [vmem:[%s17299_s12 + $0x120] sm:$0xff] %v11407_v44  ;;  %11472 = vst [vmem:[%s17299_s12 + $0x128] sm:$0xff] %v11408_v19  ;;  %v11432_v0 = vld [vmem:[#allocation3 + $0x1e8] sm:$0xff]  ;;  %v11433_v10 = vld [vmem:[#allocation3 + $0x1f0] sm:$0xff] }
 0xcab   : > { %11473 = vst [vmem:[%s17299_s12 + $0x130] sm:$0xff] %v11409_v28  ;;  %11474 = vst [vmem:[%s17299_s12 + $0x138] sm:$0xff] %v11410_v40  ;;  %v11434_v12 = vld [vmem:[#allocation3 + $0x1f8] sm:$0xff] }
 0xcac   : > { %11475 = vst [vmem:[%s17299_s12 + $0x140] sm:$0xff] %v11411_v55  ;;  %11476 = vst [vmem:[%s17299_s12 + $0x148] sm:$0xff] %v11412_v7 }
 0xcad   : > { %11477 = vst [vmem:[%s17299_s12 + $0x150] sm:$0xff] %v11413_v35  ;;  %11478 = vst [vmem:[%s17299_s12 + $0x158] sm:$0xff] %v11414_v38 }
 0xcae   : > { %11479 = vst [vmem:[%s17299_s12 + $0x160] sm:$0xff] %v11415_v20  ;;  %11480 = vst [vmem:[%s17299_s12 + $0x168] sm:$0xff] %v11416_v25 }
 0xcaf   : > { %11481 = vst [vmem:[%s17299_s12 + $0x170] sm:$0xff] %v11417_v39  ;;  %11482 = vst [vmem:[%s17299_s12 + $0x178] sm:$0xff] %v11418_v18 }
 0xcb0   : > { %11483 = vst [vmem:[%s17299_s12 + $0x180] sm:$0xff] %v11419_v21  ;;  %11484 = vst [vmem:[%s17299_s12 + $0x188] sm:$0xff] %v11420_v46 }
 0xcb1   : > { %11485 = vst [vmem:[%s17299_s12 + $0x190] sm:$0xff] %v11421_v54  ;;  %11486 = vst [vmem:[%s17299_s12 + $0x198] sm:$0xff] %v11422_v13 }
 0xcb2   : > { %11487 = vst [vmem:[%s17299_s12 + $0x1a0] sm:$0xff] %v11423_v49  ;;  %11488 = vst [vmem:[%s17299_s12 + $0x1a8] sm:$0xff] %v11424_v60 }
 0xcb3   : > { %11489 = vst [vmem:[%s17299_s12 + $0x1b0] sm:$0xff] %v11425_v37  ;;  %11490 = vst [vmem:[%s17299_s12 + $0x1b8] sm:$0xff] %v11426_v27 }
 0xcb4   : > { %11491 = vst [vmem:[%s17299_s12 + $0x1c0] sm:$0xff] %v11427_v15  ;;  %11492 = vst [vmem:[%s17299_s12 + $0x1c8] sm:$0xff] %v11428_v56 }
 0xcb5   : > { %11493 = vst [vmem:[%s17299_s12 + $0x1d0] sm:$0xff] %v11429_v36  ;;  %11494 = vst [vmem:[%s17299_s12 + $0x1d8] sm:$0xff] %v11430_v59 }
 0xcb6   : > { %11495 = vst [vmem:[%s17299_s12 + $0x1e0] sm:$0xff] %v11431_v57  ;;  %11496 = vst [vmem:[%s17299_s12 + $0x1e8] sm:$0xff] %v11432_v0 }
 0xcb7   : > { %11497 = vst [vmem:[%s17299_s12 + $0x1f0] sm:$0xff] %v11433_v10  ;;  %11498 = vst [vmem:[%s17299_s12 + $0x1f8] sm:$0xff] %v11434_v12 }
 0xcb8 PF: > { %s21921_s4 = sld [smem:[#allocation57_spill]]  ;;  %s21922_s8 = sld [smem:[#allocation58_spill]] }
 0xcb9   : > { %s11550_s1 = sshll.u32 %s17293_s2, 4  ;;  %s21923_s27 = sld [smem:[#allocation240_spill]]  ;;  %s20858_s1 = int_to_ptr.vmem [resolvable:$true] %s11550_s1 }
 0xcba   : > { %s11505_s14 = scalar_lea.sflag [#allocation32], %s17242_s24  ;;  %s16133_s17 = scalar_lea.vmem %s20858_s1, 4096 }
 0xcbb   : > { %p16134_p9 = scmp.ne.s32.totalorder %s20858_s1, %s16133_s17  ;;  %p21925_p10 = scmp.ne.s32.totalorder %s21450_s20, 0 }
 0xcbc   : > { %s16445_s13 = smov [#allocation31]  }
 0xcbd   : > { %p16135_p4 = pnand %p16134_p9, %p21925_p10 }
 0xcbe   : > { %s12909_s6 = sshll.u32 %s21921_s4, 6  ;;  %s12790_s3 = sshll.u32 %s21922_s8, 7 }
 0xcbf   : > { %s20846_s0 = sadd.s32 %s12909_s6, %s12790_s3  ;;  %s21924_s18 = smov %s21923_s27 }
 0xcc0   : > { %s20849_s9 = sshll.u32 %s20846_s0, 6  ;;  %p16136_p12 = pneg %p16135_p4 }
 0xcc1   : > { %s20856_s23 = scalar_lea.hbm %s21923_s27, %s20849_s9  ;;  %s16137_s4 = sshll.u32 %s16445_s13, 4  ;;  %s16138_s4 = int_to_ptr.vmem [resolvable:$false] %s16137_s4 }
 0xcc2   : > { %s16139_s2 = scalar_lea.vmem %s16138_s4, 8192  ;;  %p16140_p6 = scmp.lt.s32.totalorder %s20858_s1, %s16138_s4 }
 0xcc3   : > { %p16141_p11 = scmp.lt.s32.totalorder %s16139_s2, %s16133_s17 }
 0xcc5   : > { %p16142_p2 = por %p16141_p11, %p16140_p6 }
 0xcc7   : > { %p16143_p3 = pnand %p16142_p2, %p16136_p12 }
 0xcc9   : > { %16146 = shalt.err (!%p16143_p3)
}
 0xcca   : > { %s16147_s8 = scalar_lea.hbm %s20856_s23, 4096  ;;  %s16151_s30 = scalar_lea.hbm %s21924_s18, 16384 }
 0xccb   : > { %p16148_p8 = scmp.ne.s32.totalorder %s20856_s23, %s16147_s8  ;;  %p16152_p5 = scmp.lt.u32.totalorder %s20856_s23, %s21924_s18 }
 0xccc   : > { %p16153_p0 = scmp.lt.u32.totalorder %s16151_s30, %s16147_s8  ;;  %p16155_p9 = scmp.lt.u32.totalorder %s16147_s8, %s20856_s23 }
 0xccd   : > { %p16149_p7 = pnand %p16148_p8, %p21925_p10 }
 0xcce   : > { %p16154_p13 = por %p16153_p0, %p16152_p5 }
 0xccf   : > { %p16150_p1 = pneg %p16149_p7 }
 0xcd0   : > { %p16156_p4 = por %p16155_p9, %p16154_p13 }
 0xcd2   : > { %p16157_p12 = pnand %p16156_p4, %p16150_p1 }
 0xcd4   : > { %16160 = shalt.err (!%p16157_p12)
}
 0xcd5   : > { %s16446_s17 = smov 256   ;;  %s16447_s13 = smov 16  }
 0xcd6   : > { %14118 = dma.vmem_to_hbm [thread:$0]  (%p21925_p10), %s20858_s1, 4096, %s20856_s23, %s11505_s14, %s16446_s17, %s16446_s17, %s16447_s13  }
 0xcd7   : > { %s21926_s8 = sld [smem:[#allocation239_spill]]  ;;  %s11531_s3 = sshll.u32 %s17291_s11, 4  ;;  %s20900_s3 = int_to_ptr.vmem [resolvable:$true] %s11531_s3 }
 0xcd8   : > { %s21927_s27 = sld [smem:[#allocation241_spill]]  ;;  %s11569_s10 = sshll.u32 %s17295_s26, 4  ;;  %s20932_s10 = int_to_ptr.vmem [resolvable:$true] %s11569_s10 }
 0xcd9   : > { %s11500_s16 = scalar_lea.sflag [#allocation6], %s17229_s21  ;;  %s16161_s18 = scalar_lea.vmem %s20900_s3, 4096 }
 0xcda   : > { %p16162_p6 = scmp.ne.s32.totalorder %s20900_s3, %s16161_s18  ;;  %s16448_s1 = smov [#allocation30]  }
 0xcdb   : > { %s16165_s23 = sshll.u32 %s16448_s1, 4  ;;  %s16166_s23 = int_to_ptr.vmem [resolvable:$false] %s16165_s23 }
 0xcdc   : > { %p16163_p11 = pnand %p16162_p6, %p21925_p10  ;;  %s16167_s11 = scalar_lea.vmem %s16166_s23, 8192 }
 0xcdd   : > { %s20891_s6 = scalar_lea.hbm %s21926_s8, %s20849_s9  ;;  %p16168_p3 = scmp.lt.s32.totalorder %s20900_s3, %s16166_s23 }
 0xcde   : > { %s21928_s5 = smov %s21927_s27  ;;  %s20898_s7 = scalar_lea.hbm %s21927_s27, %s20849_s9 }
 0xcdf   : > { %p16164_p2 = pneg %p16163_p11  ;;  %p16169_p8 = scmp.lt.s32.totalorder %s16167_s11, %s16161_s18 }
 0xce1   : > { %p16170_p7 = por %p16169_p8, %p16168_p3 }
 0xce3   : > { %p16171_p1 = pnand %p16170_p7, %p16164_p2 }
 0xce5   : > { %16174 = shalt.err (!%p16171_p1)
}
 0xce6   : > { %s16175_s9 = scalar_lea.hbm %s20891_s6, 4096  ;;  %s16179_s30 = scalar_lea.hbm %s21926_s8, 16384 }
 0xce7   : > { %p16176_p5 = scmp.ne.s32.totalorder %s20891_s6, %s16175_s9  ;;  %p16180_p9 = scmp.lt.u32.totalorder %s20891_s6, %s21926_s8 }
 0xce8   : > { %p16181_p4 = scmp.lt.u32.totalorder %s16179_s30, %s16175_s9  ;;  %p16183_p6 = scmp.lt.u32.totalorder %s16175_s9, %s20891_s6 }
 0xce9   : > { %p16177_p0 = pnand %p16176_p5, %p21925_p10 }
 0xcea   : > { %p16182_p12 = por %p16181_p4, %p16180_p9 }
 0xceb   : > { %p16178_p13 = pneg %p16177_p0 }
 0xcec   : > { %p16184_p11 = por %p16183_p6, %p16182_p12 }
 0xcee   : > { %p16185_p2 = pnand %p16184_p11, %p16178_p13 }
 0xcf0   : > { %16188 = shalt.err (!%p16185_p2)
}
 0xcf1   : > { %14117 = dma.vmem_to_hbm [thread:$0]  (%p21925_p10), %s20900_s3, 4096, %s20891_s6, %s11500_s16, %s16446_s17, %s16446_s17, %s16447_s13  }
 0xcf2   : > { %s16189_s18 = scalar_lea.vmem %s20932_s10, 4096  ;;  %s16449_s1 = smov [#allocation33]  }
 0xcf3   : > { %p16190_p3 = scmp.ne.s32.totalorder %s20932_s10, %s16189_s18  ;;  %s16193_s23 = sshll.u32 %s16449_s1, 4  ;;  %s16194_s23 = int_to_ptr.vmem [resolvable:$false] %s16193_s23 }
 0xcf4   : > { %s16195_s11 = scalar_lea.vmem %s16194_s23, 8192  ;;  %p16196_p1 = scmp.lt.s32.totalorder %s20932_s10, %s16194_s23 }
 0xcf5   : > { %p16191_p8 = pnand %p16190_p3, %p21925_p10  ;;  %p16197_p5 = scmp.lt.s32.totalorder %s16195_s11, %s16189_s18 }
 0xcf7   : > { %p16192_p7 = pneg %p16191_p8  ;;  %p16198_p0 = por %p16197_p5, %p16196_p1 }
 0xcf9   : > { %p16199_p13 = pnand %p16198_p0, %p16192_p7 }
 0xcfb   : > { %16202 = shalt.err (!%p16199_p13)
}
 0xcfc   : > { %s16203_s16 = scalar_lea.hbm %s20898_s7, 4096  ;;  %s16207_s3 = scalar_lea.hbm %s21928_s5, 16384 }
 0xcfd   : > { %p16204_p9 = scmp.ne.s32.totalorder %s20898_s7, %s16203_s16  ;;  %p16208_p6 = scmp.lt.u32.totalorder %s20898_s7, %s21928_s5 }
 0xcfe   : > { %p16209_p11 = scmp.lt.u32.totalorder %s16207_s3, %s16203_s16  ;;  %p16211_p3 = scmp.lt.u32.totalorder %s16203_s16, %s20898_s7 }
 0xcff   : > { %p16205_p4 = pnand %p16204_p9, %p21925_p10 }
 0xd00   : > { %p16210_p2 = por %p16209_p11, %p16208_p6 }
 0xd01   : > { %p16206_p12 = pneg %p16205_p4 }
 0xd02   : > { %p16212_p8 = por %p16211_p3, %p16210_p2 }
 0xd04   : > { %p16213_p7 = pnand %p16212_p8, %p16206_p12 }
 0xd06   : > { %16216 = shalt.err (!%p16213_p7)
}
 0xd07   : > { %14119 = dma.vmem_to_hbm [thread:$0]  (%p21925_p10), %s20932_s10, 4096, %s20898_s7, %s11505_s14, %s16446_s17, %s16446_s17, %s16447_s13  }
 0xd08   : > { %s12803_s2 = sshll.u32 %s20846_s0, 7  ;;  %s11588_s30 = sshll.u32 %s17299_s12, 4  ;;  %s20967_s30 = int_to_ptr.vmem [resolvable:$true] %s11588_s30 }
 0xd09   : > { %s21929_s18 = sld [smem:[#allocation242_spill]]  ;;  %s11515_s24 = scalar_lea.sflag [#allocation35], %s17229_s21 }
 0xd0a   : > { %s16217_s23 = scalar_lea.vmem %s20967_s30, 8192  ;;  %s16450_s11 = smov [#allocation34]  }
 0xd0b   : > { %p16218_p1 = scmp.ne.s32.totalorder %s20967_s30, %s16217_s23  ;;  %s16221_s7 = sshll.u32 %s16450_s11, 4  ;;  %s16222_s7 = int_to_ptr.vmem [resolvable:$false] %s16221_s7 }
 0xd0c   : > { %s16223_s10 = scalar_lea.vmem %s16222_s7, 16384  ;;  %p16224_p13 = scmp.lt.s32.totalorder %s20967_s30, %s16222_s7 }
 0xd0d   : > { %p16219_p5 = pnand %p16218_p1, %p21925_p10  ;;  %p16225_p9 = scmp.lt.s32.totalorder %s16223_s10, %s16217_s23 }
 0xd0f   : > { %s20965_s1 = scalar_lea.hbm %s21929_s18, %s12803_s2  ;;  %p16220_p0 = pneg %p16219_p5 }
 0xd10   : > { %p16226_p4 = por %p16225_p9, %p16224_p13 }
 0xd12   : > { %p16227_p12 = pnand %p16226_p4, %p16220_p0 }
 0xd14   : > { %16230 = shalt.err (!%p16227_p12)
}
 0xd15   : > { %s16231_s12 = scalar_lea.hbm %s20965_s1, 8192  ;;  %s16235_s17 = scalar_lea.hbm %s21929_s18, 32768 }
 0xd16   : > { %p16232_p6 = scmp.ne.s32.totalorder %s20965_s1, %s16231_s12  ;;  %p16236_p3 = scmp.lt.u32.totalorder %s20965_s1, %s21929_s18 }
 0xd17   : > { %p16237_p8 = scmp.lt.u32.totalorder %s16235_s17, %s16231_s12  ;;  %p16239_p1 = scmp.lt.u32.totalorder %s16231_s12, %s20965_s1 }
 0xd18   : > { %p16233_p11 = pnand %p16232_p6, %p21925_p10 }
 0xd19   : > { %p16238_p7 = por %p16237_p8, %p16236_p3 }
 0xd1a   : > { %p16234_p2 = pneg %p16233_p11 }
 0xd1b   : > { %p16240_p5 = por %p16239_p1, %p16238_p7 }
 0xd1d   : > { %p16241_p0 = pnand %p16240_p5, %p16234_p2 }
 0xd1f   : > { %16244 = shalt.err (!%p16241_p0)
}
 0xd20   : > { %s16451_s26 = smov 512   ;;  %s16452_s6 = smov 32  }
 0xd21   : > { %14120 = dma.vmem_to_hbm [thread:$0]  (%p21925_p10), %s20967_s30, 8192, %s20965_s1, %s11515_s24, %s16451_s26, %s16451_s26, %s16452_s6  }
 0xd22 PF: > { %s21930_s3 = sld [smem:[#allocation53_spill]]  ;;  %p14209_p13 = scmp.ge.s32.totalorder %s16419_s19, 2 }
 0xd23   : > { %p21931_p9 = scmp.ne.s32.totalorder %s21451_s22, 0 }
 0xd25   : > { %p14176_p4 = pnand %p14209_p13, %p21931_p9 }
 0xd28   : > { %s11603_s9 = sand.u32 1, %s21930_s3  }
 0xd29   : > { %s11604_s4 = scalar_lea.sflag [#allocation6], %s11603_s9 }
 0xd2a   : > { %16346 = dma.done.wait (!%p14176_p4), %s11604_s4, 4096  }
 0xd2b   : > { %16348 = vsyncadd (!%p14176_p4), %s11604_s4, 4294963200  ;;  %s21932_s2 = sadd.s32 4294967294, %s16419_s19  }
 0xd2c   : > { %s11612_s15 = sand.u32 1, %s21932_s2  }
 0xd2d   : > { %s11613_s27 = scalar_lea.sflag [#allocation32], %s11612_s15 }
 0xd2e   : > { %16350 = dma.done.wait (!%p14176_p4), %s11613_s27, 8192  }
 0xd2f   : > { %16352 = vsyncadd (!%p14176_p4), %s11613_s27, 4294959104  ;;  %s11631_s20 = scalar_lea.sflag [#allocation35], %s11603_s9 }
 0xd30   : > { %16354 = dma.done.wait (!%p14176_p4), %s11631_s20, 8192  }
 0xd31   : > { %16356 = vsyncadd (!%p14176_p4), %s11631_s20, 4294959104  ;;  %s56_s19 = sadd.s32 1, %s16419_s19   ;;  %s21934_s0 = sld [smem:[#allocation49_spill]] }
 0xd32   : > { %p21000_p10 = scmp.ge.s32.totalorder %s56_s19, 18   ;;  %s21935_s30 = sld [smem:[#allocation50_spill]] }
 0xd33   : > { %s21936_s20 = sld [smem:[#allocation64_spill]]  ;;  %s21938_s1 = sld [smem:[#allocation52_spill]] }
 0xd34   : > { %s21937_s22 = sld [smem:[#allocation51_spill]]  ;;  %s21939_s24 = sld [smem:[#allocation65_spill]] }
 0xd35   : > { %s21940_s2 = sld [smem:[#allocation54_spill]]  ;;  %s21941_s23 = sld [smem:[#allocation55_spill]] }
 0xd36   : > { %s21942_s11 = sld [smem:[#allocation59_spill]]  ;;  %s21943_s27 = sld [smem:[#allocation61_spill]] }
 0xd37   : > { %s21944_s7 = sld [smem:[#allocation62_spill]]  ;;  %s21945_s10 = sld [smem:[#allocation63_spill]] }
 0xd38   : > { %s21951_s3 = smov %s16411_s28  ;;  %s21952_s26 = smov %s16415_s29 }
 0xd39   :  { %55 = sbr.rel (!%p21000_p10) target bundleno = 47 (0x2f), region = 287 }
 0xd3a   : > { %s21947_s21 = smov %s21937_s22  ;;  %s21948_s22 = smov %s21939_s24 }
 0xd3b   : > { %s21949_s24 = smov %s17061_s25 }
 0xd3c   : > { %s21950_s25 = smov %s21942_s11 }
 0xd3d   : > { %s21953_s28 = smov %s21944_s7  ;;  %s21954_s29 = smov %s21945_s10 }
 0xd40   :  { %11636 = vsyncpa [#allocation5], 1 }
 0xd41   :  { %11638 = vsyncpa [#allocation5 + $0x1], 1 }
 0xd42   :  { %11639 = vsyncpa [#allocation8], 1 }
 0xd43   :  { %11641 = vsyncpa [#allocation8 + $0x1], 1 }
 0xd44   :  { %11642 = vsyncpa [#allocation11], 1 }
 0xd45   :  { %11643 = vsyncpa [#allocation14], 1 }
 0xd46   :  { %11644 = vsyncpa [#allocation17], 1 }
 0xd47   :  { %11645 = vsyncpa [#allocation20], 1 }
 0xd48   :  { %11646 = vsyncpa [#allocation23], 1 }
 0xd49   :  { %11647 = vsyncpa [#allocation26], 1 }
 0xd4a   :  { %11649 = vsyncpa [#allocation26 + $0x1], 1 }
 0xd4b   :  { %11650 = vsyncpa [#allocation29], 1 }
 0xd4c   :  { %11652 = vsyncpa [#allocation29 + $0x1], 1 }
 0xd4d   :  { %11653 = vsyncpa [#allocation6], 1 }
 0xd4e   :  { %11655 = vsyncpa [#allocation6 + $0x1], 1 }
 0xd4f   :  { %11656 = vsyncpa [#allocation32], 1 }
 0xd50   :  { %11658 = vsyncpa [#allocation32 + $0x1], 1 }
 0xd51   :  { %11659 = vsyncpa [#allocation35], 1 }
 0xd52   :  { %11661 = vsyncpa [#allocation35 + $0x1], 1 }

</bundles_post_ra>
